<compile_context>
chip_gen: v6e
topology: v6e:2x2x1
jax: 0.10.0
libtpu: 0.0.40
codegen_flags: <defaults>
</compile_context>

<pallas_src>
import jax
import jax.numpy as jnp
from jax import lax
from jax.experimental import pallas as pl
from jax.experimental.pallas import tpu as pltpu

BN_EPS = 1e-5
LEAKY_SLOPE = 0.2
OFFSETS = tuple((dh, dw) for dh in (-1, 0, 1) for dw in (-1, 0, 1))


def _decode_hw(p_i, H, W):
    """(h, w) spatial indices from flattened p = (b*H + h)*W + w, per sublane.

    Avoids vector integer div/mod (not relied upon by the VPU lowering):
    power-of-two H/W use shifts & masks; otherwise an f32 floor-divide that is
    exact for the moderate P this whole-resident kernel targets."""
    if (W & (W - 1)) == 0 and (H & (H - 1)) == 0:
        w_i = p_i & (W - 1)
        h_i = (p_i >> (W.bit_length() - 1)) & (H - 1)
        return h_i, w_i
    pf = p_i.astype(jnp.float32)
    row = jnp.floor((pf + 0.5) * (1.0 / W)).astype(jnp.int32)
    w_i = p_i - W * row
    rowf = row.astype(jnp.float32)
    h_i = row - H * jnp.floor((rowf + 0.5) * (1.0 / H)).astype(jnp.int32)
    return h_i, w_i


# ---------------------------------------------------------------------------
# Fused Pallas kernel: conv1(1x1) -> BN -> LReLU -> conv2(3x3) -> BN -> LReLU
#                      -> conv3(1x1) -> tanh, all resident in VMEM.
# ---------------------------------------------------------------------------
def _fused_gin_call(x_col, params_k, B, H, W, C):
    P = B * H * W
    PADR = ((W + 1 + 7) // 8) * 8     # row padding (>= max |shift| = W+1, 8-aligned)
    K2 = 9 * C                        # im2col contraction depth (144 for C=16)

    def kernel(x_ref, w1_ref, g1_ref, be1_ref, w2c_ref, g2_ref, be2_ref,
               w3_ref, b3_ref, o_ref, zp_ref, slab_ref):

        def bn_lrelu(y, gamma, beta):
            # BatchNorm2d, training mode: per-channel mean / biased variance
            # over the N*H*W (= row) axis; gamma folded into the rsqrt scale.
            mean = jnp.mean(y, axis=0, keepdims=True)
            d = y - mean
            var = jnp.mean(d * d, axis=0, keepdims=True)
            yhat = d * (gamma * lax.rsqrt(var + BN_EPS)) + beta
            return jnp.maximum(yhat, LEAKY_SLOPE * yhat)     # LeakyReLU(0.2)

        # ---- Layer 1: 1x1 conv with Cin=1 -> broadcast multiply on the VPU.
        #      Conv bias skipped: exactly cancelled by BN mean subtraction.
        a1 = bn_lrelu(x_ref[...] * w1_ref[...], g1_ref[...], be1_ref[...])

        # ---- Stage a1 into a row-padded VMEM scratch.  Only the two pad
        #      bands are zeroed (masks already cover every pad-region read).
        zp_ref[pl.ds(0, PADR), :] = jnp.zeros((PADR, C), jnp.float32)
        zp_ref[pl.ds(PADR + P, PADR), :] = jnp.zeros((PADR, C), jnp.float32)
        zp_ref[pl.ds(PADR, P), :] = a1

        # ---- Border masks from in-kernel iota (no h/w index DMAs), hoisted
        #      out of the shift loop.
        p_i = lax.broadcasted_iota(jnp.int32, (P, 1), 0)
        h_i, w_i = _decode_hw(p_i, H, W)
        h_lo, h_hi = h_i > 0, h_i < H - 1
        w_lo, w_hi = w_i > 0, w_i < W - 1

        # ---- Layer 2: 3x3 SAME conv as ONE fused im2col matmul:
        #      9 masked shifted patches -> (P, 144) bf16 slab -> single MXU dot.
        for j, (dh, dw) in enumerate(OFFSETS):
            patch = zp_ref[pl.ds(PADR + dh * W + dw, P), :]
            conds = []
            if dh < 0:
                conds.append(h_lo)
            if dh > 0:
                conds.append(h_hi)
            if dw < 0:
                conds.append(w_lo)
            if dw > 0:
                conds.append(w_hi)
            if conds:
                valid = conds[0]
                for cnd in conds[1:]:
                    valid = jnp.logical_and(valid, cnd)
                patch = jnp.where(valid, patch, 0.0)
            slab_ref[:, j * C:(j + 1) * C] = patch.astype(jnp.bfloat16)

        conv2 = jnp.dot(slab_ref[...], w2c_ref[...],
                        preferred_element_type=jnp.float32)    # (P, C) f32 acc
        a2 = bn_lrelu(conv2, g2_ref[...], be2_ref[...])

        # ---- Layer 3: 1x1 conv to Cout=1 as a transposed matmul producing a
        #      lane-dense (1, P) row (w3 is zero-padded to 8 rows for a clean
        #      MXU M dimension), + bias, tanh.
        z8 = lax.dot_general(w3_ref[...], a2,
                             dimension_numbers=(((1,), (1,)), ((), ())),
                             preferred_element_type=jnp.float32)   # (8, P)
        o_ref[...] = jnp.tanh(z8[0:1, :] + b3_ref[...])

    vmem = pl.BlockSpec(memory_space=pltpu.MemorySpace.VMEM)
    return pl.pallas_call(
        kernel,
        out_shape=jax.ShapeDtypeStruct((1, P), jnp.float32),
        in_specs=[vmem] * 9,
        out_specs=vmem,
        scratch_shapes=[pltpu.VMEM((P + 2 * PADR, C), jnp.float32),   # zp stage
                        pltpu.VMEM((P, K2), jnp.bfloat16)],           # im2col slab
    )(x_col,
      params_k["w1"], params_k["gamma1"], params_k["beta1"],
      params_k["w2cat"], params_k["gamma2"], params_k["beta2"],
      params_k["w3pad"], params_k["b3"])


# ---------------------------------------------------------------------------
# Public forward (jitted).
# ---------------------------------------------------------------------------
@jax.jit
def learnable_gin_forward(x_nchw, params):
    """x_nchw: (B, 1, H, W) float32 -> (B, 1, H, W) float32."""
    B, c_in, H, W = x_nchw.shape
    assert c_in == 1, "fused kernel specialises the module default in_channels=1"
    C = params["w1"].shape[1]
    P = B * H * W

    # TODO(synk): x stays a (P,1) column; a lane-dense feed needs an in-kernel
    # lane->sublane relayout whose cost outweighs the tiny load at these shapes.
    x_col = x_nchw.reshape(P, 1).astype(jnp.float32)

    params_k = {
        "w1": params["w1"], "gamma1": params["gamma1"], "beta1": params["beta1"],
        # layer-2 weights concatenated along the im2col K axis, bf16 operands
        "w2cat": params["w2"].reshape(9 * C, C).astype(jnp.bfloat16),
        "gamma2": params["gamma2"], "beta2": params["beta2"],
        # layer-3 weight zero-padded to 8 rows (MXU-friendly M dimension)
        "w3pad": jnp.zeros((8, C), jnp.float32).at[0:1, :].set(params["w3"]),
        "b3": params["b3"],
    }

    out_row = _fused_gin_call(x_col, params_k, B, H, W, C)     # (1, P) lane-dense
    # Cout = in_channels = 1, so row-major P == NCHW flattening: pure reshape.
    return out_row.reshape(B, 1, H, W)


# ---------------------------------------------------------------------------
# Parameter init (matches PyTorch Conv2d default: uniform(+-1/sqrt(fan_in)),
# BatchNorm gamma=1 / beta=0).  Weights stored in matmul-friendly layouts.
# ---------------------------------------------------------------------------
def init_params(key, in_channels=1, num_channels=16):
    assert in_channels == 1
    C = num_channels

    def conv_init(k, ksize, c_in, c_out):
        fan_in = ksize * ksize * c_in
        bound = float(fan_in) ** -0.5
        wk, bk = jax.random.split(k)
        w = jax.random.uniform(wk, (ksize, ksize, c_in, c_out),
                               minval=-bound, maxval=bound, dtype=jnp.float32)
        b = jax.random.uniform(bk, (c_out,),
                               minval=-bound, maxval=bound, dtype=jnp.float32)
        return w, b

    k1, k2, k3 = jax.random.split(key, 3)
    w1, b1 = conv_init(k1, 1, 1, C)      # layer 1: 1x1, 1  -> C
    w2, b2 = conv_init(k2, 3, C, C)      # layer 2: 3x3, C  -> C (SAME)
    w3, b3 = conv_init(k3, 1, C, 1)      # layer 3: 1x1, C  -> 1 (final)

    return {
        "w1": w1.reshape(1, C),
        "b1": b1.reshape(1, C),          # not fed to kernel (cancelled by BN)
        "gamma1": jnp.ones((1, C), jnp.float32),
        "beta1": jnp.zeros((1, C), jnp.float32),
        "w2": w2.reshape(9, C, C),       # index = kh*3 + kw -> (Cin, Cout)
        "b2": b2.reshape(1, C),          # not fed to kernel (cancelled by BN)
        "gamma2": jnp.ones((1, C), jnp.float32),
        "beta2": jnp.zeros((1, C), jnp.float32),
        "w3": w3.reshape(1, C),
        "b3": b3.reshape(1, 1),
    }


# ---------------------------------------------------------------------------
# Plain-JAX reference of the PyTorch forward (training-mode BatchNorm),
# INCLUDING the conv biases the kernel omits (they cancel under BN).  Layer-2
# uses bf16 operands / f32 accumulation, matching the kernel's MXU path.
# ---------------------------------------------------------------------------
def reference_forward(x_nchw, params):
    B, _, H, W = x_nchw.shape
    C = params["w1"].shape[1]
    x = x_nchw.reshape(B, H, W, 1).astype(jnp.float32)

    def bn_lrelu(y, gamma, beta):
        mean = jnp.mean(y, axis=(0, 1, 2), keepdims=True)
        var = jnp.mean((y - mean) ** 2, axis=(0, 1, 2), keepdims=True)
        yh = ((y - mean) * lax.rsqrt(var + BN_EPS)
              * gamma.reshape(1, 1, 1, C) + beta.reshape(1, 1, 1, C))
        return jnp.where(yh >= 0, yh, LEAKY_SLOPE * yh)

    y1 = x * params["w1"].reshape(1, 1, 1, C) + params["b1"].reshape(1, 1, 1, C)
    a1 = bn_lrelu(y1, params["gamma1"], params["beta1"])

    a1p = jnp.pad(a1, ((0, 0), (1, 1), (1, 1), (0, 0))).astype(jnp.bfloat16)
    w2b = params["w2"].astype(jnp.bfloat16)
    y2 = jnp.zeros((B, H, W, C), jnp.float32)
    for kh in range(3):
        for kw in range(3):
            y2 = y2 + jnp.einsum("bhwc,cd->bhwd",
                                 a1p[:, kh:kh + H, kw:kw + W, :],
                                 w2b[kh * 3 + kw],
                                 preferred_element_type=jnp.float32)
    y2 = y2 + params["b2"].reshape(1, 1, 1, C)
    a2 = bn_lrelu(y2, params["gamma2"], params["beta2"])

    z = (jnp.einsum("bhwc,c->bhw", a2, params["w3"].reshape(C),
                    preferred_element_type=jnp.float32)
         + params["b3"].reshape(()))
    return jnp.tanh(z).reshape(B, 1, H, W)


if __name__ == "__main__":
    key = jax.random.PRNGKey(0)
    key, xkey, pkey = jax.random.split(key, 3)

    # Small shapes consistent with LearnableGIN(in_channels=1): (B=2, C=1, 16, 16)
    x = jax.random.normal(xkey, (2, 1, 16, 16), dtype=jnp.float32)
    params = init_params(pkey, in_channels=1, num_channels=16)

    out = jax.block_until_ready(learnable_gin_forward(x, params))

    assert out.shape == (2, 1, 16, 16), out.shape
    assert bool(jnp.all(jnp.isfinite(out)))
    assert bool(jnp.all(jnp.abs(out) <= 1.0 + 1e-6))       # tanh output range

    ref = jax.block_until_ready(reference_forward(x, params))
    max_err = float(jnp.max(jnp.abs(out - ref)))
    # Tolerance leaves room for MXU bf16 accumulation-order / f32 multi-pass
    # differences while still catching structural errors (wrong shifts / masks /
    # BN statistics).
    assert max_err < 3e-2, f"max |pallas - reference| = {max_err}"

    print("KERNEL_OK")
</pallas_src>

<mosaic_0001>
module attributes {stable_mosaic.version = 11 : i64} {
  func.func @kernel(%arg0: memref<512x1xf32, #tpu.memory_space<vmem>>, %arg1: memref<1x16xf32, #tpu.memory_space<vmem>>, %arg2: memref<1x16xf32, #tpu.memory_space<vmem>>, %arg3: memref<1x16xf32, #tpu.memory_space<vmem>>, %arg4: memref<144x16xbf16, #tpu.memory_space<vmem>>, %arg5: memref<1x16xf32, #tpu.memory_space<vmem>>, %arg6: memref<1x16xf32, #tpu.memory_space<vmem>>, %arg7: memref<8x16xf32, #tpu.memory_space<vmem>>, %arg8: memref<1x1xf32, #tpu.memory_space<vmem>>, %arg9: memref<1x512xf32, #tpu.memory_space<vmem>>, %arg10: memref<560x16xf32, #tpu.memory_space<vmem>>, %arg11: memref<512x144xbf16, #tpu.memory_space<vmem>>) attributes {dimension_semantics = [], scalar_prefetch = 0 : i64, scratch_operands = 2 : i64, tpu.core_type = #tpu.core_type<tc>} {
    %c0 = arith.constant 0 : index
    %c0_0 = arith.constant 0 : index
    %0 = vector.load %arg0[%c0, %c0_0] : memref<512x1xf32, #tpu.memory_space<vmem>>, vector<512x1xf32>
    %c0_1 = arith.constant 0 : index
    %c0_2 = arith.constant 0 : index
    %1 = vector.load %arg1[%c0_1, %c0_2] : memref<1x16xf32, #tpu.memory_space<vmem>>, vector<1x16xf32>
    %2 = vector.broadcast %0 : vector<512x1xf32> to vector<512x16xf32>
    %3 = vector.broadcast %1 : vector<1x16xf32> to vector<512x16xf32>
    %4 = arith.mulf %2, %3 : vector<512x16xf32>
    %c0_3 = arith.constant 0 : index
    %c0_4 = arith.constant 0 : index
    %5 = vector.load %arg2[%c0_3, %c0_4] : memref<1x16xf32, #tpu.memory_space<vmem>>, vector<1x16xf32>
    %c0_5 = arith.constant 0 : index
    %c0_6 = arith.constant 0 : index
    %6 = vector.load %arg3[%c0_5, %c0_6] : memref<1x16xf32, #tpu.memory_space<vmem>>, vector<1x16xf32>
    %cst = arith.constant dense<0.000000e+00> : vector<16xf32>
    %7 = vector.multi_reduction <add>, %4, %cst [0] : vector<512x16xf32> to vector<16xf32>
    %8 = vector.shape_cast %7 : vector<16xf32> to vector<1x16xf32>
    %cst_7 = arith.constant 5.120000e+02 : f32
    %9 = vector.broadcast %cst_7 : f32 to vector<1x16xf32>
    %10 = arith.divf %8, %9 : vector<1x16xf32>
    %11 = vector.broadcast %10 : vector<1x16xf32> to vector<512x16xf32>
    %12 = arith.subf %4, %11 : vector<512x16xf32>
    %13 = arith.mulf %12, %12 : vector<512x16xf32>
    %cst_8 = arith.constant dense<0.000000e+00> : vector<16xf32>
    %14 = vector.multi_reduction <add>, %13, %cst_8 [0] : vector<512x16xf32> to vector<16xf32>
    %15 = vector.shape_cast %14 : vector<16xf32> to vector<1x16xf32>
    %cst_9 = arith.constant 5.120000e+02 : f32
    %16 = vector.broadcast %cst_9 : f32 to vector<1x16xf32>
    %17 = arith.divf %15, %16 : vector<1x16xf32>
    %cst_10 = arith.constant 9.99999974E-6 : f32
    %18 = vector.broadcast %cst_10 : f32 to vector<1x16xf32>
    %19 = arith.addf %17, %18 : vector<1x16xf32>
    %20 = math.rsqrt %19 : vector<1x16xf32>
    %21 = arith.mulf %5, %20 : vector<1x16xf32>
    %22 = vector.broadcast %21 : vector<1x16xf32> to vector<512x16xf32>
    %23 = arith.mulf %12, %22 : vector<512x16xf32>
    %24 = vector.broadcast %6 : vector<1x16xf32> to vector<512x16xf32>
    %25 = arith.addf %23, %24 : vector<512x16xf32>
    %cst_11 = arith.constant 2.000000e-01 : f32
    %26 = vector.broadcast %cst_11 : f32 to vector<512x16xf32>
    %27 = arith.mulf %26, %25 : vector<512x16xf32>
    %28 = arith.maximumf %25, %27 : vector<512x16xf32>
    %cst_12 = arith.constant 0.000000e+00 : f32
    %29 = vector.broadcast %cst_12 : f32 to vector<24x16xf32>
    %c0_13 = arith.constant 0 : index
    %c0_14 = arith.constant 0 : index
    %30 = vector.load %arg10[%c0_13, %c0_14] : memref<560x16xf32, #tpu.memory_space<vmem>>, vector<24x16xf32>
    tpu.vector_store %arg10[%c0_13, %c0_14], %29 {strides = array<i32>} : memref<560x16xf32, #tpu.memory_space<vmem>>, vector<24x16xf32>,
    %cst_15 = arith.constant 0.000000e+00 : f32
    %31 = vector.broadcast %cst_15 : f32 to vector<24x16xf32>
    %c536 = arith.constant 536 : index
    %c0_16 = arith.constant 0 : index
    %32 = vector.load %arg10[%c536, %c0_16] : memref<560x16xf32, #tpu.memory_space<vmem>>, vector<24x16xf32>
    tpu.vector_store %arg10[%c536, %c0_16], %31 {strides = array<i32>} : memref<560x16xf32, #tpu.memory_space<vmem>>, vector<24x16xf32>,
    %c24 = arith.constant 24 : index
    %c0_17 = arith.constant 0 : index
    %33 = vector.load %arg10[%c24, %c0_17] : memref<560x16xf32, #tpu.memory_space<vmem>>, vector<512x16xf32>
    tpu.vector_store %arg10[%c24, %c0_17], %28 {strides = array<i32>} : memref<560x16xf32, #tpu.memory_space<vmem>>, vector<512x16xf32>,
    %34 = tpu.iota {dimensions = array<i32: 0>} : vector<512x1xi32>
    %c15_i32 = arith.constant 15 : i32
    %35 = vector.broadcast %c15_i32 : i32 to vector<512x1xi32>
    %36 = arith.andi %34, %35 : vector<512x1xi32>
    %c4_i32 = arith.constant 4 : i32
    %37 = vector.broadcast %c4_i32 : i32 to vector<512x1xi32>
    %38 = arith.shrsi %34, %37 : vector<512x1xi32>
    %c15_i32_18 = arith.constant 15 : i32
    %39 = vector.broadcast %c15_i32_18 : i32 to vector<512x1xi32>
    %40 = arith.andi %38, %39 : vector<512x1xi32>
    %c0_i32 = arith.constant 0 : i32
    %41 = vector.broadcast %c0_i32 : i32 to vector<512x1xi32>
    %42 = arith.cmpi sgt, %40, %41 : vector<512x1xi32>
    %c15_i32_19 = arith.constant 15 : i32
    %43 = vector.broadcast %c15_i32_19 : i32 to vector<512x1xi32>
    %44 = arith.cmpi slt, %40, %43 : vector<512x1xi32>
    %c0_i32_20 = arith.constant 0 : i32
    %45 = vector.broadcast %c0_i32_20 : i32 to vector<512x1xi32>
    %46 = arith.cmpi sgt, %36, %45 : vector<512x1xi32>
    %c15_i32_21 = arith.constant 15 : i32
    %47 = vector.broadcast %c15_i32_21 : i32 to vector<512x1xi32>
    %48 = arith.cmpi slt, %36, %47 : vector<512x1xi32>
    %c7 = arith.constant 7 : index
    %c0_22 = arith.constant 0 : index
    %49 = vector.load %arg10[%c7, %c0_22] : memref<560x16xf32, #tpu.memory_space<vmem>>, vector<512x16xf32>
    %50 = arith.andi %42, %46 : vector<512x1xi1>
    %cst_23 = arith.constant 0.000000e+00 : f32
    %51 = vector.shape_cast %50 : vector<512x1xi1> to vector<512x1xi1>
    %52 = vector.broadcast %51 : vector<512x1xi1> to vector<512x16xi1>
    %53 = vector.broadcast %cst_23 : f32 to vector<512x16xf32>
    %54 = arith.select %52, %49, %53 : vector<512x16xi1>, vector<512x16xf32>
    %55 = arith.truncf %54 : vector<512x16xf32> to vector<512x16xbf16>
    %c0_24 = arith.constant 0 : index
    %c0_25 = arith.constant 0 : index
    %56 = vector.load %arg11[%c0_24, %c0_25] : memref<512x144xbf16, #tpu.memory_space<vmem>>, vector<512x16xbf16>
    tpu.vector_store %arg11[%c0_24, %c0_25], %55 {strides = array<i32>} : memref<512x144xbf16, #tpu.memory_space<vmem>>, vector<512x16xbf16>,
    %c8 = arith.constant 8 : index
    %c0_26 = arith.constant 0 : index
    %57 = vector.load %arg10[%c8, %c0_26] : memref<560x16xf32, #tpu.memory_space<vmem>>, vector<512x16xf32>
    %cst_27 = arith.constant 0.000000e+00 : f32
    %58 = vector.shape_cast %42 : vector<512x1xi1> to vector<512x1xi1>
    %59 = vector.broadcast %58 : vector<512x1xi1> to vector<512x16xi1>
    %60 = vector.broadcast %cst_27 : f32 to vector<512x16xf32>
    %61 = arith.select %59, %57, %60 : vector<512x16xi1>, vector<512x16xf32>
    %62 = arith.truncf %61 : vector<512x16xf32> to vector<512x16xbf16>
    %c0_28 = arith.constant 0 : index
    %c16 = arith.constant 16 : index
    %63 = vector.load %arg11[%c0_28, %c16] : memref<512x144xbf16, #tpu.memory_space<vmem>>, vector<512x16xbf16>
    tpu.vector_store %arg11[%c0_28, %c16], %62 {strides = array<i32>} : memref<512x144xbf16, #tpu.memory_space<vmem>>, vector<512x16xbf16>,
    %c9 = arith.constant 9 : index
    %c0_29 = arith.constant 0 : index
    %64 = vector.load %arg10[%c9, %c0_29] : memref<560x16xf32, #tpu.memory_space<vmem>>, vector<512x16xf32>
    %65 = arith.andi %42, %48 : vector<512x1xi1>
    %cst_30 = arith.constant 0.000000e+00 : f32
    %66 = vector.shape_cast %65 : vector<512x1xi1> to vector<512x1xi1>
    %67 = vector.broadcast %66 : vector<512x1xi1> to vector<512x16xi1>
    %68 = vector.broadcast %cst_30 : f32 to vector<512x16xf32>
    %69 = arith.select %67, %64, %68 : vector<512x16xi1>, vector<512x16xf32>
    %70 = arith.truncf %69 : vector<512x16xf32> to vector<512x16xbf16>
    %c0_31 = arith.constant 0 : index
    %c32 = arith.constant 32 : index
    %71 = vector.load %arg11[%c0_31, %c32] : memref<512x144xbf16, #tpu.memory_space<vmem>>, vector<512x16xbf16>
    tpu.vector_store %arg11[%c0_31, %c32], %70 {strides = array<i32>} : memref<512x144xbf16, #tpu.memory_space<vmem>>, vector<512x16xbf16>,
    %c23 = arith.constant 23 : index
    %c0_32 = arith.constant 0 : index
    %72 = vector.load %arg10[%c23, %c0_32] : memref<560x16xf32, #tpu.memory_space<vmem>>, vector<512x16xf32>
    %cst_33 = arith.constant 0.000000e+00 : f32
    %73 = vector.shape_cast %46 : vector<512x1xi1> to vector<512x1xi1>
    %74 = vector.broadcast %73 : vector<512x1xi1> to vector<512x16xi1>
    %75 = vector.broadcast %cst_33 : f32 to vector<512x16xf32>
    %76 = arith.select %74, %72, %75 : vector<512x16xi1>, vector<512x16xf32>
    %77 = arith.truncf %76 : vector<512x16xf32> to vector<512x16xbf16>
    %c0_34 = arith.constant 0 : index
    %c48 = arith.constant 48 : index
    %78 = vector.load %arg11[%c0_34, %c48] : memref<512x144xbf16, #tpu.memory_space<vmem>>, vector<512x16xbf16>
    tpu.vector_store %arg11[%c0_34, %c48], %77 {strides = array<i32>} : memref<512x144xbf16, #tpu.memory_space<vmem>>, vector<512x16xbf16>,
    %c24_35 = arith.constant 24 : index
    %c0_36 = arith.constant 0 : index
    %79 = vector.load %arg10[%c24_35, %c0_36] : memref<560x16xf32, #tpu.memory_space<vmem>>, vector<512x16xf32>
    %80 = arith.truncf %79 : vector<512x16xf32> to vector<512x16xbf16>
    %c0_37 = arith.constant 0 : index
    %c64 = arith.constant 64 : index
    %81 = vector.load %arg11[%c0_37, %c64] : memref<512x144xbf16, #tpu.memory_space<vmem>>, vector<512x16xbf16>
    tpu.vector_store %arg11[%c0_37, %c64], %80 {strides = array<i32>} : memref<512x144xbf16, #tpu.memory_space<vmem>>, vector<512x16xbf16>,
    %c25 = arith.constant 25 : index
    %c0_38 = arith.constant 0 : index
    %82 = vector.load %arg10[%c25, %c0_38] : memref<560x16xf32, #tpu.memory_space<vmem>>, vector<512x16xf32>
    %cst_39 = arith.constant 0.000000e+00 : f32
    %83 = vector.shape_cast %48 : vector<512x1xi1> to vector<512x1xi1>
    %84 = vector.broadcast %83 : vector<512x1xi1> to vector<512x16xi1>
    %85 = vector.broadcast %cst_39 : f32 to vector<512x16xf32>
    %86 = arith.select %84, %82, %85 : vector<512x16xi1>, vector<512x16xf32>
    %87 = arith.truncf %86 : vector<512x16xf32> to vector<512x16xbf16>
    %c0_40 = arith.constant 0 : index
    %c80 = arith.constant 80 : index
    %88 = vector.load %arg11[%c0_40, %c80] : memref<512x144xbf16, #tpu.memory_space<vmem>>, vector<512x16xbf16>
    tpu.vector_store %arg11[%c0_40, %c80], %87 {strides = array<i32>} : memref<512x144xbf16, #tpu.memory_space<vmem>>, vector<512x16xbf16>,
    %c39 = arith.constant 39 : index
    %c0_41 = arith.constant 0 : index
    %89 = vector.load %arg10[%c39, %c0_41] : memref<560x16xf32, #tpu.memory_space<vmem>>, vector<512x16xf32>
    %90 = arith.andi %44, %46 : vector<512x1xi1>
    %cst_42 = arith.constant 0.000000e+00 : f32
    %91 = vector.shape_cast %90 : vector<512x1xi1> to vector<512x1xi1>
    %92 = vector.broadcast %91 : vector<512x1xi1> to vector<512x16xi1>
    %93 = vector.broadcast %cst_42 : f32 to vector<512x16xf32>
    %94 = arith.select %92, %89, %93 : vector<512x16xi1>, vector<512x16xf32>
    %95 = arith.truncf %94 : vector<512x16xf32> to vector<512x16xbf16>
    %c0_43 = arith.constant 0 : index
    %c96 = arith.constant 96 : index
    %96 = vector.load %arg11[%c0_43, %c96] : memref<512x144xbf16, #tpu.memory_space<vmem>>, vector<512x16xbf16>
    tpu.vector_store %arg11[%c0_43, %c96], %95 {strides = array<i32>} : memref<512x144xbf16, #tpu.memory_space<vmem>>, vector<512x16xbf16>,
    %c40 = arith.constant 40 : index
    %c0_44 = arith.constant 0 : index
    %97 = vector.load %arg10[%c40, %c0_44] : memref<560x16xf32, #tpu.memory_space<vmem>>, vector<512x16xf32>
    %cst_45 = arith.constant 0.000000e+00 : f32
    %98 = vector.shape_cast %44 : vector<512x1xi1> to vector<512x1xi1>
    %99 = vector.broadcast %98 : vector<512x1xi1> to vector<512x16xi1>
    %100 = vector.broadcast %cst_45 : f32 to vector<512x16xf32>
    %101 = arith.select %99, %97, %100 : vector<512x16xi1>, vector<512x16xf32>
    %102 = arith.truncf %101 : vector<512x16xf32> to vector<512x16xbf16>
    %c0_46 = arith.constant 0 : index
    %c112 = arith.constant 112 : index
    %103 = vector.load %arg11[%c0_46, %c112] : memref<512x144xbf16, #tpu.memory_space<vmem>>, vector<512x16xbf16>
    tpu.vector_store %arg11[%c0_46, %c112], %102 {strides = array<i32>} : memref<512x144xbf16, #tpu.memory_space<vmem>>, vector<512x16xbf16>,
    %c41 = arith.constant 41 : index
    %c0_47 = arith.constant 0 : index
    %104 = vector.load %arg10[%c41, %c0_47] : memref<560x16xf32, #tpu.memory_space<vmem>>, vector<512x16xf32>
    %105 = arith.andi %44, %48 : vector<512x1xi1>
    %cst_48 = arith.constant 0.000000e+00 : f32
    %106 = vector.shape_cast %105 : vector<512x1xi1> to vector<512x1xi1>
    %107 = vector.broadcast %106 : vector<512x1xi1> to vector<512x16xi1>
    %108 = vector.broadcast %cst_48 : f32 to vector<512x16xf32>
    %109 = arith.select %107, %104, %108 : vector<512x16xi1>, vector<512x16xf32>
    %110 = arith.truncf %109 : vector<512x16xf32> to vector<512x16xbf16>
    %c0_49 = arith.constant 0 : index
    %c128 = arith.constant 128 : index
    %111 = vector.load %arg11[%c0_49, %c128] : memref<512x144xbf16, #tpu.memory_space<vmem>>, vector<512x16xbf16>
    tpu.vector_store %arg11[%c0_49, %c128], %110 {strides = array<i32>} : memref<512x144xbf16, #tpu.memory_space<vmem>>, vector<512x16xbf16>,
    %c0_50 = arith.constant 0 : index
    %c0_51 = arith.constant 0 : index
    %112 = vector.load %arg11[%c0_50, %c0_51] : memref<512x144xbf16, #tpu.memory_space<vmem>>, vector<512x144xbf16>
    %c0_52 = arith.constant 0 : index
    %c0_53 = arith.constant 0 : index
    %113 = vector.load %arg4[%c0_52, %c0_53] : memref<144x16xbf16, #tpu.memory_space<vmem>>, vector<144x16xbf16>
    %cst_54 = arith.constant dense<0.000000e+00> : vector<512x16xf32>
    %114 = tpu.matmul %112, %113, %cst_54 {dimension_numbers = #tpu.dot_dimension_numbers<[1], [0], [0], [1], [0, 0, 1, 1], [], []>} : vector<512x144xbf16>, vector<144x16xbf16>, vector<512x16xf32> -> vector<512x16xf32>
    %c0_55 = arith.constant 0 : index
    %c0_56 = arith.constant 0 : index
    %115 = vector.load %arg5[%c0_55, %c0_56] : memref<1x16xf32, #tpu.memory_space<vmem>>, vector<1x16xf32>
    %c0_57 = arith.constant 0 : index
    %c0_58 = arith.constant 0 : index
    %116 = vector.load %arg6[%c0_57, %c0_58] : memref<1x16xf32, #tpu.memory_space<vmem>>, vector<1x16xf32>
    %cst_59 = arith.constant dense<0.000000e+00> : vector<16xf32>
    %117 = vector.multi_reduction <add>, %114, %cst_59 [0] : vector<512x16xf32> to vector<16xf32>
    %118 = vector.shape_cast %117 : vector<16xf32> to vector<1x16xf32>
    %cst_60 = arith.constant 5.120000e+02 : f32
    %119 = vector.broadcast %cst_60 : f32 to vector<1x16xf32>
    %120 = arith.divf %118, %119 : vector<1x16xf32>
    %121 = vector.broadcast %120 : vector<1x16xf32> to vector<512x16xf32>
    %122 = arith.subf %114, %121 : vector<512x16xf32>
    %123 = arith.mulf %122, %122 : vector<512x16xf32>
    %cst_61 = arith.constant dense<0.000000e+00> : vector<16xf32>
    %124 = vector.multi_reduction <add>, %123, %cst_61 [0] : vector<512x16xf32> to vector<16xf32>
    %125 = vector.shape_cast %124 : vector<16xf32> to vector<1x16xf32>
    %cst_62 = arith.constant 5.120000e+02 : f32
    %126 = vector.broadcast %cst_62 : f32 to vector<1x16xf32>
    %127 = arith.divf %125, %126 : vector<1x16xf32>
    %cst_63 = arith.constant 9.99999974E-6 : f32
    %128 = vector.broadcast %cst_63 : f32 to vector<1x16xf32>
    %129 = arith.addf %127, %128 : vector<1x16xf32>
    %130 = math.rsqrt %129 : vector<1x16xf32>
    %131 = arith.mulf %115, %130 : vector<1x16xf32>
    %132 = vector.broadcast %131 : vector<1x16xf32> to vector<512x16xf32>
    %133 = arith.mulf %122, %132 : vector<512x16xf32>
    %134 = vector.broadcast %116 : vector<1x16xf32> to vector<512x16xf32>
    %135 = arith.addf %133, %134 : vector<512x16xf32>
    %cst_64 = arith.constant 2.000000e-01 : f32
    %136 = vector.broadcast %cst_64 : f32 to vector<512x16xf32>
    %137 = arith.mulf %136, %135 : vector<512x16xf32>
    %138 = arith.maximumf %135, %137 : vector<512x16xf32>
    %c0_65 = arith.constant 0 : index
    %c0_66 = arith.constant 0 : index
    %139 = vector.load %arg7[%c0_65, %c0_66] : memref<8x16xf32, #tpu.memory_space<vmem>>, vector<8x16xf32>
    %cst_67 = arith.constant dense<0.000000e+00> : vector<8x512xf32>
    %140 = tpu.matmul %139, %138, %cst_67 {dimension_numbers = #tpu.dot_dimension_numbers<[1], [1], [0], [0], [0, 0, 1, 0], [], []>} : vector<8x16xf32>, vector<512x16xf32>, vector<8x512xf32> -> vector<8x512xf32>
    %141 = vector.extract_strided_slice %140 {offsets = [0, 0], sizes = [1, 512], strides = [1, 1]} : vector<8x512xf32> to vector<1x512xf32>
    %c0_68 = arith.constant 0 : index
    %c0_69 = arith.constant 0 : index
    %142 = vector.load %arg8[%c0_68, %c0_69] : memref<1x1xf32, #tpu.memory_space<vmem>>, vector<1x1xf32>
    %143 = vector.broadcast %142 : vector<1x1xf32> to vector<1x512xf32>
    %144 = arith.addf %141, %143 : vector<1x512xf32>
    %145 = math.tanh %144 : vector<1x512xf32>
    %c0_70 = arith.constant 0 : index
    %c0_71 = arith.constant 0 : index
    %146 = vector.load %arg9[%c0_70, %c0_71] : memref<1x512xf32, #tpu.memory_space<vmem>>, vector<1x512xf32>
    tpu.vector_store %arg9[%c0_70, %c0_71], %145 {strides = array<i32>} : memref<1x512xf32, #tpu.memory_space<vmem>>, vector<1x512xf32>,
    return
  }
}

</mosaic_0001>

<bundles_post_ra>
// kernel: learnable_gin_forward.1
= control target key start
LH: loop header
LB: loop body
LE: loop exit
PB: predicated region body
PF: predicated region fallthrough
CT: control target
= control target key end

     0   :  { %v18837_v0 = vmov 0   ;;  %vm18920_vm0 = vcmask 130048   ;;  %vm18938_vm4 = vcmask 125952   ;;  %s11355_s17 = smov 80   ;;  %vm18921_vm12 = vcmask 257152   ;;  %s11356_s13 = smov 96   ;;  %s18827_s0 = inlined_call_operand.vmem [shape: f32[512,1], index: 0, kind: input, shape index: {}]   ;;  %s18828_s1 = inlined_call_operand.vmem [shape: f32[1,16], index: 1, kind: input, shape index: {}]   ;;  %s18829_s2 = inlined_call_operand.vmem [shape: f32[1,16], index: 2, kind: input, shape index: {}]   ;;  %s18830_s3 = inlined_call_operand.vmem [shape: f32[1,16], index: 3, kind: input, shape index: {}]   ;;  %s18831_s4 = inlined_call_operand.vmem [shape: bf16[144,16], index: 4, kind: input, shape index: {}]   ;;  %s18832_s8 = inlined_call_operand.<no memory space> [shape: f32[1,1], index: 8, kind: input, shape index: {}]   ;;  %s18833_s7 = inlined_call_operand.vmem [shape: f32[8,16], index: 7, kind: input, shape index: {}]   ;;  %s18834_s5 = inlined_call_operand.vmem [shape: f32[1,16], index: 5, kind: input, shape index: {}]   ;;  %s18835_s6 = inlined_call_operand.vmem [shape: f32[1,16], index: 6, kind: input, shape index: {}]   ;;  %s18836_s9 = inlined_call_operand.vmem [shape: f32[1,512], index: 9, kind: output, shape index: {}]  }
   0x1   :  { %11191 = vset.pattern.permute.xlu1 %v18837_v0  ;;  %11190 = vset.pattern.permute.xlu0 %v18837_v0  ;;  %v37_v1 = vld [vmem:[%s18827_s0 + $0x10] sm:$0xff]  ;;  %v35_v2 = vld [vmem:[%s18827_s0] sm:$0xff]  ;;  %v38_v3 = vld [vmem:[%s18827_s0 + $0x18] sm:$0xff]  ;;  %vm18922_vm13 = vcmask 388352   ;;  %s11357_s14 = smov 112  }
   0x2   :  { %112 = vperm.xlu1 %11191, %v37_v1   ;;  %102 = vperm.xlu0 %11190, %v35_v2   ;;  %v36_v4 = vld [vmem:[%s18827_s0 + $0x8] sm:$0xff]  ;;  %v39_v6 = vld [vmem:[%s18827_s0 + $0x20] sm:$0xff]  ;;  %v42_v7 = vld [vmem:[%s18827_s0 + $0x38] sm:$0xff] }
   0x3   :  { %8416 = vmatprep.subr.bf16.mxu0 %v18837_v0  ;;  %11162 = vmatprep.subr.bf16.mxu1 %v18837_v0  ;;  %v40_v5 = vld [vmem:[%s18827_s0 + $0x28] sm:$0xff]  ;;  %v41_v8 = vld [vmem:[%s18827_s0 + $0x30] sm:$0xff]  ;;  %v43_v10 = vld [vmem:[%s18827_s0 + $0x40] sm:$0xff] }
   0x4   :  { %v44_v9 = vld [vmem:[%s18827_s0 + $0x48] sm:$0xff]  ;;  %v46_v11 = vld [vmem:[%s18827_s0 + $0x58] sm:$0xff]  ;;  %v45_v12 = vld [vmem:[%s18827_s0 + $0x50] sm:$0xff] }
   0x5   :  { %v48_v13 = vld [vmem:[%s18827_s0 + $0x68] sm:$0xff]  ;;  %v47_v14 = vld [vmem:[%s18827_s0 + $0x60] sm:$0xff]  ;;  %v50_v15 = vld [vmem:[%s18827_s0 + $0x78] sm:$0xff] }
   0x6   :  { %117 = vperm.xlu1 %11191, %v38_v3   ;;  %107 = vperm.xlu0 %11190, %v36_v4   ;;  %v49_v16 = vld [vmem:[%s18827_s0 + $0x70] sm:$0xff]  ;;  %v52_v17 = vld [vmem:[%s18827_s0 + $0x88] sm:$0xff]  ;;  %v51_v18 = vld [vmem:[%s18827_s0 + $0x80] sm:$0xff] }
   0x7   :  { %v54_v19 = vld [vmem:[%s18827_s0 + $0x98] sm:$0xff]  ;;  %v53_v20 = vld [vmem:[%s18827_s0 + $0x90] sm:$0xff]  ;;  %v56_v21 = vld [vmem:[%s18827_s0 + $0xa8] sm:$0xff] }
   0x8   :  { %v55_v22 = vld [vmem:[%s18827_s0 + $0xa0] sm:$0xff]  ;;  %v58_v23 = vld [vmem:[%s18827_s0 + $0xb8] sm:$0xff]  ;;  %v57_v24 = vld [vmem:[%s18827_s0 + $0xb0] sm:$0xff] }
   0x9   :  { %v60_v25 = vld [vmem:[%s18827_s0 + $0xc8] sm:$0xff]  ;;  %v59_v26 = vld [vmem:[%s18827_s0 + $0xc0] sm:$0xff]  ;;  %v62_v27 = vld [vmem:[%s18827_s0 + $0xd8] sm:$0xff] }
   0xa   :  { %127 = vperm.xlu1 %11191, %v40_v5   ;;  %122 = vperm.xlu0 %11190, %v39_v6   ;;  %v61_v28 = vld [vmem:[%s18827_s0 + $0xd0] sm:$0xff]  ;;  %v64_v29 = vld [vmem:[%s18827_s0 + $0xe8] sm:$0xff]  ;;  %v63_v30 = vld [vmem:[%s18827_s0 + $0xe0] sm:$0xff] }
   0xb   :  { %v66_v31 = vld [vmem:[%s18827_s0 + $0xf8] sm:$0xff]  ;;  %v65_v32 = vld [vmem:[%s18827_s0 + $0xf0] sm:$0xff]  ;;  %v68_v33 = vld [vmem:[%s18827_s0 + $0x108] sm:$0xff] }
   0xc   :  { %v67_v34 = vld [vmem:[%s18827_s0 + $0x100] sm:$0xff]  ;;  %v70_v35 = vld [vmem:[%s18827_s0 + $0x118] sm:$0xff]  ;;  %v69_v36 = vld [vmem:[%s18827_s0 + $0x110] sm:$0xff] }
   0xd   :  { %v72_v37 = vld [vmem:[%s18827_s0 + $0x128] sm:$0xff]  ;;  %v71_v38 = vld [vmem:[%s18827_s0 + $0x120] sm:$0xff]  ;;  %v74_v39 = vld [vmem:[%s18827_s0 + $0x138] sm:$0xff] }
   0xe   :  { %137 = vperm.xlu1 %11191, %v42_v7   ;;  %132 = vperm.xlu0 %11190, %v41_v8   ;;  %v73_v40 = vld [vmem:[%s18827_s0 + $0x130] sm:$0xff]  ;;  %v76_v41 = vld [vmem:[%s18827_s0 + $0x148] sm:$0xff]  ;;  %v75_v42 = vld [vmem:[%s18827_s0 + $0x140] sm:$0xff] }
   0xf   :  { %v78_v43 = vld [vmem:[%s18827_s0 + $0x158] sm:$0xff]  ;;  %v77_v44 = vld [vmem:[%s18827_s0 + $0x150] sm:$0xff]  ;;  %v80_v45 = vld [vmem:[%s18827_s0 + $0x168] sm:$0xff] }
  0x10   :  { %v79_v46 = vld [vmem:[%s18827_s0 + $0x160] sm:$0xff]  ;;  %v82_v47 = vld [vmem:[%s18827_s0 + $0x178] sm:$0xff]  ;;  %v81_v48 = vld [vmem:[%s18827_s0 + $0x170] sm:$0xff] }
  0x11   :  { %v84_v49 = vld [vmem:[%s18827_s0 + $0x188] sm:$0xff]  ;;  %v83_v50 = vld [vmem:[%s18827_s0 + $0x180] sm:$0xff]  ;;  %v86_v51 = vld [vmem:[%s18827_s0 + $0x198] sm:$0xff] }
  0x12   :  { %147 = vperm.xlu1 %11191, %v44_v9   ;;  %142 = vperm.xlu0 %11190, %v43_v10   ;;  %v85_v52 = vld [vmem:[%s18827_s0 + $0x190] sm:$0xff]  ;;  %v88_v53 = vld [vmem:[%s18827_s0 + $0x1a8] sm:$0xff]  ;;  %v87_v54 = vld [vmem:[%s18827_s0 + $0x1a0] sm:$0xff] }
  0x13   :  { %v90_v55 = vld [vmem:[%s18827_s0 + $0x1b8] sm:$0xff]  ;;  %v89_v56 = vld [vmem:[%s18827_s0 + $0x1b0] sm:$0xff]  ;;  %v92_v57 = vld [vmem:[%s18827_s0 + $0x1c8] sm:$0xff] }
  0x14   :  { %v91_v58 = vld [vmem:[%s18827_s0 + $0x1c0] sm:$0xff]  ;;  %v94_v59 = vld [vmem:[%s18827_s0 + $0x1d8] sm:$0xff]  ;;  %v93_v60 = vld [vmem:[%s18827_s0 + $0x1d0] sm:$0xff] }
  0x15   :  { %v96_v61 = vld [vmem:[%s18827_s0 + $0x1e8] sm:$0xff]  ;;  %v95_v62 = vld [vmem:[%s18827_s0 + $0x1e0] sm:$0xff]  ;;  %v98_v63 = vld [vmem:[%s18827_s0 + $0x1f8] sm:$0xff] }
  0x16   :  { %157 = vperm.xlu1 %11191, %v46_v11   ;;  %152 = vperm.xlu0 %11190, %v45_v12   ;;  %v97_v1 = vld [vmem:[%s18827_s0 + $0x1f0] sm:$0xff]  ;;  %v11608_v2 = vld [vmem:[%s18828_s1] ss:$0 sm:$0xff]  ;;  %s11351_s0 = smov 16   ;;  %s11352_s1 = smov 32  }
  0x1a   :  { %167 = vperm.xlu1 %11191, %v48_v13   ;;  %162 = vperm.xlu0 %11190, %v47_v14  }
  0x1e   :  { %177 = vperm.xlu1 %11191, %v50_v15   ;;  %172 = vperm.xlu0 %11190, %v49_v16  }
  0x22   :  { %187 = vperm.xlu1 %11191, %v52_v17   ;;  %182 = vperm.xlu0 %11190, %v51_v18  }
  0x26   :  { %197 = vperm.xlu1 %11191, %v54_v19   ;;  %192 = vperm.xlu0 %11190, %v53_v20  }
  0x2a   :  { %207 = vperm.xlu1 %11191, %v56_v21   ;;  %202 = vperm.xlu0 %11190, %v55_v22  }
  0x2e   :  { %217 = vperm.xlu1 %11191, %v58_v23   ;;  %212 = vperm.xlu0 %11190, %v57_v24  }
  0x32   :  { %227 = vperm.xlu1 %11191, %v60_v25   ;;  %222 = vperm.xlu0 %11190, %v59_v26  }
  0x36   :  { %237 = vperm.xlu1 %11191, %v62_v27   ;;  %232 = vperm.xlu0 %11190, %v61_v28  }
  0x3a   :  { %247 = vperm.xlu1 %11191, %v64_v29   ;;  %242 = vperm.xlu0 %11190, %v63_v30  }
  0x3e   :  { %257 = vperm.xlu1 %11191, %v66_v31   ;;  %252 = vperm.xlu0 %11190, %v65_v32  }
  0x42   :  { %267 = vperm.xlu1 %11191, %v68_v33   ;;  %262 = vperm.xlu0 %11190, %v67_v34  }
  0x46   :  { %277 = vperm.xlu1 %11191, %v70_v35   ;;  %272 = vperm.xlu0 %11190, %v69_v36  }
  0x4a   :  { %287 = vperm.xlu1 %11191, %v72_v37   ;;  %282 = vperm.xlu0 %11190, %v71_v38  }
  0x4e   :  { %297 = vperm.xlu1 %11191, %v74_v39   ;;  %292 = vperm.xlu0 %11190, %v73_v40  }
  0x52   :  { %307 = vperm.xlu1 %11191, %v76_v41   ;;  %302 = vperm.xlu0 %11190, %v75_v42  }
  0x56   :  { %317 = vperm.xlu1 %11191, %v78_v43   ;;  %312 = vperm.xlu0 %11190, %v77_v44  }
  0x5a   :  { %327 = vperm.xlu1 %11191, %v80_v45   ;;  %322 = vperm.xlu0 %11190, %v79_v46  }
  0x5e   :  { %337 = vperm.xlu1 %11191, %v82_v47   ;;  %332 = vperm.xlu0 %11190, %v81_v48  }
  0x62   :  { %347 = vperm.xlu1 %11191, %v84_v49   ;;  %342 = vperm.xlu0 %11190, %v83_v50  }
  0x66   :  { %357 = vperm.xlu1 %11191, %v86_v51   ;;  %352 = vperm.xlu0 %11190, %v85_v52  }
  0x6a   :  { %367 = vperm.xlu1 %11191, %v88_v53   ;;  %362 = vperm.xlu0 %11190, %v87_v54  }
  0x6e   :  { %377 = vperm.xlu1 %11191, %v90_v55   ;;  %372 = vperm.xlu0 %11190, %v89_v56  }
  0x72   :  { %387 = vperm.xlu1 %11191, %v92_v57   ;;  %382 = vperm.xlu0 %11190, %v91_v58  }
  0x76   :  { %397 = vperm.xlu1 %11191, %v94_v59   ;;  %392 = vperm.xlu0 %11190, %v93_v60  }
  0x7a   :  { %407 = vperm.xlu1 %11191, %v96_v61   ;;  %402 = vperm.xlu0 %11190, %v95_v62  }
  0x7d   :  { %v113_v3 = vpop.permute.xlu1 %112  ;;  %v103_v4 = vpop.permute.xlu0 %102 }
  0x7e   :  { %417 = vperm.xlu1 %11191, %v98_v63   ;;  %412 = vperm.xlu0 %11190, %v97_v1   ;;  %v11611_v5 = vmul.f32 %v11608_v2, %v103_v4  ;;  %v11614_v8 = vmul.f32 %v11608_v2, %v113_v3 }
  0x80   :  { %v493_v10 = vsel %vm18920_vm0, %v11611_v5, 0.0  ;;  %v496_v16 = vsel %vm18920_vm0, %v11614_v8, 0.0 }
  0x81   :  { %v118_v6 = vpop.permute.xlu1 %117  ;;  %v108_v7 = vpop.permute.xlu0 %107 }
  0x82   :  { %v11617_v9 = vmul.f32 %v11608_v2, %v108_v7  ;;  %v11622_v11 = vmul.f32 %v11608_v2, %v118_v6 }
  0x84   :  { %v494_v12 = vsel %vm18920_vm0, %v11617_v9, 0.0  ;;  %v498_v19 = vsel %vm18920_vm0, %v11622_v11, 0.0 }
  0x85   :  { %v495_v13 = vadd.f32 %v494_v12, %v493_v10  ;;  %v128_v14 = vpop.permute.xlu1 %127  ;;  %v123_v15 = vpop.permute.xlu0 %122 }
  0x86   :  { %v11629_v17 = vmul.f32 %v11608_v2, %v123_v15  ;;  %v11634_v20 = vmul.f32 %v11608_v2, %v128_v14 }
  0x87   :  { %v497_v18 = vadd.f32 %v496_v16, %v495_v13 }
  0x88   :  { %v500_v24 = vsel %vm18920_vm0, %v11629_v17, 0.0  ;;  %v502_v27 = vsel %vm18920_vm0, %v11634_v20, 0.0 }
  0x89   :  { %v499_v21 = vadd.f32 %v498_v19, %v497_v18  ;;  %v138_v22 = vpop.permute.xlu1 %137  ;;  %v133_v23 = vpop.permute.xlu0 %132 }
  0x8a   :  { %v11639_v25 = vmul.f32 %v11608_v2, %v133_v23  ;;  %v11644_v28 = vmul.f32 %v11608_v2, %v138_v22 }
  0x8b   :  { %v501_v26 = vadd.f32 %v500_v24, %v499_v21 }
  0x8c   :  { %v504_v32 = vsel %vm18920_vm0, %v11639_v25, 0.0  ;;  %v506_v35 = vsel %vm18920_vm0, %v11644_v28, 0.0 }
  0x8d   :  { %v503_v29 = vadd.f32 %v502_v27, %v501_v26  ;;  %v148_v30 = vpop.permute.xlu1 %147  ;;  %v143_v31 = vpop.permute.xlu0 %142 }
  0x8e   :  { %v11649_v33 = vmul.f32 %v11608_v2, %v143_v31  ;;  %v11654_v36 = vmul.f32 %v11608_v2, %v148_v30 }
  0x8f   :  { %v505_v34 = vadd.f32 %v504_v32, %v503_v29 }
  0x90   :  { %v508_v40 = vsel %vm18920_vm0, %v11649_v33, 0.0  ;;  %v510_v43 = vsel %vm18920_vm0, %v11654_v36, 0.0 }
  0x91   :  { %v507_v37 = vadd.f32 %v506_v35, %v505_v34  ;;  %v158_v38 = vpop.permute.xlu1 %157  ;;  %v153_v39 = vpop.permute.xlu0 %152 }
  0x92   :  { %v11659_v41 = vmul.f32 %v11608_v2, %v153_v39  ;;  %v11664_v44 = vmul.f32 %v11608_v2, %v158_v38 }
  0x93   :  { %v509_v42 = vadd.f32 %v508_v40, %v507_v37 }
  0x94   :  { %v512_v48 = vsel %vm18920_vm0, %v11659_v41, 0.0  ;;  %v514_v51 = vsel %vm18920_vm0, %v11664_v44, 0.0 }
  0x95   :  { %v511_v45 = vadd.f32 %v510_v43, %v509_v42  ;;  %v168_v46 = vpop.permute.xlu1 %167  ;;  %v163_v47 = vpop.permute.xlu0 %162 }
  0x96   :  { %v11669_v49 = vmul.f32 %v11608_v2, %v163_v47  ;;  %v11674_v52 = vmul.f32 %v11608_v2, %v168_v46 }
  0x97   :  { %v513_v50 = vadd.f32 %v512_v48, %v511_v45 }
  0x98   :  { %v516_v56 = vsel %vm18920_vm0, %v11669_v49, 0.0  ;;  %v518_v59 = vsel %vm18920_vm0, %v11674_v52, 0.0 }
  0x99   :  { %v515_v53 = vadd.f32 %v514_v51, %v513_v50  ;;  %v178_v54 = vpop.permute.xlu1 %177  ;;  %v173_v55 = vpop.permute.xlu0 %172 }
  0x9a   :  { %v11679_v57 = vmul.f32 %v11608_v2, %v173_v55  ;;  %v11684_v60 = vmul.f32 %v11608_v2, %v178_v54 }
  0x9b   :  { %v517_v58 = vadd.f32 %v516_v56, %v515_v53 }
  0x9c   :  { %v520_v1 = vsel %vm18920_vm0, %v11679_v57, 0.0  ;;  %v522_v6 = vsel %vm18920_vm0, %v11684_v60, 0.0 }
  0x9d   :  { %v519_v61 = vadd.f32 %v518_v59, %v517_v58  ;;  %v188_v62 = vpop.permute.xlu1 %187  ;;  %v183_v63 = vpop.permute.xlu0 %182 }
  0x9e   :  { %v11689_v3 = vmul.f32 %v11608_v2, %v183_v63  ;;  %v11694_v7 = vmul.f32 %v11608_v2, %v188_v62 }
  0x9f   :  { %v521_v4 = vadd.f32 %v520_v1, %v519_v61 }
  0xa0   :  { %v524_v14 = vsel %vm18920_vm0, %v11689_v3, 0.0  ;;  %v526_v18 = vsel %vm18920_vm0, %v11694_v7, 0.0 }
  0xa1   :  { %v523_v10 = vadd.f32 %v522_v6, %v521_v4  ;;  %v198_v12 = vpop.permute.xlu1 %197  ;;  %v193_v13 = vpop.permute.xlu0 %192 }
  0xa2   :  { %v11699_v15 = vmul.f32 %v11608_v2, %v193_v13  ;;  %v11704_v19 = vmul.f32 %v11608_v2, %v198_v12 }
  0xa3   :  { %v525_v16 = vadd.f32 %v524_v14, %v523_v10 }
  0xa4   :  { %v528_v24 = vsel %vm18920_vm0, %v11699_v15, 0.0  ;;  %v530_v29 = vsel %vm18920_vm0, %v11704_v19, 0.0 }
  0xa5   :  { %v527_v21 = vadd.f32 %v526_v18, %v525_v16  ;;  %v208_v22 = vpop.permute.xlu1 %207  ;;  %v203_v23 = vpop.permute.xlu0 %202 }
  0xa6   :  { %v11709_v26 = vmul.f32 %v11608_v2, %v203_v23  ;;  %v11714_v30 = vmul.f32 %v11608_v2, %v208_v22 }
  0xa7   :  { %v529_v27 = vadd.f32 %v528_v24, %v527_v21 }
  0xa8   :  { %v532_v35 = vsel %vm18920_vm0, %v11709_v26, 0.0  ;;  %v534_v39 = vsel %vm18920_vm0, %v11714_v30, 0.0 }
  0xa9   :  { %v531_v31 = vadd.f32 %v530_v29, %v529_v27  ;;  %v218_v32 = vpop.permute.xlu1 %217  ;;  %v213_v34 = vpop.permute.xlu0 %212 }
  0xaa   :  { %v11719_v37 = vmul.f32 %v11608_v2, %v213_v34  ;;  %v11724_v40 = vmul.f32 %v11608_v2, %v218_v32 }
  0xab   :  { %v533_v38 = vadd.f32 %v532_v35, %v531_v31 }
  0xac   :  { %v536_v46 = vsel %vm18920_vm0, %v11719_v37, 0.0  ;;  %v538_v50 = vsel %vm18920_vm0, %v11724_v40, 0.0 }
  0xad   :  { %v535_v42 = vadd.f32 %v534_v39, %v533_v38  ;;  %v228_v43 = vpop.permute.xlu1 %227  ;;  %v223_v45 = vpop.permute.xlu0 %222 }
  0xae   :  { %v11729_v47 = vmul.f32 %v11608_v2, %v223_v45  ;;  %v11734_v51 = vmul.f32 %v11608_v2, %v228_v43 }
  0xaf   :  { %v537_v48 = vadd.f32 %v536_v46, %v535_v42 }
  0xb0   :  { %v540_v56 = vsel %vm18920_vm0, %v11729_v47, 0.0  ;;  %v542_v61 = vsel %vm18920_vm0, %v11734_v51, 0.0 }
  0xb1   :  { %v539_v53 = vadd.f32 %v538_v50, %v537_v48  ;;  %v238_v54 = vpop.permute.xlu1 %237  ;;  %v233_v55 = vpop.permute.xlu0 %232 }
  0xb2   :  { %v11739_v58 = vmul.f32 %v11608_v2, %v233_v55  ;;  %v11744_v62 = vmul.f32 %v11608_v2, %v238_v54 }
  0xb3   :  { %v541_v59 = vadd.f32 %v540_v56, %v539_v53 }
  0xb4   :  { %19223 = vst [vmem:[#allocation5_spill] sm:$0xff] %v11744_v62  ;;  %v544_v6 = vsel %vm18920_vm0, %v11739_v58, 0.0  ;;  %v546_v13 = vsel %vm18920_vm0, %v11744_v62, 0.0 }
  0xb5   :  { %v543_v63 = vadd.f32 %v542_v61, %v541_v59  ;;  %v248_v1 = vpop.permute.xlu1 %247  ;;  %v243_v4 = vpop.permute.xlu0 %242 }
  0xb6   :  { %v11749_v10 = vmul.f32 %v11608_v2, %v243_v4  ;;  %v11754_v14 = vmul.f32 %v11608_v2, %v248_v1 }
  0xb7   :  { %v545_v12 = vadd.f32 %v544_v6, %v543_v63 }
  0xb8   :  { %19224 = vst [vmem:[#allocation6_spill] sm:$0xff] %v11749_v10  ;;  %19225 = vst [vmem:[#allocation7_spill] sm:$0xff] %v11754_v14  ;;  %v548_v22 = vsel %vm18920_vm0, %v11749_v10, 0.0  ;;  %v550_v27 = vsel %vm18920_vm0, %v11754_v14, 0.0 }
  0xb9   :  { %v547_v16 = vadd.f32 %v546_v13, %v545_v12  ;;  %v258_v18 = vpop.permute.xlu1 %257  ;;  %v253_v21 = vpop.permute.xlu0 %252 }
  0xba   :  { %v11759_v23 = vmul.f32 %v11608_v2, %v253_v21  ;;  %v11764_v29 = vmul.f32 %v11608_v2, %v258_v18 }
  0xbb   :  { %v549_v24 = vadd.f32 %v548_v22, %v547_v16 }
  0xbc   :  { %19226 = vst [vmem:[#allocation8_spill] sm:$0xff] %v11759_v23  ;;  %19227 = vst [vmem:[#allocation9_spill] sm:$0xff] %v11764_v29  ;;  %v552_v35 = vsel %vm18920_vm0, %v11759_v23, 0.0  ;;  %v554_v42 = vsel %vm18920_vm0, %v11764_v29, 0.0 }
  0xbd   :  { %v551_v31 = vadd.f32 %v550_v27, %v549_v24  ;;  %v268_v32 = vpop.permute.xlu1 %267  ;;  %v263_v34 = vpop.permute.xlu0 %262 }
  0xbe   :  { %v11769_v38 = vmul.f32 %v11608_v2, %v263_v34  ;;  %v11774_v43 = vmul.f32 %v11608_v2, %v268_v32 }
  0xbf   :  { %v553_v39 = vadd.f32 %v552_v35, %v551_v31 }
  0xc0   :  { %19228 = vst [vmem:[#allocation10_spill] sm:$0xff] %v11769_v38  ;;  %19229 = vst [vmem:[#allocation11_spill] sm:$0xff] %v11774_v43  ;;  %v556_v50 = vsel %vm18920_vm0, %v11769_v38, 0.0  ;;  %v558_v55 = vsel %vm18920_vm0, %v11774_v43, 0.0 }
  0xc1   :  { %v555_v45 = vadd.f32 %v554_v42, %v553_v39  ;;  %v278_v46 = vpop.permute.xlu1 %277  ;;  %v273_v48 = vpop.permute.xlu0 %272 }
  0xc2   :  { %v11779_v53 = vmul.f32 %v11608_v2, %v273_v48  ;;  %v11784_v56 = vmul.f32 %v11608_v2, %v278_v46 }
  0xc3   :  { %v557_v54 = vadd.f32 %v556_v50, %v555_v45 }
  0xc4   :  { %19230 = vst [vmem:[#allocation12_spill] sm:$0xff] %v11779_v53  ;;  %19231 = vst [vmem:[#allocation13_spill] sm:$0xff] %v11784_v56  ;;  %v560_v1 = vsel %vm18920_vm0, %v11779_v53, 0.0  ;;  %v562_v12 = vsel %vm18920_vm0, %v11784_v56, 0.0 }
  0xc5   :  { %v559_v59 = vadd.f32 %v558_v55, %v557_v54  ;;  %v288_v61 = vpop.permute.xlu1 %287  ;;  %v283_v63 = vpop.permute.xlu0 %282 }
  0xc6   :  { %v11789_v4 = vmul.f32 %v11608_v2, %v283_v63  ;;  %v11794_v13 = vmul.f32 %v11608_v2, %v288_v61 }
  0xc7   :  { %v561_v6 = vadd.f32 %v560_v1, %v559_v59 }
  0xc8   :  { %19232 = vst [vmem:[#allocation14_spill] sm:$0xff] %v11789_v4  ;;  %19233 = vst [vmem:[#allocation15_spill] sm:$0xff] %v11794_v13  ;;  %v564_v22 = vsel %vm18920_vm0, %v11789_v4, 0.0  ;;  %v566_v31 = vsel %vm18920_vm0, %v11794_v13, 0.0 }
  0xc9   :  { %v563_v16 = vadd.f32 %v562_v12, %v561_v6  ;;  %v298_v18 = vpop.permute.xlu1 %297  ;;  %v293_v21 = vpop.permute.xlu0 %292 }
  0xca   :  { %v11799_v24 = vmul.f32 %v11608_v2, %v293_v21  ;;  %v11804_v32 = vmul.f32 %v11608_v2, %v298_v18 }
  0xcb   :  { %v565_v27 = vadd.f32 %v564_v22, %v563_v16 }
  0xcc   :  { %19234 = vst [vmem:[#allocation16_spill] sm:$0xff] %v11799_v24  ;;  %19235 = vst [vmem:[#allocation17_spill] sm:$0xff] %v11804_v32  ;;  %v568_v42 = vsel %vm18920_vm0, %v11799_v24, 0.0  ;;  %v570_v48 = vsel %vm18920_vm0, %v11804_v32, 0.0 }
  0xcd   :  { %v567_v34 = vadd.f32 %v566_v31, %v565_v27  ;;  %v308_v35 = vpop.permute.xlu1 %307  ;;  %v303_v39 = vpop.permute.xlu0 %302 }
  0xce   :  { %v11809_v45 = vmul.f32 %v11608_v2, %v303_v39  ;;  %v11814_v50 = vmul.f32 %v11608_v2, %v308_v35 }
  0xcf   :  { %v569_v46 = vadd.f32 %v568_v42, %v567_v34 }
  0xd0   :  { %19236 = vst [vmem:[#allocation18_spill] sm:$0xff] %v11809_v45  ;;  %19237 = vst [vmem:[#allocation19_spill] sm:$0xff] %v11814_v50  ;;  %v572_v61 = vsel %vm18920_vm0, %v11809_v45, 0.0  ;;  %v574_v6 = vsel %vm18920_vm0, %v11814_v50, 0.0 }
  0xd1   :  { %v571_v54 = vadd.f32 %v570_v48, %v569_v46  ;;  %v318_v55 = vpop.permute.xlu1 %317  ;;  %v313_v59 = vpop.permute.xlu0 %312 }
  0xd2   :  { %v11819_v63 = vmul.f32 %v11608_v2, %v313_v59  ;;  %v11824_v12 = vmul.f32 %v11608_v2, %v318_v55 }
  0xd3   :  { %v573_v1 = vadd.f32 %v572_v61, %v571_v54 }
  0xd4   :  { %19238 = vst [vmem:[#allocation20_spill] sm:$0xff] %v11819_v63  ;;  %19239 = vst [vmem:[#allocation21_spill] sm:$0xff] %v11824_v12  ;;  %v576_v22 = vsel %vm18920_vm0, %v11819_v63, 0.0  ;;  %v578_v34 = vsel %vm18920_vm0, %v11824_v12, 0.0 }
  0xd5   :  { %v575_v16 = vadd.f32 %v574_v6, %v573_v1  ;;  %v328_v18 = vpop.permute.xlu1 %327  ;;  %v323_v21 = vpop.permute.xlu0 %322 }
  0xd6   :  { %v11829_v27 = vmul.f32 %v11608_v2, %v323_v21  ;;  %v11834_v35 = vmul.f32 %v11608_v2, %v328_v18 }
  0xd7   :  { %v577_v31 = vadd.f32 %v576_v22, %v575_v16 }
  0xd8   :  { %19240 = vst [vmem:[#allocation22_spill] sm:$0xff] %v11829_v27  ;;  %19241 = vst [vmem:[#allocation23_spill] sm:$0xff] %v11834_v35  ;;  %v580_v48 = vsel %vm18920_vm0, %v11829_v27, 0.0  ;;  %v582_v59 = vsel %vm18920_vm0, %v11834_v35, 0.0 }
  0xd9   :  { %v579_v39 = vadd.f32 %v578_v34, %v577_v31  ;;  %v338_v42 = vpop.permute.xlu1 %337  ;;  %v333_v46 = vpop.permute.xlu0 %332 }
  0xda   :  { %v11839_v54 = vmul.f32 %v11608_v2, %v333_v46  ;;  %v11844_v61 = vmul.f32 %v11608_v2, %v338_v42 }
  0xdb   :  { %v581_v55 = vadd.f32 %v580_v48, %v579_v39 }
  0xdc   :  { %v584_v18 = vsel %vm18920_vm0, %v11839_v54, 0.0  ;;  %v586_v31 = vsel %vm18920_vm0, %v11844_v61, 0.0 }
  0xdd   :  { %v583_v1 = vadd.f32 %v582_v59, %v581_v55  ;;  %v348_v6 = vpop.permute.xlu1 %347  ;;  %v343_v16 = vpop.permute.xlu0 %342 }
  0xde   :  { %v11849_v21 = vmul.f32 %v11608_v2, %v343_v16  ;;  %v11854_v34 = vmul.f32 %v11608_v2, %v348_v6 }
  0xdf   :  { %v585_v22 = vadd.f32 %v584_v18, %v583_v1 }
  0xe0   :  { %v588_v48 = vsel %vm18920_vm0, %v11849_v21, 0.0  ;;  %v590_v16 = vsel %vm18920_vm0, %v11854_v34, 0.0 }
  0xe1   :  { %v587_v39 = vadd.f32 %v586_v31, %v585_v22  ;;  %v358_v46 = vpop.permute.xlu1 %357  ;;  %v353_v42 = vpop.permute.xlu0 %352 }
  0xe2   :  { %v11859_v55 = vmul.f32 %v11608_v2, %v353_v42  ;;  %v11864_v1 = vmul.f32 %v11608_v2, %v358_v46 }
  0xe3   :  { %v589_v59 = vadd.f32 %v588_v48, %v587_v39 }
  0xe4   :  { %v592_v22 = vsel %vm18920_vm0, %v11859_v55, 0.0  ;;  %v594_v42 = vsel %vm18920_vm0, %v11864_v1, 0.0 }
  0xe5   :  { %v591_v18 = vadd.f32 %v590_v16, %v589_v59  ;;  %v368_v0 = vpop.permute.xlu1 %367  ;;  %v363_v6 = vpop.permute.xlu0 %362 }
  0xe6   :  { %v478_v31 = vmul.f32 %v11608_v2, %v363_v6  ;;  %v479_v39 = vmul.f32 %v11608_v2, %v368_v0 }
  0xe7   :  { %v593_v35 = vadd.f32 %v592_v22, %v591_v18 }
  0xe8   :  { %v596_v46 = vsel %vm18920_vm0, %v478_v31, 0.0  ;;  %v598_v63 = vsel %vm18920_vm0, %v479_v39, 0.0 }
  0xe9   :  { %v595_v48 = vadd.f32 %v594_v42, %v593_v35  ;;  %v378_v27 = vpop.permute.xlu1 %377  ;;  %v373_v12 = vpop.permute.xlu0 %372 }
  0xea   :  { %v480_v59 = vmul.f32 %v11608_v2, %v373_v12  ;;  %v481_v50 = vmul.f32 %v11608_v2, %v378_v27 }
  0xeb   :  { %v597_v16 = vadd.f32 %v596_v46, %v595_v48 }
  0xec   :  { %v600_v22 = vsel %vm18920_vm0, %v480_v59, 0.0  ;;  %v602_v35 = vsel %vm18920_vm0, %v481_v50, 0.0 }
  0xed   :  { %v599_v45 = vadd.f32 %v598_v63, %v597_v16  ;;  %v388_v6 = vpop.permute.xlu1 %387  ;;  %v383_v18 = vpop.permute.xlu0 %382 }
  0xee   :  { %v482_v32 = vmul.f32 %v11608_v2, %v383_v18  ;;  %v483_v42 = vmul.f32 %v11608_v2, %v388_v6 }
  0xef   :  { %v601_v0 = vadd.f32 %v600_v22, %v599_v45 }
  0xf0   :  { %v604_v48 = vsel %vm18920_vm0, %v482_v32, 0.0  ;;  %v606_v63 = vsel %vm18920_vm0, %v483_v42, 0.0 }
  0xf1   :  { %v603_v24 = vadd.f32 %v602_v35, %v601_v0  ;;  %v398_v13 = vpop.permute.xlu1 %397  ;;  %v393_v12 = vpop.permute.xlu0 %392 }
  0xf2   :  { %v484_v46 = vmul.f32 %v11608_v2, %v393_v12  ;;  %v485_v16 = vmul.f32 %v11608_v2, %v398_v13 }
  0xf3   :  { %v605_v27 = vadd.f32 %v604_v48, %v603_v24 }
  0xf4   :  { %v608_v45 = vsel %vm18920_vm0, %v484_v46, 0.0  ;;  %v610_v0 = vsel %vm18920_vm0, %v485_v16, 0.0 }
  0xf5   :  { %v607_v4 = vadd.f32 %v606_v63, %v605_v27  ;;  %v408_v56 = vpop.permute.xlu1 %407  ;;  %v403_v18 = vpop.permute.xlu0 %402 }
  0xf6   :  { %v486_v22 = vmul.f32 %v11608_v2, %v403_v18  ;;  %v487_v35 = vmul.f32 %v11608_v2, %v408_v56 }
  0xf7   :  { %v609_v6 = vadd.f32 %v608_v45, %v607_v4 }
  0xf8   :  { %v612_v24 = vsel %vm18920_vm0, %v486_v22, 0.0  ;;  %v614_v27 = vsel %vm18920_vm0, %v487_v35, 0.0 }
  0xf9   :  { %v611_v53 = vadd.f32 %v610_v0, %v609_v6  ;;  %v418_v43 = vpop.permute.xlu1 %417  ;;  %v413_v12 = vpop.permute.xlu0 %412 }
  0xfa   :  { %v488_v48 = vmul.f32 %v11608_v2, %v413_v12  ;;  %v489_v63 = vmul.f32 %v11608_v2, %v418_v43 }
  0xfb   :  { %v613_v13 = vadd.f32 %v612_v24, %v611_v53 }
  0xfc   :  { %v616_v18 = vsel %vm18920_vm0, %v488_v48, 0.0  ;;  %v618_v45 = vsel %vm18920_vm0, %v489_v63, 0.0 }
  0xfd   :  { %v615_v38 = vadd.f32 %v614_v27, %v613_v13 }
  0xff   :  { %v617_v4 = vadd.f32 %v616_v18, %v615_v38 }
 0x101   :  { %v619_v29 = vadd.f32 %v618_v45, %v617_v4 }
 0x103   :  { %v620_v56 = vrot.slane %v619_v29, 4 }
 0x105   :  { %v621_v6 = vadd.f32 %v620_v56, %v619_v29 }
 0x107   :  { %v622_v0 = vrot.slane %v621_v6, 2 }
 0x109   :  { %v623_v23 = vadd.f32 %v622_v0, %v621_v6 }
 0x10b   :  { %v624_v14 = vrot.slane %v623_v23, 1 }
 0x10d   :  { %v625_v10 = vadd.f32 %v624_v14, %v623_v23 }
 0x10f   :  { %v11894_v62 = vmul.f32 0.001953125, %v625_v10 }
 0x111   :  { %v11898_v53 = vsub.f32 %v11839_v54, %v11894_v62  ;;  %v11902_v2 = vsub.f32 %v11844_v61, %v11894_v62  ;;  %v11906_v38 = vsub.f32 %v11849_v21, %v11894_v62  ;;  %v11910_v29 = vsub.f32 %v11854_v34, %v11894_v62 }
 0x112   :  { %v11914_v10 = vsub.f32 %v11859_v55, %v11894_v62  ;;  %v11918_v14 = vsub.f32 %v11864_v1, %v11894_v62  ;;  %v11921_v23 = vsub.f32 %v478_v31, %v11894_v62  ;;  %v11924_v43 = vsub.f32 %v479_v39, %v11894_v62 }
 0x113   :  { %v11927_v54 = vsub.f32 %v480_v59, %v11894_v62  ;;  %v11930_v61 = vsub.f32 %v481_v50, %v11894_v62  ;;  %v11933_v21 = vsub.f32 %v482_v32, %v11894_v62  ;;  %v11936_v34 = vsub.f32 %v483_v42, %v11894_v62 }
 0x114   :  { %v11939_v55 = vsub.f32 %v484_v46, %v11894_v62  ;;  %v11942_v1 = vsub.f32 %v485_v16, %v11894_v62  ;;  %v11945_v31 = vsub.f32 %v486_v22, %v11894_v62  ;;  %v11948_v39 = vsub.f32 %v487_v35, %v11894_v62 }
 0x115   :  { %v11951_v50 = vsub.f32 %v488_v48, %v11894_v62  ;;  %v11954_v32 = vsub.f32 %v489_v63, %v11894_v62  ;;  %v11958_v59 = vsub.f32 %v11611_v5, %v11894_v62  ;;  %v11962_v42 = vsub.f32 %v11617_v9, %v11894_v62 }
 0x116   :  { %19242 = vst [vmem:[#allocation24_spill] sm:$0xff] %v11942_v1  ;;  %19243 = vst [vmem:[#allocation25_spill] sm:$0xff] %v11945_v31  ;;  %v11966_v46 = vsub.f32 %v11614_v8, %v11894_v62  ;;  %v11970_v16 = vsub.f32 %v11622_v11, %v11894_v62  ;;  %v11978_v5 = vsub.f32 %v11629_v17, %v11894_v62 }
 0x117   :  { %19244 = vst [vmem:[#allocation26_spill] sm:$0xff] %v11948_v39  ;;  %v692_v22 = vmul.f32 %v11958_v59, %v11958_v59  ;;  %v693_v35 = vmul.f32 %v11962_v42, %v11962_v42  ;;  %v11984_v8 = vsub.f32 %v11634_v20, %v11894_v62  ;;  %v11992_v13 = vsub.f32 %v11639_v25, %v11894_v62 }
 0x118   :  { %v694_v9 = vmul.f32 %v11966_v46, %v11966_v46  ;;  %v695_v11 = vmul.f32 %v11970_v16, %v11970_v16  ;;  %v696_v17 = vmul.f32 %v11978_v5, %v11978_v5  ;;  %v11999_v20 = vsub.f32 %v11644_v28, %v11894_v62 }
 0x119   :  { %v756_v12 = vsel %vm18920_vm0, %v692_v22, 0.0  ;;  %v757_v24 = vsel %vm18920_vm0, %v693_v35, 0.0  ;;  %v697_v18 = vmul.f32 %v11984_v8, %v11984_v8  ;;  %v12006_v25 = vsub.f32 %v11649_v33, %v11894_v62 }
 0x11a   :  { %v758_v48 = vadd.f32 %v757_v24, %v756_v12  ;;  %v759_v27 = vsel %vm18920_vm0, %v694_v9, 0.0  ;;  %v761_v4 = vsel %vm18920_vm0, %v695_v11, 0.0  ;;  %v698_v56 = vmul.f32 %v11992_v13, %v11992_v13 }
 0x11b   :  { %v763_v6 = vsel %vm18920_vm0, %v696_v17, 0.0  ;;  %v12013_v28 = vsub.f32 %v11654_v36, %v11894_v62  ;;  %v699_v22 = vmul.f32 %v11999_v20, %v11999_v20  ;;  %v765_v35 = vsel %vm18920_vm0, %v697_v18, 0.0 }
 0x11c   :  { %v760_v63 = vadd.f32 %v759_v27, %v758_v48  ;;  %v12020_v33 = vsub.f32 %v11659_v41, %v11894_v62  ;;  %v700_v11 = vmul.f32 %v12006_v25, %v12006_v25  ;;  %v767_v12 = vsel %vm18920_vm0, %v698_v56, 0.0 }
 0x11d   :  { %v12027_v36 = vsub.f32 %v11664_v44, %v11894_v62  ;;  %v701_v48 = vmul.f32 %v12013_v28, %v12013_v28  ;;  %v769_v17 = vsel %vm18920_vm0, %v699_v22, 0.0  ;;  %v12034_v41 = vsub.f32 %v11669_v49, %v11894_v62 }
 0x11e   :  { %v762_v45 = vadd.f32 %v761_v4, %v760_v63  ;;  %v702_v63 = vmul.f32 %v12020_v33, %v12020_v33  ;;  %v771_v18 = vsel %vm18920_vm0, %v700_v11, 0.0  ;;  %v12041_v44 = vsub.f32 %v11674_v52, %v11894_v62 }
 0x11f   :  { %v773_v56 = vsel %vm18920_vm0, %v701_v48, 0.0  ;;  %v12048_v49 = vsub.f32 %v11679_v57, %v11894_v62  ;;  %v12055_v52 = vsub.f32 %v11684_v60, %v11894_v62  ;;  %v12062_v57 = vsub.f32 %v11689_v3, %v11894_v62 }
 0x120   :  { %v764_v0 = vadd.f32 %v763_v6, %v762_v45  ;;  %v703_v45 = vmul.f32 %v12027_v36, %v12027_v36  ;;  %v775_v22 = vsel %vm18920_vm0, %v702_v63, 0.0  ;;  %v12069_v60 = vsub.f32 %v11694_v7, %v11894_v62 }
 0x121   :  { %v12076_v3 = vsub.f32 %v11699_v15, %v11894_v62  ;;  %v12083_v7 = vsub.f32 %v11704_v19, %v11894_v62  ;;  %v12090_v15 = vsub.f32 %v11709_v26, %v11894_v62  ;;  %v12097_v19 = vsub.f32 %v11714_v30, %v11894_v62 }
 0x122   :  { %v766_v9 = vadd.f32 %v765_v35, %v764_v0  ;;  %v704_v0 = vmul.f32 %v12034_v41, %v12034_v41  ;;  %v777_v11 = vsel %vm18920_vm0, %v703_v45, 0.0  ;;  %v12104_v26 = vsub.f32 %v11719_v37, %v11894_v62 }
 0x123   :  { %v12111_v30 = vsub.f32 %v11724_v40, %v11894_v62  ;;  %v12118_v37 = vsub.f32 %v11729_v47, %v11894_v62  ;;  %v12125_v40 = vsub.f32 %v11734_v51, %v11894_v62  ;;  %v12132_v47 = vsub.f32 %v11739_v58, %v11894_v62  ;;  %v19248_v51 = vld [vmem:[#allocation5_spill] sm:$0xff]  ;;  %v19250_v58 = vld [vmem:[#allocation6_spill] sm:$0xff] }
 0x124   :  { %v768_v24 = vadd.f32 %v767_v12, %v766_v9  ;;  %v705_v9 = vmul.f32 %v12041_v44, %v12041_v44  ;;  %v779_v48 = vsel %vm18920_vm0, %v704_v0, 0.0 }
 0x125   :  { %19245 = vst [vmem:[#allocation27_spill] sm:$0xff] %v12118_v37  ;;  %19246 = vst [vmem:[#allocation28_spill] sm:$0xff] %v12125_v40 }
 0x126   :  { %v770_v27 = vadd.f32 %v769_v17, %v768_v24  ;;  %v706_v24 = vmul.f32 %v12048_v49, %v12048_v49  ;;  %v781_v63 = vsel %vm18920_vm0, %v705_v9, 0.0  ;;  %19247 = vst [vmem:[#allocation29_spill] sm:$0xff] %v12132_v47 }
 0x128   :  { %v772_v4 = vadd.f32 %v771_v18, %v770_v27  ;;  %v707_v27 = vmul.f32 %v12055_v52, %v12055_v52  ;;  %v783_v45 = vsel %vm18920_vm0, %v706_v24, 0.0 }
 0x12a   :  { %v774_v6 = vadd.f32 %v773_v56, %v772_v4  ;;  %v708_v4 = vmul.f32 %v12062_v57, %v12062_v57  ;;  %v785_v0 = vsel %vm18920_vm0, %v707_v27, 0.0 }
 0x12c   :  { %v776_v35 = vadd.f32 %v775_v22, %v774_v6  ;;  %v709_v6 = vmul.f32 %v12069_v60, %v12069_v60  ;;  %v787_v9 = vsel %vm18920_vm0, %v708_v4, 0.0 }
 0x12e   :  { %v778_v12 = vadd.f32 %v777_v11, %v776_v35  ;;  %v710_v35 = vmul.f32 %v12076_v3, %v12076_v3  ;;  %v789_v24 = vsel %vm18920_vm0, %v709_v6, 0.0 }
 0x130   :  { %v780_v17 = vadd.f32 %v779_v48, %v778_v12  ;;  %v711_v12 = vmul.f32 %v12083_v7, %v12083_v7  ;;  %v791_v27 = vsel %vm18920_vm0, %v710_v35, 0.0 }
 0x132   :  { %v782_v18 = vadd.f32 %v781_v63, %v780_v17  ;;  %v712_v17 = vmul.f32 %v12090_v15, %v12090_v15  ;;  %v793_v4 = vsel %vm18920_vm0, %v711_v12, 0.0 }
 0x134   :  { %v784_v56 = vadd.f32 %v783_v45, %v782_v18  ;;  %v713_v18 = vmul.f32 %v12097_v19, %v12097_v19  ;;  %v795_v6 = vsel %vm18920_vm0, %v712_v17, 0.0  ;;  %v12139_v17 = vsub.f32 %v19248_v51, %v11894_v62 }
 0x136   :  { %v786_v22 = vadd.f32 %v785_v0, %v784_v56  ;;  %v714_v56 = vmul.f32 %v12104_v26, %v12104_v26  ;;  %v797_v35 = vsel %vm18920_vm0, %v713_v18, 0.0  ;;  %19249 = vst [vmem:[#allocation5_spill] sm:$0xff] %v12139_v17 }
 0x138   :  { %v788_v11 = vadd.f32 %v787_v9, %v786_v22  ;;  %v715_v22 = vmul.f32 %v12111_v30, %v12111_v30  ;;  %v799_v12 = vsel %vm18920_vm0, %v714_v56, 0.0 }
 0x13a   :  { %v790_v48 = vadd.f32 %v789_v24, %v788_v11  ;;  %v716_v11 = vmul.f32 %v12118_v37, %v12118_v37  ;;  %v18858_v24 = vlaneseq }
 0x13c   :  { %v792_v63 = vadd.f32 %v791_v27, %v790_v48  ;;  %v717_v27 = vmul.f32 %v12125_v40, %v12125_v40  ;;  %v803_v56 = vsel %vm18920_vm0, %v716_v11, 0.0 }
 0x13e   :  { %v794_v45 = vadd.f32 %v793_v4, %v792_v63  ;;  %v801_v63 = vsel %vm18920_vm0, %v715_v22, 0.0  ;;  %v12146_v4 = vsub.f32 %v19250_v58, %v11894_v62  ;;  %v719_v22 = vmul.f32 %v12139_v17, %v12139_v17 }
 0x140   :  { %v796_v0 = vadd.f32 %v795_v6, %v794_v45  ;;  %19251 = vst [vmem:[#allocation6_spill] sm:$0xff] %v12146_v4  ;;  %v718_v45 = vmul.f32 %v12132_v47, %v12132_v47  ;;  %v12152_v6 = vshrl.u32 %v18858_v24, 7  ;;  %v720_v11 = vmul.f32 %v12146_v4, %v12146_v4  ;;  %v19260_v4 = vld [vmem:[#allocation10_spill] sm:$0xff] }
 0x141   :  { %v12186_v17 = vsub.f32 %v19260_v4, %v11894_v62 }
 0x142   :  { %v798_v9 = vadd.f32 %v797_v35, %v796_v0  ;;  %19252 = vst [vmem:[#allocation30_spill] sm:$0xff] %v12152_v6  ;;  %v19253_v35 = vld [vmem:[#allocation7_spill] sm:$0xff]  ;;  %v1360_v51 = vshra.s32 %v12152_v6, 4 }
 0x143   :  { %19261 = vst [vmem:[#allocation10_spill] sm:$0xff] %v12186_v17 }
 0x144   :  { %v800_v48 = vadd.f32 %v799_v12, %v798_v9  ;;  %v12156_v9 = vsub.f32 %v19253_v35, %v11894_v62  ;;  %v805_v12 = vsel %vm18920_vm0, %v717_v27, 0.0  ;;  %v19258_v35 = vld [vmem:[#allocation9_spill] sm:$0xff] }
 0x146   :  { %v802_v18 = vadd.f32 %v801_v63, %v800_v48  ;;  %19254 = vst [vmem:[#allocation7_spill] sm:$0xff] %v12156_v9  ;;  %v19255_v63 = vld [vmem:[#allocation8_spill] sm:$0xff] }
 0x147   :  { %v12164_v58 = vsub.f32 %v19255_v63, %v11894_v62  ;;  %v809_v63 = vsel %vm18920_vm0, %v719_v22, 0.0 }
 0x148   :  { %v804_v0 = vadd.f32 %v803_v56, %v802_v18  ;;  %v807_v18 = vsel %vm18920_vm0, %v718_v45, 0.0  ;;  %v11350_v56 = vmov 0.0   ;;  %v721_v45 = vmul.f32 %v12156_v9, %v12156_v9  ;;  %v19264_v9 = vld [vmem:[#allocation12_spill] sm:$0xff] }
 0x149   :  { %19256 = vst [vmem:[#allocation8_spill] sm:$0xff] %v12164_v58  ;;  %1162 = vst.msk [vmem:[#allocation2 + $0x8] sm:$0xff] %vm18920_vm0, %v11350_v56  ;;  %v12201_v47 = vsub.f32 %v19264_v9, %v11894_v62 }
 0x14a   :  { %v806_v48 = vadd.f32 %v805_v12, %v804_v0  ;;  %1161 = vst.msk [vmem:[#allocation2] sm:$0xff] %vm18920_vm0, %v11350_v56  ;;  %1163 = vst.msk [vmem:[#allocation2 + $0x10] sm:$0xff] %vm18920_vm0, %v11350_v56  ;;  %v12175_v0 = vand.u32 15, %v1360_v51  ;;  %v12179_v12 = vsub.f32 %v19258_v35, %v11894_v62 }
 0x14b   :  { %1164 = vst.msk [vmem:[#allocation2 + $0x218] sm:$0xff] %vm18920_vm0, %v11350_v56  ;;  %1165 = vst.msk [vmem:[#allocation2 + $0x220] sm:$0xff] %vm18920_vm0, %v11350_v56 }
 0x14c   :  { %1166 = vst.msk [vmem:[#allocation2 + $0x228] sm:$0xff] %vm18920_vm0, %v11350_v56  ;;  %v808_v27 = vadd.f32 %v807_v18, %v806_v48  ;;  %19257 = vst [vmem:[#allocation31_spill] sm:$0xff] %v12175_v0  ;;  %v722_v56 = vmul.f32 %v12164_v58, %v12164_v58  ;;  %v811_v48 = vsel %vm18920_vm0, %v720_v11, 0.0  ;;  %vm1488_vm1 = vcmp.gt.s32.totalorder %v12175_v0, 0  ;;  %v19262_v18 = vld [vmem:[#allocation11_spill] sm:$0xff] }
 0x14d   :  { %19259 = vst [vmem:[#allocation9_spill] sm:$0xff] %v12179_v12  ;;  %v12194_v35 = vsub.f32 %v19262_v18, %v11894_v62  ;;  %v723_v22 = vmul.f32 %v12179_v12, %v12179_v12  ;;  %19265 = vst [vmem:[#allocation12_spill] sm:$0xff] %v12201_v47  ;;  %v19266_v12 = vld [vmem:[#allocation13_spill] sm:$0xff] }
 0x14e   :  { %v810_v24 = vadd.f32 %v809_v63, %v808_v27  ;;  %v813_v27 = vsel %vm18920_vm0, %v721_v45, 0.0  ;;  %v815_v11 = vsel %vm18920_vm0, %v722_v56, 0.0  ;;  %v12210_v40 = vsub.f32 %v19266_v12, %v11894_v62  ;;  %v19268_v56 = vld [vmem:[#allocation14_spill] sm:$0xff] }
 0x14f   :  { %19263 = vst [vmem:[#allocation11_spill] sm:$0xff] %v12194_v35  ;;  %v725_v45 = vmul.f32 %v12194_v35, %v12194_v35  ;;  %v817_v9 = vsel %vm18920_vm0, %v723_v22, 0.0 }
 0x150   :  { %v812_v51 = vadd.f32 %v811_v48, %v810_v24  ;;  %v2385_v4 = vld [vmem:[#allocation2 + $0x8] sm:$0xff]  ;;  %v724_v24 = vmul.f32 %v12186_v17, %v12186_v17  ;;  %19267 = vst [vmem:[#allocation13_spill] sm:$0xff] %v12210_v40  ;;  %v727_v22 = vmul.f32 %v12210_v40, %v12210_v40 }
 0x151   :  { %v2577_v48 = vsel %vm1488_vm1, %v2385_v4, 0.0  ;;  %v2386_v17 = vld [vmem:[#allocation2 + $0x10] sm:$0xff] }
 0x152   :  { %v814_v63 = vadd.f32 %v813_v27, %v812_v51  ;;  %v10582_v58 = vpack.c.bf16 %v2577_v48, %v2577_v48  ;;  %v12218_v27 = vsub.f32 %v19268_v56, %v11894_v62  ;;  %v819_v4 = vsel %vm18920_vm0, %v724_v24, 0.0 }
 0x154   :  { %v816_v18 = vadd.f32 %v815_v11, %v814_v63  ;;  %2833 = vrot.lane.b32.xlu0 %v10582_v58, %s11351_s0  ;;  %19269 = vst [vmem:[#allocation14_spill] sm:$0xff] %v12218_v27  ;;  %v726_v63 = vmul.f32 %v12201_v47, %v12201_v47  ;;  %v19270_v11 = vld [vmem:[#allocation15_spill] sm:$0xff]  ;;  %v728_v47 = vmul.f32 %v12218_v27, %v12218_v27  ;;  %v19276_v27 = vld [vmem:[#allocation18_spill] sm:$0xff] }
 0x155   :  { %v12225_v48 = vsub.f32 %v19270_v11, %v11894_v62  ;;  %v19274_v11 = vld [vmem:[#allocation17_spill] sm:$0xff]  ;;  %v12250_v40 = vsub.f32 %v19276_v27, %v11894_v62 }
 0x156   :  { %v818_v51 = vadd.f32 %v817_v9, %v816_v18  ;;  %v821_v18 = vsel %vm18920_vm0, %v725_v45, 0.0  ;;  %v19272_v9 = vld [vmem:[#allocation16_spill] sm:$0xff]  ;;  %v823_v24 = vsel %vm18920_vm0, %v726_v63, 0.0  ;;  %v12242_v35 = vsub.f32 %v19274_v11, %v11894_v62 }
 0x157   :  { %19271 = vst [vmem:[#allocation15_spill] sm:$0xff] %v12225_v48  ;;  %v12232_v56 = vsub.f32 %v19272_v9, %v11894_v62  ;;  %v729_v45 = vmul.f32 %v12225_v48, %v12225_v48  ;;  %19277 = vst [vmem:[#allocation18_spill] sm:$0xff] %v12250_v40  ;;  %v19279_v48 = vld [vmem:[#allocation19_spill] sm:$0xff] }
 0x158   :  { %v820_v12 = vadd.f32 %v819_v4, %v818_v51  ;;  %v12238_v4 = vadd.s32 8, %v12152_v6  ;;  %19275 = vst [vmem:[#allocation17_spill] sm:$0xff] %v12242_v35  ;;  %v12259_v37 = vsub.f32 %v19279_v48, %v11894_v62 }
 0x159   :  { %v730_v63 = vmul.f32 %v12232_v56, %v12232_v56 }
 0x15a   :  { %v822_v58 = vadd.f32 %v821_v18, %v820_v12  ;;  %19273 = vst [vmem:[#allocation16_spill] sm:$0xff] %v12238_v4  ;;  %v825_v12 = vsel %vm18920_vm0, %v727_v22, 0.0  ;;  %v1361_v9 = vshra.s32 %v12238_v4, 4  ;;  %v731_v22 = vmul.f32 %v12242_v35, %v12242_v35  ;;  %v19281_v35 = vld [vmem:[#allocation21_spill] sm:$0xff] }
 0x15c   :  { %v824_v51 = vadd.f32 %v823_v24, %v822_v58  ;;  %v827_v58 = vsel %vm18920_vm0, %v728_v47, 0.0  ;;  %v12255_v11 = vand.u32 15, %v1361_v9  ;;  %v732_v47 = vmul.f32 %v12250_v40, %v12250_v40  ;;  %v19283_v40 = vld [vmem:[#allocation22_spill] sm:$0xff] }
 0x15e   :  { %v826_v18 = vadd.f32 %v825_v12, %v824_v51  ;;  %19278 = vst [vmem:[#allocation32_spill] sm:$0xff] %v12255_v11  ;;  %v829_v51 = vsel %vm18920_vm0, %v729_v45, 0.0  ;;  %vm18935_vm2 = vcmp.gt.s32.totalorder %v12255_v11, 0  ;;  %v19280_v12 = vld [vmem:[#allocation20_spill] sm:$0xff]  ;;  %v12276_v45 = vsub.f32 %v19281_v35, %v11894_v62  ;;  %v19284_v35 = vld [vmem:[#allocation23_spill] sm:$0xff] }
 0x15f   :  { %v12267_v4 = vsub.f32 %v19280_v12, %v11894_v62  ;;  %v2578_v48 = vsel %vm18935_vm2, %v2386_v17, 0.0 }
 0x160   :  { %v828_v24 = vadd.f32 %v827_v58, %v826_v18  ;;  %v831_v18 = vsel %vm18920_vm0, %v730_v63, 0.0  ;;  %v10583_v58 = vpack.c.bf16 %v2578_v48, %v2578_v48  ;;  %19282 = vst [vmem:[#allocation19_spill] sm:$0xff] %v12276_v45  ;;  %v12284_v63 = vsub.f32 %v19283_v40, %v11894_v62 }
 0x161   :  { %v734_v17 = vmul.f32 %v12267_v4, %v12267_v4  ;;  %v12291_v48 = vsub.f32 %v19284_v35, %v11894_v62  ;;  %v738_v62 = vmul.f32 %v11898_v53, %v11898_v53 }
 0x162   :  { %v830_v27 = vadd.f32 %v829_v51, %v828_v24  ;;  %v733_v24 = vmul.f32 %v12259_v37, %v12259_v37  ;;  %v833_v51 = vsel %vm18920_vm0, %v731_v22, 0.0  ;;  %2835 = vrot.lane.b32.xlu1 %v10583_v58, %s11351_s0  ;;  %v735_v22 = vmul.f32 %v12276_v45, %v12276_v45 }
 0x163   :  { %v736_v40 = vmul.f32 %v12284_v63, %v12284_v63 }
 0x164   :  { %v832_v9 = vadd.f32 %v831_v18, %v830_v27  ;;  %v835_v27 = vsel %vm18920_vm0, %v732_v47, 0.0  ;;  %v737_v47 = vmul.f32 %v12291_v48, %v12291_v48 }
 0x165   :  { %v843_v35 = vsel %vm18920_vm0, %v736_v40, 0.0  ;;  %v741_v40 = vmul.f32 %v11910_v29, %v11910_v29 }
 0x166   :  { %v834_v12 = vadd.f32 %v833_v51, %v832_v9  ;;  %v837_v9 = vsel %vm18920_vm0, %v733_v24, 0.0  ;;  %v839_v51 = vsel %vm18920_vm0, %v734_v17, 0.0  ;;  %v3090_v24 = vld [vmem:[#allocation2 + $0x9] sm:$0xff] }
 0x167   :  { %v3346_v17 = vsel %vm1488_vm1, %v3090_v24, 0.0 }
 0x168   :  { %v836_v18 = vadd.f32 %v835_v27, %v834_v12  ;;  %v841_v12 = vsel %vm18920_vm0, %v735_v22, 0.0  ;;  %v847_v22 = vsel %vm18920_vm0, %v738_v62, 0.0  ;;  %v853_v62 = vsel %vm18920_vm0, %v741_v40, 0.0 }
 0x169   :  { %v747_v40 = vmul.f32 %v11930_v61, %v11930_v61 }
 0x16a   :  { %v838_v58 = vadd.f32 %v837_v9, %v836_v18  ;;  %v739_v18 = vmul.f32 %v11902_v2, %v11902_v2  ;;  %v845_v9 = vsel %vm18920_vm0, %v737_v47, 0.0 }
 0x16c   :  { %v840_v11 = vadd.f32 %v839_v51, %v838_v58  ;;  %v10646_v51 = vpack.c.bf16 %v3346_v17, %v3346_v17 }
 0x16e   :  { %v842_v27 = vadd.f32 %v841_v12, %v840_v11  ;;  %v740_v11 = vmul.f32 %v11906_v38, %v11906_v38  ;;  %3602 = vrot.lane.b32.xlu0 %v10646_v51, %s11352_s1 }
 0x170   :  { %v844_v45 = vadd.f32 %v843_v35, %v842_v27  ;;  %v849_v27 = vsel %vm18920_vm0, %v739_v18, 0.0  ;;  %v742_v35 = vmul.f32 %v11914_v10, %v11914_v10  ;;  %v745_v18 = vmul.f32 %v11924_v43, %v11924_v43 }
 0x172   :  { %v846_v58 = vadd.f32 %v845_v9, %v844_v45  ;;  %v851_v45 = vsel %vm18920_vm0, %v740_v11, 0.0  ;;  %v743_v9 = vmul.f32 %v11918_v14, %v11918_v14  ;;  %v855_v51 = vsel %vm18920_vm0, %v742_v35, 0.0 }
 0x173   :  { %v746_v11 = vmul.f32 %v11927_v54, %v11927_v54  ;;  %v748_v35 = vmul.f32 %v11933_v21, %v11933_v21 }
 0x174   :  { %v848_v12 = vadd.f32 %v847_v22, %v846_v58  ;;  %v744_v58 = vmul.f32 %v11921_v23, %v11921_v23 }
 0x176   :  { %v850_v47 = vadd.f32 %v849_v27, %v848_v12  ;;  %v857_v12 = vsel %vm18920_vm0, %v743_v9, 0.0  ;;  %v749_v9 = vmul.f32 %v11936_v34, %v11936_v34 }
 0x178   :  { %v852_v24 = vadd.f32 %v851_v45, %v850_v47  ;;  %v859_v47 = vsel %vm18920_vm0, %v744_v58, 0.0  ;;  %v750_v58 = vmul.f32 %v11939_v55, %v11939_v55 }
 0x17a   :  { %v854_v17 = vadd.f32 %v853_v62, %v852_v24  ;;  %v861_v24 = vsel %vm18920_vm0, %v745_v18, 0.0  ;;  %v751_v18 = vmul.f32 %v11942_v1, %v11942_v1 }
 0x17c   :  { %v856_v22 = vadd.f32 %v855_v51, %v854_v17  ;;  %v863_v17 = vsel %vm18920_vm0, %v746_v11, 0.0  ;;  %v752_v11 = vmul.f32 %v11945_v31, %v11945_v31 }
 0x17e   :  { %v858_v27 = vadd.f32 %v857_v12, %v856_v22  ;;  %v865_v22 = vsel %vm18920_vm0, %v747_v40, 0.0  ;;  %v753_v40 = vmul.f32 %v11948_v39, %v11948_v39 }
 0x180   :  { %v860_v45 = vadd.f32 %v859_v47, %v858_v27  ;;  %v867_v27 = vsel %vm18920_vm0, %v748_v35, 0.0  ;;  %v754_v35 = vmul.f32 %v11951_v50, %v11951_v50 }
 0x182   :  { %v862_v62 = vadd.f32 %v861_v24, %v860_v45  ;;  %v869_v45 = vsel %vm18920_vm0, %v749_v9, 0.0  ;;  %v755_v9 = vmul.f32 %v11954_v32, %v11954_v32 }
 0x184   :  { %v864_v51 = vadd.f32 %v863_v17, %v862_v62  ;;  %v871_v62 = vsel %vm18920_vm0, %v750_v58, 0.0  ;;  %v879_v58 = vsel %vm18920_vm0, %v754_v35, 0.0 }
 0x186   :  { %v866_v12 = vadd.f32 %v865_v22, %v864_v51  ;;  %v873_v51 = vsel %vm18920_vm0, %v751_v18, 0.0 }
 0x188   :  { %v868_v47 = vadd.f32 %v867_v27, %v866_v12  ;;  %v875_v12 = vsel %vm18920_vm0, %v752_v11, 0.0 }
 0x18a   :  { %v870_v24 = vadd.f32 %v869_v45, %v868_v47  ;;  %v877_v47 = vsel %vm18920_vm0, %v753_v40, 0.0  ;;  %v490_v40 = vld [vmem:[%s18829_s2] sm:$0x1]  ;;  %s11353_s2 = smov 64  }
 0x18c   :  { %v872_v17 = vadd.f32 %v871_v62, %v870_v24  ;;  %v881_v62 = vsel %vm18920_vm0, %v755_v9, 0.0 }
 0x18e   :  { %v874_v22 = vadd.f32 %v873_v51, %v872_v17 }
 0x190   :  { %v876_v27 = vadd.f32 %v875_v12, %v874_v22  ;;  %v12365_v12 = vsub.s32 0, %v12152_v6  ;;  %v19301_v6 = vld [vmem:[#allocation15_spill] sm:$0xff] }
 0x192   :  { %v878_v45 = vadd.f32 %v877_v47, %v876_v27  ;;  %19285 = vst [vmem:[#allocation20_spill] sm:$0xff] %v12365_v12 }
 0x194   :  { %v880_v24 = vadd.f32 %v879_v58, %v878_v45 }
 0x196   :  { %v882_v0 = vadd.f32 %v881_v62, %v880_v24 }
 0x198   :  { %v883_v18 = vrot.slane %v882_v0, 4 }
 0x19a   :  { %v884_v17 = vadd.f32 %v883_v18, %v882_v0  ;;  %v12373_v0 = vld [vmem:[%s18830_s3] ss:$0 sm:$0xff]  ;;  %v19286_v18 = vld [vmem:[#allocation27_spill] sm:$0xff]  ;;  %s11354_s3 = smov 48  }
 0x19c   :  { %v885_v51 = vrot.slane %v884_v17, 2 }
 0x19e   :  { %v886_v39 = vadd.f32 %v885_v51, %v884_v17  ;;  %v19287_v17 = vld [vmem:[#allocation28_spill] sm:$0xff] }
 0x1a0   :  { %v887_v31 = vrot.slane %v886_v39, 1 }
 0x1a2   :  { %v888_v1 = vadd.f32 %v887_v31, %v886_v39 }
 0x1a4   :  { %v889_v11 = vmul.f32 0.001953125, %v888_v1 }
 0x1a6   :  { %v890_v22 = vadd.f32 1e-05, %v889_v11 }
 0x1a8   :  { %11268 = vrsqrt.f32 %v890_v22 }
 0x1b5   :  { %v11269_v35 = vpop.eup %11268 }
 0x1b6   :  { %v892_v27 = vmul.f32 %v11269_v35, %v490_v40  ;;  %v19291_v40 = vld [vmem:[#allocation7_spill] sm:$0xff] }
 0x1b8   :  { %v12368_v9 = vrot.slane %v892_v27, %v12365_v12  ;;  %v19292_v27 = vld [vmem:[#allocation8_spill] sm:$0xff]  ;;  %v19300_v12 = vld [vmem:[#allocation14_spill] sm:$0xff] }
 0x1ba   :  { %v961_v1 = vmul.f32 %v12368_v9, %v11951_v50  ;;  %v12379_v31 = vmul.f32 %v12368_v9, %v11958_v59  ;;  %v12383_v39 = vmul.f32 %v12368_v9, %v11962_v42  ;;  %v12387_v47 = vmul.f32 %v12368_v9, %v11966_v46 }
 0x1bb   :  { %v12391_v45 = vmul.f32 %v12368_v9, %v11970_v16  ;;  %v12395_v58 = vmul.f32 %v12368_v9, %v11978_v5  ;;  %v12400_v59 = vmul.f32 %v12368_v9, %v11984_v8  ;;  %v12404_v42 = vmul.f32 %v12368_v9, %v11992_v13 }
 0x1bc   :  { %v1031_v50 = vadd.f32 %v12373_v0, %v961_v1  ;;  %v12408_v46 = vmul.f32 %v12368_v9, %v11999_v20  ;;  %v12412_v16 = vmul.f32 %v12368_v9, %v12006_v25  ;;  %v12416_v5 = vmul.f32 %v12368_v9, %v12013_v28 }
 0x1bd   :  { %v12420_v8 = vmul.f32 %v12368_v9, %v12020_v33  ;;  %v12424_v13 = vmul.f32 %v12368_v9, %v12027_v36  ;;  %v12428_v20 = vmul.f32 %v12368_v9, %v12034_v41  ;;  %v12432_v25 = vmul.f32 %v12368_v9, %v12041_v44 }
 0x1be   :  { %v1095_v24 = vmul.f32 0.2, %v1031_v50  ;;  %v12436_v28 = vmul.f32 %v12368_v9, %v12048_v49  ;;  %v12440_v33 = vmul.f32 %v12368_v9, %v12055_v52  ;;  %v12444_v36 = vmul.f32 %v12368_v9, %v12062_v57 }
 0x1bf   :  { %v12448_v41 = vmul.f32 %v12368_v9, %v12069_v60  ;;  %v12452_v44 = vmul.f32 %v12368_v9, %v12076_v3  ;;  %v12456_v49 = vmul.f32 %v12368_v9, %v12083_v7  ;;  %v12460_v52 = vmul.f32 %v12368_v9, %v12090_v15 }
 0x1c0   :  { %v1159_v62 = vmax.f32 %v1031_v50, %v1095_v24  ;;  %v12464_v57 = vmul.f32 %v12368_v9, %v12097_v19  ;;  %v12468_v60 = vmul.f32 %v12368_v9, %v12104_v26  ;;  %v12472_v3 = vmul.f32 %v12368_v9, %v12111_v30  ;;  %v19288_v19 = vld [vmem:[#allocation29_spill] sm:$0xff]  ;;  %v19290_v30 = vld [vmem:[#allocation6_spill] sm:$0xff] }
 0x1c1   :  { %v12476_v7 = vmul.f32 %v12368_v9, %v19286_v18  ;;  %v12480_v15 = vmul.f32 %v12368_v9, %v19287_v17  ;;  %v12485_v51 = vmul.f32 %v12368_v9, %v19288_v19  ;;  %v19289_v26 = vld [vmem:[#allocation5_spill] sm:$0xff]  ;;  %v12493_v22 = vmul.f32 %v12368_v9, %v19290_v30  ;;  %v19295_v17 = vld [vmem:[#allocation11_spill] sm:$0xff] }
 0x1c2   :  { %1229 = vst.msk [vmem:[#allocation2 + $0x208] sm:$0xff] %vm18920_vm0, %v1159_v62  ;;  %v12489_v11 = vmul.f32 %v12368_v9, %v19289_v26  ;;  %v12497_v35 = vmul.f32 %v12368_v9, %v19291_v40  ;;  %v12501_v1 = vmul.f32 %v12368_v9, %v19292_v27  ;;  %v19293_v50 = vld [vmem:[#allocation9_spill] sm:$0xff]  ;;  %v19294_v62 = vld [vmem:[#allocation10_spill] sm:$0xff]  ;;  %v12513_v19 = vmul.f32 %v12368_v9, %v19295_v17  ;;  %v19297_v26 = vld [vmem:[#allocation12_spill] sm:$0xff] }
 0x1c3   :  { %v12505_v24 = vmul.f32 %v12368_v9, %v19293_v50  ;;  %v12509_v18 = vmul.f32 %v12368_v9, %v19294_v62  ;;  %v12517_v30 = vmul.f32 %v12368_v9, %v19297_v26  ;;  %v19299_v40 = vld [vmem:[#allocation13_spill] sm:$0xff]  ;;  %v12525_v50 = vmul.f32 %v12368_v9, %v19300_v12 }
 0x1c4   :  { %19296 = vst [vmem:[#allocation21_spill] sm:$0xff] %v12513_v19  ;;  %v12521_v27 = vmul.f32 %v12368_v9, %v19299_v40  ;;  %v12529_v62 = vmul.f32 %v12368_v9, %v19301_v6  ;;  %v12533_v17 = vmul.f32 %v12368_v9, %v12232_v56  ;;  %v19303_v19 = vld [vmem:[#allocation17_spill] sm:$0xff]  ;;  %v12545_v12 = vmul.f32 %v12368_v9, %v12259_v37 }
 0x1c5   :  { %19298 = vst [vmem:[#allocation22_spill] sm:$0xff] %v12517_v30  ;;  %v12537_v26 = vmul.f32 %v12368_v9, %v19303_v19  ;;  %v19304_v30 = vld [vmem:[#allocation18_spill] sm:$0xff]  ;;  %v12549_v6 = vmul.f32 %v12368_v9, %v12267_v4  ;;  %v12557_v19 = vmul.f32 %v12368_v9, %v12284_v63  ;;  %v12565_v37 = vmul.f32 %v12368_v9, %v11898_v53 }
 0x1c6   :  { %19302 = vst [vmem:[#allocation23_spill] sm:$0xff] %v12529_v62  ;;  %v12541_v40 = vmul.f32 %v12368_v9, %v19304_v30  ;;  %v19305_v62 = vld [vmem:[#allocation19_spill] sm:$0xff]  ;;  %v12561_v30 = vmul.f32 %v12368_v9, %v12291_v48  ;;  %v12569_v4 = vmul.f32 %v12368_v9, %v11902_v2  ;;  %v12577_v63 = vmul.f32 %v12368_v9, %v11910_v29 }
 0x1c7   :  { %v12553_v56 = vmul.f32 %v12368_v9, %v19305_v62  ;;  %v12573_v62 = vmul.f32 %v12368_v9, %v11906_v38  ;;  %v12581_v48 = vmul.f32 %v12368_v9, %v11914_v10  ;;  %v12585_v53 = vmul.f32 %v12368_v9, %v11918_v14 }
 0x1c8   :  { %v12589_v2 = vmul.f32 %v12368_v9, %v11921_v23  ;;  %v12593_v38 = vmul.f32 %v12368_v9, %v11924_v43  ;;  %v12597_v29 = vmul.f32 %v12368_v9, %v11927_v54  ;;  %v12601_v10 = vmul.f32 %v12368_v9, %v11930_v61 }
 0x1c9   :  { %v12605_v14 = vmul.f32 %v12368_v9, %v11933_v21  ;;  %v12609_v23 = vmul.f32 %v12368_v9, %v11936_v34  ;;  %v12613_v43 = vmul.f32 %v12368_v9, %v11939_v55  ;;  %v971_v21 = vadd.f32 %v12373_v0, %v12387_v47 }
 0x1ca   :  { %19306 = vst [vmem:[#allocation27_spill] sm:$0xff] %v12593_v38  ;;  %19307 = vst [vmem:[#allocation28_spill] sm:$0xff] %v12597_v29  ;;  %v19310_v38 = vld [vmem:[#allocation24_spill] sm:$0xff]  ;;  %v19311_v29 = vld [vmem:[#allocation25_spill] sm:$0xff]  ;;  %v12631_v34 = vmul.f32 %v12368_v9, %v11954_v32  ;;  %v972_v55 = vadd.f32 %v12373_v0, %v12391_v45  ;;  %v12645_v47 = vadd.f32 %v12373_v0, %v12395_v58 }
 0x1cb   :  { %19308 = vst [vmem:[#allocation29_spill] sm:$0xff] %v12601_v10  ;;  %19309 = vst [vmem:[#allocation5_spill] sm:$0xff] %v12605_v14  ;;  %v12617_v54 = vmul.f32 %v12368_v9, %v19310_v38  ;;  %v12621_v61 = vmul.f32 %v12368_v9, %v19311_v29  ;;  %v19313_v14 = vld [vmem:[#allocation26_spill] sm:$0xff]  ;;  %v12637_v38 = vadd.f32 %v12373_v0, %v12379_v31  ;;  %v1035_v29 = vmul.f32 0.2, %v971_v21 }
 0x1cc   :  { %v12627_v10 = vmul.f32 %v12368_v9, %v19313_v14  ;;  %v12649_v32 = vadd.f32 %v12373_v0, %v12400_v59  ;;  %v1036_v9 = vmul.f32 0.2, %v972_v55  ;;  %v12653_v45 = vadd.f32 %v12373_v0, %v12404_v42  ;;  %v19315_v14 = vld [vmem:[#allocation31_spill] sm:$0xff] }
 0x1cd   :  { %19312 = vst [vmem:[#allocation6_spill] sm:$0xff] %v12621_v61  ;;  %v12641_v61 = vadd.f32 %v12373_v0, %v12383_v39  ;;  %v12657_v31 = vadd.f32 %v12373_v0, %v12408_v46  ;;  %v12661_v39 = vadd.f32 %v12373_v0, %v12412_v16  ;;  %vm18934_vm3 = vcmp.lt.s32.totalorder %v19315_v14, 15 }
 0x1ce   :  { %19314 = vst [vmem:[#allocation7_spill] sm:$0xff] %v12649_v32  ;;  %v1099_v58 = vmax.f32 %v971_v21, %v1035_v29  ;;  %v12666_v59 = vadd.f32 %v12373_v0, %v12416_v5  ;;  %v12670_v32 = vadd.f32 %v12373_v0, %v12420_v8  ;;  %v12674_v42 = vadd.f32 %v12373_v0, %v12424_v13  ;;  %v19323_v29 = vld [vmem:[#allocation22_spill] sm:$0xff] }
 0x1cf   :  { %v1100_v46 = vmax.f32 %v972_v55, %v1036_v9  ;;  %v12678_v16 = vadd.f32 %v12373_v0, %v12428_v20  ;;  %v12682_v21 = vadd.f32 %v12373_v0, %v12432_v25  ;;  %v12686_v5 = vadd.f32 %v12373_v0, %v12436_v28  ;;  %v19322_v55 = vld [vmem:[#allocation21_spill] sm:$0xff]  ;;  %v19325_v9 = vld [vmem:[#allocation23_spill] sm:$0xff] }
 0x1d0   :  { %1169 = vst.msk [vmem:[#allocation2 + $0x28] sm:$0xff] %vm18920_vm0, %v1099_v58  ;;  %v12691_v8 = vadd.f32 %v12373_v0, %v12440_v33  ;;  %v12695_v13 = vadd.f32 %v12373_v0, %v12444_v36  ;;  %v12699_v20 = vadd.f32 %v12373_v0, %v12448_v41  ;;  %v12703_v25 = vadd.f32 %v12373_v0, %v12452_v44 }
 0x1d1   :  { %1170 = vst.msk [vmem:[#allocation2 + $0x30] sm:$0xff] %vm18920_vm0, %v1100_v46  ;;  %v12708_v28 = vadd.f32 %v12373_v0, %v12456_v49  ;;  %v12712_v33 = vadd.f32 %v12373_v0, %v12460_v52  ;;  %v12716_v36 = vadd.f32 %v12373_v0, %v12464_v57  ;;  %v12720_v41 = vadd.f32 %v12373_v0, %v12468_v60 }
 0x1d2   :  { %19316 = vst [vmem:[#allocation8_spill] sm:$0xff] %v12695_v13  ;;  %v12724_v44 = vadd.f32 %v12373_v0, %v12472_v3  ;;  %v12728_v49 = vadd.f32 %v12373_v0, %v12476_v7  ;;  %v12732_v52 = vadd.f32 %v12373_v0, %v12480_v15  ;;  %v12736_v57 = vadd.f32 %v12373_v0, %v12485_v51  ;;  %v19345_v14 = vld [vmem:[#allocation5_spill] sm:$0xff] }
 0x1d3   :  { %19317 = vst [vmem:[#allocation9_spill] sm:$0xff] %v12708_v28  ;;  %19318 = vst [vmem:[#allocation10_spill] sm:$0xff] %v12720_v41  ;;  %v12740_v60 = vadd.f32 %v12373_v0, %v12489_v11  ;;  %v12744_v3 = vadd.f32 %v12373_v0, %v12493_v22  ;;  %v12748_v7 = vadd.f32 %v12373_v0, %v12497_v35 }
 0x1d4   :  { %19319 = vst [vmem:[#allocation11_spill] sm:$0xff] %v12732_v52  ;;  %v12752_v15 = vadd.f32 %v12373_v0, %v12501_v1  ;;  %v12756_v51 = vadd.f32 %v12373_v0, %v12505_v24  ;;  %v12760_v11 = vadd.f32 %v12373_v0, %v12509_v18  ;;  %v12764_v22 = vadd.f32 %v12373_v0, %v19322_v55 }
 0x1d5   :  { %19320 = vst [vmem:[#allocation12_spill] sm:$0xff] %v12744_v3  ;;  %v12768_v35 = vadd.f32 %v12373_v0, %v19323_v29  ;;  %v12772_v1 = vadd.f32 %v12373_v0, %v12521_v27  ;;  %v12776_v24 = vadd.f32 %v12373_v0, %v12525_v50  ;;  %v12780_v18 = vadd.f32 %v12373_v0, %v19325_v9  ;;  %v19339_v9 = vld [vmem:[#allocation27_spill] sm:$0xff] }
 0x1d6   :  { %19321 = vst [vmem:[#allocation13_spill] sm:$0xff] %v12756_v51  ;;  %v12784_v58 = vadd.f32 %v12373_v0, %v12533_v17  ;;  %v12788_v46 = vadd.f32 %v12373_v0, %v12537_v26  ;;  %v12792_v27 = vadd.f32 %v12373_v0, %v12541_v40  ;;  %v12796_v50 = vadd.f32 %v12373_v0, %v12545_v12 }
 0x1d7   :  { %19324 = vst [vmem:[#allocation14_spill] sm:$0xff] %v12768_v35  ;;  %19326 = vst [vmem:[#allocation15_spill] sm:$0xff] %v12780_v18  ;;  %v12800_v55 = vadd.f32 %v12373_v0, %v12549_v6  ;;  %v12804_v17 = vadd.f32 %v12373_v0, %v12553_v56  ;;  %v12808_v26 = vadd.f32 %v12373_v0, %v12557_v19 }
 0x1d8   :  { %19327 = vst [vmem:[#allocation17_spill] sm:$0xff] %v12792_v27  ;;  %v12812_v40 = vadd.f32 %v12373_v0, %v12561_v30  ;;  %v12816_v12 = vadd.f32 %v12373_v0, %v12565_v37  ;;  %v12818_v29 = vld [vmem:[#allocation2 + $0x29] sm:$0xff]  ;;  %v12822_v6 = vadd.f32 %v12373_v0, %v12569_v4  ;;  %v12826_v56 = vadd.f32 %v12373_v0, %v12573_v62 }
 0x1d9   :  { %19328 = vst [vmem:[#allocation18_spill] sm:$0xff] %v12804_v17  ;;  %19329 = vst [vmem:[#allocation19_spill] sm:$0xff] %v12808_v26  ;;  %v12830_v19 = vadd.f32 %v12373_v0, %v12577_v63  ;;  %v12834_v30 = vadd.f32 %v12373_v0, %v12581_v48  ;;  %v7512_v37 = vsel %vm18934_vm3, %v12818_v29, 0.0  ;;  %v12841_v4 = vadd.f32 %v12373_v0, %v12585_v53 }
 0x1da   :  { %19330 = vst [vmem:[#allocation24_spill] sm:$0xff] %v12812_v40  ;;  %19331 = vst [vmem:[#allocation25_spill] sm:$0xff] %v12816_v12  ;;  %v12845_v62 = vadd.f32 %v12373_v0, %v12589_v2  ;;  %v12849_v63 = vadd.f32 %v12373_v0, %v19339_v9  ;;  %v12861_v53 = vadd.f32 %v12373_v0, %v19345_v14 }
 0x1db   :  { %19332 = vst [vmem:[#allocation26_spill] sm:$0xff] %v12818_v29  ;;  %19333 = vst [vmem:[#allocation21_spill] sm:$0xff] %v12822_v6  ;;  %v12865_v2 = vadd.f32 %v12373_v0, %v12609_v23  ;;  %v12869_v9 = vadd.f32 %v12373_v0, %v12613_v43  ;;  %v12882_v14 = vadd.f32 %v12373_v0, %v12627_v10  ;;  %v1033_v23 = vmul.f32 0.2, %v12637_v38 }
 0x1dc   :  { %19334 = vst [vmem:[#allocation22_spill] sm:$0xff] %v12826_v56  ;;  %19335 = vst [vmem:[#allocation23_spill] sm:$0xff] %v12830_v19  ;;  %v11030_v19 = vpack.c.bf16 %v7512_v37, %v7512_v37  ;;  %v19341_v56 = vld [vmem:[#allocation28_spill] sm:$0xff]  ;;  %v19350_v37 = vld [vmem:[#allocation6_spill] sm:$0xff]  ;;  %v1037_v43 = vmul.f32 0.2, %v12645_v47 }
 0x1dd   :  { %19336 = vst [vmem:[#allocation33_spill] sm:$0xff] %v12834_v30  ;;  %19337 = vst [vmem:[#allocation34_spill] sm:$0xff] %v12841_v4  ;;  %v12853_v48 = vadd.f32 %v12373_v0, %v19341_v56  ;;  %v19343_v30 = vld [vmem:[#allocation29_spill] sm:$0xff]  ;;  %v12873_v56 = vadd.f32 %v12373_v0, %v12617_v54  ;;  %v12889_v54 = vadd.f32 %v12373_v0, %v12631_v34  ;;  %v1042_v10 = vmul.f32 0.2, %v12666_v59 }
 0x1de   :  { %19338 = vst [vmem:[#allocation35_spill] sm:$0xff] %v12845_v62  ;;  %19340 = vst [vmem:[#allocation27_spill] sm:$0xff] %v12849_v63  ;;  %v12857_v29 = vadd.f32 %v12373_v0, %v19343_v30  ;;  %v12877_v30 = vadd.f32 %v12373_v0, %v19350_v37  ;;  %v1039_v37 = vmul.f32 0.2, %v12653_v45  ;;  %v1046_v0 = vmul.f32 0.2, %v12682_v21 }
 0x1df   :  { %19342 = vst [vmem:[#allocation28_spill] sm:$0xff] %v12853_v48  ;;  %19346 = vst [vmem:[#allocation5_spill] sm:$0xff] %v12861_v53  ;;  %v1097_v53 = vmax.f32 %v12637_v38, %v1033_v23  ;;  %v1045_v48 = vmul.f32 0.2, %v12678_v16  ;;  %v12906_v63 = vmul.f32 0.2, %v12691_v8  ;;  %v1101_v4 = vmax.f32 %v12645_v47, %v1037_v43 }
 0x1e0   :  { %19344 = vst [vmem:[#allocation29_spill] sm:$0xff] %v12857_v29  ;;  %19347 = vst [vmem:[#allocation36_spill] sm:$0xff] %v12865_v2  ;;  %v1034_v2 = vmul.f32 0.2, %v12641_v61  ;;  %v1044_v29 = vmul.f32 0.2, %v12674_v42  ;;  %v1103_v43 = vmax.f32 %v12653_v45, %v1039_v37 }
 0x1e1   :  { %19348 = vst [vmem:[#allocation37_spill] sm:$0xff] %v12869_v9  ;;  %19349 = vst [vmem:[#allocation38_spill] sm:$0xff] %v12873_v56  ;;  %v19354_v56 = vld [vmem:[#allocation7_spill] sm:$0xff]  ;;  %v12909_v62 = vmul.f32 0.2, %v12695_v13 }
 0x1e2   :  { %19351 = vst [vmem:[#allocation6_spill] sm:$0xff] %v12877_v30  ;;  %7832 = vst.msk [vmem:[#allocation3 + $0x4] sm:$0xf] %vm18938_vm4, %v11030_v19  ;;  %v1038_v9 = vmul.f32 0.2, %v19354_v56  ;;  %v1098_v34 = vmax.f32 %v12641_v61, %v1034_v2 }
 0x1e3   :  { %19352 = vst [vmem:[#allocation39_spill] sm:$0xff] %v12882_v14  ;;  %19353 = vst [vmem:[#allocation40_spill] sm:$0xff] %v12889_v54  ;;  %v1040_v19 = vmul.f32 0.2, %v12657_v31  ;;  %v1041_v30 = vmul.f32 0.2, %v12661_v39 }
 0x1e4   :  { %v1043_v14 = vmul.f32 0.2, %v12670_v32  ;;  %v12903_v54 = vmul.f32 0.2, %v12686_v5  ;;  %1167 = vst.msk [vmem:[#allocation2 + $0x18] sm:$0xff] %vm18920_vm0, %v1097_v53  ;;  %v1102_v2 = vmax.f32 %v19354_v56, %v1038_v9  ;;  %1168 = vst.msk [vmem:[#allocation2 + $0x20] sm:$0xff] %vm18920_vm0, %v1098_v34 }
 0x1e5   :  { %v12914_v38 = vmul.f32 0.2, %v12699_v20  ;;  %v12917_v23 = vmul.f32 0.2, %v12703_v25  ;;  %v12920_v61 = vmul.f32 0.2, %v12708_v28  ;;  %v1104_v34 = vmax.f32 %v12657_v31, %v1040_v19 }
 0x1e6   :  { %v12925_v13 = vmul.f32 0.2, %v12712_v33  ;;  %v12928_v47 = vmul.f32 0.2, %v12716_v36  ;;  %v12931_v53 = vmul.f32 0.2, %v12720_v41  ;;  %v1105_v37 = vmax.f32 %v12661_v39, %v1041_v30 }
 0x1e7   :  { %1171 = vst.msk [vmem:[#allocation2 + $0x38] sm:$0xff] %vm18920_vm0, %v1101_v4  ;;  %v12936_v28 = vmul.f32 0.2, %v12724_v44  ;;  %v12939_v9 = vmul.f32 0.2, %v12728_v49  ;;  %1172 = vst.msk [vmem:[#allocation2 + $0x40] sm:$0xff] %vm18920_vm0, %v1102_v2  ;;  %v1106_v2 = vmax.f32 %v12666_v59, %v1042_v10 }
 0x1e8   :  { %v12942_v56 = vmul.f32 0.2, %v12732_v52  ;;  %v12947_v41 = vmul.f32 0.2, %v12736_v57  ;;  %v12950_v45 = vmul.f32 0.2, %v12740_v60 }
 0x1e9   :  { %v12953_v4 = vmul.f32 0.2, %v12744_v3  ;;  %1173 = vst.msk [vmem:[#allocation2 + $0x48] sm:$0xff] %vm18920_vm0, %v1103_v43  ;;  %v12958_v52 = vmul.f32 0.2, %v12748_v7  ;;  %1174 = vst.msk [vmem:[#allocation2 + $0x50] sm:$0xff] %vm18920_vm0, %v1104_v34  ;;  %v1107_v43 = vmax.f32 %v12670_v32, %v1043_v14  ;;  %v1108_v34 = vmax.f32 %v12674_v42, %v1044_v29 }
 0x1ea   :  { %v12961_v31 = vmul.f32 0.2, %v12752_v15  ;;  %v12964_v19 = vmul.f32 0.2, %v12756_v51  ;;  %v12969_v3 = vmul.f32 0.2, %v12760_v11 }
 0x1eb   :  { %v12972_v39 = vmul.f32 0.2, %v12764_v22  ;;  %v12975_v30 = vmul.f32 0.2, %v12768_v35  ;;  %1175 = vst.msk [vmem:[#allocation2 + $0x58] sm:$0xff] %vm18920_vm0, %v1105_v37  ;;  %1176 = vst.msk [vmem:[#allocation2 + $0x60] sm:$0xff] %vm18920_vm0, %v1106_v2  ;;  %v1109_v37 = vmax.f32 %v12678_v16, %v1045_v48  ;;  %v1110_v2 = vmax.f32 %v12682_v21, %v1046_v0 }
 0x1ec   :  { %v12980_v51 = vmul.f32 0.2, %v12772_v1  ;;  %v12983_v59 = vmul.f32 0.2, %v12776_v24  ;;  %v12986_v10 = vmul.f32 0.2, %v12780_v18 }
 0x1ed   :  { %v12991_v35 = vmul.f32 0.2, %v12784_v58  ;;  %v12994_v32 = vmul.f32 0.2, %v12788_v46  ;;  %v12997_v14 = vmul.f32 0.2, %v12792_v27 }
 0x1ee   :  { %1177 = vst.msk [vmem:[#allocation2 + $0x68] sm:$0xff] %vm18920_vm0, %v1107_v43  ;;  %v13002_v18 = vmul.f32 0.2, %v12796_v50  ;;  %v13005_v42 = vmul.f32 0.2, %v12800_v55  ;;  %1178 = vst.msk [vmem:[#allocation2 + $0x70] sm:$0xff] %vm18920_vm0, %v1108_v34  ;;  %v1111_v43 = vmax.f32 %v12686_v5, %v12903_v54 }
 0x1ef   :  { %v13008_v29 = vmul.f32 0.2, %v12804_v17  ;;  %v13013_v27 = vmul.f32 0.2, %v12808_v26  ;;  %v13016_v16 = vmul.f32 0.2, %v12812_v40  ;;  %v1112_v40 = vmax.f32 %v12691_v8, %v12906_v63 }
 0x1f0   :  { %v13019_v48 = vmul.f32 0.2, %v12816_v12  ;;  %1179 = vst.msk [vmem:[#allocation2 + $0x78] sm:$0xff] %vm18920_vm0, %v1109_v37  ;;  %v13025_v17 = vmul.f32 0.2, %v12822_v6  ;;  %v19356_v21 = vld [vmem:[#allocation22_spill] sm:$0xff] }
 0x1f1   :  { %v13028_v0 = vmul.f32 0.2, %v19356_v21  ;;  %v19358_v34 = vld [vmem:[#allocation23_spill] sm:$0xff]  ;;  %1180 = vst.msk [vmem:[#allocation2 + $0x80] sm:$0xff] %vm18920_vm0, %v1110_v2  ;;  %v19360_v12 = vld [vmem:[#allocation33_spill] sm:$0xff]  ;;  %v19361_v5 = vld [vmem:[#allocation34_spill] sm:$0xff] }
 0x1f2   :  { %19355 = vst [vmem:[#allocation7_spill] sm:$0xff] %v13019_v48  ;;  %v13031_v26 = vmul.f32 0.2, %v19358_v34  ;;  %v13037_v48 = vmul.f32 0.2, %v19360_v12  ;;  %v19362_v37 = vld [vmem:[#allocation35_spill] sm:$0xff] }
 0x1f3   :  { %19357 = vst [vmem:[#allocation41_spill] sm:$0xff] %v13028_v0  ;;  %v13040_v54 = vmul.f32 0.2, %v19361_v5  ;;  %v13043_v6 = vmul.f32 0.2, %v19362_v37  ;;  %v19364_v21 = vld [vmem:[#allocation8_spill] sm:$0xff]  ;;  %v1114_v5 = vmax.f32 %v12699_v20, %v12914_v38 }
 0x1f4   :  { %19359 = vst [vmem:[#allocation42_spill] sm:$0xff] %v13031_v26  ;;  %v1113_v0 = vmax.f32 %v19364_v21, %v12909_v62  ;;  %1181 = vst.msk [vmem:[#allocation2 + $0x88] sm:$0xff] %vm18920_vm0, %v1111_v43  ;;  %v19365_v34 = vld [vmem:[#allocation27_spill] sm:$0xff]  ;;  %v19366_v8 = vld [vmem:[#allocation28_spill] sm:$0xff] }
 0x1f5   :  { %19363 = vst [vmem:[#allocation43_spill] sm:$0xff] %v13043_v6  ;;  %v13049_v26 = vmul.f32 0.2, %v19365_v34  ;;  %v13052_v63 = vmul.f32 0.2, %v19366_v8  ;;  %v19367_v2 = vld [vmem:[#allocation29_spill] sm:$0xff]  ;;  %v1115_v8 = vmax.f32 %v12703_v25, %v12917_v23  ;;  %v1117_v25 = vmax.f32 %v12712_v33, %v12925_v13 }
 0x1f6   :  { %v13055_v12 = vmul.f32 0.2, %v19367_v2  ;;  %1182 = vst.msk [vmem:[#allocation2 + $0x90] sm:$0xff] %vm18920_vm0, %v1112_v40  ;;  %v19369_v37 = vld [vmem:[#allocation5_spill] sm:$0xff]  ;;  %v19370_v62 = vld [vmem:[#allocation36_spill] sm:$0xff]  ;;  %1183 = vst.msk [vmem:[#allocation2 + $0x98] sm:$0xff] %vm18920_vm0, %v1113_v0  ;;  %v1118_v23 = vmax.f32 %v12716_v36, %v12928_v47  ;;  %v1123_v13 = vmax.f32 %v12736_v57, %v12947_v41  ;;  %v1124_v33 = vmax.f32 %v12740_v60, %v12950_v45 }
 0x1f7   :  { %v13061_v6 = vmul.f32 0.2, %v19369_v37  ;;  %v13064_v21 = vmul.f32 0.2, %v19370_v62  ;;  %v19372_v43 = vld [vmem:[#allocation37_spill] sm:$0xff]  ;;  %v19374_v2 = vld [vmem:[#allocation38_spill] sm:$0xff]  ;;  %v1129_v57 = vmax.f32 %v12760_v11, %v12969_v3  ;;  %v1130_v60 = vmax.f32 %v12764_v22, %v12972_v39 }
 0x1f8   :  { %19368 = vst [vmem:[#allocation8_spill] sm:$0xff] %v13055_v12  ;;  %v13067_v34 = vmul.f32 0.2, %v19372_v43  ;;  %v13073_v12 = vmul.f32 0.2, %v19374_v2  ;;  %v19375_v20 = vld [vmem:[#allocation6_spill] sm:$0xff]  ;;  %v1133_v3 = vmax.f32 %v12776_v24, %v12983_v59 }
 0x1f9   :  { %19371 = vst [vmem:[#allocation44_spill] sm:$0xff] %v13064_v21  ;;  %v13076_v38 = vmul.f32 0.2, %v19375_v20  ;;  %v19376_v40 = vld [vmem:[#allocation39_spill] sm:$0xff]  ;;  %v19377_v62 = vld [vmem:[#allocation9_spill] sm:$0xff]  ;;  %1184 = vst.msk [vmem:[#allocation2 + $0xa0] sm:$0xff] %vm18920_vm0, %v1114_v5 }
 0x1fa   :  { %19373 = vst [vmem:[#allocation45_spill] sm:$0xff] %v13067_v34  ;;  %v13079_v37 = vmul.f32 0.2, %v19376_v40  ;;  %v1116_v21 = vmax.f32 %v19377_v62, %v12920_v61  ;;  %v19378_v43 = vld [vmem:[#allocation40_spill] sm:$0xff]  ;;  %v19379_v0 = vld [vmem:[#allocation10_spill] sm:$0xff]  ;;  %1185 = vst.msk [vmem:[#allocation2 + $0xa8] sm:$0xff] %vm18920_vm0, %v1115_v8  ;;  %v1120_v40 = vmax.f32 %v12724_v44, %v12936_v28  ;;  %v1121_v61 = vmax.f32 %v12728_v49, %v12939_v9 }
 0x1fb   :  { %v13085_v34 = vmul.f32 0.2, %v19378_v43  ;;  %v1119_v20 = vmax.f32 %v19379_v0, %v12931_v53  ;;  %v19380_v5 = vld [vmem:[#allocation11_spill] sm:$0xff]  ;;  %v19381_v36 = vld [vmem:[#allocation12_spill] sm:$0xff]  ;;  %v1126_v28 = vmax.f32 %v12748_v7, %v12958_v52  ;;  %v1127_v44 = vmax.f32 %v12752_v15, %v12961_v31  ;;  %1187 = vst.msk [vmem:[#allocation2 + $0xb8] sm:$0xff] %vm18920_vm0, %v1117_v25  ;;  %1188 = vst.msk [vmem:[#allocation2 + $0xc0] sm:$0xff] %vm18920_vm0, %v1118_v23 }
 0x1fc   :  { %v1122_v62 = vmax.f32 %v19380_v5, %v12942_v56  ;;  %1186 = vst.msk [vmem:[#allocation2 + $0xb0] sm:$0xff] %vm18920_vm0, %v1116_v21  ;;  %v1125_v47 = vmax.f32 %v19381_v36, %v12953_v4  ;;  %v19382_v41 = vld [vmem:[#allocation13_spill] sm:$0xff]  ;;  %v19383_v52 = vld [vmem:[#allocation14_spill] sm:$0xff]  ;;  %1190 = vst.msk [vmem:[#allocation2 + $0xd0] sm:$0xff] %vm18920_vm0, %v1120_v40  ;;  %v1132_v15 = vmax.f32 %v12772_v1, %v12980_v51 }
 0x1fd   :  { %1189 = vst.msk [vmem:[#allocation2 + $0xc8] sm:$0xff] %vm18920_vm0, %v1119_v20  ;;  %v1128_v49 = vmax.f32 %v19382_v41, %v12964_v19  ;;  %v1131_v7 = vmax.f32 %v19383_v52, %v12975_v30  ;;  %1191 = vst.msk [vmem:[#allocation2 + $0xd8] sm:$0xff] %vm18920_vm0, %v1121_v61  ;;  %v19384_v11 = vld [vmem:[#allocation15_spill] sm:$0xff]  ;;  %v1135_v53 = vmax.f32 %v12784_v58, %v12991_v35  ;;  %v19385_v1 = vld [vmem:[#allocation17_spill] sm:$0xff] }
 0x1fe   :  { %1192 = vst.msk [vmem:[#allocation2 + $0xe0] sm:$0xff] %vm18920_vm0, %v1122_v62  ;;  %1193 = vst.msk [vmem:[#allocation2 + $0xe8] sm:$0xff] %vm18920_vm0, %v1123_v13  ;;  %v1134_v22 = vmax.f32 %v19384_v11, %v12986_v10  ;;  %v1136_v51 = vmax.f32 %v12788_v46, %v12994_v32  ;;  %v1137_v24 = vmax.f32 %v19385_v1, %v12997_v14  ;;  %v19386_v58 = vld [vmem:[#allocation18_spill] sm:$0xff]  ;;  %v19387_v56 = vld [vmem:[#allocation19_spill] sm:$0xff] }
 0x1ff   :  { %1194 = vst.msk [vmem:[#allocation2 + $0xf0] sm:$0xff] %vm18920_vm0, %v1124_v33  ;;  %1195 = vst.msk [vmem:[#allocation2 + $0xf8] sm:$0xff] %vm18920_vm0, %v1125_v47  ;;  %v1138_v9 = vmax.f32 %v12796_v50, %v13002_v18  ;;  %v1139_v35 = vmax.f32 %v12800_v55, %v13005_v42  ;;  %v1140_v46 = vmax.f32 %v19386_v58, %v13008_v29  ;;  %v19388_v4 = vld [vmem:[#allocation24_spill] sm:$0xff]  ;;  %v19389_v50 = vld [vmem:[#allocation7_spill] sm:$0xff] }
 0x200   :  { %1196 = vst.msk [vmem:[#allocation2 + $0x100] sm:$0xff] %vm18920_vm0, %v1126_v28  ;;  %1197 = vst.msk [vmem:[#allocation2 + $0x108] sm:$0xff] %vm18920_vm0, %v1127_v44  ;;  %v1141_v45 = vmax.f32 %v19387_v56, %v13013_v27  ;;  %v1142_v18 = vmax.f32 %v19388_v4, %v13016_v16  ;;  %v19390_v31 = vld [vmem:[#allocation25_spill] sm:$0xff]  ;;  %v19393_v59 = vld [vmem:[#allocation22_spill] sm:$0xff]  ;;  %v1156_v41 = vmax.f32 %v19374_v2, %v13073_v12 }
 0x201   :  { %1198 = vst.msk [vmem:[#allocation2 + $0x110] sm:$0xff] %vm18920_vm0, %v1128_v49  ;;  %1199 = vst.msk [vmem:[#allocation2 + $0x118] sm:$0xff] %vm18920_vm0, %v1129_v57  ;;  %v1143_v55 = vmax.f32 %v19390_v31, %v19389_v50  ;;  %v19391_v19 = vld [vmem:[#allocation21_spill] sm:$0xff]  ;;  %v19394_v10 = vld [vmem:[#allocation42_spill] sm:$0xff]  ;;  %v1160_v52 = vmax.f32 %v19378_v43, %v13085_v34 }
 0x202   :  { %1200 = vst.msk [vmem:[#allocation2 + $0x120] sm:$0xff] %vm18920_vm0, %v1130_v60  ;;  %1201 = vst.msk [vmem:[#allocation2 + $0x128] sm:$0xff] %vm18920_vm0, %v1131_v7  ;;  %v1144_v39 = vmax.f32 %v19391_v19, %v13025_v17  ;;  %v19392_v30 = vld [vmem:[#allocation41_spill] sm:$0xff]  ;;  %v19395_v32 = vld [vmem:[#allocation23_spill] sm:$0xff] }
 0x203   :  { %1202 = vst.msk [vmem:[#allocation2 + $0x130] sm:$0xff] %vm18920_vm0, %v1132_v15  ;;  %1203 = vst.msk [vmem:[#allocation2 + $0x138] sm:$0xff] %vm18920_vm0, %v1133_v3  ;;  %v1145_v27 = vmax.f32 %v19393_v59, %v19392_v30  ;;  %v1146_v14 = vmax.f32 %v19395_v32, %v19394_v10  ;;  %v19396_v42 = vld [vmem:[#allocation33_spill] sm:$0xff]  ;;  %v19397_v16 = vld [vmem:[#allocation34_spill] sm:$0xff] }
 0x204   :  { %1204 = vst.msk [vmem:[#allocation2 + $0x140] sm:$0xff] %vm18920_vm0, %v1134_v22  ;;  %1205 = vst.msk [vmem:[#allocation2 + $0x148] sm:$0xff] %vm18920_vm0, %v1135_v53  ;;  %v1147_v29 = vmax.f32 %v19396_v42, %v13037_v48  ;;  %v1148_v17 = vmax.f32 %v19397_v16, %v13040_v54  ;;  %v19398_v8 = vld [vmem:[#allocation43_spill] sm:$0xff]  ;;  %v19401_v23 = vld [vmem:[#allocation28_spill] sm:$0xff] }
 0x205   :  { %1206 = vst.msk [vmem:[#allocation2 + $0x150] sm:$0xff] %vm18920_vm0, %v1136_v51  ;;  %1207 = vst.msk [vmem:[#allocation2 + $0x158] sm:$0xff] %vm18920_vm0, %v1137_v24  ;;  %v19399_v21 = vld [vmem:[#allocation35_spill] sm:$0xff]  ;;  %v1151_v48 = vmax.f32 %v19401_v23, %v13052_v63  ;;  %v4564_v0 = vld [vmem:[#allocation2 + $0x18] sm:$0xff] }
 0x206   :  { %1208 = vst.msk [vmem:[#allocation2 + $0x160] sm:$0xff] %vm18920_vm0, %v1138_v9  ;;  %1209 = vst.msk [vmem:[#allocation2 + $0x168] sm:$0xff] %vm18920_vm0, %v1139_v35  ;;  %v1149_v20 = vmax.f32 %v19399_v21, %v19398_v8  ;;  %v19400_v40 = vld [vmem:[#allocation27_spill] sm:$0xff]  ;;  %v19402_v54 = vld [vmem:[#allocation8_spill] sm:$0xff]  ;;  %v10774_v7 = vpack.c.bf16 %v4564_v0, %v4564_v0 }
 0x207   :  { %v1150_v25 = vmax.f32 %v19400_v40, %v13049_v26  ;;  %1210 = vst.msk [vmem:[#allocation2 + $0x170] sm:$0xff] %vm18920_vm0, %v1140_v46  ;;  %1211 = vst.msk [vmem:[#allocation2 + $0x178] sm:$0xff] %vm18920_vm0, %v1141_v45  ;;  %v3860_v61 = vld [vmem:[#allocation2 + $0x1f] sm:$0xff]  ;;  %v19403_v5 = vld [vmem:[#allocation29_spill] sm:$0xff] }
 0x208   :  { %1212 = vst.msk [vmem:[#allocation2 + $0x180] sm:$0xff] %vm18920_vm0, %v1142_v18  ;;  %1213 = vst.msk [vmem:[#allocation2 + $0x188] sm:$0xff] %vm18920_vm0, %v1143_v55  ;;  %v1152_v62 = vmax.f32 %v19403_v5, %v19402_v54  ;;  %v19404_v13 = vld [vmem:[#allocation5_spill] sm:$0xff]  ;;  %v19405_v26 = vld [vmem:[#allocation44_spill] sm:$0xff]  ;;  %v10711_v12 = vpack.c.bf16 %v3860_v61, %v3860_v61  ;;  %4820 = vrot.lane.b32.xlu0 %v10774_v7, %s11353_s2 }
 0x209   :  { %v1153_v33 = vmax.f32 %v19404_v13, %v13061_v6  ;;  %v19406_v36 = vld [vmem:[#allocation36_spill] sm:$0xff]  ;;  %v19407_v63 = vld [vmem:[#allocation45_spill] sm:$0xff]  ;;  %1214 = vst.msk [vmem:[#allocation2 + $0x190] sm:$0xff] %vm18920_vm0, %v1144_v39  ;;  %1215 = vst.msk [vmem:[#allocation2 + $0x198] sm:$0xff] %vm18920_vm0, %v1145_v27 }
 0x20a   :  { %v1154_v47 = vmax.f32 %v19406_v36, %v19405_v26  ;;  %v19408_v28 = vld [vmem:[#allocation37_spill] sm:$0xff]  ;;  %1216 = vst.msk [vmem:[#allocation2 + $0x1a0] sm:$0xff] %vm18920_vm0, %v1146_v14  ;;  %1217 = vst.msk [vmem:[#allocation2 + $0x1a8] sm:$0xff] %vm18920_vm0, %v1147_v29  ;;  %v19409_v49 = vld [vmem:[#allocation6_spill] sm:$0xff]  ;;  %4309 = vrot.lane.b32.xlu1 %v10711_v12, %s11354_s3  ;;  %v2834_v14 = vpop.permute.xlu0 %2833 }
 0x20b   :  { %v1155_v44 = vmax.f32 %v19408_v28, %v19407_v63  ;;  %v1157_v6 = vmax.f32 %v19409_v49, %v13076_v38  ;;  %v19410_v57 = vld [vmem:[#allocation39_spill] sm:$0xff]  ;;  %1218 = vst.msk [vmem:[#allocation2 + $0x1b0] sm:$0xff] %vm18920_vm0, %v1148_v17  ;;  %1219 = vst.msk [vmem:[#allocation2 + $0x1b8] sm:$0xff] %vm18920_vm0, %v1149_v20  ;;  %v5077_v34 = vld [vmem:[#allocation2 + $0x19] sm:$0xff] }
 0x20c   :  { %v1158_v60 = vmax.f32 %v19410_v57, %v13079_v37  ;;  %1220 = vst.msk [vmem:[#allocation2 + $0x1c0] sm:$0xff] %vm18920_vm0, %v1150_v25  ;;  %1221 = vst.msk [vmem:[#allocation2 + $0x1c8] sm:$0xff] %vm18920_vm0, %v1151_v48  ;;  %v4565_v37 = vld [vmem:[#allocation2 + $0x20] sm:$0xff]  ;;  %v19412_v38 = vld [vmem:[#allocation16_spill] sm:$0xff]  ;;  %v10838_v3 = vpack.c.bf16 %v5077_v34, %v5077_v34 }
 0x20d   :  { %1222 = vst.msk [vmem:[#allocation2 + $0x1d0] sm:$0xff] %vm18920_vm0, %v1152_v62  ;;  %1223 = vst.msk [vmem:[#allocation2 + $0x1d8] sm:$0xff] %vm18920_vm0, %v1153_v33  ;;  %v19411_v2 = vld [vmem:[#allocation30_spill] sm:$0xff]  ;;  %v1297_v15 = vand.u32 15, %v19412_v38  ;;  %v10775_v11 = vpack.c.bf16 %v4565_v37, %v4565_v37  ;;  %v4566_v53 = vld [vmem:[#allocation2 + $0x28] sm:$0xff] }
 0x20e   :  { %1224 = vst.msk [vmem:[#allocation2 + $0x1e0] sm:$0xff] %vm18920_vm0, %v1154_v47  ;;  %1225 = vst.msk [vmem:[#allocation2 + $0x1e8] sm:$0xff] %vm18920_vm0, %v1155_v44  ;;  %v1235_v43 = vadd.s32 24, %v19411_v2  ;;  %v13223_v22 = vadd.s32 16, %v19411_v2  ;;  %v3862_v51 = vld [vmem:[#allocation2 + $0x2f] sm:$0xff]  ;;  %5525 = vrot.lane.b32.xlu0 %v10838_v3, %s11355_s17  ;;  %v1296_v24 = vand.u32 15, %v19411_v2  ;;  %v10776_v58 = vpack.c.bf16 %v4566_v53, %v4566_v53  ;;  %v2836_v47 = vpop.permute.xlu1 %2835  ;;  %v3603_v28 = vpop.permute.xlu0 %3602 }
 0x20f   :  { %1226 = vst.msk [vmem:[#allocation2 + $0x1f0] sm:$0xff] %vm18920_vm0, %v1156_v41  ;;  %1227 = vst.msk [vmem:[#allocation2 + $0x1f8] sm:$0xff] %vm18920_vm0, %v1157_v6  ;;  %4822 = vrot.lane.b32.xlu1 %v10775_v11, %s11353_s2  ;;  %vm13228_vm5 = vcmp.lt.s32.totalorder %v1297_v15, 15  ;;  %v19415_v35 = vld [vmem:[#allocation32_spill] sm:$0xff]  ;;  %v10713_v46 = vpack.c.bf16 %v3862_v51, %v3862_v51  ;;  %v13237_v50 = vadd.s32 32, %v19411_v2  ;;  %v1237_v31 = vadd.s32 40, %v19411_v2 }
 0x210   :  { %1228 = vst.msk [vmem:[#allocation2 + $0x200] sm:$0xff] %vm18920_vm0, %v1158_v60  ;;  %1230 = vst.msk [vmem:[#allocation2 + $0x210] sm:$0xff] %vm18920_vm0, %v1160_v52  ;;  %v1363_v1 = vshra.s32 %v1235_v43, 4  ;;  %vm18931_vm6 = vcmp.lt.s32.totalorder %v19415_v35, 15  ;;  %v1362_v56 = vshra.s32 %v13223_v22, 4  ;;  %v1299_v45 = vand.u32 15, %v1235_v43 }
 0x211   :  { %v4567_v4 = vld [vmem:[#allocation2 + $0x30] sm:$0xff]  ;;  %vm13242_vm7 = vcmp.gt.s32.totalorder %v1296_v24, 0  ;;  %vm13250_vm8 = vmand %vm18931_vm6, %vm13228_vm5  ;;  %v1744_v30 = vld [vmem:[#allocation2 + $0x7] sm:$0xff]  ;;  %v1364_v21 = vshra.s32 %v13237_v50, 4  ;;  %v1365_v20 = vshra.s32 %v1237_v31, 4  ;;  %v1301_v23 = vand.u32 15, %v1237_v31 }
 0x212   :  { %v13234_v18 = vand.u32 15, %v1363_v1  ;;  %4824 = vrot.lane.b32.xlu0 %v10776_v58, %s11353_s2  ;;  %v7257_v39 = vld [vmem:[#allocation2 + $0x31] sm:$0xff]  ;;  %v19420_v59 = vld [vmem:[#allocation31_spill] sm:$0xff]  ;;  %vm1808_vm9 = vmand %vm1488_vm1, %vm13242_vm7  ;;  %v10777_v32 = vpack.c.bf16 %v4567_v4, %v4567_v4  ;;  %v13260_v42 = vand.u32 15, %v1362_v56  ;;  %vm13262_vm10 = vcmp.lt.s32.totalorder %v1299_v45, 15 }
 0x213   :  { %4313 = vrot.lane.b32.xlu1 %v10713_v46, %s11354_s3  ;;  %v19421_v27 = vld [vmem:[#allocation26_spill] sm:$0xff]  ;;  %v1745_v8 = vld [vmem:[#allocation2 + $0xf] sm:$0xff]  ;;  %v7513_v40 = vsel %vm13250_vm8, %v7257_v39, 0.0  ;;  %v2000_v25 = vsel %vm1808_vm9, %v1744_v30, 0.0  ;;  %v13273_v48 = vadd.s32 48, %v19411_v2  ;;  %v1239_v54 = vadd.s32 56, %v19411_v2 }
 0x214   :  { %v10840_v10 = vpack.c.bf16 %v19421_v27, %v19421_v27  ;;  %v4568_v16 = vld [vmem:[#allocation2 + $0x38] sm:$0xff]  ;;  %vm18929_vm11 = vcmp.lt.s32.totalorder %v13234_v18, 15  ;;  %v11031_v0 = vpack.c.bf16 %v7513_v40, %v7513_v40  ;;  %v10518_v61 = vpack.c.bf16 %v2000_v25, %v2000_v25  ;;  %v4569_v26 = vld [vmem:[#allocation2 + $0x40] sm:$0xff]  ;;  %v4570_v12 = vld [vmem:[#allocation2 + $0x48] sm:$0xff] }
 0x215   :  { %v3864_v17 = vld [vmem:[#allocation2 + $0x3f] sm:$0xff]  ;;  %v10778_v5 = vpack.c.bf16 %v4568_v16, %v4568_v16  ;;  %v2001_v13 = vsel %vm18935_vm2, %v1745_v8, 0.0  ;;  %vm18930_vm14 = vcmp.lt.s32.totalorder %v13260_v42, 15  ;;  %v13281_v63 = vand.u32 15, %v1365_v20  ;;  %vm7323_vm15 = vmand %vm18929_vm11, %vm13262_vm10  ;;  %v3866_v34 = vld [vmem:[#allocation2 + $0x4f] sm:$0xff] }
 0x216   :  { %5529 = vrot.lane.b32.xlu0 %v10840_v10, %s11355_s17  ;;  %v10715_v62 = vpack.c.bf16 %v3864_v17, %v3864_v17  ;;  %v5081_v33 = vld [vmem:[#allocation2 + $0x39] sm:$0xff]  ;;  %7833 = vst.msk [vmem:[#allocation3 + $0xc] sm:$0xf] %vm18938_vm4, %v11031_v0  ;;  %2321 = vst.msk [vmem:[#allocation3] sm:$0xf] %vm18938_vm4, %v10518_v61  ;;  %v10519_v36 = vpack.c.bf16 %v2001_v13, %v2001_v13  ;;  %v7259_v44 = vld [vmem:[#allocation2 + $0x41] sm:$0xff]  ;;  %v10779_v60 = vpack.c.bf16 %v4569_v26, %v4569_v26 }
 0x217   :  { %4826 = vrot.lane.b32.xlu1 %v10777_v32, %s11353_s2  ;;  %3026 = vst.msk [vmem:[#allocation3] sm:$0xf] %vm18921_vm12, %v2834_v14  ;;  %v13292_v41 = vand.u32 15, %v1364_v21  ;;  %vm13294_vm1 = vcmp.lt.s32.totalorder %v1301_v23, 15  ;;  %v1367_v6 = vshra.s32 %v1239_v54, 4  ;;  %v10842_v57 = vpack.c.bf16 %v5081_v33, %v5081_v33  ;;  %v5083_v53 = vld [vmem:[#allocation2 + $0x49] sm:$0xff] }
 0x218   :  { %2322 = vst.msk [vmem:[#allocation3 + $0x8] sm:$0xf] %vm18938_vm4, %v10519_v36  ;;  %v7514_v52 = vsel %vm18930_vm14, %v5081_v33, 0.0  ;;  %v1366_v7 = vshra.s32 %v13273_v48, 4  ;;  %v7515_v43 = vsel %vm7323_vm15, %v7259_v44, 0.0  ;;  %vm18923_vm8 = vcmp.lt.s32.totalorder %v13281_v63, 15 }
 0x219   :  { %3795 = vst.msk [vmem:[#allocation3] sm:$0xf] %vm18922_vm13, %v3603_v28  ;;  %v11032_v37 = vpack.c.bf16 %v7514_v52, %v7514_v52  ;;  %v1241_v38 = vadd.s32 72, %v19411_v2  ;;  %v11033_v15 = vpack.c.bf16 %v7515_v43, %v7515_v43  ;;  %v1303_v3 = vand.u32 15, %v1239_v54  ;;  %v7261_v58 = vld [vmem:[#allocation2 + $0x51] sm:$0xff]  ;;  %vm7325_vm15 = vmand %vm18923_vm8, %vm13294_vm1  ;;  %v3868_v21 = vld [vmem:[#allocation2 + $0x5f] sm:$0xff] }
 0x21a   :  { %4828 = vrot.lane.b32.xlu0 %v10778_v5, %s11353_s2  ;;  %3027 = vst.msk [vmem:[#allocation3 + $0x8] sm:$0xf] %vm18921_vm12, %v2836_v47  ;;  %v13307_v11 = vadd.s32 64, %v19411_v2  ;;  %vm18924_vm9 = vcmp.lt.s32.totalorder %v13292_v41, 15  ;;  %v13311_v51 = vand.u32 15, %v1367_v6  ;;  %v10780_v1 = vpack.c.bf16 %v4570_v12, %v4570_v12  ;;  %v4571_v46 = vld [vmem:[#allocation2 + $0x50] sm:$0xff] }
 0x21b   :  { %4317 = vrot.lane.b32.xlu1 %v10715_v62, %s11354_s3  ;;  %7834 = vst.msk [vmem:[#allocation3 + $0x14] sm:$0xf] %vm18938_vm4, %v11032_v37  ;;  %v10717_v24 = vpack.c.bf16 %v3866_v34, %v3866_v34  ;;  %7835 = vst.msk [vmem:[#allocation3 + $0x1c] sm:$0xf] %vm18938_vm4, %v11033_v15  ;;  %v13318_v56 = vand.u32 15, %v1366_v7  ;;  %v1369_v45 = vshra.s32 %v1241_v38, 4  ;;  %v10844_v32 = vpack.c.bf16 %v5083_v53, %v5083_v53 }
 0x21c   :  { %v7516_v4 = vsel %vm18924_vm9, %v5083_v53, 0.0  ;;  %vm13324_vm0 = vcmp.lt.s32.totalorder %v1303_v3, 15  ;;  %v19426_v31 = vmov 0  ;;  %v1368_v19 = vshra.s32 %v13307_v11, 4  ;;  %v4572_v8 = vld [vmem:[#allocation2 + $0x58] sm:$0xff]  ;;  %v7263_v25 = vld [vmem:[#allocation2 + $0x61] sm:$0xff] }
 0x21d   :  { %v19427_v31 = vsel %vm13324_vm0, 4294967295, %v19426_v31  ;;  %v1243_v39 = vadd.s32 88, %v19411_v2  ;;  %v11034_v30 = vpack.c.bf16 %v7516_v4, %v7516_v4  ;;  %v7517_v27 = vsel %vm7325_vm15, %v7261_v58, 0.0  ;;  %v5085_v20 = vld [vmem:[#allocation2 + $0x59] sm:$0xff]  ;;  %v7265_v12 = vld [vmem:[#allocation2 + $0x71] sm:$0xff]  ;;  %v4574_v34 = vld [vmem:[#allocation2 + $0x68] sm:$0xff] }
 0x21e   :  { %5533 = vrot.lane.b32.xlu0 %v10842_v57, %s11355_s17  ;;  %vm18925_vm12 = vcmp.lt.s32.totalorder %v13311_v51, 15  ;;  %v1305_v10 = vand.u32 15, %v1241_v38  ;;  %v10781_v14 = vpack.c.bf16 %v4571_v46, %v4571_v46  ;;  %v11035_v16 = vpack.c.bf16 %v7517_v27, %v7517_v27  ;;  %v4573_v33 = vld [vmem:[#allocation2 + $0x60] sm:$0xff]  ;;  %v3870_v37 = vld [vmem:[#allocation2 + $0x6f] sm:$0xff] }
 0x21f   :  { %4830 = vrot.lane.b32.xlu1 %v10779_v60, %s11353_s2  ;;  %v13332_v17 = vadd.s32 80, %v19411_v2  ;;  %7836 = vst.msk [vmem:[#allocation3 + $0x24] sm:$0xf] %vm18938_vm4, %v11034_v30  ;;  %vm18926_vm13 = vcmp.lt.s32.totalorder %v13318_v56, 15  ;;  %v13336_v40 = vand.u32 15, %v1369_v45  ;;  %vm7327_vm15 = vmand %vm18925_vm12, %vm13324_vm0  ;;  %v1371_v23 = vshra.s32 %v1243_v39, 4 }
 0x220   :  { %7837 = vst.msk [vmem:[#allocation3 + $0x2c] sm:$0xf] %vm18938_vm4, %v11035_v16  ;;  %v13345_v0 = vand.u32 15, %v1368_v19  ;;  %vm13347_vm8 = vcmp.lt.s32.totalorder %v1305_v10, 15  ;;  %v19428_v61 = vmov 0  ;;  %v10782_v54 = vpack.c.bf16 %v4572_v8, %v4572_v8  ;;  %v5087_v60 = vld [vmem:[#allocation2 + $0x69] sm:$0xff] }
 0x221   :  { %v19429_v61 = vsel %vm13347_vm8, 4294967295, %v19428_v61  ;;  %v10719_v5 = vpack.c.bf16 %v3868_v21, %v3868_v21  ;;  %v7518_v62 = vsel %vm18926_vm13, %v5085_v20, 0.0  ;;  %v1370_v13 = vshra.s32 %v13332_v17, 4  ;;  %v4575_v30 = vld [vmem:[#allocation2 + $0x70] sm:$0xff]  ;;  %v13387_v27 = vld [vmem:[#allocation2 + $0x79] sm:$0xff] }
 0x222   :  { %4832 = vrot.lane.b32.xlu0 %v10780_v1, %s11353_s2  ;;  %v11036_v26 = vpack.c.bf16 %v7518_v62, %v7518_v62  ;;  %v7519_v36 = vsel %vm7327_vm15, %v7263_v25, 0.0  ;;  %vm18927_vm9 = vcmp.lt.s32.totalorder %v13336_v40, 15  ;;  %v1245_v47 = vadd.s32 104, %v19411_v2  ;;  %v4576_v62 = vld [vmem:[#allocation2 + $0x78] sm:$0xff] }
 0x223   :  { %4321 = vrot.lane.b32.xlu1 %v10717_v24, %s11354_s3  ;;  %v11037_v28 = vpack.c.bf16 %v7519_v36, %v7519_v36  ;;  %v13358_v44 = vand.u32 15, %v1371_v23  ;;  %v1307_v6 = vand.u32 15, %v1243_v39  ;;  %v13361_v57 = vadd.s32 96, %v19411_v2  ;;  %vm7329_vm12 = vmand %vm18927_vm9, %vm13347_vm8 }
 0x224   :  { %7838 = vst.msk [vmem:[#allocation3 + $0x34] sm:$0xf] %vm18938_vm4, %v11036_v26  ;;  %vm18928_vm15 = vcmp.lt.s32.totalorder %v13345_v0, 15  ;;  %v10846_v52 = vpack.c.bf16 %v5085_v20, %v5085_v20  ;;  %v10783_v7 = vpack.c.bf16 %v4573_v33, %v4573_v33  ;;  %v1298_v43 = vand.u32 15, %v13223_v22 }
 0x225   :  { %7839 = vst.msk [vmem:[#allocation3 + $0x3c] sm:$0xf] %vm18938_vm4, %v11037_v28  ;;  %v13371_v38 = vand.u32 15, %v1370_v13  ;;  %v1373_v15 = vshra.s32 %v1245_v47, 4  ;;  %v7520_v3 = vsel %vm18928_vm15, %v5087_v60, 0.0  ;;  %vm13377_vm13 = vcmp.lt.s32.totalorder %v1307_v6, 15 }
 0x226   :  { %5537 = vrot.lane.b32.xlu0 %v10844_v32, %s11355_s17  ;;  %v19430_v53 = vmov 0  ;;  %vm18932_vm9 = vcmp.lt.s32.totalorder %v13358_v44, 15  ;;  %v1372_v1 = vshra.s32 %v13361_v57, 4  ;;  %v11038_v24 = vpack.c.bf16 %v7520_v3, %v7520_v3  ;;  %v3872_v13 = vld [vmem:[#allocation2 + $0x7f] sm:$0xff]  ;;  %v13427_v6 = vld [vmem:[#allocation2 + $0x89] sm:$0xff]  ;;  %v14053_v32 = vld [vmem:[#allocation2 + $0x31] sm:$0xff] }
 0x227   :  { %4834 = vrot.lane.b32.xlu1 %v10781_v14, %s11353_s2  ;;  %v19431_v53 = vsel %vm13377_vm13, 4294967295, %v19430_v53  ;;  %v7521_v22 = vsel %vm7329_vm12, %v7265_v12, 0.0  ;;  %v1309_v58 = vand.u32 15, %v1245_v47  ;;  %v1247_v46 = vadd.s32 120, %v19411_v2  ;;  %v7267_v14 = vld [vmem:[#allocation2 + $0x81] sm:$0xff]  ;;  %vm7331_vm14 = vmand %vm18932_vm9, %vm13377_vm13 }
 0x228   :  { %v10784_v45 = vpack.c.bf16 %v4574_v34, %v4574_v34  ;;  %v10721_v4 = vpack.c.bf16 %v3870_v37, %v3870_v37  ;;  %v11039_v19 = vpack.c.bf16 %v7521_v22, %v7521_v22  ;;  %v13385_v39 = vadd.s32 112, %v19411_v2  ;;  %7840 = vst.msk [vmem:[#allocation3 + $0x44] sm:$0xf] %vm18938_vm4, %v11038_v24  ;;  %v7269_v37 = vld [vmem:[#allocation2 + $0x91] sm:$0xff] }
 0x229   :  { %vm18933_vm15 = vcmp.lt.s32.totalorder %v13371_v38, 15  ;;  %v13391_v10 = vand.u32 15, %v1373_v15  ;;  %vm18936_vm12 = vcmp.gt.s32.totalorder %v13260_v42, 0  ;;  %vm13396_vm11 = vcmp.gt.s32.totalorder %v1298_v43, 0  ;;  %v4577_v43 = vld [vmem:[#allocation2 + $0x80] sm:$0xff] }
 0x22a   :  { %4836 = vrot.lane.b32.xlu0 %v10782_v54, %s11353_s2  ;;  %7841 = vst.msk [vmem:[#allocation3 + $0x4c] sm:$0xf] %vm18938_vm4, %v11039_v19  ;;  %v1300_v16 = vand.u32 15, %v13237_v50  ;;  %v13406_v8 = vand.u32 15, %v1372_v1  ;;  %vm13408_vm6 = vcmp.lt.s32.totalorder %v1309_v58, 15  ;;  %v19434_v21 = vmov 0 }
 0x22b   :  { %4325 = vrot.lane.b32.xlu1 %v10719_v5, %s11354_s3  ;;  %v19435_v21 = vsel %vm13408_vm6, 4294967295, %v19434_v21  ;;  %v1375_v20 = vshra.s32 %v1247_v46, 4  ;;  %v10848_v25 = vpack.c.bf16 %v5087_v60, %v5087_v60  ;;  %v10785_v23 = vpack.c.bf16 %v4575_v30, %v4575_v30  ;;  %v1746_v60 = vld [vmem:[#allocation2 + $0x17] sm:$0xff]  ;;  %v1747_v1 = vld [vmem:[#allocation2 + $0x1f] sm:$0xff] }
 0x22c   :  { %19436 = vst [vmem:[#allocation38_spill] sm:$0xff] %v19435_v21  ;;  %v7522_v54 = vsel %vm18933_vm15, %v13387_v27, 0.0  ;;  %v1374_v5 = vshra.s32 %v13385_v39, 4  ;;  %v7523_v26 = vsel %vm7331_vm14, %v7267_v14, 0.0  ;;  %vm18937_vm9 = vcmp.lt.s32.totalorder %v13391_v10, 15  ;;  %vm13433_vm14 = vmand %vm18936_vm12, %vm13396_vm11 }
 0x22d   :  { %v11040_v33 = vpack.c.bf16 %v7522_v54, %v7522_v54  ;;  %v13418_v50 = vadd.s32 128, %v19411_v2  ;;  %v11041_v36 = vpack.c.bf16 %v7523_v26, %v7523_v26  ;;  %v1311_v47 = vand.u32 15, %v1247_v46  ;;  %vm7333_vm15 = vmand %vm18937_vm9, %vm13408_vm6  ;;  %v3874_v54 = vld [vmem:[#allocation2 + $0x8f] sm:$0xff] }
 0x22e   :  { %5541 = vrot.lane.b32.xlu0 %v10846_v52, %s11355_s17  ;;  %v13423_v28 = vadd.s32 136, %v19411_v2  ;;  %v10786_v12 = vpack.c.bf16 %v4576_v62, %v4576_v62  ;;  %v10723_v34 = vpack.c.bf16 %v3872_v13, %v3872_v13  ;;  %vm18939_vm3 = vcmp.gt.s32.totalorder %v13234_v18, 0  ;;  %v1748_v13 = vld [vmem:[#allocation2 + $0x27] sm:$0xff] }
 0x22f   :  { %4838 = vrot.lane.b32.xlu1 %v10783_v7, %s11353_s2  ;;  %7842 = vst.msk [vmem:[#allocation3 + $0x54] sm:$0xf] %vm18938_vm4, %v11040_v33  ;;  %v13437_v7 = vand.u32 15, %v1375_v20  ;;  %7843 = vst.msk [vmem:[#allocation3 + $0x5c] sm:$0xf] %vm18938_vm4, %v11041_v36  ;;  %vm13446_vm12 = vcmp.gt.s32.totalorder %v1300_v16, 0  ;;  %v10850_v14 = vpack.c.bf16 %v13387_v27, %v13387_v27  ;;  %v10787_v16 = vpack.c.bf16 %v4577_v43, %v4577_v43 }
 0x230   :  { %v1302_v3 = vand.u32 15, %v13273_v48  ;;  %v13451_v24 = vand.u32 15, %v1374_v5  ;;  %v1376_v22 = vshra.s32 %v13418_v50, 4  ;;  %vm19443_vm2 = vcmp.lt.s32.totalorder %v13406_v8, 15  ;;  %v13479_v27 = vld [vmem:[#allocation2 + $0x99] sm:$0xff]  ;;  %v13492_v36 = vld [vmem:[#allocation2 + $0xa1] sm:$0xff] }
 0x231   :  { %19439 = vst [vmem:[#allocation9_spill] sm:$0xff] %v13437_v7  ;;  %v7524_v58 = vsel %vm19443_vm2, %v13427_v6, 0.0  ;;  %v2002_v46 = vsel %vm13433_vm14, %v1746_v60, 0.0  ;;  %vm13461_vm9 = vcmp.lt.s32.totalorder %v1311_v47, 15  ;;  %v1377_v48 = vshra.s32 %v13423_v28, 4  ;;  %v4579_v43 = vld [vmem:[#allocation2 + $0x90] sm:$0xff] }
 0x232   :  { %4840 = vrot.lane.b32.xlu0 %v10784_v45, %s11353_s2  ;;  %19442 = vst [vmem:[#allocation40_spill] sm:$0xff] %v13451_v24  ;;  %v19444_v45 = vmov 0  ;;  %v10520_v19 = vpack.c.bf16 %v2002_v46, %v2002_v46  ;;  %v7525_v30 = vsel %vm7333_vm15, %v7269_v37, 0.0  ;;  %vm19447_vm2 = vcmask 125952   ;;  %v5091_v37 = vld [vmem:[#allocation2 + $0x89] sm:$0xff]  ;;  %v1750_v33 = vld [vmem:[#allocation2 + $0x37] sm:$0xff] }
 0x233   :  { %4329 = vrot.lane.b32.xlu1 %v10721_v4, %s11354_s3  ;;  %v19445_v45 = vsel %vm13461_vm9, 4294967295, %v19444_v45  ;;  %v11042_v4 = vpack.c.bf16 %v7524_v58, %v7524_v58  ;;  %v11043_v20 = vpack.c.bf16 %v7525_v30, %v7525_v30  ;;  %vm19448_vm14 = vmmov %vm19447_vm2  ;;  %v13473_v62 = vand.u32 15, %v1376_v22  ;;  %v13558_v47 = vld [vmem:[#allocation2 + $0xb1] sm:$0xff] }
 0x234   :  { %19446 = vst [vmem:[#allocation10_spill] sm:$0xff] %v19445_v45  ;;  %2323 = vst.msk [vmem:[#allocation3 + $0x10] sm:$0xf] %vm19448_vm14, %v10520_v19  ;;  %v1313_v26 = vand.u32 15, %v13423_v28  ;;  %vm18946_vm14 = vcmp.gt.s32.totalorder %v13281_v63, 0  ;;  %v13502_v60 = vand.u32 15, %v1377_v48 }
 0x235   :  { %7844 = vst.msk [vmem:[#allocation3 + $0x64] sm:$0xf] %vm19447_vm2, %v11042_v4  ;;  %19449 = vst [vmem:[#allocation11_spill] sm:$0xff] %v13473_v62  ;;  %vm13505_vm13 = vcmp.gt.s32.totalorder %v1302_v3, 0  ;;  %v19459_v28 = vmov 0  ;;  %v13529_v30 = vadd.s32 144, %v19411_v2 }
 0x236   :  { %5545 = vrot.lane.b32.xlu0 %v10848_v25, %s11355_s17  ;;  %v2003_v25 = vsel %vm18939_vm3, %v1747_v1, 0.0  ;;  %vm19450_vm15 = vmmov %vm19447_vm2  ;;  %vm19451_vm2 = vcmp.gt.s32.totalorder %v13292_v41, 0  ;;  %19458 = vst [vmem:[#allocation12_spill] sm:$0xff] %v13502_v60  ;;  %v19460_v28 = vsel %vm13505_vm13, 4294967295, %v19459_v28  ;;  %v1304_v1 = vand.u32 15, %v13307_v11 }
 0x237   :  { %4842 = vrot.lane.b32.xlu1 %v10785_v23, %s11353_s2  ;;  %v4578_v23 = vld [vmem:[#allocation2 + $0x88] sm:$0xff]  ;;  %v10521_v5 = vpack.c.bf16 %v2003_v25, %v2003_v25  ;;  %7845 = vst.msk [vmem:[#allocation3 + $0x6c] sm:$0xf] %vm19450_vm15, %v11043_v20  ;;  %vm13485_vm3 = vmand %vm19451_vm2, %vm13446_vm12  ;;  %vm13521_vm2 = vcmp.lt.s32.totalorder %v1313_v26, 15  ;;  %v19462_v11 = vmov 0  ;;  %v4580_v20 = vld [vmem:[#allocation2 + $0x98] sm:$0xff] }
 0x238   :  { %vm19454_vm6 = vmmov %vm19450_vm15  ;;  %vm19455_vm15 = vcmp.lt.s32.totalorder %v13437_v7, 15  ;;  %v10788_v52 = vpack.c.bf16 %v4578_v23, %v4578_v23  ;;  %v2004_v58 = vsel %vm13485_vm3, %v1748_v13, 0.0  ;;  %v19463_v11 = vsel %vm13521_vm2, 4294967295, %v19462_v11  ;;  %v13548_v13 = vld [vmem:[#allocation2 + $0xa9] sm:$0xff] }
 0x239   :  { %2324 = vst.msk [vmem:[#allocation3 + $0x18] sm:$0xf] %vm19454_vm6, %v10521_v5  ;;  %vm13498_vm4 = vmand %vm19455_vm15, %vm13461_vm9  ;;  %vm19461_vm6 = vcmp.lt.s32.totalorder %v13451_v24, 15  ;;  %v10522_v46 = vpack.c.bf16 %v2004_v58, %v2004_v58  ;;  %vm19471_vm3 = vcmp.gt.s32.totalorder %v13473_v62, 0  ;;  %v19473_v26 = vmov 0 }
 0x23a   :  { %4844 = vrot.lane.b32.xlu0 %v10786_v12, %s11353_s2  ;;  %v10725_v12 = vpack.c.bf16 %v3874_v54, %v3874_v54  ;;  %v7526_v22 = vsel %vm19461_vm6, %v13479_v27, 0.0  ;;  %v7527_v48 = vsel %vm13498_vm4, %v13492_v36, 0.0  ;;  %19464 = vst [vmem:[#allocation13_spill] sm:$0xff] %v19463_v11  ;;  %vm19465_vm6 = vcmask 125952   ;;  %v3876_v54 = vld [vmem:[#allocation2 + $0x9f] sm:$0xff]  ;;  %v4587_v11 = vld [vmem:[#allocation2 + $0xd0] sm:$0xff] }
 0x23b   :  { %4333 = vrot.lane.b32.xlu1 %v10723_v34, %s11354_s3  ;;  %v1749_v34 = vld [vmem:[#allocation2 + $0x2f] sm:$0xff]  ;;  %v11044_v3 = vpack.c.bf16 %v7526_v22, %v7526_v22  ;;  %v11045_v4 = vpack.c.bf16 %v7527_v48, %v7527_v48  ;;  %vm19466_vm15 = vmmov %vm19465_vm6  ;;  %vm19467_vm4 = vcmp.gt.s32.totalorder %v13318_v56, 0  ;;  %v13545_v5 = vsel %vm19471_vm3, %v13427_v6, 0.0  ;;  %v1751_v6 = vld [vmem:[#allocation2 + $0x3f] sm:$0xff] }
 0x23c   :  { %v2005_v19 = vsel %vm18946_vm14, %v1749_v34, 0.0  ;;  %2325 = vst.msk [vmem:[#allocation3 + $0x20] sm:$0xf] %vm19466_vm15, %v10522_v46  ;;  %vm13537_vm9 = vmand %vm19467_vm4, %vm13505_vm13  ;;  %vm13553_vm4 = vcmp.gt.s32.totalorder %v1304_v1, 0  ;;  %vm19476_vm3 = vcmp.lt.s32.totalorder %v13502_v60, 15  ;;  %vm18949_vm8 = vcmp.gt.s32.totalorder %v13311_v51, 0 }
 0x23d   :  { %7846 = vst.msk [vmem:[#allocation3 + $0x74] sm:$0xf] %vm19465_vm6, %v11044_v3  ;;  %v10523_v25 = vpack.c.bf16 %v2005_v19, %v2005_v19  ;;  %vm19470_vm14 = vmmov %vm19465_vm6  ;;  %v19474_v26 = vsel %vm13553_vm4, 4294967295, %v19473_v26  ;;  %v10727_v34 = vpack.c.bf16 %v3876_v54, %v3876_v54  ;;  %vm19477_vm15 = vcmp.lt.s32.totalorder %v13473_v62, 15  ;;  %v4581_v22 = vld [vmem:[#allocation2 + $0xa0] sm:$0xff]  ;;  %v1753_v54 = vld [vmem:[#allocation2 + $0x4f] sm:$0xff] }
 0x23e   :  { %5549 = vrot.lane.b32.xlu0 %v10850_v14, %s11355_s17  ;;  %v10852_v14 = vpack.c.bf16 %v5091_v37, %v5091_v37  ;;  %7847 = vst.msk [vmem:[#allocation3 + $0x7c] sm:$0xf] %vm19470_vm14, %v11045_v4  ;;  %19472 = vst [vmem:[#allocation14_spill] sm:$0xff] %v13545_v5  ;;  %v5093_v37 = vld [vmem:[#allocation2 + $0x99] sm:$0xff]  ;;  %v2006_v1 = vsel %vm13537_vm9, %v1750_v33, 0.0  ;;  %v1752_v48 = vld [vmem:[#allocation2 + $0x47] sm:$0xff]  ;;  %v10791_v33 = vpack.c.bf16 %v4581_v22, %v4581_v22 }
 0x23f   :  { %4846 = vrot.lane.b32.xlu1 %v10787_v16, %s11353_s2  ;;  %v10789_v16 = vpack.c.bf16 %v4579_v43, %v4579_v43  ;;  %vm19475_vm14 = vmmov %vm19465_vm6  ;;  %v7528_v43 = vsel %vm19477_vm15, %v13548_v13, 0.0  ;;  %v10524_v3 = vpack.c.bf16 %v2006_v1, %v2006_v1  ;;  %v1310_v45 = vand.u32 15, %v13385_v39 }
 0x240   :  { %2326 = vst.msk [vmem:[#allocation3 + $0x28] sm:$0xf] %vm19475_vm14, %v10523_v25  ;;  %vm7337_vm6 = vmand %vm19476_vm3, %vm13521_vm2  ;;  %v11046_v58 = vpack.c.bf16 %v7528_v43, %v7528_v43  ;;  %vm19478_vm14 = vcmp.gt.s32.totalorder %v13345_v0, 0  ;;  %v1314_v43 = vand.u32 15, %v13529_v30  ;;  %v1312_v9 = vand.u32 15, %v13418_v50 }
 0x241   :  { %v7529_v46 = vsel %vm7337_vm6, %v13558_v47, 0.0  ;;  %vm13576_vm3 = vmand %vm19478_vm14, %vm13553_vm4  ;;  %vm19481_vm6 = vcmask 125952  }
 0x242   :  { %4848 = vrot.lane.b32.xlu0 %v10788_v52, %s11353_s2  ;;  %v1378_v52 = vshra.s32 %v13529_v30, 4  ;;  %v11047_v19 = vpack.c.bf16 %v7529_v46, %v7529_v46  ;;  %7848 = vst.msk [vmem:[#allocation3 + $0x84] sm:$0xf] %vm19481_vm6, %v11046_v58  ;;  %vm19482_vm15 = vmmov %vm19481_vm6  ;;  %v19488_v46 = vmov 0 }
 0x243   :  { %4337 = vrot.lane.b32.xlu1 %v10725_v12, %s11354_s3  ;;  %v10790_v12 = vpack.c.bf16 %v4580_v20, %v4580_v20  ;;  %v1306_v20 = vand.u32 15, %v13332_v17  ;;  %2327 = vst.msk [vmem:[#allocation3 + $0x30] sm:$0xf] %vm19482_vm15, %v10524_v3  ;;  %vm19484_vm14 = vmmov %vm19481_vm6  ;;  %v2008_v17 = vsel %vm13576_vm3, %v1752_v48, 0.0  ;;  %vm19487_vm3 = vcmp.gt.s32.totalorder %v13336_v40, 0 }
 0x244   :  { %v13588_v23 = vand.u32 15, %v1378_v52  ;;  %7849 = vst.msk [vmem:[#allocation3 + $0x8c] sm:$0xf] %vm19484_vm14, %v11047_v19  ;;  %vm19485_vm15 = vmmov %vm19481_vm6  ;;  %v10526_v52 = vpack.c.bf16 %v2008_v17, %v2008_v17  ;;  %v2009_v58 = vsel %vm19487_vm3, %v1753_v54, 0.0  ;;  %v19490_v48 = vmov 0  ;;  %v5095_v19 = vld [vmem:[#allocation2 + $0xa9] sm:$0xff] }
 0x245   :  { %vm13610_vm14 = vcmp.gt.s32.totalorder %v1306_v20, 0  ;;  %v4584_v17 = vld [vmem:[#allocation2 + $0xb8] sm:$0xff] }
 0x246   :  { %5553 = vrot.lane.b32.xlu0 %v10852_v14, %s11355_s17  ;;  %v2007_v14 = vsel %vm18949_vm8, %v1751_v6, 0.0  ;;  %19483 = vst [vmem:[#allocation15_spill] sm:$0xff] %v13588_v23  ;;  %v13593_v6 = vld [vmem:[#allocation2 + $0xb9] sm:$0xff]  ;;  %vm18950_vm8 = vcmp.gt.s32.totalorder %v13588_v23, 0  ;;  %vm18951_vm9 = vcmp.lt.s32.totalorder %v13588_v23, 15  ;;  %v19489_v46 = vsel %vm13610_vm14, 4294967295, %v19488_v46 }
 0x247   :  { %4850 = vrot.lane.b32.xlu1 %v10789_v16, %s11353_s2  ;;  %v10854_v16 = vpack.c.bf16 %v5093_v37, %v5093_v37  ;;  %v10525_v25 = vpack.c.bf16 %v2007_v14, %v2007_v14  ;;  %v3878_v37 = vld [vmem:[#allocation2 + $0xaf] sm:$0xff]  ;;  %v13606_v1 = vsel %vm18950_vm8, %v13479_v27, 0.0  ;;  %v7530_v4 = vsel %vm18951_vm9, %v13593_v6, 0.0  ;;  %2329 = vst.msk [vmem:[#allocation3 + $0x40] sm:$0xf] %vm19481_vm6, %v10526_v52 }
 0x248   :  { %19486 = vst [vmem:[#allocation17_spill] sm:$0xff] %v13606_v1  ;;  %v10729_v27 = vpack.c.bf16 %v3878_v37, %v3878_v37  ;;  %v4583_v14 = vld [vmem:[#allocation2 + $0xb0] sm:$0xff]  ;;  %v11048_v54 = vpack.c.bf16 %v7530_v4, %v7530_v4  ;;  %v3880_v37 = vld [vmem:[#allocation2 + $0xbf] sm:$0xff]  ;;  %v10856_v52 = vpack.c.bf16 %v5095_v19, %v5095_v19 }
 0x249   :  { %2328 = vst.msk [vmem:[#allocation3 + $0x38] sm:$0xf] %vm19485_vm15, %v10525_v25  ;;  %vm13614_vm15 = vcmp.gt.s32.totalorder %v1314_v43, 0  ;;  %v19496_v25 = vmov 0  ;;  %v5097_v4 = vld [vmem:[#allocation2 + $0xb9] sm:$0xff]  ;;  %v3882_v1 = vld [vmem:[#allocation2 + $0xcf] sm:$0xff] }
 0x24a   :  { %4852 = vrot.lane.b32.xlu0 %v10790_v12, %s11353_s2  ;;  %v4582_v12 = vld [vmem:[#allocation2 + $0xa8] sm:$0xff]  ;;  %v19491_v48 = vsel %vm13614_vm15, 4294967295, %v19490_v48  ;;  %vm13632_vm8 = vmand %vm18951_vm9, %vm13614_vm15  ;;  %vm19500_vm9 = vcmask 125952   ;;  %v1755_v19 = vld [vmem:[#allocation2 + $0x5f] sm:$0xff] }
 0x24b   :  { %4341 = vrot.lane.b32.xlu1 %v10727_v34, %s11354_s3  ;;  %v1251_v34 = vadd.s32 152, %v19411_v2  ;;  %v10792_v3 = vpack.c.bf16 %v4582_v12, %v4582_v12  ;;  %19492 = vst [vmem:[#allocation18_spill] sm:$0xff] %v19491_v48  ;;  %v19497_v25 = vsel %vm13632_vm8, 4294967295, %v19496_v25  ;;  %7850 = vst.msk [vmem:[#allocation3 + $0x94] sm:$0xf] %vm19500_vm9, %v11048_v54  ;;  %vm19501_vm8 = vcmp.gt.s32.totalorder %v13371_v38, 0 }
 0x24c   :  { %19498 = vst [vmem:[#allocation24_spill] sm:$0xff] %v19497_v25  ;;  %vm13652_vm2 = vmand %vm19501_vm8, %vm13610_vm14  ;;  %v10731_v54 = vpack.c.bf16 %v3880_v37, %v3880_v37  ;;  %v13694_v25 = vadd.s32 176, %v19411_v2  ;;  %v1765_v48 = vld [vmem:[#allocation2 + $0xaf] sm:$0xff] }
 0x24d   :  { %v1379_v30 = vshra.s32 %v1251_v34, 4  ;;  %v1315_v22 = vand.u32 15, %v1251_v34  ;;  %v10527_v34 = vpack.c.bf16 %v2009_v58, %v2009_v58  ;;  %vm19504_vm4 = vmmov %vm19500_vm9  ;;  %v11193_v58 = vld [vmem:[%s18831_s4 + $0x30] sm:$0xff]   ;;  %vm18961_vm9 = vcmp.gt.s32.totalorder %v13358_v44, 0 }
 0x24e   :  { %5557 = vrot.lane.b32.xlu0 %v10854_v16, %s11355_s17 }
 0x24f   :  { %4854 = vrot.lane.b32.xlu1 %v10791_v33, %s11353_s2  ;;  %v13622_v16 = vand.u32 15, %v1379_v30  ;;  %vm13624_vm3 = vcmp.lt.s32.totalorder %v1315_v22, 15  ;;  %v11192_v33 = vld [vmem:[%s18831_s4 + $0x38] sm:$0xff]   ;;  %2330 = vst.msk [vmem:[#allocation3 + $0x48] sm:$0xf] %vm19504_vm4, %v10527_v34  ;;  %v10793_v30 = vpack.c.bf16 %v4583_v14, %v4583_v14  ;;  %v19505_v22 = vmov 0  }
 0x250   :  { %v13642_v12 = vsel %vm13624_vm3, %v13558_v47, 0.0  ;;  %8417 = vmatpush1.bf16.msra.mxu0 %v11192_v33  ;;  %11171 = vmatpush1.bf16.msra.mxu1 %v11192_v33  ;;  %v10794_v14 = vpack.c.bf16 %v4584_v17, %v4584_v17  ;;  %v11194_v33 = vld [vmem:[%s18831_s4 + $0x28] sm:$0xff]  }
 0x251   :  { %19493 = vst [vmem:[#allocation19_spill] sm:$0xff] %v13622_v16  ;;  %19499 = vst [vmem:[#allocation7_spill] sm:$0xff] %v13642_v12  ;;  %vm18956_vm6 = vcmp.gt.s32.totalorder %v13622_v16, 0  ;;  %8418 = vmatprep.subr.bf16.mxu0 %v19505_v22  ;;  %11163 = vmatprep.subr.bf16.mxu1 %v19505_v22  ;;  %vm18960_vm4 = vcmp.lt.s32.totalorder %v13622_v16, 15  ;;  %v10858_v12 = vpack.c.bf16 %v5097_v4, %v5097_v4  ;;  %v4586_v4 = vld [vmem:[#allocation2 + $0xc8] sm:$0xff] }
 0x252   :  { %4856 = vrot.lane.b32.xlu0 %v10792_v3, %s11353_s2  ;;  %v13661_v3 = vld [vmem:[#allocation2 + $0xc1] sm:$0xff]  ;;  %vm3173_vm8 = vmand %vm18956_vm6, %vm13624_vm3 }
 0x253   :  { %4345 = vrot.lane.b32.xlu1 %v10729_v27, %s11354_s3  ;;  %v1754_v27 = vld [vmem:[#allocation2 + $0x57] sm:$0xff]  ;;  %v13677_v34 = vsel %vm3173_vm8, %v13492_v36, 0.0  ;;  %vm7339_vm6 = vmand %vm18960_vm4, %vm13624_vm3  ;;  %v1253_v36 = vadd.s32 168, %v19411_v2  ;;  %vm19507_vm3 = vcmask 125952  }
 0x254   :  { %8419 = vmatpush1.bf16.msra.mxu0 %v11193_v58  ;;  %19506 = vst [vmem:[#allocation25_spill] sm:$0xff] %v13677_v34  ;;  %11172 = vmatpush1.bf16.msra.mxu1 %v11193_v58  ;;  %v7531_v17 = vsel %vm7339_vm6, %v13661_v3, 0.0  ;;  %v2010_v20 = vsel %vm13652_vm2, %v1754_v27, 0.0  ;;  %v2011_v58 = vsel %vm18961_vm9, %v1755_v19, 0.0  ;;  %vm19508_vm2 = vcmp.gt.s32.totalorder %v19415_v35, 0 }
 0x255   :  { %8420 = vmatprep.subr.bf16.mxu0 %v19505_v22  ;;  %11164 = vmatprep.subr.bf16.mxu1 %v19505_v22  ;;  %v11049_v37 = vpack.c.bf16 %v7531_v17, %v7531_v17  ;;  %v1317_v17 = vand.u32 15, %v1253_v36  ;;  %v10528_v43 = vpack.c.bf16 %v2010_v20, %v2010_v20  ;;  %v10529_v27 = vpack.c.bf16 %v2011_v58, %v2011_v58  ;;  %vm13705_vm6 = vmand %vm19508_vm2, %vm13228_vm5 }
 0x256   :  { %5561 = vrot.lane.b32.xlu0 %v10856_v52, %s11355_s17  ;;  %v4585_v52 = vld [vmem:[#allocation2 + $0xc0] sm:$0xff]  ;;  %vm19516_vm2 = vmmov %vm19507_vm3  ;;  %v1382_v20 = vshra.s32 %v13694_v25, 4  ;;  %v13729_v58 = vadd.s32 184, %v19411_v2 }
 0x257   :  { %4858 = vrot.lane.b32.xlu1 %v10793_v30, %s11353_s2  ;;  %v1252_v30 = vadd.s32 160, %v19411_v2  ;;  %v10795_v34 = vpack.c.bf16 %v4585_v52, %v4585_v52  ;;  %7851 = vst.msk [vmem:[#allocation3 + $0x9c] sm:$0xf] %vm19507_vm3, %v11049_v37  ;;  %vm13713_vm8 = vcmp.lt.s32.totalorder %v1317_v17, 15  ;;  %2331 = vst.msk [vmem:[#allocation3 + $0x50] sm:$0xf] %vm19507_vm3, %v10528_v43 }
 0x258   :  { %8421 = vmatpush1.bf16.msra.mxu0 %v11194_v33  ;;  %11173 = vmatpush1.bf16.msra.mxu1 %v11194_v33  ;;  %2332 = vst.msk [vmem:[#allocation3 + $0x58] sm:$0xf] %vm19516_vm2, %v10529_v27  ;;  %v5099_v17 = vld [vmem:[#allocation2 + $0xc9] sm:$0xff]  ;;  %v11196_v43 = vld [vmem:[%s18831_s4 + $0x18] sm:$0xff]   ;;  %v1308_v27 = vand.u32 15, %v13361_v57  ;;  %v13774_v19 = vand.u32 15, %v1382_v20 }
 0x259   :  { %8422 = vmatprep.subr.bf16.mxu0 %v19505_v22  ;;  %v1316_v5 = vand.u32 15, %v1252_v30  ;;  %11165 = vmatprep.subr.bf16.mxu1 %v19505_v22  ;;  %v10860_v55 = vpack.c.bf16 %v5099_v17, %v5099_v17  ;;  %v13789_v20 = vld [vmem:[#allocation2 + $0x27] sm:$0xff] }
 0x25a   :  { %4860 = vrot.lane.b32.xlu0 %v10794_v14, %s11353_s2  ;;  %v1380_v14 = vshra.s32 %v1252_v30, 4  ;;  %v3859_v30 = vld [vmem:[#allocation2 + $0x17] sm:$0xff]  ;;  %19525 = vst [vmem:[#allocation34_spill] sm:$0xff] %v13774_v19 }
 0x25b   :  { %4349 = vrot.lane.b32.xlu1 %v10731_v54, %s11354_s3  ;;  %v1381_v54 = vshra.s32 %v1253_v36, 4  ;;  %v13723_v36 = vsel %vm13713_vm8, %v13661_v3, 0.0  ;;  %vm13746_vm2 = vcmp.gt.s32.totalorder %v1316_v5, 0  ;;  %v4051_v57 = vsel %vm13242_vm7, %v3859_v30, 0.0  ;;  %v13772_v30 = vld [vmem:[#allocation2 + $0xd1] sm:$0xff] }
 0x25c   :  { %v13709_v33 = vand.u32 15, %v1380_v14  ;;  %19515 = vst [vmem:[#allocation22_spill] sm:$0xff] %v13723_v36  ;;  %v10796_v14 = vpack.c.bf16 %v4586_v4, %v4586_v4  ;;  %v13750_v4 = vld [vmem:[#allocation2 + $0xc9] sm:$0xff]  ;;  %v19543_v5 = vmov 0 }
 0x25d   :  { %v13711_v52 = vand.u32 15, %v1381_v54  ;;  %v10733_v54 = vpack.c.bf16 %v3882_v1, %v3882_v1  ;;  %v19518_v1 = vmov 0 }
 0x25e   :  { %5565 = vrot.lane.b32.xlu0 %v10858_v12, %s11355_s17  ;;  %19511 = vst [vmem:[#allocation21_spill] sm:$0xff] %v13709_v33  ;;  %v3091_v12 = vld [vmem:[#allocation2 + $0x11] sm:$0xff]  ;;  %vm18963_vm4 = vcmp.gt.s32.totalorder %v13709_v33, 0  ;;  %v19519_v1 = vsel %vm13746_vm2, 4294967295, %v19518_v1  ;;  %vm18973_vm14 = vcmp.lt.s32.totalorder %v13709_v33, 15 }
 0x25f   :  { %4862 = vrot.lane.b32.xlu1 %v10795_v34, %s11353_s2  ;;  %19512 = vst [vmem:[#allocation41_spill] sm:$0xff] %v13711_v52  ;;  %v11195_v34 = vld [vmem:[%s18831_s4 + $0x20] sm:$0xff]   ;;  %vm18962_vm9 = vcmp.gt.s32.totalorder %v13711_v52, 0  ;;  %v13740_v36 = vsel %vm18963_vm4, %v13548_v13, 0.0  ;;  %19520 = vst [vmem:[#allocation23_spill] sm:$0xff] %v19519_v1  ;;  %v3347_v13 = vsel %vm13705_vm6, %v3091_v12, 0.0  ;;  %v10797_v12 = vpack.c.bf16 %v4587_v11, %v4587_v11 }
 0x260   :  { %8423 = vmatpush1.bf16.msra.mxu0 %v11195_v34  ;;  %19517 = vst [vmem:[#allocation42_spill] sm:$0xff] %v13740_v36  ;;  %vm3175_vm3 = vmand %vm18962_vm9, %vm13713_vm8  ;;  %11174 = vmatpush1.bf16.msra.mxu1 %v11195_v34  ;;  %vm19522_vm9 = vcmp.lt.s32.totalorder %v19420_v59, 15  ;;  %vm18974_vm13 = vcmp.lt.s32.totalorder %v13711_v52, 15  ;;  %v19526_v34 = vmov 0  ;;  %vm13792_vm6 = vcmp.gt.s32.totalorder %v1308_v27, 0  ;;  %v11197_v11 = vld [vmem:[%s18831_s4 + $0x10] sm:$0xff]  }
 0x261   :  { %v13759_v36 = vsel %vm3175_vm3, %v13558_v47, 0.0  ;;  %vm13765_vm4 = vmand %vm19522_vm9, %vm13242_vm7  ;;  %8424 = vmatprep.subr.bf16.mxu0 %v19505_v22  ;;  %v1383_v47 = vshra.s32 %v13729_v58, 4  ;;  %11166 = vmatprep.subr.bf16.mxu1 %v19505_v22  ;;  %vm18976_vm9 = vcmp.gt.s32.totalorder %v13406_v8, 0  ;;  %v10647_v27 = vpack.c.bf16 %v3347_v13, %v3347_v13  ;;  %v11198_v13 = vld [vmem:[%s18831_s4 + $0x8] sm:$0xff]  }
 0x262   :  { %4864 = vrot.lane.b32.xlu0 %v10796_v14, %s11353_s2  ;;  %19521 = vst [vmem:[#allocation33_spill] sm:$0xff] %v13759_v36  ;;  %vm13782_vm7 = vmand %vm18973_vm14, %vm13746_vm2  ;;  %v7532_v14 = vsel %vm18973_vm14, %v13750_v4, 0.0  ;;  %v13805_v36 = vld [vmem:[#allocation2 + $0x21] sm:$0xff]  ;;  %vm19532_vm14 = vcmask 125952   ;;  %v6038_v39 = vsel %vm13765_vm4, %v13789_v20, 0.0 }
 0x263   :  { %4353 = vrot.lane.b32.xlu1 %v10733_v54, %s11354_s3  ;;  %v19527_v34 = vsel %vm13782_vm7, 4294967295, %v19526_v34  ;;  %v19529_v54 = vmov 0  ;;  %v11050_v17 = vpack.c.bf16 %v7532_v14, %v7532_v14  ;;  %vm7341_vm3 = vmand %vm18974_vm13, %vm13713_vm8  ;;  %vm18975_vm8 = vcmp.gt.s32.totalorder %v13774_v19, 0 }
 0x264   :  { %19528 = vst [vmem:[#allocation43_spill] sm:$0xff] %v19527_v34  ;;  %8425 = vmatpush1.bf16.msra.mxu0 %v11196_v43  ;;  %v19530_v54 = vsel %vm13792_vm6, 4294967295, %v19529_v54  ;;  %11175 = vmatpush1.bf16.msra.mxu1 %v11196_v43  ;;  %v10710_v34 = vpack.c.bf16 %v4051_v57, %v4051_v57  ;;  %v7533_v21 = vsel %vm7341_vm3, %v13772_v30, 0.0  ;;  %v13812_v43 = vand.u32 15, %v1383_v47  ;;  %vm19535_vm3 = vmmov %vm19532_vm14 }
 0x265   :  { %19531 = vst [vmem:[#allocation35_spill] sm:$0xff] %v19530_v54  ;;  %8426 = vmatprep.subr.bf16.mxu0 %v19505_v22  ;;  %7852 = vst.msk [vmem:[#allocation3 + $0xa4] sm:$0xf] %vm19532_vm14, %v11050_v17  ;;  %v11051_v37 = vpack.c.bf16 %v7533_v21, %v7533_v21  ;;  %11167 = vmatprep.subr.bf16.mxu1 %v19505_v22  ;;  %v13824_v57 = vsel %vm18975_vm8, %v13593_v6, 0.0  ;;  %v1318_v21 = vand.u32 15, %v13694_v25  ;;  %v19540_v25 = vmov 0 }
 0x266   :  { %5569 = vrot.lane.b32.xlu0 %v10860_v55, %s11355_s17  ;;  %19533 = vst [vmem:[#allocation27_spill] sm:$0xff] %v13812_v43  ;;  %v1319_v55 = vand.u32 15, %v13729_v58  ;;  %19534 = vst [vmem:[#allocation28_spill] sm:$0xff] %v13824_v57  ;;  %v5270_v58 = vsel %vm13228_vm5, %v13805_v36, 0.0  ;;  %vm18977_vm13 = vcmp.gt.s32.totalorder %v13812_v43, 0  ;;  %v10902_v14 = vpack.c.bf16 %v6038_v39, %v6038_v39  ;;  %v11281_v39 = vld [vmem:[#allocation2 + $0x2f] sm:$0xff] }
 0x267   :  { %4866 = vrot.lane.b32.xlu1 %v10797_v12, %s11353_s2  ;;  %v13815_v12 = vld [vmem:[#allocation2 + $0xd9] sm:$0xff]  ;;  %7853 = vst.msk [vmem:[#allocation3 + $0xac] sm:$0xf] %vm19535_vm3, %v11051_v37  ;;  %vm13845_vm5 = vmand %vm18976_vm9, %vm13792_vm6  ;;  %vm13851_vm3 = vcmp.gt.s32.totalorder %v1310_v45, 0  ;;  %vm13859_vm14 = vcmp.gt.s32.totalorder %v1318_v21, 0  ;;  %vm19547_vm9 = vcmp.lt.s32.totalorder %v13774_v19, 15 }
 0x268   :  { %8427 = vmatpush1.bf16.msra.mxu0 %v11197_v11  ;;  %vm13837_vm8 = vcmp.lt.s32.totalorder %v1319_v55, 15  ;;  %11176 = vmatpush1.bf16.msra.mxu1 %v11197_v11  ;;  %v19541_v25 = vsel %vm13851_vm3, 4294967295, %v19540_v25  ;;  %v19544_v5 = vsel %vm13859_vm14, 4294967295, %v19543_v5  ;;  %v7534_v45 = vsel %vm19547_vm9, %v13815_v12, 0.0  ;;  %v13871_v11 = vld [vmem:[#allocation2 + $0x28] sm:$0xff]  ;;  %vm19550_vm6 = vmmov %vm19547_vm9  ;;  %v11283_v6 = vld [vmem:[#allocation2 + $0x18] sm:$0xff] }
 0x269   :  { %19542 = vst [vmem:[#allocation8_spill] sm:$0xff] %v19541_v25  ;;  %vm3177_vm4 = vmand %vm18977_vm13, %vm13837_vm8  ;;  %v13866_v47 = vsel %vm13837_vm8, %v13772_v30, 0.0  ;;  %vm19548_vm13 = vcmp.lt.s32.totalorder %v19420_v59, 15  ;;  %8428 = vmatprep.subr.bf16.mxu0 %v19505_v22  ;;  %v19551_v37 = vmov 0  ;;  %v1757_v55 = vld [vmem:[#allocation2 + $0x6f] sm:$0xff]  ;;  %11168 = vmatprep.subr.bf16.mxu1 %v19505_v22  ;;  %v10839_v59 = vpack.c.bf16 %v5270_v58, %v5270_v58  ;;  %v13899_v57 = vld [vmem:[#allocation2 + $0xe1] sm:$0xff] }
 0x26a   :  { %4307 = vrot.lane.b32.xlu0 %v10710_v34, %s11354_s3  ;;  %19545 = vst [vmem:[#allocation29_spill] sm:$0xff] %v19544_v5  ;;  %19546 = vst [vmem:[#allocation5_spill] sm:$0xff] %v13866_v47  ;;  %v1756_v34 = vld [vmem:[#allocation2 + $0x67] sm:$0xff]  ;;  %v6743_v17 = vsel %vm19548_vm13, %v13871_v11, 0.0  ;;  %vm19554_vm13 = vcmp.lt.s32.totalorder %v19415_v35, 15  ;;  %v13892_v47 = vld [vmem:[#allocation2 + $0x30] sm:$0xff] }
 0x26b   :  { %3604 = vrot.lane.b32.xlu1 %v10647_v27, %s11352_s1  ;;  %v13879_v27 = vsel %vm3177_vm4, %v13661_v3, 0.0  ;;  %vm13885_vm9 = vmand %vm19550_vm6, %vm13859_vm14  ;;  %v6039_v21 = vsel %vm19554_vm13, %v11281_v39, 0.0  ;;  %v2012_v58 = vsel %vm13845_vm5, %v1756_v34, 0.0  ;;  %vm19559_vm5 = vcmask 125952   ;;  %v1759_v25 = vld [vmem:[#allocation2 + $0x7f] sm:$0xff] }
 0x26c   :  { %19549 = vst [vmem:[#allocation44_spill] sm:$0xff] %v13879_v27  ;;  %v19552_v37 = vsel %vm13885_vm9, 4294967295, %v19551_v37  ;;  %vm19555_vm4 = vmmov %vm19554_vm13  ;;  %v11052_v27 = vpack.c.bf16 %v7534_v45, %v7534_v45  ;;  %8429 = vmatpush1.bf16.msra.mxu0 %v11198_v13  ;;  %vm18989_vm13 = vcmp.lt.s32.totalorder %v13812_v43, 15  ;;  %11177 = vmatpush1.bf16.msra.mxu1 %v11198_v13  ;;  %v10966_v45 = vpack.c.bf16 %v6743_v17, %v6743_v17  ;;  %v1758_v13 = vld [vmem:[#allocation2 + $0x77] sm:$0xff] }
 0x26d   :  { %19553 = vst [vmem:[#allocation36_spill] sm:$0xff] %v19552_v37  ;;  %v13897_v3 = vsel %vm19555_vm4, %v13892_v47, 0.0  ;;  %v11199_v37 = vld [vmem:[%s18831_s4] sm:$0xff]   ;;  %vm19556_vm4 = vcmp.gt.s32.totalorder %v13451_v24, 0  ;;  %v10530_v34 = vpack.c.bf16 %v2012_v58, %v2012_v58  ;;  %vm19560_vm6 = vcmp.gt.s32.totalorder %v13391_v10, 0  ;;  %8430 = vmatprep.subr.bf16.mxu0 %v19505_v22  ;;  %11169 = vmatprep.subr.bf16.mxu1 %v19505_v22 }
 0x26e   :  { %vm13912_vm7 = vmand %vm19556_vm4, %vm13851_vm3  ;;  %6294 = vrot.lane.b32.xlu0 %v10902_v14, %s11356_s13  ;;  %7854 = vst.msk [vmem:[#allocation3 + $0xb4] sm:$0xf] %vm19559_vm5, %v11052_v27  ;;  %v2013_v39 = vsel %vm19560_vm6, %v1757_v55, 0.0  ;;  %v10903_v24 = vpack.c.bf16 %v6039_v21, %v6039_v21  ;;  %v10967_v14 = vpack.c.bf16 %v13897_v3, %v13897_v3  ;;  %vm19561_vm5 = vcmp.gt.s32.totalorder %v13260_v42, 0  ;;  %v11285_v54 = vld [vmem:[#allocation2 + $0x19] sm:$0xff] }
 0x26f   :  { %5527 = vrot.lane.b32.xlu1 %v10839_v59, %s11355_s17  ;;  %vm7343_vm4 = vmand %vm18989_vm13, %vm13837_vm8  ;;  %v10531_v17 = vpack.c.bf16 %v2013_v39, %v2013_v39  ;;  %v2579_v27 = vsel %vm19561_vm5, %v11283_v6, 0.0  ;;  %vm19562_vm8 = vcmask 125952   ;;  %v1256_v59 = vadd.s32 192, %v19411_v2 }
 0x270   :  { %v7535_v50 = vsel %vm7343_vm4, %v13899_v57, 0.0  ;;  %2333 = vst.msk [vmem:[#allocation3 + $0x60] sm:$0xf] %vm19562_vm8, %v10530_v34  ;;  %v1257_v21 = vadd.s32 200, %v19411_v2  ;;  %8431 = vmatpush1.bf16.msra.mxu0 %v11199_v37  ;;  %vm19563_vm6 = vmmov %vm19562_vm8  ;;  %v2014_v3 = vsel %vm13912_vm7, %v1758_v13, 0.0  ;;  %vm19564_vm4 = vcmp.gt.s32.totalorder %v13437_v7, 0  ;;  %11178 = vmatpush1.bf16.msra.mxu1 %v11199_v37 }
 0x271   :  { %v11053_v55 = vpack.c.bf16 %v7535_v50, %v7535_v50  ;;  %2334 = vst.msk [vmem:[#allocation3 + $0x68] sm:$0xf] %vm19563_vm6, %v10531_v17  ;;  %v2015_v58 = vsel %vm19564_vm4, %v1759_v25, 0.0  ;;  %v13942_v39 = vadd.s32 208, %v19411_v2  ;;  %v13945_v6 = vadd.s32 216, %v19411_v2  ;;  %vm19565_vm5 = vmmov %vm19563_vm6  ;;  %8446 = vmatprep.subr.bf16.mxu0 %v19505_v22  ;;  %v11200_v25 = vld [vmem:[%s18831_s4 + $0x40] sm:$0xff]   ;;  %11170 = vmatprep.subr.bf16.mxu1 %v19505_v22 }
 0x272   :  { %6999 = vrot.lane.b32.xlu0 %v10966_v45, %s11357_s14  ;;  %v1384_v34 = vshra.s32 %v1256_v59, 4  ;;  %v1385_v35 = vshra.s32 %v1257_v21, 4  ;;  %v1321_v13 = vand.u32 15, %v1257_v21  ;;  %v1320_v50 = vand.u32 15, %v1256_v59  ;;  %v11284_v59 = vld [vmem:[#allocation2 + $0x20] sm:$0xff] }
 0x273   :  { %6296 = vrot.lane.b32.xlu1 %v10903_v24, %s11356_s13  ;;  %7855 = vst.msk [vmem:[#allocation3 + $0xbc] sm:$0xf] %vm19565_vm5, %v11053_v55  ;;  %v10584_v17 = vpack.c.bf16 %v2579_v27, %v2579_v27  ;;  %v10532_v7 = vpack.c.bf16 %v2014_v3, %v2014_v3  ;;  %v10533_v37 = vpack.c.bf16 %v2015_v58, %v2015_v58  ;;  %v1386_v27 = vshra.s32 %v13942_v39, 4  ;;  %v1761_v55 = vld [vmem:[#allocation2 + $0x8f] sm:$0xff] }
 0x274   :  { %v13955_v45 = vand.u32 15, %v1384_v34  ;;  %v13957_v24 = vand.u32 15, %v1385_v35  ;;  %vm13959_vm7 = vcmp.lt.s32.totalorder %v1321_v13, 15  ;;  %vm19570_vm8 = vcmp.gt.s32.totalorder %v13234_v18, 0  ;;  %8447 = vmatpush2.bf16.msra.mxu0 %v11200_v25  ;;  %11179 = vmatpush2.bf16.msra.mxu1 %v11200_v25  ;;  %v14003_v35 = vld [vmem:[#allocation2 + $0xe9] sm:$0xff]  ;;  %v14006_v13 = vld [vmem:[#allocation2 + $0x37] sm:$0xff] }
 0x275   :  { %v2580_v21 = vsel %vm19570_vm8, %v11284_v59, 0.0  ;;  %vm19571_vm6 = vcmp.gt.s32.totalorder %v13260_v42, 0  ;;  %vm19572_vm4 = vmmov %vm19570_vm8  ;;  %vm13976_vm13 = vcmp.gt.s32.totalorder %v1320_v50, 0  ;;  %v19575_v58 = vmov 0 }
 0x276   :  { %19566 = vst [vmem:[#allocation45_spill] sm:$0xff] %v13955_v45  ;;  %19567 = vst [vmem:[#allocation37_spill] sm:$0xff] %v13957_v24  ;;  %v3348_v3 = vsel %vm19571_vm6, %v11285_v54, 0.0  ;;  %v19576_v58 = vsel %vm13976_vm13, 4294967295, %v19575_v58  ;;  %vm19578_vm9 = vcmask 125952   ;;  %v13985_v54 = vsel %vm13959_vm7, %v13899_v57, 0.0  ;;  %2837 = vrot.lane.b32.xlu0 %v10584_v17, %s11351_s0 }
 0x277   :  { %vm13972_vm5 = vmand %vm19572_vm4, %vm13262_vm10  ;;  %19577 = vst [vmem:[#allocation6_spill] sm:$0xff] %v19576_v58  ;;  %7001 = vrot.lane.b32.xlu1 %v10967_v14, %s11357_s14  ;;  %vm19581_vm6 = vcmp.lt.s32.totalorder %v13260_v42, 15  ;;  %vm18996_vm3 = vcmp.gt.s32.totalorder %v13957_v24, 0  ;;  %v1387_v14 = vshra.s32 %v13945_v6, 4  ;;  %vm19003_vm0 = vcmp.lt.s32.totalorder %v13955_v45, 15  ;;  %v14379_v58 = vld [vmem:[#allocation2 + $0x50] sm:$0xff] }
 0x278   :  { %2335 = vst.msk [vmem:[#allocation3 + $0x70] sm:$0xf] %vm19578_vm9, %v10532_v7  ;;  %vm19579_vm8 = vmmov %vm19578_vm9  ;;  %vm13997_vm9 = vcmp.gt.s32.totalorder %v1312_v9, 0  ;;  %v19584_v7 = vmov 0  ;;  %v10585_v9 = vpack.c.bf16 %v2580_v21, %v2580_v21  ;;  %v10648_v17 = vpack.c.bf16 %v3348_v3, %v3348_v3 }
 0x279   :  { %2336 = vst.msk [vmem:[#allocation3 + $0x78] sm:$0xf] %vm19579_vm8, %v10533_v37  ;;  %19580 = vst [vmem:[#allocation39_spill] sm:$0xff] %v13985_v54  ;;  %v19585_v7 = vsel %vm13997_vm9, 4294967295, %v19584_v7  ;;  %vm18997_vm8 = vcmp.gt.s32.totalorder %v13955_v45, 0  ;;  %v19589_v37 = vmov 0 }
 0x27a   :  { %vm13993_vm4 = vmand %vm19581_vm6, %vm13396_vm11  ;;  %19586 = vst [vmem:[#allocation16_spill] sm:$0xff] %v19585_v7  ;;  %v14011_v50 = vsel %vm18997_vm8, %v13750_v4, 0.0  ;;  %v14029_v4 = vld [vmem:[#allocation2 + $0xf1] sm:$0xff]  ;;  %v14031_v59 = vand.u32 15, %v1386_v27  ;;  %v3349_v21 = vsel %vm13972_vm5, %v13805_v36, 0.0  ;;  %v7536_v3 = vsel %vm19003_vm0, %v14003_v35, 0.0  ;;  %3606 = vrot.lane.b32.xlu0 %v10648_v17, %s11352_s1  ;;  %v14071_v29 = vpop.permute.xlu0 %4820 }
 0x27b   :  { %19587 = vst [vmem:[#allocation32_spill] sm:$0xff] %v14011_v50  ;;  %vm3179_vm6 = vmand %vm18996_vm3, %vm13959_vm7  ;;  %vm19593_vm3 = vcmp.gt.s32.totalorder %v13473_v62, 0  ;;  %2839 = vrot.lane.b32.xlu1 %v10585_v9, %s11351_s0  ;;  %v5272_v36 = vsel %vm13262_vm10, %v14053_v32, 0.0  ;;  %v11054_v22 = vpack.c.bf16 %v7536_v3, %v7536_v3  ;;  %v14065_v54 = vand.u32 15, %v1387_v14  ;;  %v1760_v9 = vld [vmem:[#allocation2 + $0x87] sm:$0xff] }
 0x27c   :  { %v14019_v25 = vsel %vm3179_vm6, %v13772_v30, 0.0  ;;  %vm14025_vm14 = vmand %vm19003_vm0, %vm13976_vm13  ;;  %19592 = vst [vmem:[#allocation46_spill] sm:$0xff] %v14031_v59  ;;  %v4053_v30 = vsel %vm13396_vm11, %v13789_v20, 0.0  ;;  %vm19004_vm6 = vcmp.lt.s32.totalorder %v13957_v24, 15  ;;  %v6040_v20 = vsel %vm13993_vm4, %v14006_v13, 0.0 }
 0x27d   :  { %19588 = vst [vmem:[#allocation31_spill] sm:$0xff] %v14019_v25  ;;  %v19590_v37 = vsel %vm14025_vm14, 4294967295, %v19589_v37  ;;  %vm14047_vm8 = vmand %vm19593_vm3, %vm13997_vm9  ;;  %vm19005_vm3 = vcmp.gt.s32.totalorder %v13502_v60, 0  ;;  %v10649_v25 = vpack.c.bf16 %v3349_v21, %v3349_v21  ;;  %v10712_v34 = vpack.c.bf16 %v4053_v30, %v4053_v30  ;;  %v11287_v21 = vld [vmem:[#allocation2 + $0x3f] sm:$0xff] }
 0x27e   :  { %19591 = vst [vmem:[#allocation26_spill] sm:$0xff] %v19590_v37  ;;  %vm7345_vm11 = vmand %vm19004_vm6, %vm13959_vm7  ;;  %v14069_v37 = vpop.permute.xlu1 %4309  ;;  %vm19598_vm10 = vcmask 125952   ;;  %vm19006_vm5 = vcmp.gt.s32.totalorder %v14031_v59, 0  ;;  %v10841_v50 = vpack.c.bf16 %v5272_v36, %v5272_v36  ;;  %v10904_v14 = vpack.c.bf16 %v6040_v20, %v6040_v20  ;;  %v14088_v36 = vld [vmem:[#allocation2 + $0x38] sm:$0xff] }
 0x27f   :  { %19596 = vst [vmem:[#allocation47_spill] sm:$0xff] %v14065_v54  ;;  %v7537_v17 = vsel %vm7345_vm11, %v14029_v4, 0.0  ;;  %19597 = vst [vmem:[#allocation48_spill] sm:$0xff] %v14069_v37  ;;  %v14078_v7 = vsel %vm19006_vm5, %v13815_v12, 0.0  ;;  %v2016_v62 = vsel %vm14047_vm8, %v1760_v9, 0.0  ;;  %v14082_v37 = vld [vmem:[#allocation2 + $0xf9] sm:$0xff]  ;;  %3608 = vrot.lane.b32.xlu1 %v10649_v25, %s11352_s1  ;;  %4311 = vrot.lane.b32.xlu0 %v10712_v34, %s11354_s3 }
 0x280   :  { %7856 = vst.msk [vmem:[#allocation3 + $0xc4] sm:$0xf] %vm19598_vm10, %v11054_v22  ;;  %v11055_v3 = vpack.c.bf16 %v7537_v17, %v7537_v17  ;;  %19599 = vst [vmem:[#allocation49_spill] sm:$0xff] %v14078_v7  ;;  %vm19600_vm7 = vcmp.lt.s32.totalorder %v13234_v18, 15  ;;  %vm19601_vm4 = vcmp.lt.s32.totalorder %v13260_v42, 15  ;;  %vm19008_vm8 = vcmp.gt.s32.totalorder %v14065_v54, 0  ;;  %v14110_v17 = vpop.permute.xlu0 %5525 }
 0x281   :  { %v6041_v30 = vsel %vm19600_vm7, %v11287_v21, 0.0  ;;  %v6745_v12 = vsel %vm19601_vm4, %v14088_v36, 0.0  ;;  %vm19602_vm11 = vmmov %vm19598_vm10  ;;  %v1323_v27 = vand.u32 15, %v13945_v6  ;;  %v10534_v20 = vpack.c.bf16 %v2016_v62, %v2016_v62  ;;  %v14147_v7 = vld [vmem:[#allocation2 + $0x101] sm:$0xff] }
 0x282   :  { %7857 = vst.msk [vmem:[#allocation3 + $0xcc] sm:$0xf] %vm19602_vm11, %v11055_v3  ;;  %v1322_v25 = vand.u32 15, %v13942_v39  ;;  %v2017_v22 = vsel %vm19005_vm3, %v1761_v55, 0.0  ;;  %vm19007_vm10 = vcmp.lt.s32.totalorder %v14031_v59, 15  ;;  %vm19603_vm7 = vcmp.gt.s32.totalorder %v13588_v23, 0  ;;  %v14108_v9 = vpop.permute.xlu1 %4822  ;;  %vm19612_vm5 = vmmov %vm19602_vm11 }
 0x283   :  { %vm14104_vm0 = vmand %vm19603_vm7, %vm13614_vm15  ;;  %vm14112_vm4 = vcmp.lt.s32.totalorder %v1323_v27, 15  ;;  %v10535_v39 = vpack.c.bf16 %v2017_v22, %v2017_v22  ;;  %v7538_v6 = vsel %vm19007_vm10, %v14082_v37, 0.0  ;;  %vm19608_vm7 = vcmp.gt.s32.totalorder %v13709_v33, 0  ;;  %v14128_v3 = vld [vmem:[#allocation2 + $0x40] sm:$0xff]  ;;  %2337 = vst.msk [vmem:[#allocation3 + $0x80] sm:$0xf] %vm19612_vm5, %v10534_v20  ;;  %5531 = vrot.lane.b32.xlu1 %v10841_v50, %s11355_s17  ;;  %6298 = vrot.lane.b32.xlu0 %v10904_v14, %s11356_s13 }
 0x284   :  { %vm14124_vm6 = vmand %vm19608_vm7, %vm13746_vm2  ;;  %vm19611_vm3 = vcmp.lt.s32.totalorder %v13234_v18, 15  ;;  %vm14138_vm10 = vcmp.gt.s32.totalorder %v1322_v25, 0  ;;  %v19613_v21 = vmov 0  ;;  %v14145_v27 = vsel %vm14112_vm4, %v14029_v4, 0.0  ;;  %v1762_v18 = vld [vmem:[#allocation2 + $0x97] sm:$0xff] }
 0x285   :  { %v6746_v55 = vsel %vm19611_vm3, %v14128_v3, 0.0  ;;  %vm3181_vm11 = vmand %vm19008_vm8, %vm14112_vm4  ;;  %v19614_v21 = vsel %vm14138_vm10, 4294967295, %v19613_v21  ;;  %19616 = vst [vmem:[#allocation51_spill] sm:$0xff] %v14145_v27  ;;  %v11056_v22 = vpack.c.bf16 %v7538_v6, %v7538_v6  ;;  %vm19617_vm3 = vcmp.gt.s32.totalorder %v13292_v41, 0 }
 0x286   :  { %19615 = vst [vmem:[#allocation50_spill] sm:$0xff] %v19614_v21  ;;  %v2581_v20 = vsel %vm19617_vm3, %v13871_v11, 0.0  ;;  %v14155_v25 = vsel %vm3181_vm11, %v13899_v57, 0.0  ;;  %2338 = vst.msk [vmem:[#allocation3 + $0x88] sm:$0xf] %vm19612_vm5, %v10535_v39  ;;  %vm19619_vm7 = vcmp.lt.s32.totalorder %v14031_v59, 15  ;;  %v10905_v50 = vpack.c.bf16 %v6041_v30, %v6041_v30  ;;  %v14171_v14 = vpop.permute.xlu1 %4313  ;;  %v14173_v39 = vpop.permute.xlu0 %4824 }
 0x287   :  { %19618 = vst [vmem:[#allocation52_spill] sm:$0xff] %v14155_v25  ;;  %vm14162_vm8 = vmand %vm19619_vm7, %vm14138_vm10  ;;  %v19620_v6 = vmov 0  ;;  %vm19624_vm3 = vcmp.lt.s32.totalorder %v14065_v54, 15  ;;  %v1763_v57 = vld [vmem:[#allocation2 + $0x9f] sm:$0xff]  ;;  %v1764_v11 = vld [vmem:[#allocation2 + $0xa7] sm:$0xff]  ;;  %v10968_v27 = vpack.c.bf16 %v6745_v12, %v6745_v12  ;;  %v10969_v25 = vpack.c.bf16 %v6746_v55, %v6746_v55 }
 0x288   :  { %v19621_v6 = vsel %vm14162_vm8, 4294967295, %v19620_v6  ;;  %vm19623_vm14 = vmmov %vm19612_vm5  ;;  %v2018_v30 = vsel %vm14104_vm0, %v1762_v18, 0.0  ;;  %v1260_v62 = vadd.s32 224, %v19411_v2  ;;  %6300 = vrot.lane.b32.xlu1 %v10905_v50, %s11356_s13  ;;  %v3094_v55 = vld [vmem:[#allocation2 + $0x29] sm:$0xff]  ;;  %v1261_v42 = vadd.s32 232, %v19411_v2 }
 0x289   :  { %19622 = vst [vmem:[#allocation53_spill] sm:$0xff] %v19621_v6  ;;  %7858 = vst.msk [vmem:[#allocation3 + $0xd4] sm:$0xf] %vm19623_vm14, %v11056_v22  ;;  %v10586_v6 = vpack.c.bf16 %v2581_v20, %v2581_v20  ;;  %v10536_v33 = vpack.c.bf16 %v2018_v30, %v2018_v30  ;;  %7003 = vrot.lane.b32.xlu0 %v10968_v27, %s11357_s14  ;;  %vm19625_vm14 = vcmp.gt.s32.totalorder %v13281_v63, 0  ;;  %vm19629_vm11 = vcmp.gt.s32.totalorder %v13711_v52, 0 }
 0x28a   :  { %vm7347_vm2 = vmand %vm19624_vm3, %vm14112_vm4  ;;  %v2582_v12 = vsel %vm19625_vm14, %v13892_v47, 0.0  ;;  %v1388_v18 = vshra.s32 %v1260_v62, 4  ;;  %v1324_v27 = vand.u32 15, %v1260_v62  ;;  %v14191_v30 = vpop.permute.xlu1 %4826  ;;  %v14193_v47 = vpop.permute.xlu0 %5529  ;;  %v1389_v60 = vshra.s32 %v1261_v42, 4 }
 0x28b   :  { %v7539_v1 = vsel %vm7347_vm2, %v14147_v7, 0.0  ;;  %vm19626_vm2 = vcmp.gt.s32.totalorder %v13622_v16, 0  ;;  %vm19627_vm0 = vmmov %vm19612_vm5  ;;  %v1325_v16 = vand.u32 15, %v1261_v42  ;;  %v14198_v34 = vadd.s32 240, %v19411_v2 }
 0x28c   :  { %v11057_v22 = vpack.c.bf16 %v7539_v1, %v7539_v1  ;;  %v2019_v23 = vsel %vm19626_vm2, %v1763_v57, 0.0  ;;  %v2020_v1 = vsel %vm14124_vm6, %v1764_v11, 0.0  ;;  %vm19628_vm4 = vmmov %vm19627_vm0  ;;  %v2021_v57 = vsel %vm19629_vm11, %v1765_v48, 0.0  ;;  %7005 = vrot.lane.b32.xlu1 %v10969_v25, %s11357_s14 }
 0x28d   :  { %2339 = vst.msk [vmem:[#allocation3 + $0x90] sm:$0xf] %vm19628_vm4, %v10536_v33  ;;  %v10537_v20 = vpack.c.bf16 %v2019_v23, %v2019_v23  ;;  %v10538_v50 = vpack.c.bf16 %v2020_v1, %v2020_v1  ;;  %vm19630_vm6 = vcmp.gt.s32.totalorder %v13292_v41, 0  ;;  %v14202_v33 = vand.u32 15, %v1388_v18  ;;  %vm19632_vm5 = vmmov %vm19627_vm0  ;;  %2841 = vrot.lane.b32.xlu0 %v10586_v6, %s11351_s0  ;;  %v7284_v6 = vld [vmem:[#allocation2 + $0x109] sm:$0xff] }
 0x28e   :  { %7859 = vst.msk [vmem:[#allocation3 + $0xdc] sm:$0xf] %vm19627_vm0, %v11057_v22  ;;  %v3350_v11 = vsel %vm19630_vm6, %v3094_v55, 0.0  ;;  %vm14205_vm7 = vcmp.gt.s32.totalorder %v1324_v27, 0  ;;  %v19633_v23 = vmov 0  ;;  %vm19636_vm3 = vmmov %vm19627_vm0  ;;  %v10539_v22 = vpack.c.bf16 %v2021_v57, %v2021_v57  ;;  %v14234_v1 = vpop.permute.xlu1 %4317  ;;  %v14266_v57 = vld [vmem:[#allocation2 + $0x47] sm:$0xff] }
 0x28f   :  { %19631 = vst [vmem:[#allocation54_spill] sm:$0xff] %v14202_v33  ;;  %2340 = vst.msk [vmem:[#allocation3 + $0x98] sm:$0xf] %vm19632_vm5, %v10537_v20  ;;  %v19634_v23 = vsel %vm14205_vm7, 4294967295, %v19633_v23  ;;  %v14220_v62 = vand.u32 15, %v1389_v60  ;;  %vm14222_vm0 = vcmp.lt.s32.totalorder %v1325_v16, 15  ;;  %v10587_v42 = vpack.c.bf16 %v2582_v12, %v2582_v12  ;;  %v14236_v60 = vpop.permute.xlu0 %4828 }
 0x290   :  { %19635 = vst [vmem:[#allocation55_spill] sm:$0xff] %v19634_v23  ;;  %2341 = vst.msk [vmem:[#allocation3 + $0xa0] sm:$0xf] %vm19636_vm3, %v10538_v50  ;;  %vm19022_vm4 = vcmp.gt.s32.totalorder %v14202_v33, 0  ;;  %v14230_v25 = vsel %vm14222_vm0, %v14147_v7, 0.0  ;;  %vm19030_vm11 = vcmp.lt.s32.totalorder %v14202_v33, 15  ;;  %v10650_v16 = vpack.c.bf16 %v3350_v11, %v3350_v11 }
 0x291   :  { %vm14216_vm2 = vmand %vm19625_vm14, %vm13294_vm1  ;;  %19639 = vst [vmem:[#allocation56_spill] sm:$0xff] %v14220_v62  ;;  %vm19021_vm5 = vcmp.gt.s32.totalorder %v14220_v62, 0  ;;  %v14242_v12 = vsel %vm19022_vm4, %v14003_v35, 0.0  ;;  %v19645_v18 = vmov 0  ;;  %v1390_v20 = vshra.s32 %v14198_v34, 4  ;;  %2843 = vrot.lane.b32.xlu1 %v10587_v42, %s11351_s0 }
 0x292   :  { %19642 = vst [vmem:[#allocation57_spill] sm:$0xff] %v14230_v25  ;;  %vm19643_vm6 = vmmov %vm19636_vm3  ;;  %v3351_v27 = vsel %vm14216_vm2, %v14053_v32, 0.0  ;;  %v4055_v50 = vsel %vm13446_vm12, %v14006_v13, 0.0  ;;  %v1263_v35 = vadd.s32 248, %v19411_v2  ;;  %3610 = vrot.lane.b32.xlu0 %v10650_v16, %s11352_s1  ;;  %vm19648_vm2 = vcmp.lt.s32.totalorder %v13292_v41, 15  ;;  %v14292_v42 = vpop.permute.xlu1 %4830 }
 0x293   :  { %2342 = vst.msk [vmem:[#allocation3 + $0xa8] sm:$0xf] %vm19643_vm6, %v10539_v22  ;;  %19644 = vst [vmem:[#allocation58_spill] sm:$0xff] %v14242_v12  ;;  %v7540_v11 = vsel %vm19030_vm11, %v7284_v6, 0.0  ;;  %v14281_v22 = vld [vmem:[#allocation2 + $0x111] sm:$0xff]  ;;  %vm19652_vm4 = vnez %v19544_v5  ;;  %v10651_v16 = vpack.c.bf16 %v3351_v27, %v3351_v27  ;;  %v10714_v25 = vpack.c.bf16 %v4055_v50, %v4055_v50  ;;  %v1767_v5 = vld [vmem:[#allocation2 + $0xbf] sm:$0xff] }
 0x294   :  { %vm14248_vm3 = vmand %vm19030_vm11, %vm14205_vm7  ;;  %v11058_v48 = vpack.c.bf16 %v7540_v11, %v7540_v11  ;;  %v14300_v6 = vand.u32 15, %v1390_v20  ;;  %v1766_v11 = vld [vmem:[#allocation2 + $0xb7] sm:$0xff]  ;;  %v1391_v27 = vshra.s32 %v1263_v35, 4  ;;  %v1327_v50 = vand.u32 15, %v1263_v35 }
 0x295   :  { %v19646_v18 = vsel %vm14248_vm3, 4294967295, %v19645_v18  ;;  %vm3183_vm14 = vmand %vm19021_vm5, %vm14222_vm0  ;;  %vm19031_vm5 = vcmp.lt.s32.totalorder %v14220_v62, 15  ;;  %vm19653_vm3 = vcmp.gt.s32.totalorder %v13774_v19, 0  ;;  %3612 = vrot.lane.b32.xlu1 %v10651_v16, %s11352_s1  ;;  %v1326_v49 = vand.u32 15, %v14198_v34  ;;  %v11291_v19 = vld [vmem:[#allocation2 + $0x4f] sm:$0xff] }
 0x296   :  { %19647 = vst [vmem:[#allocation59_spill] sm:$0xff] %v19646_v18  ;;  %vm14272_vm6 = vmand %vm19648_vm2, %vm13446_vm12  ;;  %v14277_v13 = vsel %vm3183_vm14, %v14029_v4, 0.0  ;;  %v14294_v4 = vpop.permute.xlu0 %5533  ;;  %v14302_v18 = vld [vmem:[#allocation2 + $0x41] sm:$0xff]  ;;  %4315 = vrot.lane.b32.xlu0 %v10714_v25, %s11354_s3  ;;  %v14318_v52 = vand.u32 15, %v1391_v27  ;;  %v14327_v16 = vpop.permute.xlu1 %4321  ;;  %vm14332_vm2 = vcmp.lt.s32.totalorder %v1327_v50, 15  ;;  %vm19037_vm11 = vcmp.lt.s32.totalorder %v14300_v6, 15 }
 0x297   :  { %19651 = vst [vmem:[#allocation60_spill] sm:$0xff] %v14277_v13  ;;  %vm14288_vm8 = vmand %vm19653_vm3, %vm19652_vm4  ;;  %v5274_v13 = vsel %vm13294_vm1, %v14302_v18, 0.0  ;;  %v6042_v12 = vsel %vm14272_vm6, %v14266_v57, 0.0  ;;  %vm19657_vm3 = vcmask 125952   ;;  %vm19658_vm1 = vcmp.lt.s32.totalorder %v13281_v63, 15  ;;  %v14336_v27 = vld [vmem:[#allocation2 + $0x48] sm:$0xff] }
 0x298   :  { %vm7349_vm12 = vmand %vm19031_vm5, %vm14222_vm0  ;;  %19656 = vst [vmem:[#allocation61_spill] sm:$0xff] %v14300_v6  ;;  %vm19039_vm0 = vcmp.gt.s32.totalorder %v14300_v6, 0  ;;  %v6043_v32 = vsel %vm19658_vm1, %v11291_v19, 0.0  ;;  %v2022_v25 = vsel %vm14288_vm8, %v1766_v11, 0.0  ;;  %v10843_v34 = vpack.c.bf16 %v5274_v13, %v5274_v13  ;;  %v1768_v50 = vld [vmem:[#allocation2 + $0xc7] sm:$0xff] }
 0x299   :  { %7860 = vst.msk [vmem:[#allocation3 + $0xe4] sm:$0xf] %vm19657_vm3, %v11058_v48  ;;  %v7541_v55 = vsel %vm7349_vm12, %v14281_v22, 0.0  ;;  %19659 = vst [vmem:[#allocation62_spill] sm:$0xff] %v14318_v52  ;;  %v14323_v48 = vsel %vm19039_vm0, %v14082_v37, 0.0  ;;  %vm19664_vm6 = vcmp.lt.s32.totalorder %v13292_v41, 15  ;;  %v10540_v15 = vpack.c.bf16 %v2022_v25, %v2022_v25 }
 0x29a   :  { %v11059_v20 = vpack.c.bf16 %v7541_v55, %v7541_v55  ;;  %19660 = vst [vmem:[#allocation63_spill] sm:$0xff] %v14323_v48  ;;  %v14329_v35 = vpop.permute.xlu0 %4832  ;;  %v10906_v55 = vpack.c.bf16 %v6042_v12, %v6042_v12  ;;  %vm19661_vm14 = vmmov %vm19657_vm3  ;;  %v6747_v37 = vsel %vm19664_vm6, %v14336_v27, 0.0  ;;  %vm19038_vm8 = vcmp.gt.s32.totalorder %v14318_v52, 0  ;;  %5535 = vrot.lane.b32.xlu1 %v10843_v34, %s11355_s17 }
 0x29b   :  { %vm19665_vm12 = vcmp.gt.s32.totalorder %v13812_v43, 0  ;;  %vm19666_vm3 = vcmp.gt.s32.totalorder %v13955_v45, 0  ;;  %v10907_v41 = vpack.c.bf16 %v6043_v32, %v6043_v32  ;;  %vm14358_vm6 = vcmp.gt.s32.totalorder %v1326_v49, 0  ;;  %v1769_v45 = vld [vmem:[#allocation2 + $0xcf] sm:$0xff] }
 0x29c   :  { %7861 = vst.msk [vmem:[#allocation3 + $0xec] sm:$0xf] %vm19661_vm14, %v11059_v20  ;;  %v2023_v11 = vsel %vm19665_vm12, %v1767_v5, 0.0  ;;  %vm14348_vm1 = vmand %vm19666_vm3, %vm13976_vm13  ;;  %6302 = vrot.lane.b32.xlu0 %v10906_v55, %s11356_s13  ;;  %v19669_v5 = vmov 0  ;;  %v14362_v20 = vld [vmem:[#allocation2 + $0x119] sm:$0xff]  ;;  %vm19673_vm12 = vcmask 125952   ;;  %v14375_v55 = vpop.permute.xlu1 %4834  ;;  %v10970_v48 = vpack.c.bf16 %v6747_v37, %v6747_v37 }
 0x29d   :  { %vm3185_vm14 = vmand %vm19038_vm8, %vm14332_vm2  ;;  %v19670_v5 = vsel %vm14358_vm6, 4294967295, %v19669_v5  ;;  %v10541_v13 = vpack.c.bf16 %v2023_v11, %v2023_v11  ;;  %2343 = vst.msk [vmem:[#allocation3 + $0xb0] sm:$0xf] %vm19673_vm12, %v10540_v15  ;;  %v1274_v32 = vadd.s32 336, %v19411_v2  ;;  %v1275_v34 = vadd.s32 344, %v19411_v2 }
 0x29e   :  { %19671 = vst [vmem:[#allocation64_spill] sm:$0xff] %v19670_v5  ;;  %v14365_v25 = vsel %vm3185_vm14, %v14147_v7, 0.0  ;;  %v14373_v49 = vsel %vm14332_vm2, %v14281_v22, 0.0  ;;  %19675 = vst [vmem:[#allocation67_spill] sm:$0xff] %v14375_v55  ;;  %v14377_v11 = vpop.permute.xlu0 %5537  ;;  %vm19677_vm3 = vcmp.lt.s32.totalorder %v13281_v63, 15  ;;  %vm19678_vm14 = vcmp.gt.s32.totalorder %v13318_v56, 0  ;;  %6304 = vrot.lane.b32.xlu1 %v10907_v41, %s11356_s13 }
 0x29f   :  { %19672 = vst [vmem:[#allocation65_spill] sm:$0xff] %v14365_v25  ;;  %19674 = vst [vmem:[#allocation66_spill] sm:$0xff] %v14373_v49  ;;  %v6748_v7 = vsel %vm19677_vm3, %v14379_v58, 0.0  ;;  %v2583_v15 = vsel %vm19678_vm14, %v14088_v36, 0.0  ;;  %v1403_v49 = vshra.s32 %v1275_v34, 4  ;;  %v1339_v25 = vand.u32 15, %v1275_v34 }
 0x2a0   :  { %19676 = vst [vmem:[#allocation68_spill] sm:$0xff] %v14377_v11  ;;  %2344 = vst.msk [vmem:[#allocation3 + $0xb8] sm:$0xf] %vm19673_vm12, %v10541_v13  ;;  %v19679_v37 = vmov 0  ;;  %v7542_v63 = vsel %vm19037_vm11, %v14362_v20, 0.0  ;;  %v2024_v36 = vsel %vm14348_vm1, %v1768_v50, 0.0  ;;  %7007 = vrot.lane.b32.xlu0 %v10970_v48, %s11357_s14  ;;  %v14413_v12 = vpop.permute.xlu1 %4325  ;;  %v10971_v41 = vpack.c.bf16 %v6748_v7, %v6748_v7 }
 0x2a1   :  { %vm14393_vm5 = vmand %vm19037_vm11, %vm14358_vm6  ;;  %v11060_v13 = vpack.c.bf16 %v7542_v63, %v7542_v63  ;;  %v10542_v34 = vpack.c.bf16 %v2024_v36, %v2024_v36  ;;  %v1402_v43 = vshra.s32 %v1274_v32, 4  ;;  %v14404_v11 = vand.u32 15, %v1403_v49  ;;  %19686 = vst [vmem:[#allocation72_spill] sm:$0xff] %v14413_v12  ;;  %v14530_v12 = vld [vmem:[#allocation2 + $0x58] sm:$0xff] }
 0x2a2   :  { %v19680_v37 = vsel %vm14393_vm5, 4294967295, %v19679_v37  ;;  %vm14406_vm3 = vcmp.lt.s32.totalorder %v1339_v25, 15  ;;  %v19683_v55 = vmov 0  ;;  %vm19043_vm14 = vcmp.lt.s32.totalorder %v14318_v52, 15  ;;  %v14415_v50 = vpop.permute.xlu0 %4836  ;;  %vm19689_vm11 = vmmov %vm19673_vm12  ;;  %v11294_v25 = vld [vmem:[#allocation2 + $0x39] sm:$0xff]  ;;  %7009 = vrot.lane.b32.xlu1 %v10971_v41, %s11357_s14 }
 0x2a3   :  { %19681 = vst [vmem:[#allocation69_spill] sm:$0xff] %v19680_v37  ;;  %19682 = vst [vmem:[#allocation70_spill] sm:$0xff] %v14404_v11  ;;  %v19684_v55 = vsel %vm14406_vm3, 4294967295, %v19683_v55  ;;  %v14411_v37 = vld [vmem:[#allocation2 + $0x121] sm:$0xff]  ;;  %v10588_v48 = vpack.c.bf16 %v2583_v15, %v2583_v15  ;;  %vm19688_vm1 = vcmp.gt.s32.totalorder %v13311_v51, 0  ;;  %vm19690_vm0 = vcmp.gt.s32.totalorder %v13318_v56, 0 }
 0x2a4   :  { %19685 = vst [vmem:[#allocation71_spill] sm:$0xff] %v19684_v55  ;;  %19687 = vst [vmem:[#allocation73_spill] sm:$0xff] %v14415_v50  ;;  %v2584_v63 = vsel %vm19688_vm1, %v14128_v3, 0.0  ;;  %v3352_v49 = vsel %vm19690_vm0, %v11294_v25, 0.0  ;;  %vm19691_vm5 = vnez %v19427_v31  ;;  %v1338_v3 = vand.u32 15, %v1274_v32  ;;  %v11296_v55 = vld [vmem:[#allocation2 + $0x5f] sm:$0xff] }
 0x2a5   :  { %7862 = vst.msk [vmem:[#allocation3 + $0xf4] sm:$0xf] %vm19673_vm12, %v11060_v13  ;;  %vm7351_vm8 = vmand %vm19043_vm14, %vm14332_vm2  ;;  %vm19693_vm12 = vcmp.gt.s32.totalorder %v13957_v24, 0  ;;  %2845 = vrot.lane.b32.xlu0 %v10588_v48, %s11351_s0  ;;  %v19694_v19 = vmov 0  ;;  %v14446_v36 = vand.u32 15, %v1402_v43  ;;  %v14448_v13 = vpop.permute.xlu1 %4838  ;;  %v10652_v41 = vpack.c.bf16 %v3352_v49, %v3352_v49  ;;  %v1770_v24 = vld [vmem:[#allocation2 + $0xd7] sm:$0xff] }
 0x2a6   :  { %2345 = vst.msk [vmem:[#allocation3 + $0xc0] sm:$0xf] %vm19689_vm11, %v10542_v34  ;;  %vm19692_vm13 = vmmov %vm19688_vm1  ;;  %vm19053_vm1 = vcmp.gt.s32.totalorder %v14404_v11, 0  ;;  %v2025_v7 = vsel %vm19693_vm12, %v1769_v45, 0.0  ;;  %v7543_v15 = vsel %vm7351_vm8, %v14411_v37, 0.0  ;;  %v14450_v45 = vpop.permute.xlu0 %5541  ;;  %v10589_v34 = vpack.c.bf16 %v2584_v63, %v2584_v63  ;;  %v14479_v49 = vld [vmem:[#allocation2 + $0x179] sm:$0xff] }
 0x2a7   :  { %vm3161_vm4 = vmand %vm19692_vm13, %vm19691_vm5  ;;  %19697 = vst [vmem:[#allocation75_spill] sm:$0xff] %v14446_v36  ;;  %v11061_v32 = vpack.c.bf16 %v7543_v15, %v7543_v15  ;;  %v10543_v25 = vpack.c.bf16 %v2025_v7, %v2025_v7  ;;  %vm19700_vm13 = vcmp.gt.s32.totalorder %v14031_v59, 0  ;;  %vm19701_vm2 = vnez %v19460_v28 }
 0x2a8   :  { %vm14441_vm11 = vmand %vm19053_vm1, %vm14406_vm3  ;;  %19698 = vst [vmem:[#allocation76_spill] sm:$0xff] %v14448_v13  ;;  %v3353_v48 = vsel %vm3161_vm4, %v14302_v18, 0.0  ;;  %v4057_v43 = vsel %vm19701_vm2, %v14266_v57, 0.0  ;;  %vm19702_vm8 = vcmask 125952   ;;  %vm14461_vm12 = vcmp.gt.s32.totalorder %v1338_v3, 0  ;;  %2847 = vrot.lane.b32.xlu1 %v10589_v34, %s11351_s0  ;;  %v14467_v18 = vld [vmem:[#allocation2 + $0x57] sm:$0xff] }
 0x2a9   :  { %v19695_v19 = vsel %vm14441_vm11, 4294967295, %v19694_v19  ;;  %19699 = vst [vmem:[#allocation77_spill] sm:$0xff] %v14450_v45  ;;  %vm1834_vm0 = vmand %vm19700_vm13, %vm14138_vm10  ;;  %v19703_v15 = vmov 0  ;;  %3614 = vrot.lane.b32.xlu0 %v10652_v41, %s11352_s1  ;;  %vm19706_vm4 = vcmp.lt.s32.totalorder %v13318_v56, 15  ;;  %v1265_v57 = vadd.s32 264, %v19411_v2  ;;  %v14483_v34 = vpop.permute.xlu1 %4329  ;;  %v1771_v13 = vld [vmem:[#allocation2 + $0xdf] sm:$0xff] }
 0x2aa   :  { %19696 = vst [vmem:[#allocation74_spill] sm:$0xff] %v19695_v19  ;;  %7863 = vst.msk [vmem:[#allocation3 + $0xfc] sm:$0xf] %vm19702_vm8, %v11061_v32  ;;  %v19704_v15 = vsel %vm14461_vm12, 4294967295, %v19703_v15  ;;  %v10653_v3 = vpack.c.bf16 %v3353_v48, %v3353_v48  ;;  %v1264_v7 = vadd.s32 256, %v19411_v2  ;;  %v2026_v32 = vsel %vm1834_vm0, %v1770_v24, 0.0  ;;  %v14485_v28 = vpop.permute.xlu0 %4840 }
 0x2ab   :  { %19705 = vst [vmem:[#allocation78_spill] sm:$0xff] %v19704_v15  ;;  %vm14473_vm13 = vmand %vm19706_vm4, %vm19701_vm2  ;;  %v10716_v41 = vpack.c.bf16 %v4057_v43, %v4057_v43  ;;  %v14487_v19 = vld [vmem:[#allocation2 + $0x51] sm:$0xff]  ;;  %v1393_v21 = vshra.s32 %v1265_v57, 4  ;;  %v1329_v59 = vand.u32 15, %v1265_v57  ;;  %v19712_v48 = vmov 0  ;;  %v14500_v24 = vld [vmem:[#allocation2 + $0x181] sm:$0xff] }
 0x2ac   :  { %vm19709_vm14 = vmmov %vm19702_vm8  ;;  %vm19050_vm8 = vcmp.lt.s32.totalorder %v14446_v36, 15  ;;  %19710 = vst [vmem:[#allocation79_spill] sm:$0xff] %v14483_v34  ;;  %v6044_v43 = vsel %vm14473_vm13, %v14467_v18, 0.0  ;;  %3616 = vrot.lane.b32.xlu1 %v10653_v3, %s11352_s1  ;;  %v1392_v63 = vshra.s32 %v1264_v7, 4  ;;  %vm19718_vm4 = vcmask 125952  }
 0x2ad   :  { %2346 = vst.msk [vmem:[#allocation3 + $0xc8] sm:$0xf] %vm19709_vm14, %v10543_v25  ;;  %19711 = vst [vmem:[#allocation80_spill] sm:$0xff] %v14485_v28  ;;  %v5276_v25 = vsel %vm19691_vm5, %v14487_v19, 0.0  ;;  %v7554_v31 = vsel %vm19050_vm8, %v14479_v49, 0.0  ;;  %v10544_v28 = vpack.c.bf16 %v2026_v32, %v2026_v32  ;;  %vm19051_vm5 = vcmp.lt.s32.totalorder %v14404_v11, 15  ;;  %4319 = vrot.lane.b32.xlu0 %v10716_v41, %s11354_s3  ;;  %v14523_v3 = vpop.permute.xlu1 %4842 }
 0x2ae   :  { %vm14496_vm14 = vmand %vm19050_vm8, %vm14461_vm12  ;;  %v14511_v57 = vand.u32 15, %v1393_v21  ;;  %vm14513_vm0 = vcmp.lt.s32.totalorder %v1329_v59, 15  ;;  %v11072_v34 = vpack.c.bf16 %v7554_v31, %v7554_v31  ;;  %19719 = vst [vmem:[#allocation83_spill] sm:$0xff] %v14523_v3  ;;  %v14525_v41 = vpop.permute.xlu0 %5545  ;;  %v10845_v21 = vpack.c.bf16 %v5276_v25, %v5276_v25  ;;  %v11306_v3 = vld [vmem:[#allocation2 + $0x7f] sm:$0xff] }
 0x2af   :  { %v19713_v48 = vsel %vm14496_vm14, 4294967295, %v19712_v48  ;;  %vm7363_vm2 = vmand %vm19051_vm5, %vm14406_vm3  ;;  %2347 = vst.msk [vmem:[#allocation3 + $0xd0] sm:$0xf] %vm19718_vm4, %v10544_v28  ;;  %v10908_v59 = vpack.c.bf16 %v6044_v43, %v6044_v43  ;;  %vm19721_vm8 = vcmp.lt.s32.totalorder %v13311_v51, 15  ;;  %vm19722_vm4 = vcmp.lt.s32.totalorder %v13318_v56, 15  ;;  %v14542_v43 = vld [vmem:[#allocation2 + $0x60] sm:$0xff] }
 0x2b0   :  { %19714 = vst [vmem:[#allocation81_spill] sm:$0xff] %v19713_v48  ;;  %19715 = vst [vmem:[#allocation82_spill] sm:$0xff] %v14511_v57  ;;  %v7555_v32 = vsel %vm7363_vm2, %v14500_v24, 0.0  ;;  %vm19052_vm13 = vcmp.gt.s32.totalorder %v14511_v57, 0  ;;  %v6045_v50 = vsel %vm19721_vm8, %v11296_v55, 0.0  ;;  %v6749_v28 = vsel %vm19722_vm4, %v14530_v12, 0.0  ;;  %5539 = vrot.lane.b32.xlu1 %v10845_v21, %s11355_s17 }
 0x2b1   :  { %19720 = vst [vmem:[#allocation84_spill] sm:$0xff] %v14525_v41  ;;  %v11073_v45 = vpack.c.bf16 %v7555_v32, %v7555_v32  ;;  %vm3187_vm2 = vmand %vm19052_vm13, %vm14513_vm0  ;;  %vm19723_vm5 = vcmask 125952   ;;  %v1328_v25 = vand.u32 15, %v1264_v7  ;;  %6306 = vrot.lane.b32.xlu0 %v10908_v59, %s11356_s13  ;;  %v6750_v55 = vsel %vm19721_vm8, %v14542_v43, 0.0  ;;  %v14558_v32 = vpop.permute.xlu1 %4333 }
 0x2b2   :  { %7874 = vst.msk [vmem:[#allocation3 + $0x154] sm:$0xf] %vm19723_vm5, %v11072_v34  ;;  %v14548_v56 = vsel %vm3187_vm2, %v14281_v22, 0.0  ;;  %vm19725_vm4 = vmmov %vm19723_vm5  ;;  %vm19726_vm13 = vcmp.gt.s32.totalorder %v13345_v0, 0  ;;  %v14554_v7 = vand.u32 15, %v1392_v63  ;;  %vm19728_vm5 = vcmp.gt.s32.totalorder %v14065_v54, 0  ;;  %v14560_v21 = vpop.permute.xlu0 %4844 }
 0x2b3   :  { %19724 = vst [vmem:[#allocation85_spill] sm:$0xff] %v14548_v56  ;;  %7875 = vst.msk [vmem:[#allocation3 + $0x15c] sm:$0xf] %vm19725_vm4, %v11073_v45  ;;  %v2585_v34 = vsel %vm19726_vm13, %v14336_v27, 0.0  ;;  %v2027_v31 = vsel %vm19728_vm5, %v1771_v13, 0.0  ;;  %v10909_v51 = vpack.c.bf16 %v6045_v50, %v6045_v50  ;;  %v10972_v59 = vpack.c.bf16 %v6749_v28, %v6749_v28  ;;  %v1772_v22 = vld [vmem:[#allocation2 + $0xe7] sm:$0xff] }
 0x2b4   :  { %19727 = vst [vmem:[#allocation86_spill] sm:$0xff] %v14554_v7  ;;  %19729 = vst [vmem:[#allocation87_spill] sm:$0xff] %v14558_v32  ;;  %v10545_v41 = vpack.c.bf16 %v2027_v31, %v2027_v31  ;;  %vm19731_vm2 = vcmp.gt.s32.totalorder %v14202_v33, 0  ;;  %v10973_v45 = vpack.c.bf16 %v6750_v55, %v6750_v55  ;;  %vm14566_vm13 = vcmp.gt.s32.totalorder %v1328_v25, 0  ;;  %v14570_v63 = vld [vmem:[#allocation2 + $0x129] sm:$0xff] }
 0x2b5   :  { %19730 = vst [vmem:[#allocation88_spill] sm:$0xff] %v14560_v21  ;;  %vm1836_vm8 = vmand %vm19731_vm2, %vm14205_vm7  ;;  %v19732_v27 = vmov 0  ;;  %6308 = vrot.lane.b32.xlu1 %v10909_v51, %s11356_s13  ;;  %7011 = vrot.lane.b32.xlu0 %v10972_v59, %s11357_s14  ;;  %v10590_v50 = vpack.c.bf16 %v2585_v34, %v2585_v34  ;;  %v1276_v13 = vadd.s32 352, %v19411_v2  ;;  %v1277_v28 = vadd.s32 360, %v19411_v2  ;;  %v14587_v34 = vpop.permute.xlu1 %4846  ;;  %v11299_v51 = vld [vmem:[#allocation2 + $0x49] sm:$0xff] }
 0x2b6   :  { %v19733_v27 = vsel %vm14566_vm13, 4294967295, %v19732_v27  ;;  %2348 = vst.msk [vmem:[#allocation3 + $0xd8] sm:$0xf] %vm19725_vm4, %v10545_v41  ;;  %v14580_v25 = vsel %vm14513_vm0, %v14411_v37, 0.0  ;;  %vm19736_vm5 = vcmp.gt.s32.totalorder %v13336_v40, 0  ;;  %vm19059_vm2 = vcmp.lt.s32.totalorder %v14554_v7, 15  ;;  %v14589_v41 = vpop.permute.xlu0 %5549 }
 0x2b7   :  { %19734 = vst [vmem:[#allocation89_spill] sm:$0xff] %v19733_v27  ;;  %19735 = vst [vmem:[#allocation90_spill] sm:$0xff] %v14580_v25  ;;  %v2586_v55 = vsel %vm19736_vm5, %v14379_v58, 0.0  ;;  %v2028_v31 = vsel %vm1836_vm8, %v1772_v22, 0.0  ;;  %vm19061_vm1 = vcmp.lt.s32.totalorder %v14511_v57, 15  ;;  %vm19739_vm4 = vcmp.gt.s32.totalorder %v13345_v0, 0 }
 0x2b8   :  { %19737 = vst [vmem:[#allocation91_spill] sm:$0xff] %v14587_v34  ;;  %19738 = vst [vmem:[#allocation92_spill] sm:$0xff] %v14589_v41  ;;  %v3354_v59 = vsel %vm19739_vm4, %v11299_v51, 0.0  ;;  %v1405_v56 = vshra.s32 %v1277_v28, 4  ;;  %v1341_v23 = vand.u32 15, %v1277_v28  ;;  %v19740_v58 = vmov 0 }
 0x2b9   :  { %vm14597_vm5 = vmand %vm19059_vm2, %vm14566_vm13  ;;  %v7544_v22 = vsel %vm19059_vm2, %v14570_v63, 0.0  ;;  %v14604_v25 = vld [vmem:[#allocation2 + $0x131] sm:$0xff]  ;;  %v10546_v41 = vpack.c.bf16 %v2028_v31, %v2028_v31  ;;  %7013 = vrot.lane.b32.xlu1 %v10973_v45, %s11357_s14  ;;  %2849 = vrot.lane.b32.xlu0 %v10590_v50, %s11351_s0  ;;  %vm19743_vm4 = vnez %v19429_v61  ;;  %v1404_v51 = vshra.s32 %v1276_v13, 4  ;;  %v14631_v34 = vpop.permute.xlu1 %4337 }
 0x2ba   :  { %v19741_v58 = vsel %vm14597_vm5, 4294967295, %v19740_v58  ;;  %v1773_v33 = vld [vmem:[#allocation2 + $0xef] sm:$0xff]  ;;  %v11062_v54 = vpack.c.bf16 %v7544_v22, %v7544_v22  ;;  %vm7353_vm8 = vmand %vm19061_vm1, %vm14513_vm0  ;;  %vm19744_vm5 = vcmp.gt.s32.totalorder %v13336_v40, 0  ;;  %v14620_v22 = vand.u32 15, %v1405_v56  ;;  %19753 = vst [vmem:[#allocation95_spill] sm:$0xff] %v14631_v34  ;;  %v14633_v21 = vpop.permute.xlu0 %4848  ;;  %v6582_v34 = vld [vmem:[#allocation2 + $0x120] sm:$0xff] }
 0x2bb   :  { %19742 = vst [vmem:[#allocation93_spill] sm:$0xff] %v19741_v58  ;;  %vm14616_vm14 = vmand %vm19744_vm5, %vm19743_vm4  ;;  %vm14622_vm2 = vcmp.lt.s32.totalorder %v1341_v23, 15  ;;  %v10591_v31 = vpack.c.bf16 %v2586_v55, %v2586_v55  ;;  %v10654_v58 = vpack.c.bf16 %v3354_v59, %v3354_v59  ;;  %vm19750_vm0 = vcmask 125952   ;;  %v14650_v59 = vld [vmem:[#allocation2 + $0x67] sm:$0xff] }
 0x2bc   :  { %19747 = vst [vmem:[#allocation94_spill] sm:$0xff] %v14620_v22  ;;  %7864 = vst.msk [vmem:[#allocation3 + $0x104] sm:$0xf] %vm19750_vm0, %v11062_v54  ;;  %v7545_v45 = vsel %vm7353_vm8, %v14604_v25, 0.0  ;;  %vm19752_vm5 = vcmp.gt.s32.totalorder %v14220_v62, 0  ;;  %vm19755_vm3 = vnez %v19474_v26  ;;  %vm19756_vm11 = vcmp.lt.s32.totalorder %v13345_v0, 15 }
 0x2bd   :  { %vm19751_vm1 = vmmov %vm19750_vm0  ;;  %v2029_v50 = vsel %vm19752_vm5, %v1773_v33, 0.0  ;;  %19754 = vst [vmem:[#allocation96_spill] sm:$0xff] %v14633_v21  ;;  %vm19072_vm0 = vcmp.gt.s32.totalorder %v14620_v22, 0  ;;  %v11063_v54 = vpack.c.bf16 %v7545_v45, %v7545_v45  ;;  %v1340_v56 = vand.u32 15, %v1276_v13  ;;  %2851 = vrot.lane.b32.xlu1 %v10591_v31, %s11351_s0  ;;  %3618 = vrot.lane.b32.xlu0 %v10654_v58, %s11352_s1  ;;  %v14662_v13 = vld [vmem:[#allocation2 + $0x61] sm:$0xff]  ;;  %v14679_v58 = vpop.permute.xlu1 %4850  ;;  %v6581_v21 = vld [vmem:[#allocation2 + $0x118] sm:$0xff] }
 0x2be   :  { %2349 = vst.msk [vmem:[#allocation3 + $0xe0] sm:$0xf] %vm19751_vm1, %v10546_v41  ;;  %vm14639_vm7 = vmand %vm19756_vm11, %vm19755_vm3  ;;  %v10547_v55 = vpack.c.bf16 %v2029_v50, %v2029_v50  ;;  %v3355_v33 = vsel %vm14616_vm14, %v14487_v19, 0.0  ;;  %v4059_v41 = vsel %vm19755_vm3, %v14467_v18, 0.0  ;;  %v19759_v62 = vmov 0  ;;  %v1774_v18 = vld [vmem:[#allocation2 + $0xf7] sm:$0xff]  ;;  %v14681_v31 = vpop.permute.xlu0 %5553 }
 0x2bf   :  { %vm14656_vm1 = vmand %vm19072_vm0, %vm14622_vm2  ;;  %v5278_v26 = vsel %vm19743_vm4, %v14662_v13, 0.0  ;;  %v14667_v19 = vand.u32 15, %v1404_v51  ;;  %vm19763_vm3 = vcmask 125952   ;;  %vm19765_vm14 = vcmp.gt.s32.totalorder %v14300_v6, 0  ;;  %19768 = vst [vmem:[#allocation99_spill] sm:$0xff] %v14679_v58  ;;  %v11302_v23 = vld [vmem:[#allocation2 + $0x68] sm:$0xff] }
 0x2c0   :  { %v19760_v62 = vsel %vm14656_vm1, 4294967295, %v19759_v62  ;;  %7865 = vst.msk [vmem:[#allocation3 + $0x10c] sm:$0xf] %vm19763_vm3, %v11063_v54  ;;  %vm19764_vm11 = vmmov %vm19763_vm3  ;;  %v10655_v61 = vpack.c.bf16 %v3355_v33, %v3355_v33  ;;  %v10718_v51 = vpack.c.bf16 %v4059_v41, %v4059_v41  ;;  %v6046_v45 = vsel %vm14639_vm7, %v14650_v59, 0.0  ;;  %v14696_v33 = vld [vmem:[#allocation2 + $0x189] sm:$0xff] }
 0x2c1   :  { %19761 = vst [vmem:[#allocation97_spill] sm:$0xff] %v19760_v62  ;;  %19762 = vst [vmem:[#allocation98_spill] sm:$0xff] %v14667_v19  ;;  %vm14686_vm4 = vcmp.gt.s32.totalorder %v1340_v56, 0  ;;  %v19770_v50 = vmov 0  ;;  %v10847_v54 = vpack.c.bf16 %v5278_v26, %v5278_v26  ;;  %vm19773_vm5 = vcmp.lt.s32.totalorder %v13336_v40, 15 }
 0x2c2   :  { %2350 = vst.msk [vmem:[#allocation3 + $0xe8] sm:$0xf] %vm19764_vm11, %v10547_v55  ;;  %vm14675_vm8 = vmand %vm19765_vm14, %vm14358_vm6  ;;  %v19771_v50 = vsel %vm14686_vm4, 4294967295, %v19770_v50  ;;  %v11301_v55 = vld [vmem:[#allocation2 + $0x6f] sm:$0xff]  ;;  %v14693_v5 = vadd.s32 272, %v19411_v2  ;;  %v1267_v6 = vadd.s32 280, %v19411_v2  ;;  %3620 = vrot.lane.b32.xlu1 %v10655_v61, %s11352_s1  ;;  %4323 = vrot.lane.b32.xlu0 %v10718_v51, %s11354_s3 }
 0x2c3   :  { %19769 = vst [vmem:[#allocation100_spill] sm:$0xff] %v14681_v31  ;;  %19772 = vst [vmem:[#allocation101_spill] sm:$0xff] %v19771_v50  ;;  %v6047_v62 = vsel %vm19773_vm5, %v11301_v55, 0.0  ;;  %vm19774_vm7 = vcmp.lt.s32.totalorder %v13345_v0, 15  ;;  %v14705_v41 = vsel %vm14622_vm2, %v14500_v24, 0.0  ;;  %vm19071_vm3 = vcmp.lt.s32.totalorder %v14667_v19, 15 }
 0x2c4   :  { %v6751_v56 = vsel %vm19774_vm7, %v11302_v23, 0.0  ;;  %19775 = vst [vmem:[#allocation102_spill] sm:$0xff] %v14705_v41  ;;  %v2030_v26 = vsel %vm14675_vm8, %v1774_v18, 0.0  ;;  %v10910_v55 = vpack.c.bf16 %v6046_v45, %v6046_v45  ;;  %v1394_v31 = vshra.s32 %v14693_v5, 4  ;;  %vm14715_vm11 = vmand %vm19071_vm3, %vm14686_vm4  ;;  %v14719_v51 = vld [vmem:[#allocation2 + $0x191] sm:$0xff]  ;;  %v14721_v23 = vpop.permute.xlu1 %4341  ;;  %v14723_v41 = vpop.permute.xlu0 %4852 }
 0x2c5   :  { %v1395_v61 = vshra.s32 %v1267_v6, 4  ;;  %v1331_v58 = vand.u32 15, %v1267_v6  ;;  %v19776_v0 = vmov 0  ;;  %v10911_v18 = vpack.c.bf16 %v6047_v62, %v6047_v62  ;;  %v11303_v62 = vld [vmem:[#allocation2 + $0x70] sm:$0xff] }
 0x2c6   :  { %v19777_v0 = vsel %vm14715_vm11, 4294967295, %v19776_v0  ;;  %v7556_v28 = vsel %vm19071_vm3, %v14696_v33, 0.0  ;;  %v10548_v6 = vpack.c.bf16 %v2030_v26, %v2030_v26  ;;  %vm19073_vm14 = vcmp.lt.s32.totalorder %v14620_v22, 15  ;;  %5543 = vrot.lane.b32.xlu1 %v10847_v54, %s11355_s17  ;;  %6310 = vrot.lane.b32.xlu0 %v10910_v55, %s11356_s13  ;;  %v1775_v26 = vld [vmem:[#allocation2 + $0xff] sm:$0xff] }
 0x2c7   :  { %19778 = vst [vmem:[#allocation103_spill] sm:$0xff] %v19777_v0  ;;  %v10974_v45 = vpack.c.bf16 %v6751_v56, %v6751_v56  ;;  %v14729_v32 = vand.u32 15, %v1394_v31  ;;  %v14731_v0 = vand.u32 15, %v1395_v61  ;;  %vm14733_vm8 = vcmp.lt.s32.totalorder %v1331_v58, 15  ;;  %vm7365_vm5 = vmand %vm19073_vm14, %vm14622_vm2 }
 0x2c8   :  { %vm19783_vm7 = vcmp.lt.s32.totalorder %v13336_v40, 15  ;;  %vm19784_vm3 = vcmp.gt.s32.totalorder %v13371_v38, 0  ;;  %v11074_v56 = vpack.c.bf16 %v7556_v28, %v7556_v28  ;;  %vm19785_vm0 = vcmask 125952   ;;  %v14753_v55 = vpop.permute.xlu1 %4854  ;;  %v14755_v40 = vpop.permute.xlu0 %5557 }
 0x2c9   :  { %19779 = vst [vmem:[#allocation104_spill] sm:$0xff] %v14729_v32  ;;  %19780 = vst [vmem:[#allocation105_spill] sm:$0xff] %v14731_v0  ;;  %v6752_v31 = vsel %vm19783_vm7, %v11303_v62, 0.0  ;;  %v2587_v58 = vsel %vm19784_vm3, %v14530_v12, 0.0  ;;  %v7557_v48 = vsel %vm7365_vm5, %v14719_v51, 0.0  ;;  %vm19074_vm2 = vcmp.gt.s32.totalorder %v14729_v32, 0 }
 0x2ca   :  { %2351 = vst.msk [vmem:[#allocation3 + $0xf0] sm:$0xf] %vm19785_vm0, %v10548_v6  ;;  %vm19084_vm14 = vcmp.gt.s32.totalorder %v14731_v0, 0  ;;  %v11075_v54 = vpack.c.bf16 %v7557_v48, %v7557_v48  ;;  %v14759_v12 = vsel %vm19074_vm2, %v6581_v21, 0.0  ;;  %v14768_v28 = vsel %vm19074_vm2, %v14362_v20, 0.0  ;;  %6312 = vrot.lane.b32.xlu1 %v10911_v18, %s11356_s13  ;;  %7015 = vrot.lane.b32.xlu0 %v10974_v45, %s11357_s14  ;;  %v14844_v20 = vld [vmem:[#allocation2 + $0x77] sm:$0xff] }
 0x2cb   :  { %19786 = vst [vmem:[#allocation106_spill] sm:$0xff] %v14759_v12  ;;  %v14763_v61 = vsel %vm19084_vm14, %v6582_v34, 0.0  ;;  %19788 = vst [vmem:[#allocation108_spill] sm:$0xff] %v14768_v28  ;;  %vm19789_vm3 = vcmask 125952   ;;  %v1330_v6 = vand.u32 15, %v14693_v5  ;;  %vm19790_vm5 = vcmp.gt.s32.totalorder %v13358_v44, 0 }
 0x2cc   :  { %19787 = vst [vmem:[#allocation107_spill] sm:$0xff] %v14763_v61  ;;  %vm3189_vm0 = vmand %vm19084_vm14, %vm14733_vm8  ;;  %v2588_v21 = vsel %vm19790_vm5, %v14542_v43, 0.0  ;;  %v11304_v34 = vld [vmem:[#allocation2 + $0x59] sm:$0xff]  ;;  %vm19791_vm7 = vcmp.gt.s32.totalorder %v13371_v38, 0  ;;  %vm19792_vm2 = vnez %v19431_v53  ;;  %v10975_v48 = vpack.c.bf16 %v6752_v31, %v6752_v31 }
 0x2cd   :  { %7876 = vst.msk [vmem:[#allocation3 + $0x164] sm:$0xf] %vm19789_vm3, %v11074_v56  ;;  %v3356_v62 = vsel %vm19791_vm7, %v11304_v34, 0.0  ;;  %vm19793_vm11 = vmmov %vm19790_vm5  ;;  %v14790_v56 = vsel %vm3189_vm0, %v14411_v37, 0.0  ;;  %vm19797_vm5 = vcmp.gt.s32.totalorder %v14318_v52, 0  ;;  %v1786_v43 = vld [vmem:[#allocation2 + $0x157] sm:$0xff]  ;;  %v10592_v34 = vpack.c.bf16 %v2587_v58, %v2587_v58 }
 0x2ce   :  { %vm14785_vm1 = vmand %vm19793_vm11, %vm19792_vm2  ;;  %19796 = vst [vmem:[#allocation109_spill] sm:$0xff] %v14790_v56  ;;  %v2031_v5 = vsel %vm19797_vm5, %v1775_v26, 0.0  ;;  %vm19798_vm11 = vcmp.gt.s32.totalorder %v14446_v36, 0  ;;  %v1787_v37 = vld [vmem:[#allocation2 + $0x15f] sm:$0xff]  ;;  %v14801_v56 = vpop.permute.xlu1 %4345  ;;  %v10593_v18 = vpack.c.bf16 %v2588_v21, %v2588_v21  ;;  %v10656_v61 = vpack.c.bf16 %v3356_v62, %v3356_v62  ;;  %7017 = vrot.lane.b32.xlu1 %v10975_v48, %s11357_s14 }
 0x2cf   :  { %7877 = vst.msk [vmem:[#allocation3 + $0x16c] sm:$0xf] %vm19789_vm3, %v11075_v54  ;;  %vm1850_vm7 = vmand %vm19798_vm11, %vm14461_vm12  ;;  %v10549_v28 = vpack.c.bf16 %v2031_v5, %v2031_v5  ;;  %v14803_v54 = vpop.permute.xlu0 %4856  ;;  %v14808_v45 = vsel %vm14785_vm1, %v14662_v13, 0.0  ;;  %vm14810_vm0 = vcmp.gt.s32.totalorder %v1330_v6, 0  ;;  %v19799_v26 = vmov 0  ;;  %v14822_v5 = vld [vmem:[#allocation2 + $0x139] sm:$0xff]  ;;  %2853 = vrot.lane.b32.xlu0 %v10592_v34, %s11351_s0 }
 0x2d0   :  { %v19800_v26 = vsel %vm14810_vm0, 4294967295, %v19799_v26  ;;  %vm19802_vm3 = vnez %v19489_v46  ;;  %vm19803_vm5 = vcmask 125952   ;;  %v14819_v58 = vadd.s32 368, %v19411_v2  ;;  %v6593_v36 = vld [vmem:[#allocation2 + $0x178] sm:$0xff]  ;;  %v6594_v52 = vld [vmem:[#allocation2 + $0x180] sm:$0xff] }
 0x2d1   :  { %19801 = vst [vmem:[#allocation110_spill] sm:$0xff] %v19800_v26  ;;  %v4061_v31 = vsel %vm19802_vm3, %v14650_v59, 0.0  ;;  %2352 = vst.msk [vmem:[#allocation3 + $0xf8] sm:$0xf] %vm19803_vm5, %v10549_v28  ;;  %v2042_v21 = vsel %vm1850_vm7, %v1786_v43, 0.0  ;;  %v1279_v62 = vadd.s32 376, %v19411_v2  ;;  %v10657_v46 = vpack.c.bf16 %v14808_v45, %v14808_v45 }
 0x2d2   :  { %vm19804_vm1 = vcmp.lt.s32.totalorder %v13371_v38, 15  ;;  %v10560_v13 = vpack.c.bf16 %v2042_v21, %v2042_v21  ;;  %vm19807_vm5 = vcmp.gt.s32.totalorder %v14404_v11, 0  ;;  %v14839_v6 = vsel %vm14733_vm8, %v14604_v25, 0.0  ;;  %v14855_v21 = vld [vmem:[#allocation2 + $0x141] sm:$0xff]  ;;  %v14866_v11 = vld [vmem:[#allocation2 + $0x71] sm:$0xff]  ;;  %2855 = vrot.lane.b32.xlu1 %v10593_v18, %s11351_s0 }
 0x2d3   :  { %vm14830_vm11 = vmand %vm19804_vm1, %vm19802_vm3  ;;  %v2043_v28 = vsel %vm19807_vm5, %v1787_v37, 0.0  ;;  %19808 = vst [vmem:[#allocation111_spill] sm:$0xff] %v14839_v6  ;;  %vm19083_vm7 = vcmp.lt.s32.totalorder %v14729_v32, 15  ;;  %v1406_v43 = vshra.s32 %v14819_v58, 4  ;;  %v1407_v48 = vshra.s32 %v1279_v62, 4  ;;  %v14857_v6 = vpop.permute.xlu1 %4858  ;;  %v14859_v12 = vpop.permute.xlu0 %5561  ;;  %3622 = vrot.lane.b32.xlu0 %v10656_v61, %s11352_s1 }
 0x2d4   :  { %v10561_v34 = vpack.c.bf16 %v2043_v28, %v2043_v28  ;;  %vm14851_vm3 = vmand %vm19083_vm7, %vm14810_vm0  ;;  %v19809_v37 = vmov 0  ;;  %19812 = vst [vmem:[#allocation113_spill] sm:$0xff] %v14857_v6  ;;  %v10720_v45 = vpack.c.bf16 %v4061_v31, %v4061_v31  ;;  %vm19814_vm1 = vcmask 125952  }
 0x2d5   :  { %v19810_v37 = vsel %vm14851_vm3, 4294967295, %v19809_v37  ;;  %19813 = vst [vmem:[#allocation114_spill] sm:$0xff] %v14859_v12  ;;  %2363 = vst.msk [vmem:[#allocation3 + $0x150] sm:$0xf] %vm19814_vm1, %v10560_v13  ;;  %v1343_v15 = vand.u32 15, %v1279_v62  ;;  %v7546_v28 = vsel %vm19083_vm7, %v14822_v5, 0.0 }
 0x2d6   :  { %19811 = vst [vmem:[#allocation112_spill] sm:$0xff] %v19810_v37  ;;  %vm19085_vm5 = vcmp.lt.s32.totalorder %v14731_v0, 15  ;;  %v5280_v37 = vsel %vm19792_vm2, %v14866_v11, 0.0  ;;  %v14871_v6 = vand.u32 15, %v1406_v43  ;;  %v14873_v31 = vand.u32 15, %v1407_v48  ;;  %3624 = vrot.lane.b32.xlu1 %v10657_v46, %s11352_s1 }
 0x2d7   :  { %2364 = vst.msk [vmem:[#allocation3 + $0x158] sm:$0xf] %vm19814_vm1, %v10561_v34  ;;  %v11064_v62 = vpack.c.bf16 %v7546_v28, %v7546_v28  ;;  %vm7355_vm7 = vmand %vm19085_vm5, %vm14733_vm8  ;;  %v6048_v53 = vsel %vm14830_vm11, %v14844_v20, 0.0  ;;  %vm19089_vm2 = vcmp.gt.s32.totalorder %v14554_v7, 0  ;;  %vm14886_vm14 = vcmp.lt.s32.totalorder %v1343_v15, 15  ;;  %v14898_v18 = vpop.permute.xlu1 %4349  ;;  %v14900_v15 = vpop.permute.xlu0 %4860  ;;  %4327 = vrot.lane.b32.xlu0 %v10720_v45, %s11354_s3  ;;  %v3102_v7 = vld [vmem:[#allocation2 + $0x69] sm:$0xff] }
 0x2d8   :  { %v7547_v43 = vsel %vm7355_vm7, %v14855_v21, 0.0  ;;  %vm19817_vm1 = vcmp.lt.s32.totalorder %v13358_v44, 15  ;;  %vm19094_vm8 = vcmp.gt.s32.totalorder %v14871_v6, 0  ;;  %vm19090_vm5 = vcmp.gt.s32.totalorder %v14873_v31, 0  ;;  %19819 = vst [vmem:[#allocation115_spill] sm:$0xff] %v14898_v18  ;;  %19820 = vst [vmem:[#allocation116_spill] sm:$0xff] %v14900_v15 }
 0x2d9   :  { %v14893_v48 = vsel %vm19817_vm1, %v11306_v3, 0.0  ;;  %vm19818_vm3 = vcmask 125952   ;;  %v11065_v61 = vpack.c.bf16 %v7547_v43, %v7547_v43  ;;  %v14904_v59 = vsel %vm19094_vm8, %v6593_v36, 0.0  ;;  %vm3201_vm11 = vmand %vm19090_vm5, %vm14886_vm14  ;;  %v11307_v43 = vld [vmem:[#allocation2 + $0x78] sm:$0xff] }
 0x2da   :  { %7866 = vst.msk [vmem:[#allocation3 + $0x114] sm:$0xf] %vm19818_vm3, %v11064_v62  ;;  %19821 = vst [vmem:[#allocation117_spill] sm:$0xff] %v14904_v59  ;;  %v14908_v34 = vsel %vm19090_vm5, %v6594_v52, 0.0  ;;  %v14913_v28 = vsel %vm19094_vm8, %v14479_v49, 0.0  ;;  %v1342_v62 = vand.u32 15, %v14819_v58  ;;  %v10849_v58 = vpack.c.bf16 %v5280_v37, %v5280_v37 }
 0x2db   :  { %19822 = vst [vmem:[#allocation118_spill] sm:$0xff] %v14908_v34  ;;  %19823 = vst [vmem:[#allocation119_spill] sm:$0xff] %v14913_v28  ;;  %vm19824_vm7 = vcmp.lt.s32.totalorder %v13371_v38, 15  ;;  %v14923_v3 = vsel %vm3201_vm11, %v14500_v24, 0.0  ;;  %v1776_v52 = vld [vmem:[#allocation2 + $0x107] sm:$0xff]  ;;  %v1777_v49 = vld [vmem:[#allocation2 + $0x10f] sm:$0xff]  ;;  %v10912_v28 = vpack.c.bf16 %v6048_v53, %v6048_v53  ;;  %v10913_v38 = vpack.c.bf16 %v14893_v48, %v14893_v48  ;;  %v14934_v24 = vpop.permute.xlu1 %4862 }
 0x2dc   :  { %v6753_v36 = vsel %vm19824_vm7, %v11307_v43, 0.0  ;;  %19825 = vst [vmem:[#allocation120_spill] sm:$0xff] %v14923_v3  ;;  %7867 = vst.msk [vmem:[#allocation3 + $0x11c] sm:$0xf] %vm19818_vm3, %v11065_v61  ;;  %v14936_v43 = vpop.permute.xlu0 %5565  ;;  %v2397_v3 = vld [vmem:[#allocation2 + $0x68] sm:$0xff]  ;;  %vm14938_vm11 = vcmp.gt.s32.totalorder %v1342_v62, 0  ;;  %5547 = vrot.lane.b32.xlu1 %v10849_v58, %s11355_s17 }
 0x2dd   :  { %vm1840_vm1 = vmand %vm19089_vm2, %vm14566_vm13  ;;  %19826 = vst [vmem:[#allocation121_spill] sm:$0xff] %v14934_v24  ;;  %v10976_v61 = vpack.c.bf16 %v6753_v36, %v6753_v36  ;;  %v14943_v46 = vadd.s32 288, %v19411_v2  ;;  %v14945_v59 = vld [vmem:[#allocation2 + $0x199] sm:$0xff]  ;;  %vm19830_vm7 = vcmp.lt.s32.totalorder %v13358_v44, 15  ;;  %v1269_v27 = vadd.s32 296, %v19411_v2  ;;  %6314 = vrot.lane.b32.xlu0 %v10912_v28, %s11356_s13  ;;  %v2398_v62 = vld [vmem:[#allocation2 + $0x70] sm:$0xff] }
 0x2de   :  { %19827 = vst [vmem:[#allocation122_spill] sm:$0xff] %v14936_v43  ;;  %v2032_v45 = vsel %vm1840_vm1, %v1776_v52, 0.0  ;;  %v11308_v37 = vld [vmem:[#allocation2 + $0x80] sm:$0xff]  ;;  %vm19831_vm3 = vcmp.gt.s32.totalorder %v14511_v57, 0  ;;  %v14958_v44 = vsel %vm14886_vm14, %v14719_v51, 0.0  ;;  %vm19095_vm1 = vcmp.lt.s32.totalorder %v14871_v6, 15 }
 0x2df   :  { %v6754_v53 = vsel %vm19830_vm7, %v11308_v37, 0.0  ;;  %v10550_v48 = vpack.c.bf16 %v2032_v45, %v2032_v45  ;;  %v2033_v36 = vsel %vm19831_vm3, %v1777_v49, 0.0  ;;  %v1396_v52 = vshra.s32 %v14943_v46, 4  ;;  %19832 = vst [vmem:[#allocation123_spill] sm:$0xff] %v14958_v44  ;;  %vm14968_vm2 = vmand %vm19095_vm1, %vm14938_vm11  ;;  %v14977_v44 = vpop.permute.xlu1 %4353 }
 0x2e0   :  { %v10551_v43 = vpack.c.bf16 %v2033_v36, %v2033_v36  ;;  %vm19833_vm7 = vcmp.gt.s32.totalorder %v13406_v8, 0  ;;  %vm19834_vm3 = vcmask 125952   ;;  %v1397_v49 = vshra.s32 %v1269_v27, 4  ;;  %v14975_v36 = vld [vmem:[#allocation2 + $0x1a1] sm:$0xff]  ;;  %19838 = vst [vmem:[#allocation125_spill] sm:$0xff] %v14977_v44  ;;  %v6584_v44 = vld [vmem:[#allocation2 + $0x130] sm:$0xff]  ;;  %6316 = vrot.lane.b32.xlu1 %v10913_v38, %s11356_s13 }
 0x2e1   :  { %v2589_v45 = vsel %vm19833_vm7, %v2397_v3, 0.0  ;;  %2353 = vst.msk [vmem:[#allocation3 + $0x100] sm:$0xf] %vm19834_vm3, %v10550_v48  ;;  %v1333_v58 = vand.u32 15, %v1269_v27  ;;  %v19835_v28 = vmov 0  ;;  %v7558_v37 = vsel %vm19095_vm1, %v14945_v59, 0.0  ;;  %v14979_v3 = vpop.permute.xlu0 %4864  ;;  %7019 = vrot.lane.b32.xlu0 %v10976_v61, %s11357_s14 }
 0x2e2   :  { %v19836_v28 = vsel %vm14968_vm2, 4294967295, %v19835_v28  ;;  %19839 = vst [vmem:[#allocation126_spill] sm:$0xff] %v14979_v3  ;;  %v10977_v48 = vpack.c.bf16 %v6754_v53, %v6754_v53  ;;  %v19840_v27 = vld [vmem:[#allocation38_spill] sm:$0xff]  ;;  %vm19842_vm3 = vcmp.gt.s32.totalorder %v13391_v10, 0  ;;  %v14989_v24 = vand.u32 15, %v1396_v52 }
 0x2e3   :  { %19837 = vst [vmem:[#allocation124_spill] sm:$0xff] %v19836_v28  ;;  %vm19841_vm7 = vnez %v19840_v27  ;;  %v6583_v28 = vld [vmem:[#allocation2 + $0x128] sm:$0xff]  ;;  %vm19845_vm8 = vcmask 125952   ;;  %v11076_v15 = vpack.c.bf16 %v7558_v37, %v7558_v37  ;;  %vm19098_vm1 = vcmp.lt.s32.totalorder %v14873_v31, 15  ;;  %vm19846_vm2 = vmmov %vm19842_vm3 }
 0x2e4   :  { %vm14985_vm5 = vmand %vm19842_vm3, %vm19841_vm7  ;;  %2354 = vst.msk [vmem:[#allocation3 + $0x108] sm:$0xf] %vm19845_vm8, %v10551_v43  ;;  %v2590_v3 = vsel %vm19846_vm2, %v2398_v62, 0.0  ;;  %vm19847_vm13 = vcmp.gt.s32.totalorder %v13406_v8, 0  ;;  %v14997_v18 = vand.u32 15, %v1397_v49  ;;  %vm14999_vm3 = vcmp.lt.s32.totalorder %v1333_v58, 15  ;;  %v15024_v62 = vpop.permute.xlu1 %4866  ;;  %7021 = vrot.lane.b32.xlu1 %v10977_v48, %s11357_s14 }
 0x2e5   :  { %v3358_v53 = vsel %vm19847_vm13, %v3102_v7, 0.0  ;;  %vm7367_vm8 = vmand %vm19098_vm1, %vm14886_vm14  ;;  %vm19101_vm2 = vcmp.gt.s32.totalorder %v14667_v19, 0  ;;  %vm19099_vm13 = vcmp.gt.s32.totalorder %v14989_v24, 0  ;;  %vm19850_vm12 = vcmask 125952   ;;  %v15026_v52 = vpop.permute.xlu0 %5569  ;;  %v19854_v49 = vld [vmem:[#allocation35_spill] sm:$0xff] }
 0x2e6   :  { %7878 = vst.msk [vmem:[#allocation3 + $0x174] sm:$0xf] %vm19850_vm12, %v11076_v15  ;;  %v7559_v7 = vsel %vm7367_vm8, %v14975_v36, 0.0  ;;  %v1332_v43 = vand.u32 15, %v14943_v46  ;;  %v15016_v13 = vsel %vm19099_vm13, %v6583_v28, 0.0  ;;  %vm19100_vm14 = vcmp.gt.s32.totalorder %v14997_v18, 0 }
 0x2e7   :  { %19851 = vst [vmem:[#allocation38_spill] sm:$0xff] %v15016_v13  ;;  %v15022_v38 = vsel %vm19099_vm13, %v14570_v63, 0.0  ;;  %v11077_v61 = vpack.c.bf16 %v7559_v7, %v7559_v7  ;;  %19853 = vst [vmem:[#allocation128_spill] sm:$0xff] %v15026_v52  ;;  %v10594_v15 = vpack.c.bf16 %v2589_v45, %v2589_v45  ;;  %v15031_v46 = vsel %vm14985_vm5, %v14866_v11, 0.0  ;;  %v1788_v11 = vld [vmem:[#allocation2 + $0x167] sm:$0xff]  ;;  %v6596_v13 = vld [vmem:[#allocation2 + $0x190] sm:$0xff] }
 0x2e8   :  { %19852 = vst [vmem:[#allocation127_spill] sm:$0xff] %v15022_v38  ;;  %vm19855_vm12 = vnez %v19854_v49  ;;  %v15040_v63 = vsel %vm19100_vm14, %v6584_v44, 0.0  ;;  %vm3191_vm8 = vmand %vm19100_vm14, %vm14999_vm3  ;;  %vm19858_vm1 = vcmask 125952   ;;  %vm19103_vm13 = vcmask 519552   ;;  %v1789_v44 = vld [vmem:[#allocation2 + $0x16f] sm:$0xff]  ;;  %v3605_v7 = vpop.permute.xlu1 %3604 }
 0x2e9   :  { %v15036_v58 = vsel %vm19855_vm12, %v14844_v20, 0.0  ;;  %19856 = vst [vmem:[#allocation35_spill] sm:$0xff] %v15040_v63  ;;  %v15047_v45 = vsel %vm3191_vm8, %v14604_v25, 0.0  ;;  %7879 = vst.msk [vmem:[#allocation3 + $0x17c] sm:$0xf] %vm19858_vm1, %v11077_v61  ;;  %2857 = vrot.lane.b32.xlu0 %v10594_v15, %s11351_s0  ;;  %v10595_v57 = vpack.c.bf16 %v2590_v3, %v2590_v3  ;;  %v10658_v20 = vpack.c.bf16 %v3358_v53, %v3358_v53  ;;  %v4308_v61 = vpop.permute.xlu0 %4307  ;;  %v15068_v15 = vld [vmem:[#allocation2 + $0x149] sm:$0xff] }
 0x2ea   :  { %19857 = vst [vmem:[#allocation129_spill] sm:$0xff] %v15047_v45  ;;  %vm1852_vm5 = vmand %vm19101_vm2, %vm14686_vm4  ;;  %v10659_v25 = vpack.c.bf16 %v15031_v46, %v15031_v46  ;;  %v10722_v28 = vpack.c.bf16 %v15036_v58, %v15036_v58  ;;  %vm15060_vm1 = vcmp.gt.s32.totalorder %v1332_v43, 0  ;;  %vm19112_vm8 = vcmask 781952   ;;  %v15072_v46 = vld [vmem:[#allocation2 + $0x87] sm:$0xff]  ;;  %v5795_v58 = vld [vmem:[#allocation2 + $0x8f] sm:$0xff] }
 0x2eb   :  { %v15065_v48 = vadd.s32 384, %v19411_v2  ;;  %v2044_v3 = vsel %vm1852_vm5, %v1788_v11, 0.0  ;;  %v1281_v53 = vadd.s32 392, %v19411_v2  ;;  %vm19861_vm2 = vcmask 388352   ;;  %4500 = vst.msk [vmem:[#allocation3] sm:$0xf] %vm19103_vm13, %v4308_v61  ;;  %2859 = vrot.lane.b32.xlu1 %v10595_v57, %s11351_s0 }
 0x2ec   :  { %3796 = vst.msk [vmem:[#allocation3 + $0x8] sm:$0xf] %vm19861_vm2, %v3605_v7  ;;  %vm19862_vm14 = vcmp.lt.s32.totalorder %v13406_v8, 15  ;;  %v10562_v11 = vpack.c.bf16 %v2044_v3, %v2044_v3  ;;  %vm19865_vm5 = vcmp.gt.s32.totalorder %v14620_v22, 0  ;;  %v15087_v7 = vsel %vm14999_vm3, %v14855_v21, 0.0  ;;  %v19867_v61 = vld [vmem:[#allocation48_spill] sm:$0xff] }
 0x2ed   :  { %vm15078_vm4 = vmand %vm19862_vm14, %vm19855_vm12  ;;  %v2045_v45 = vsel %vm19865_vm5, %v1789_v44, 0.0  ;;  %19866 = vst [vmem:[#allocation130_spill] sm:$0xff] %v15087_v7  ;;  %vm19106_vm2 = vcmp.lt.s32.totalorder %v14989_v24, 15  ;;  %vm19868_vm14 = vcmask 650752   ;;  %3626 = vrot.lane.b32.xlu0 %v10658_v20, %s11352_s1  ;;  %v15096_v49 = vld [vmem:[#allocation2 + $0x88] sm:$0xff]  ;;  %v1408_v44 = vshra.s32 %v15065_v48, 4  ;;  %v5528_v7 = vpop.permute.xlu1 %5527 }
 0x2ee   :  { %4501 = vst.msk [vmem:[#allocation3 + $0x8] sm:$0xf] %vm19103_vm13, %v19867_v61  ;;  %v1409_v3 = vshra.s32 %v1281_v53, 4  ;;  %v10563_v38 = vpack.c.bf16 %v2045_v45, %v2045_v45  ;;  %vm15103_vm5 = vmand %vm19106_vm2, %vm15060_vm1  ;;  %v19869_v61 = vmov 0  ;;  %v15113_v57 = vld [vmem:[#allocation2 + $0x81] sm:$0xff]  ;;  %vm19872_vm13 = vcmask 125952  }
 0x2ef   :  { %5013 = vst.msk [vmem:[#allocation3] sm:$0xf] %vm19868_vm14, %v14071_v29  ;;  %v19870_v61 = vsel %vm15103_vm5, 4294967295, %v19869_v61  ;;  %v15107_v29 = vld [vmem:[#allocation2 + $0x151] sm:$0xff]  ;;  %5014 = vst.msk [vmem:[#allocation3 + $0x8] sm:$0xf] %vm19868_vm14, %v14108_v9  ;;  %v6295_v9 = vpop.permute.xlu0 %6294  ;;  %3628 = vrot.lane.b32.xlu1 %v10659_v25, %s11352_s1 }
 0x2f0   :  { %19871 = vst [vmem:[#allocation48_spill] sm:$0xff] %v19870_v61  ;;  %5718 = vst.msk [vmem:[#allocation3] sm:$0xf] %vm19112_vm8, %v14110_v17  ;;  %v5282_v45 = vsel %vm19841_vm7, %v15113_v57, 0.0  ;;  %v1345_v20 = vand.u32 15, %v1281_v53  ;;  %v7548_v61 = vsel %vm19106_vm2, %v15068_v15, 0.0 }
 0x2f1   :  { %2365 = vst.msk [vmem:[#allocation3 + $0x160] sm:$0xf] %vm19872_vm13, %v10562_v11  ;;  %vm19107_vm12 = vcmp.lt.s32.totalorder %v14997_v18, 15  ;;  %v6050_v17 = vsel %vm15078_vm4, %v15072_v46, 0.0  ;;  %v6595_v63 = vld [vmem:[#allocation2 + $0x188] sm:$0xff]  ;;  %v15126_v50 = vand.u32 15, %v1408_v44  ;;  %vm19873_vm7 = vmmov %vm19872_vm13  ;;  %v11066_v53 = vpack.c.bf16 %v7548_v61, %v7548_v61  ;;  %4331 = vrot.lane.b32.xlu0 %v10722_v28, %s11354_s3 }
 0x2f2   :  { %v15128_v27 = vand.u32 15, %v1409_v3  ;;  %2366 = vst.msk [vmem:[#allocation3 + $0x168] sm:$0xf] %vm19873_vm7, %v10563_v38  ;;  %vm7357_vm13 = vmand %vm19107_vm12, %vm14999_vm3  ;;  %vm19874_vm14 = vcmask 913152   ;;  %vm19875_vm4 = vcmp.lt.s32.totalorder %v13391_v10, 15  ;;  %vm19876_vm2 = vcmp.lt.s32.totalorder %v13406_v8, 15 }
 0x2f3   :  { %5719 = vst.msk [vmem:[#allocation3 + $0x8] sm:$0xf] %vm19112_vm8, %v5528_v7  ;;  %v6051_v43 = vsel %vm19875_vm4, %v5795_v58, 0.0  ;;  %v6755_v11 = vsel %vm19876_vm2, %v15096_v49, 0.0  ;;  %vm15142_vm5 = vcmp.lt.s32.totalorder %v1345_v20, 15  ;;  %v7549_v12 = vsel %vm7357_vm13, %v15107_v29, 0.0  ;;  %v6297_v7 = vpop.permute.xlu1 %6296  ;;  %v7000_v3 = vpop.permute.xlu0 %6999 }
 0x2f4   :  { %6487 = vst.msk [vmem:[#allocation3] sm:$0xf] %vm19874_vm14, %v6295_v9  ;;  %vm19110_vm3 = vcmask 1044352   ;;  %vm19109_vm7 = vcmp.gt.s32.totalorder %v15126_v50, 0  ;;  %vm19108_vm14 = vcmp.gt.s32.totalorder %v15128_v27, 0  ;;  %vm19879_vm4 = vcmask 125952  }
 0x2f5   :  { %7868 = vst.msk [vmem:[#allocation3 + $0x124] sm:$0xf] %vm19879_vm4, %v11066_v53  ;;  %v11067_v38 = vpack.c.bf16 %v7549_v12, %v7549_v12  ;;  %v15154_v8 = vsel %vm19109_vm7, %v6595_v63, 0.0  ;;  %v15158_v58 = vsel %vm19108_vm14, %v6596_v13, 0.0  ;;  %v15163_v25 = vsel %vm19109_vm7, %v14696_v33, 0.0  ;;  %vm3203_vm2 = vmand %vm19108_vm14, %vm15142_vm5  ;;  %v15170_v20 = vld [vmem:[#allocation2 + $0x90] sm:$0xff] }
 0x2f6   :  { %19880 = vst [vmem:[#allocation131_spill] sm:$0xff] %v15154_v8  ;;  %19881 = vst [vmem:[#allocation132_spill] sm:$0xff] %v15158_v58  ;;  %v1344_v28 = vand.u32 15, %v15065_v48  ;;  %v10851_v63 = vpack.c.bf16 %v5282_v45, %v5282_v45  ;;  %v10914_v61 = vpack.c.bf16 %v6050_v17, %v6050_v17  ;;  %v15173_v13 = vsel %vm3203_vm2, %v14719_v51, 0.0  ;;  %v1778_v33 = vld [vmem:[#allocation2 + $0x117] sm:$0xff]  ;;  %v1779_v45 = vld [vmem:[#allocation2 + $0x11f] sm:$0xff] }
 0x2f7   :  { %19882 = vst [vmem:[#allocation133_spill] sm:$0xff] %v15163_v25  ;;  %19883 = vst [vmem:[#allocation134_spill] sm:$0xff] %v15173_v13  ;;  %vm19886_vm14 = vcmask 913152   ;;  %v2399_v48 = vld [vmem:[#allocation2 + $0x78] sm:$0xff]  ;;  %v10915_v51 = vpack.c.bf16 %v6051_v43, %v6051_v43  ;;  %v10978_v9 = vpack.c.bf16 %v6755_v11, %v6755_v11  ;;  %vm19887_vm2 = vcmp.lt.s32.totalorder %v13391_v10, 15  ;;  %v19890_v13 = vld [vmem:[#allocation40_spill] sm:$0xff] }
 0x2f8   :  { %vm19884_vm13 = vmmov %vm19879_vm4  ;;  %vm19885_vm4 = vcmp.gt.s32.totalorder %v14729_v32, 0  ;;  %6488 = vst.msk [vmem:[#allocation3 + $0x8] sm:$0xf] %vm19886_vm14, %v6297_v7  ;;  %5551 = vrot.lane.b32.xlu1 %v10851_v63, %s11355_s17  ;;  %6318 = vrot.lane.b32.xlu0 %v10914_v61, %s11356_s13  ;;  %v6756_v17 = vsel %vm19887_vm2, %v15170_v20, 0.0  ;;  %v15192_v12 = vadd.s32 304, %v19411_v2  ;;  %v15194_v7 = vld [vmem:[#allocation2 + $0x1a9] sm:$0xff]  ;;  %v2838_v63 = vpop.permute.xlu0 %2837 }
 0x2f9   :  { %7869 = vst.msk [vmem:[#allocation3 + $0x12c] sm:$0xf] %vm19884_vm13, %v11067_v38  ;;  %vm1842_vm12 = vmand %vm19885_vm4, %vm14810_vm0  ;;  %vm15187_vm13 = vcmp.gt.s32.totalorder %v1344_v28, 0  ;;  %vm19891_vm14 = vcmp.gt.s32.totalorder %v19890_v13, 0  ;;  %v1271_v61 = vadd.s32 312, %v19411_v2  ;;  %vm19892_vm4 = vcmp.gt.s32.totalorder %v14731_v0, 0 }
 0x2fa   :  { %7192 = vst.msk [vmem:[#allocation3] sm:$0xf] %vm19110_vm3, %v7000_v3  ;;  %v2034_v38 = vsel %vm1842_vm12, %v1778_v33, 0.0  ;;  %v7002_v3 = vpop.permute.xlu1 %7001  ;;  %v2591_v43 = vsel %vm19891_vm14, %v2399_v48, 0.0  ;;  %v2035_v10 = vsel %vm19892_vm4, %v1779_v45, 0.0  ;;  %vm19893_vm2 = vcmask 257152  }
 0x2fb   :  { %v10552_v11 = vpack.c.bf16 %v2034_v38, %v2034_v38  ;;  %7193 = vst.msk [vmem:[#allocation3 + $0x8] sm:$0xf] %vm19110_vm3, %v7002_v3  ;;  %v2400_v28 = vld [vmem:[#allocation2 + $0x80] sm:$0xff]  ;;  %v1398_v33 = vshra.s32 %v15192_v12, 4  ;;  %v10553_v25 = vpack.c.bf16 %v2035_v10, %v2035_v10  ;;  %v15207_v58 = vsel %vm15142_vm5, %v14975_v36, 0.0  ;;  %v19901_v10 = vld [vmem:[#allocation9_spill] sm:$0xff] }
 0x2fc   :  { %3028 = vst.msk [vmem:[#allocation3 + $0x10] sm:$0xf] %vm19893_vm2, %v2838_v63  ;;  %19894 = vst [vmem:[#allocation40_spill] sm:$0xff] %v15207_v58  ;;  %vm19121_vm12 = vcmp.lt.s32.totalorder %v15126_v50, 15  ;;  %6320 = vrot.lane.b32.xlu1 %v10915_v51, %s11356_s13  ;;  %7023 = vrot.lane.b32.xlu0 %v10978_v9, %s11357_s14  ;;  %v3104_v48 = vld [vmem:[#allocation2 + $0x79] sm:$0xff]  ;;  %vm19895_vm14 = vcmask 125952   ;;  %v3607_v32 = vpop.permute.xlu0 %3606  ;;  %v10979_v0 = vpack.c.bf16 %v6756_v17, %v6756_v17  ;;  %v10596_v26 = vpack.c.bf16 %v2591_v43, %v2591_v43 }
 0x2fd   :  { %2355 = vst.msk [vmem:[#allocation3 + $0x110] sm:$0xf] %vm19895_vm14, %v10552_v11  ;;  %v1399_v45 = vshra.s32 %v1271_v61, 4  ;;  %v1335_v38 = vand.u32 15, %v1271_v61  ;;  %vm15217_vm4 = vmand %vm19121_vm12, %vm15187_vm13  ;;  %v19896_v3 = vmov 0  ;;  %v7560_v63 = vsel %vm19121_vm12, %v15194_v7, 0.0 }
 0x2fe   :  { %v19897_v3 = vsel %vm15217_vm4, 4294967295, %v19896_v3  ;;  %v15224_v51 = vld [vmem:[#allocation2 + $0x1b1] sm:$0xff]  ;;  %v19899_v9 = vld [vmem:[#allocation10_spill] sm:$0xff]  ;;  %vm19902_vm14 = vcmp.gt.s32.totalorder %v19901_v10, 0  ;;  %v15234_v58 = vand.u32 15, %v1398_v33  ;;  %vm19905_vm3 = vcmask 125952   ;;  %v2840_v8 = vpop.permute.xlu1 %2839 }
 0x2ff   :  { %19898 = vst [vmem:[#allocation135_spill] sm:$0xff] %v19897_v3  ;;  %vm19900_vm2 = vnez %v19899_v9  ;;  %v6585_v61 = vld [vmem:[#allocation2 + $0x138] sm:$0xff]  ;;  %2356 = vst.msk [vmem:[#allocation3 + $0x118] sm:$0xf] %vm19905_vm3, %v10553_v25  ;;  %v11078_v3 = vpack.c.bf16 %v7560_v63, %v7560_v63  ;;  %vm19126_vm8 = vcmp.lt.s32.totalorder %v15128_v27, 15  ;;  %v6586_v22 = vld [vmem:[#allocation2 + $0x140] sm:$0xff] }
 0x300   :  { %vm15230_vm7 = vmand %vm19902_vm14, %vm19900_vm2  ;;  %v15238_v19 = vand.u32 15, %v1399_v45  ;;  %vm15240_vm12 = vcmp.lt.s32.totalorder %v1335_v38, 15  ;;  %vm19908_vm3 = vcmask 257152   ;;  %vm19909_vm4 = vcmask 388352   ;;  %7025 = vrot.lane.b32.xlu1 %v10979_v0, %s11357_s14  ;;  %2861 = vrot.lane.b32.xlu0 %v10596_v26, %s11351_s0  ;;  %v1790_v45 = vld [vmem:[#allocation2 + $0x177] sm:$0xff] }
 0x301   :  { %vm7369_vm14 = vmand %vm19126_vm8, %vm15142_vm5  ;;  %3029 = vst.msk [vmem:[#allocation3 + $0x18] sm:$0xf] %vm19908_vm3, %v2840_v8  ;;  %vm19910_vm0 = vcmp.gt.s32.totalorder %v19901_v10, 0  ;;  %vm19911_vm6 = vcmp.gt.s32.totalorder %v19890_v13, 0  ;;  %vm19133_vm10 = vcmp.gt.s32.totalorder %v15234_v58, 0  ;;  %vm19912_vm15 = vcmask 125952  }
 0x302   :  { %3797 = vst.msk [vmem:[#allocation3 + $0x10] sm:$0xf] %vm19909_vm4, %v3607_v32  ;;  %v2592_v25 = vsel %vm19910_vm0, %v2400_v28, 0.0  ;;  %v3360_v17 = vsel %vm19911_vm6, %v3104_v48, 0.0  ;;  %v7561_v43 = vsel %vm7369_vm14, %v15224_v51, 0.0  ;;  %v15261_v44 = vsel %vm19133_vm10, %v6585_v61, 0.0  ;;  %v3609_v38 = vpop.permute.xlu1 %3608 }
 0x303   :  { %7880 = vst.msk [vmem:[#allocation3 + $0x184] sm:$0xf] %vm19912_vm15, %v11078_v3  ;;  %vm19128_vm5 = vcmp.gt.s32.totalorder %v15238_v19, 0  ;;  %v15267_v32 = vsel %vm19133_vm10, %v14822_v5, 0.0  ;;  %v11079_v8 = vpack.c.bf16 %v7561_v43, %v7561_v43  ;;  %vm19914_vm15 = vcmp.gt.s32.totalorder %v14871_v6, 0  ;;  %v19917_v28 = vld [vmem:[#allocation8_spill] sm:$0xff]  ;;  %v4312_v3 = vpop.permute.xlu0 %4311 }
 0x304   :  { %19913 = vst [vmem:[#allocation10_spill] sm:$0xff] %v15267_v32  ;;  %vm15273_vm6 = vmand %vm19914_vm15, %vm14938_vm11  ;;  %v3361_v26 = vsel %vm15230_vm7, %v15113_v57, 0.0  ;;  %vm19918_vm0 = vnez %v19917_v28  ;;  %v15285_v5 = vsel %vm19128_vm5, %v6586_v22, 0.0  ;;  %v1334_v48 = vand.u32 15, %v15192_v12  ;;  %v11201_v11 = vld [vmem:[#allocation3] ss:$8 sps:$4 sm:$0xff]  }
 0x305   :  { %v4065_v33 = vsel %vm19918_vm0, %v15072_v46, 0.0  ;;  %19919 = vst [vmem:[#allocation9_spill] sm:$0xff] %v15285_v5  ;;  %vm3193_vm4 = vmand %vm19128_vm5, %vm15240_vm12  ;;  %v10597_v63 = vpack.c.bf16 %v2592_v25, %v2592_v25  ;;  %v10660_v57 = vpack.c.bf16 %v3360_v17, %v3360_v17  ;;  %v11203_v61 = vld [vmem:[#allocation3 + $0x4] ss:$8 sps:$4 sm:$0xff]   ;;  %vm19921_vm7 = vcmask 125952  }
 0x306   :  { %v15293_v46 = vsel %vm3193_vm4, %v14855_v21, 0.0  ;;  %7881 = vst.msk [vmem:[#allocation3 + $0x18c] sm:$0xf] %vm19921_vm7, %v11079_v8  ;;  %vm19922_vm14 = vcmask 388352   ;;  %vm19923_vm3 = vcmask 519552   ;;  %v1791_v22 = vld [vmem:[#allocation2 + $0x17f] sm:$0xff]  ;;  %v10661_v12 = vpack.c.bf16 %v3361_v26, %v3361_v26  ;;  %v5532_v28 = vpop.permute.xlu1 %5531 }
 0x307   :  { %19920 = vst [vmem:[#allocation8_spill] sm:$0xff] %v15293_v46  ;;  %3798 = vst.msk [vmem:[#allocation3 + $0x18] sm:$0xf] %vm19922_vm14, %v3609_v38  ;;  %vm19925_vm8 = vcmask 650752   ;;  %2863 = vrot.lane.b32.xlu1 %v10597_v63, %s11351_s0  ;;  %3630 = vrot.lane.b32.xlu0 %v10660_v57, %s11352_s1  ;;  %v10724_v21 = vpack.c.bf16 %v4065_v33, %v4065_v33  ;;  %v15304_v25 = vld [vmem:[#allocation2 + $0x97] sm:$0xff]  ;;  %vm19926_vm4 = vcmp.lt.s32.totalorder %v19890_v13, 15 }
 0x308   :  { %4502 = vst.msk [vmem:[#allocation3 + $0x10] sm:$0xf] %vm19923_vm3, %v4312_v3  ;;  %vm19924_vm15 = vmmov %vm19923_vm3  ;;  %vm19929_vm14 = vcmask 781952   ;;  %vm19930_vm3 = vcmask 130048   ;;  %v2046_v26 = vsel %vm15273_vm6, %v1790_v45, 0.0  ;;  %v15340_v9 = vsel %vm15240_vm12, %v15107_v29, 0.0 }
 0x309   :  { %4503 = vst.msk [vmem:[#allocation3 + $0x18] sm:$0xf] %vm19924_vm15, %v14171_v14  ;;  %vm15310_vm7 = vmand %vm19926_vm4, %vm19918_vm0  ;;  %v15315_v14 = vadd.s32 400, %v19411_v2  ;;  %10419 = vmatprep.mubr.msk.bf16.mxu0 %vm19930_vm3, %v11203_v61  ;;  %vm15327_vm0 = vcmp.gt.s32.totalorder %v1334_v48, 0  ;;  %v10564_v38 = vpack.c.bf16 %v2046_v26, %v2046_v26  ;;  %vm19933_vm15 = vcmp.gt.s32.totalorder %v14873_v31, 0  ;;  %v7294_v48 = vld [vmem:[#allocation2 + $0x159] sm:$0xff] }
 0x30a   :  { %5015 = vst.msk [vmem:[#allocation3 + $0x10] sm:$0xf] %vm19925_vm8, %v14173_v39  ;;  %5016 = vst.msk [vmem:[#allocation3 + $0x18] sm:$0xf] %vm19925_vm8, %v14191_v30  ;;  %v15322_v39 = vld [vmem:[#allocation2 + $0x91] sm:$0xff]  ;;  %v1283_v30 = vadd.s32 408, %v19411_v2  ;;  %8449 = vmatmul.mubr.bf16.vlgmr.msra.gmra.mxu0 %v11201_v11 }
 0x30b   :  { %5720 = vst.msk [vmem:[#allocation3 + $0x10] sm:$0xf] %vm19929_vm14, %v14193_v47  ;;  %v5284_v43 = vsel %vm19900_vm2, %v15322_v39, 0.0  ;;  %v6299_v47 = vpop.permute.xlu0 %6298  ;;  %v1410_v33 = vshra.s32 %v15315_v14, 4  ;;  %v2047_v3 = vsel %vm19933_vm15, %v1791_v22, 0.0  ;;  %19934 = vst [vmem:[#allocation136_spill] sm:$0xff] %v15340_v9  ;;  %3632 = vrot.lane.b32.xlu1 %v10661_v12, %s11352_s1  ;;  %4335 = vrot.lane.b32.xlu0 %v10724_v21, %s11354_s3 }
 0x30c   :  { %vm19935_vm2 = vmmov %vm19929_vm14  ;;  %vm19936_vm6 = vcmask 913152   ;;  %v6052_v0 = vsel %vm15310_vm7, %v15304_v25, 0.0  ;;  %v5797_v45 = vld [vmem:[#allocation2 + $0x9f] sm:$0xff]  ;;  %v1411_v63 = vshra.s32 %v1283_v30, 4  ;;  %v10565_v57 = vpack.c.bf16 %v2047_v3, %v2047_v3  ;;  %v6588_v46 = vld [vmem:[#allocation2 + $0x150] sm:$0xff] }
 0x30d   :  { %5721 = vst.msk [vmem:[#allocation3 + $0x18] sm:$0xf] %vm19935_vm2, %v5532_v28  ;;  %v1347_v11 = vand.u32 15, %v1283_v30  ;;  %v15349_v61 = vld [vmem:[#allocation2 + $0x98] sm:$0xff]  ;;  %v15351_v26 = vand.u32 15, %v1410_v33  ;;  %vm19938_vm4 = vcmask 125952   ;;  %v10853_v17 = vpack.c.bf16 %v5284_v43, %v5284_v43  ;;  %v6301_v33 = vpop.permute.xlu1 %6300 }
 0x30e   :  { %6489 = vst.msk [vmem:[#allocation3 + $0x10] sm:$0xf] %vm19936_vm6, %v6299_v47  ;;  %v6597_v22 = vld [vmem:[#allocation2 + $0x198] sm:$0xff]  ;;  %vm19127_vm8 = vcmp.lt.s32.totalorder %v15234_v58, 15  ;;  %vm19129_vm14 = vcmp.lt.s32.totalorder %v15238_v19, 15  ;;  %v6598_v28 = vld [vmem:[#allocation2 + $0x1a0] sm:$0xff]  ;;  %vm19940_vm7 = vmmov %vm19938_vm4  ;;  %v10916_v3 = vpack.c.bf16 %v6052_v0, %v6052_v0 }
 0x30f   :  { %19937 = vst [vmem:[#allocation137_spill] sm:$0xff] %v15351_v26  ;;  %2367 = vst.msk [vmem:[#allocation3 + $0x170] sm:$0xf] %vm19938_vm4, %v10564_v38  ;;  %v15356_v47 = vand.u32 15, %v1411_v63  ;;  %vm15359_vm3 = vcmp.lt.s32.totalorder %v1347_v11, 15  ;;  %v19943_v21 = vmov 0  ;;  %v7004_v38 = vpop.permute.xlu0 %7003  ;;  %5555 = vrot.lane.b32.xlu1 %v10853_v17, %s11355_s17 }
 0x310   :  { %2368 = vst.msk [vmem:[#allocation3 + $0x178] sm:$0xf] %vm19940_vm7, %v10565_v57  ;;  %vm15367_vm15 = vmand %vm19127_vm8, %vm15327_vm0  ;;  %v7550_v43 = vsel %vm19127_vm8, %v7294_v48, 0.0  ;;  %v15373_v30 = vld [vmem:[#allocation2 + $0x161] sm:$0xff]  ;;  %vm19946_vm2 = vcmp.lt.s32.totalorder %v19901_v10, 15  ;;  %vm19132_vm6 = vcmp.gt.s32.totalorder %v15351_v26, 0  ;;  %6322 = vrot.lane.b32.xlu0 %v10916_v3, %s11356_s13 }
 0x311   :  { %19939 = vst [vmem:[#allocation138_spill] sm:$0xff] %v15356_v47  ;;  %v19944_v21 = vsel %vm15367_vm15, 4294967295, %v19943_v21  ;;  %v6053_v63 = vsel %vm19946_vm2, %v5797_v45, 0.0  ;;  %v15377_v57 = vld [vmem:[#allocation2 + $0xa0] sm:$0xff]  ;;  %v11068_v11 = vpack.c.bf16 %v7550_v43, %v7550_v43  ;;  %vm7359_vm4 = vmand %vm19129_vm14, %vm15240_vm12  ;;  %vm19947_vm7 = vcmask 913152  }
 0x312   :  { %19945 = vst [vmem:[#allocation139_spill] sm:$0xff] %v19944_v21  ;;  %6490 = vst.msk [vmem:[#allocation3 + $0x18] sm:$0xf] %vm19947_vm7, %v6301_v33  ;;  %vm19948_vm8 = vcmask 1044352   ;;  %vm19949_vm5 = vcmp.lt.s32.totalorder %v19890_v13, 15  ;;  %v15391_v0 = vsel %vm19132_vm6, %v6597_v22, 0.0  ;;  %v7006_v33 = vpop.permute.xlu1 %7005  ;;  %v10917_v3 = vpack.c.bf16 %v6053_v63, %v6053_v63 }
 0x313   :  { %7194 = vst.msk [vmem:[#allocation3 + $0x10] sm:$0xf] %vm19948_vm8, %v7004_v38  ;;  %v6757_v48 = vsel %vm19949_vm5, %v15349_v61, 0.0  ;;  %19950 = vst [vmem:[#allocation140_spill] sm:$0xff] %v15391_v0  ;;  %vm19131_vm2 = vcmp.gt.s32.totalorder %v15356_v47, 0  ;;  %v15397_v52 = vsel %vm19132_vm6, %v14945_v59, 0.0  ;;  %v2842_v38 = vpop.permute.xlu0 %2841 }
 0x314   :  { %19951 = vst [vmem:[#allocation141_spill] sm:$0xff] %v15397_v52  ;;  %v15403_v45 = vsel %vm19131_vm2, %v6598_v28, 0.0  ;;  %vm3205_vm12 = vmand %vm19131_vm2, %vm15359_vm3  ;;  %vm19953_vm5 = vcmask 125952   ;;  %v7551_v13 = vsel %vm7359_vm4, %v15373_v30, 0.0  ;;  %v1346_v59 = vand.u32 15, %v15315_v14  ;;  %v1780_v43 = vld [vmem:[#allocation2 + $0x127] sm:$0xff]  ;;  %6324 = vrot.lane.b32.xlu1 %v10917_v3, %s11356_s13 }
 0x315   :  { %19952 = vst [vmem:[#allocation142_spill] sm:$0xff] %v15403_v45  ;;  %7870 = vst.msk [vmem:[#allocation3 + $0x134] sm:$0xf] %vm19953_vm5, %v11068_v11  ;;  %vm19954_vm8 = vcmp.lt.s32.totalorder %v19901_v10, 15  ;;  %v15416_v17 = vsel %vm3205_vm12, %v14975_v36, 0.0  ;;  %v11069_v28 = vpack.c.bf16 %v7551_v13, %v7551_v13  ;;  %vm19956_vm7 = vcmp.gt.s32.totalorder %v14989_v24, 0 }
 0x316   :  { %v6758_v22 = vsel %vm19954_vm8, %v15377_v57, 0.0  ;;  %19955 = vst [vmem:[#allocation143_spill] sm:$0xff] %v15416_v17  ;;  %vm1844_vm14 = vmand %vm19956_vm7, %vm15060_vm1  ;;  %v10980_v11 = vpack.c.bf16 %v6757_v48, %v6757_v48  ;;  %v19957_v14 = vld [vmem:[#allocation11_spill] sm:$0xff]  ;;  %v1781_v10 = vld [vmem:[#allocation2 + $0x12f] sm:$0xff]  ;;  %vm19959_vm5 = vcmask 1044352   ;;  %vm19960_vm12 = vcmask 257152   ;;  %v2844_v3 = vpop.permute.xlu1 %2843 }
 0x317   :  { %vm19958_vm4 = vcmp.gt.s32.totalorder %v19957_v14, 0  ;;  %7195 = vst.msk [vmem:[#allocation3 + $0x18] sm:$0xf] %vm19959_vm5, %v7006_v33  ;;  %vm19961_vm8 = vcmask 125952   ;;  %v10981_v36 = vpack.c.bf16 %v6758_v22, %v6758_v22  ;;  %vm15430_vm7 = vcmp.gt.s32.totalorder %v1346_v59, 0  ;;  %v15437_v48 = vld [vmem:[#allocation2 + $0x1b9] sm:$0xff] }
 0x318   :  { %v2593_v21 = vsel %vm19958_vm4, %v15096_v49, 0.0  ;;  %3030 = vst.msk [vmem:[#allocation3 + $0x20] sm:$0xf] %vm19960_vm12, %v2842_v38  ;;  %7027 = vrot.lane.b32.xlu0 %v10980_v11, %s11357_s14  ;;  %v19962_v13 = vmov 0  ;;  %v15435_v63 = vadd.s32 320, %v19411_v2  ;;  %v2036_v49 = vsel %vm1844_vm14, %v1780_v43, 0.0  ;;  %v3611_v11 = vpop.permute.xlu0 %3610 }
 0x319   :  { %7871 = vst.msk [vmem:[#allocation3 + $0x13c] sm:$0xf] %vm19961_vm8, %v11069_v28  ;;  %v19963_v13 = vsel %vm15430_vm7, 4294967295, %v19962_v13  ;;  %v10598_v33 = vpack.c.bf16 %v2593_v21, %v2593_v21  ;;  %v10554_v17 = vpack.c.bf16 %v2036_v49, %v2036_v49  ;;  %v1273_v38 = vadd.s32 328, %v19411_v2  ;;  %v19965_v22 = vld [vmem:[#allocation13_spill] sm:$0xff]  ;;  %v19967_v59 = vld [vmem:[#allocation12_spill] sm:$0xff]  ;;  %7029 = vrot.lane.b32.xlu1 %v10981_v36, %s11357_s14 }
 0x31a   :  { %vm19964_vm4 = vcmp.gt.s32.totalorder %v14997_v18, 0  ;;  %vm19966_vm5 = vnez %v19965_v22  ;;  %vm19968_vm12 = vcmp.gt.s32.totalorder %v19967_v59, 0  ;;  %v1400_v43 = vshra.s32 %v15435_v63, 4  ;;  %v7898_v32 = vld [vmem:[#allocation3 + $0x10] sm:$0xff] }
 0x31b   :  { %v2037_v28 = vsel %vm19964_vm4, %v1781_v10, 0.0  ;;  %vm15446_vm8 = vmand %vm19968_vm12, %vm19966_vm5  ;;  %v15454_v21 = vsel %vm15359_vm3, %v15224_v51, 0.0  ;;  %vm19135_vm14 = vcmp.lt.s32.totalorder %v15351_v26, 15  ;;  %vm19972_vm4 = vcmask 257152   ;;  %v11204_v5 = vld [vmem:[#allocation3 + $0x14] ss:$8 sps:$4 sm:$0xff]  }
 0x31c   :  { %v10555_v9 = vpack.c.bf16 %v2037_v28, %v2037_v28  ;;  %19971 = vst [vmem:[#allocation11_spill] sm:$0xff] %v15454_v21  ;;  %3031 = vst.msk [vmem:[#allocation3 + $0x28] sm:$0xf] %vm19972_vm4, %v2844_v3  ;;  %vm19973_vm2 = vcmask 388352   ;;  %v2594_v10 = vsel %vm19968_vm12, %v15170_v20, 0.0  ;;  %vm19974_vm6 = vcmask 125952   ;;  %2865 = vrot.lane.b32.xlu0 %v10598_v33, %s11351_s0 }
 0x31d   :  { %3799 = vst.msk [vmem:[#allocation3 + $0x20] sm:$0xf] %vm19973_vm2, %v3611_v11  ;;  %v1401_v49 = vshra.s32 %v1273_v38, 4  ;;  %v1337_v45 = vand.u32 15, %v1273_v38  ;;  %vm15467_vm10 = vmand %vm19135_vm14, %vm15430_vm7  ;;  %v19975_v28 = vmov 0  ;;  %v7562_v3 = vsel %vm19135_vm14, %v15437_v48, 0.0 }
 0x31e   :  { %2357 = vst.msk [vmem:[#allocation3 + $0x120] sm:$0xf] %vm19974_vm6, %v10554_v17  ;;  %v19976_v28 = vsel %vm15467_vm10, 4294967295, %v19975_v28  ;;  %v15474_v11 = vld [vmem:[#allocation2 + $0x1c1] sm:$0xff]  ;;  %v15478_v17 = vand.u32 15, %v1400_v43  ;;  %v11080_v38 = vpack.c.bf16 %v7562_v3, %v7562_v3  ;;  %vm19136_vm2 = vcmp.lt.s32.totalorder %v15356_v47, 15  ;;  %v4316_v43 = vpop.permute.xlu0 %4315 }
 0x31f   :  { %19977 = vst [vmem:[#allocation13_spill] sm:$0xff] %v19976_v28  ;;  %v6587_v20 = vld [vmem:[#allocation2 + $0x148] sm:$0xff]  ;;  %2358 = vst.msk [vmem:[#allocation3 + $0x128] sm:$0xf] %vm19974_vm6, %v10555_v9  ;;  %v3363_v28 = vsel %vm15446_vm8, %v15322_v39, 0.0  ;;  %v4067_v0 = vsel %vm13997_vm9, %v15304_v25, 0.0  ;;  %v3613_v9 = vpop.permute.xlu1 %3612  ;;  %v10599_v52 = vpack.c.bf16 %v2594_v10, %v2594_v10 }
 0x320   :  { %19978 = vst [vmem:[#allocation12_spill] sm:$0xff] %v15478_v17  ;;  %v15488_v36 = vand.u32 15, %v1401_v49  ;;  %vm15490_vm4 = vcmp.lt.s32.totalorder %v1337_v45, 15  ;;  %vm7371_vm12 = vmand %vm19136_vm2, %vm15359_vm3  ;;  %v19983_v39 = vld [vmem:[#allocation14_spill] sm:$0xff]  ;;  %v7899_v25 = vld [vmem:[#allocation3 + $0x18] sm:$0xff]  ;;  %vm19139_vm8 = vcmp.gt.s32.totalorder %v15478_v17, 0 }
 0x321   :  { %v10662_v3 = vpack.c.bf16 %v19983_v39, %v19983_v39  ;;  %7882 = vst.msk [vmem:[#allocation3 + $0x194] sm:$0xf] %vm19974_vm6, %v11080_v38  ;;  %v7563_v45 = vsel %vm7371_vm12, %v15474_v11, 0.0  ;;  %vm19984_vm14 = vcmask 388352   ;;  %vm19985_vm10 = vcmask 519552   ;;  %2867 = vrot.lane.b32.xlu1 %v10599_v52, %s11351_s0 }
 0x322   :  { %19980 = vst [vmem:[#allocation16_spill] sm:$0xff] %v15488_v36  ;;  %3800 = vst.msk [vmem:[#allocation3 + $0x28] sm:$0xf] %vm19984_vm14, %v3613_v9  ;;  %v10348_v12 = vcombine.low %v7898_v32, %v7899_v25  ;;  %vm19986_vm3 = vcmp.lt.s32.totalorder %v19957_v14, 15  ;;  %v15515_v49 = vsel %vm19139_vm8, %v6587_v20, 0.0  ;;  %vm19137_vm6 = vcmp.gt.s32.totalorder %v15488_v36, 0 }
 0x323   :  { %4504 = vst.msk [vmem:[#allocation3 + $0x20] sm:$0xf] %vm19985_vm10, %v4316_v43  ;;  %vm15509_vm2 = vmand %vm19986_vm3, %vm13997_vm9  ;;  %v15521_v38 = vsel %vm19139_vm8, %v15068_v15, 0.0  ;;  %vm19990_vm14 = vcmask 650752   ;;  %3634 = vrot.lane.b32.xlu0 %v10662_v3, %s11352_s1  ;;  %v11311_v32 = vld [vmem:[#allocation2 + $0xa1] sm:$0xff]  ;;  %v5799_v9 = vld [vmem:[#allocation2 + $0xaf] sm:$0xff]  ;;  %v10726_v39 = vpack.c.bf16 %v4067_v0, %v4067_v0 }
 0x324   :  { %19989 = vst [vmem:[#allocation14_spill] sm:$0xff] %v15521_v38  ;;  %4505 = vst.msk [vmem:[#allocation3 + $0x28] sm:$0xf] %vm19985_vm10, %v14234_v1  ;;  %v5286_v21 = vsel %vm19966_vm5, %v11311_v32, 0.0  ;;  %v15531_v20 = vld [vmem:[#allocation2 + $0xa7] sm:$0xff]  ;;  %v15535_v15 = vsel %vm19137_vm6, %v6588_v46, 0.0  ;;  %v11081_v1 = vpack.c.bf16 %v7563_v45, %v7563_v45 }
 0x325   :  { %5017 = vst.msk [vmem:[#allocation3 + $0x20] sm:$0xf] %vm19990_vm14, %v14236_v60  ;;  %vm3195_vm9 = vmand %vm19137_vm6, %vm15490_vm4  ;;  %vm19992_vm3 = vcmask 781952   ;;  %vm19993_vm5 = vcmask 130048   ;;  %v15546_v60 = vld [vmem:[#allocation2 + $0xa8] sm:$0xff]  ;;  %v1336_v46 = vand.u32 15, %v15435_v63  ;;  %v10855_v63 = vpack.c.bf16 %v5286_v21, %v5286_v21 }
 0x326   :  { %vm19991_vm12 = vmmov %vm19990_vm14  ;;  %5722 = vst.msk [vmem:[#allocation3 + $0x20] sm:$0xf] %vm19992_vm3, %v14294_v4  ;;  %10420 = vmatprep.mubr.msk.bf16.mxu0 %vm19993_vm5, %v11204_v5  ;;  %v15549_v22 = vsel %vm3195_vm9, %v15107_v29, 0.0  ;;  %v1792_v43 = vld [vmem:[#allocation2 + $0x187] sm:$0xff]  ;;  %vm19995_vm10 = vcmp.gt.s32.totalorder %v15126_v50, 0  ;;  %v6303_v4 = vpop.permute.xlu0 %6302  ;;  %v10663_v5 = vpack.c.bf16 %v3363_v28, %v3363_v28  ;;  %v1793_v29 = vld [vmem:[#allocation2 + $0x18f] sm:$0xff] }
 0x327   :  { %5018 = vst.msk [vmem:[#allocation3 + $0x28] sm:$0xf] %vm19991_vm12, %v14292_v42  ;;  %19994 = vst [vmem:[#allocation144_spill] sm:$0xff] %v15549_v22  ;;  %v5536_v42 = vpop.permute.xlu1 %5535  ;;  %8457 = vmatmul.mubr.bf16.gmra.mxu0 %v10348_v12  ;;  %vm19998_vm12 = vcmask 125952   ;;  %v6054_v3 = vsel %vm15509_vm2, %v15531_v20, 0.0  ;;  %vm20001_vm5 = vcmp.lt.s32.totalorder %v19967_v59, 15  ;;  %4339 = vrot.lane.b32.xlu0 %v10726_v39, %s11354_s3 }
 0x328   :  { %vm15556_vm14 = vmand %vm19995_vm10, %vm15187_vm13  ;;  %7883 = vst.msk [vmem:[#allocation3 + $0x19c] sm:$0xf] %vm19998_vm12, %v11081_v1  ;;  %v6055_v25 = vsel %vm20001_vm5, %v5799_v9, 0.0  ;;  %3636 = vrot.lane.b32.xlu1 %v10663_v5, %s11352_s1  ;;  %vm20002_vm10 = vcmp.lt.s32.totalorder %v19957_v14, 15  ;;  %v15574_v28 = vadd.s32 416, %v19411_v2  ;;  %v1285_v12 = vadd.s32 424, %v19411_v2 }
 0x329   :  { %vm19999_vm9 = vmmov %vm19992_vm3  ;;  %vm20000_vm3 = vcmask 913152   ;;  %v6759_v0 = vsel %vm20002_vm10, %v15546_v60, 0.0  ;;  %v2048_v45 = vsel %vm15556_vm14, %v1792_v43, 0.0  ;;  %vm15579_vm2 = vcmp.gt.s32.totalorder %v1336_v46, 0  ;;  %v7296_v9 = vld [vmem:[#allocation2 + $0x169] sm:$0xff]  ;;  %v20169_v22 = vld [vmem:[#allocation79_spill] sm:$0xff] }
 0x32a   :  { %5723 = vst.msk [vmem:[#allocation3 + $0x28] sm:$0xf] %vm19999_vm9, %v5536_v42  ;;  %v20003_v10 = vmov 0  ;;  %v10566_v32 = vpack.c.bf16 %v2048_v45, %v2048_v45  ;;  %vm20006_vm12 = vcmp.gt.s32.totalorder %v15128_v27, 0  ;;  %v15588_v14 = vsel %vm15490_vm4, %v15373_v30, 0.0  ;;  %v7008_v42 = vpop.permute.xlu0 %7007  ;;  %v15590_v43 = vld [vmem:[#allocation2 + $0xb0] sm:$0xff]  ;;  %vm20008_vm14 = vmmov %vm20000_vm3 }
 0x32b   :  { %6491 = vst.msk [vmem:[#allocation3 + $0x20] sm:$0xf] %vm20000_vm3, %v6303_v4  ;;  %v20004_v10 = vsel %vm15579_vm2, 4294967295, %v20003_v10  ;;  %v2049_v21 = vsel %vm20006_vm12, %v1793_v29, 0.0  ;;  %20007 = vst [vmem:[#allocation146_spill] sm:$0xff] %v15588_v14  ;;  %v6305_v1 = vpop.permute.xlu1 %6304  ;;  %v10918_v52 = vpack.c.bf16 %v6054_v3, %v6054_v3  ;;  %v1412_v46 = vshra.s32 %v15574_v28, 4 }
 0x32c   :  { %20005 = vst [vmem:[#allocation145_spill] sm:$0xff] %v20004_v10  ;;  %v1413_v4 = vshra.s32 %v1285_v12, 4  ;;  %v10567_v5 = vpack.c.bf16 %v2049_v21, %v2049_v21  ;;  %6492 = vst.msk [vmem:[#allocation3 + $0x28] sm:$0xf] %vm20008_vm14, %v6305_v1  ;;  %vm20009_vm9 = vcmask 1044352   ;;  %v10919_v39 = vpack.c.bf16 %v6055_v25, %v6055_v25  ;;  %v7297_v30 = vld [vmem:[#allocation2 + $0x171] sm:$0xff]  ;;  %5559 = vrot.lane.b32.xlu1 %v10855_v63, %s11355_s17 }
 0x32d   :  { %7196 = vst.msk [vmem:[#allocation3 + $0x20] sm:$0xf] %vm20009_vm9, %v7008_v42  ;;  %vm20010_vm3 = vcmask 125952   ;;  %v1349_v29 = vand.u32 15, %v1285_v12  ;;  %vm19138_vm5 = vcmp.lt.s32.totalorder %v15478_v17, 15  ;;  %vm19140_vm10 = vcmp.lt.s32.totalorder %v15488_v36, 15  ;;  %6326 = vrot.lane.b32.xlu0 %v10918_v52, %s11356_s13 }
 0x32e   :  { %2369 = vst.msk [vmem:[#allocation3 + $0x180] sm:$0xf] %vm20010_vm3, %v10566_v32  ;;  %v10982_v3 = vpack.c.bf16 %v6759_v0, %v6759_v0  ;;  %v6599_v45 = vld [vmem:[#allocation2 + $0x1a8] sm:$0xff]  ;;  %v6600_v21 = vld [vmem:[#allocation2 + $0x1b0] sm:$0xff]  ;;  %v15600_v14 = vand.u32 15, %v1412_v46  ;;  %v15602_v1 = vand.u32 15, %v1413_v4  ;;  %vm20013_vm12 = vmmov %vm20010_vm3 }
 0x32f   :  { %2370 = vst.msk [vmem:[#allocation3 + $0x188] sm:$0xf] %vm20013_vm12, %v10567_v5  ;;  %vm15609_vm14 = vmand %vm19138_vm5, %vm15579_vm2  ;;  %v20014_v25 = vmov 0  ;;  %v7552_v63 = vsel %vm19138_vm5, %v7296_v9, 0.0  ;;  %vm20017_vm9 = vcmp.lt.s32.totalorder %v19967_v59, 15  ;;  %v20018_v12 = vld [vmem:[#allocation15_spill] sm:$0xff]  ;;  %v7010_v46 = vpop.permute.xlu1 %7009  ;;  %v2846_v9 = vpop.permute.xlu0 %2845 }
 0x330   :  { %20011 = vst [vmem:[#allocation147_spill] sm:$0xff] %v15600_v14  ;;  %20012 = vst [vmem:[#allocation148_spill] sm:$0xff] %v15602_v1  ;;  %v20015_v25 = vsel %vm15609_vm14, 4294967295, %v20014_v25  ;;  %v6760_v0 = vsel %vm20017_vm9, %v15590_v43, 0.0  ;;  %vm20019_vm3 = vcmp.gt.s32.totalorder %v20018_v12, 0  ;;  %vm15621_vm12 = vcmp.lt.s32.totalorder %v1349_v29, 15  ;;  %6328 = vrot.lane.b32.xlu1 %v10919_v39, %s11356_s13 }
 0x331   :  { %20016 = vst [vmem:[#allocation149_spill] sm:$0xff] %v20015_v25  ;;  %v2595_v32 = vsel %vm20019_vm3, %v15349_v61, 0.0  ;;  %v11070_v52 = vpack.c.bf16 %v7552_v63, %v7552_v63  ;;  %vm7361_vm6 = vmand %vm19140_vm10, %vm15490_vm4  ;;  %vm19145_vm5 = vcmp.gt.s32.totalorder %v15600_v14, 0  ;;  %vm19141_vm9 = vcmp.gt.s32.totalorder %v15602_v1, 0  ;;  %7031 = vrot.lane.b32.xlu0 %v10982_v3, %s11357_s14  ;;  %v15666_v3 = vld [vmem:[#allocation2 + $0x1c9] sm:$0xff] }
 0x332   :  { %v7553_v59 = vsel %vm7361_vm6, %v7297_v30, 0.0  ;;  %v1348_v4 = vand.u32 15, %v15574_v28  ;;  %vm20022_vm3 = vcmask 1044352   ;;  %vm20023_vm8 = vcmask 257152   ;;  %vm3207_vm4 = vmand %vm19141_vm9, %vm15621_vm12  ;;  %v1782_v30 = vld [vmem:[#allocation2 + $0x137] sm:$0xff] }
 0x333   :  { %7197 = vst.msk [vmem:[#allocation3 + $0x28] sm:$0xf] %vm20022_vm3, %v7010_v46  ;;  %v15636_v61 = vsel %vm19145_vm5, %v6599_v45, 0.0  ;;  %v15640_v33 = vsel %vm19141_vm9, %v6600_v21, 0.0  ;;  %v15645_v5 = vsel %vm19145_vm5, %v15194_v7, 0.0  ;;  %vm20027_vm6 = vcmask 125952   ;;  %v2848_v45 = vpop.permute.xlu1 %2847  ;;  %v3615_v21 = vpop.permute.xlu0 %3614 }
 0x334   :  { %3032 = vst.msk [vmem:[#allocation3 + $0x30] sm:$0xf] %vm20023_vm8, %v2846_v9  ;;  %20024 = vst [vmem:[#allocation15_spill] sm:$0xff] %v15636_v61  ;;  %v11071_v28 = vpack.c.bf16 %v7553_v59, %v7553_v59  ;;  %v15655_v29 = vsel %vm3207_vm4, %v15224_v51, 0.0  ;;  %vm20030_vm3 = vcmp.gt.s32.totalorder %v15234_v58, 0  ;;  %v1783_v7 = vld [vmem:[#allocation2 + $0x13f] sm:$0xff]  ;;  %v10983_v63 = vpack.c.bf16 %v6760_v0, %v6760_v0 }
 0x335   :  { %20025 = vst [vmem:[#allocation150_spill] sm:$0xff] %v15640_v33  ;;  %20026 = vst [vmem:[#allocation151_spill] sm:$0xff] %v15645_v5  ;;  %v20031_v39 = vmov 0  ;;  %vm20034_vm4 = vcmask 257152   ;;  %v20036_v51 = vld [vmem:[#allocation19_spill] sm:$0xff]  ;;  %vm20047_vm5 = vcmask 125952  }
 0x336   :  { %7872 = vst.msk [vmem:[#allocation3 + $0x144] sm:$0xf] %vm20027_vm6, %v11070_v52  ;;  %20028 = vst [vmem:[#allocation152_spill] sm:$0xff] %v15655_v29  ;;  %v10600_v52 = vpack.c.bf16 %v2595_v32, %v2595_v32  ;;  %vm20037_vm9 = vcmp.gt.s32.totalorder %v20036_v51, 0  ;;  %7033 = vrot.lane.b32.xlu1 %v10983_v63, %s11357_s14  ;;  %v15678_v32 = vsel %vm15621_vm12, %v15474_v11, 0.0  ;;  %v1286_v42 = vadd.s32 432, %v19411_v2 }
 0x337   :  { %vm20029_vm8 = vmmov %vm20027_vm6  ;;  %vm15662_vm6 = vcmp.gt.s32.totalorder %v1348_v4, 0  ;;  %3033 = vst.msk [vmem:[#allocation3 + $0x38] sm:$0xf] %vm20034_vm4, %v2848_v45  ;;  %v2596_v46 = vsel %vm20037_vm9, %v15377_v57, 0.0  ;;  %vm20039_vm4 = vcmp.gt.s32.totalorder %v15238_v19, 0  ;;  %v20040_v57 = vmov 0  ;;  %v3617_v45 = vpop.permute.xlu1 %3616 }
 0x338   :  { %7873 = vst.msk [vmem:[#allocation3 + $0x14c] sm:$0xf] %vm20029_vm8, %v11071_v28  ;;  %vm1846_vm10 = vmand %vm20030_vm3, %vm15327_vm0  ;;  %v20032_v39 = vsel %vm15662_vm6, 4294967295, %v20031_v39  ;;  %vm20035_vm8 = vcmask 388352   ;;  %2869 = vrot.lane.b32.xlu0 %v10600_v52, %s11351_s0  ;;  %vm19144_vm3 = vcmp.lt.s32.totalorder %v15600_v14, 15  ;;  %v2039_v9 = vsel %vm20039_vm4, %v1783_v7, 0.0 }
 0x339   :  { %20033 = vst [vmem:[#allocation153_spill] sm:$0xff] %v20032_v39  ;;  %3801 = vst.msk [vmem:[#allocation3 + $0x30] sm:$0xf] %vm20035_vm8, %v3615_v21  ;;  %v2038_v0 = vsel %vm1846_vm10, %v1782_v30, 0.0  ;;  %v7564_v4 = vsel %vm19144_vm3, %v15666_v3, 0.0  ;;  %v10557_v28 = vpack.c.bf16 %v2039_v9, %v2039_v9  ;;  %v15694_v30 = vld [vmem:[#allocation2 + $0x1d1] sm:$0xff]  ;;  %v4320_v21 = vpop.permute.xlu0 %4319  ;;  %v10601_v63 = vpack.c.bf16 %v2596_v46, %v2596_v46 }
 0x33a   :  { %20038 = vst [vmem:[#allocation19_spill] sm:$0xff] %v15678_v32  ;;  %v10556_v59 = vpack.c.bf16 %v2038_v0, %v2038_v0  ;;  %vm15687_vm9 = vmand %vm19144_vm3, %vm15662_vm6  ;;  %v20043_v7 = vld [vmem:[#allocation17_spill] sm:$0xff]  ;;  %v11082_v25 = vpack.c.bf16 %v7564_v4, %v7564_v4  ;;  %vm19146_vm10 = vcmp.lt.s32.totalorder %v15602_v1, 15  ;;  %vm20044_vm4 = vcmask 519552   ;;  %v20045_v9 = vld [vmem:[#allocation18_spill] sm:$0xff] }
 0x33b   :  { %v20041_v57 = vsel %vm15687_vm9, 4294967295, %v20040_v57  ;;  %v10664_v52 = vpack.c.bf16 %v20043_v7, %v20043_v7  ;;  %v7900_v0 = vld [vmem:[#allocation3 + $0x20] sm:$0xff]  ;;  %v7901_v32 = vld [vmem:[#allocation3 + $0x28] sm:$0xff]  ;;  %3802 = vst.msk [vmem:[#allocation3 + $0x38] sm:$0xf] %vm20035_vm8, %v3617_v45  ;;  %vm20046_vm3 = vnez %v20045_v9  ;;  %vm20048_vm9 = vmmov %vm20047_vm5  ;;  %vm20050_vm8 = vcmask 650752   ;;  %2871 = vrot.lane.b32.xlu1 %v10601_v63, %s11351_s0  ;;  %v5540_v45 = vpop.permute.xlu1 %5539 }
 0x33c   :  { %20042 = vst [vmem:[#allocation154_spill] sm:$0xff] %v20041_v57  ;;  %v11206_v29 = vld [vmem:[#allocation3 + $0x24] ss:$8 sps:$4 sm:$0xff]   ;;  %4506 = vst.msk [vmem:[#allocation3 + $0x30] sm:$0xf] %vm20044_vm4, %v4320_v21  ;;  %v10350_v57 = vcombine.low %v7900_v0, %v7901_v32  ;;  %v4069_v5 = vsel %vm20046_vm3, %v15531_v20, 0.0 }
 0x33d   :  { %2359 = vst.msk [vmem:[#allocation3 + $0x130] sm:$0xf] %vm20047_vm5, %v10556_v59  ;;  %vm7373_vm14 = vmand %vm19146_vm10, %vm15621_vm12  ;;  %3638 = vrot.lane.b32.xlu0 %v10664_v52, %s11352_s1  ;;  %v15716_v20 = vld [vmem:[#allocation2 + $0xb7] sm:$0xff]  ;;  %v20056_v59 = vld [vmem:[#allocation68_spill] sm:$0xff]  ;;  %v1287_v4 = vadd.s32 440, %v19411_v2  ;;  %v6307_v21 = vpop.permute.xlu0 %6306  ;;  %v10728_v52 = vpack.c.bf16 %v4069_v5, %v4069_v5  ;;  %v1414_v0 = vshra.s32 %v1286_v42, 4 }
 0x33e   :  { %2360 = vst.msk [vmem:[#allocation3 + $0x138] sm:$0xf] %vm20048_vm9, %v10557_v28  ;;  %vm20049_vm15 = vmmov %vm20044_vm4  ;;  %v7565_v46 = vsel %vm7373_vm14, %v15694_v30, 0.0  ;;  %v1794_v32 = vld [vmem:[#allocation2 + $0x197] sm:$0xff]  ;;  %vm20057_vm9 = vcmask 781952   ;;  %vm20058_vm4 = vcmask 130048  }
 0x33f   :  { %4507 = vst.msk [vmem:[#allocation3 + $0x38] sm:$0xf] %vm20049_vm15, %v14327_v16  ;;  %vm20051_vm15 = vcmp.gt.s32.totalorder %v15351_v26, 0  ;;  %vm20055_vm3 = vmmov %vm20050_vm8  ;;  %10421 = vmatprep.mubr.msk.bf16.mxu0 %vm20058_vm4, %v11206_v29  ;;  %v1795_v28 = vld [vmem:[#allocation2 + $0x19f] sm:$0xff]  ;;  %v20059_v63 = vld [vmem:[#allocation25_spill] sm:$0xff]  ;;  %v1350_v9 = vand.u32 15, %v1286_v42 }
 0x340   :  { %5019 = vst.msk [vmem:[#allocation3 + $0x30] sm:$0xf] %vm20050_vm8, %v14329_v35  ;;  %vm15725_vm12 = vmand %vm20051_vm15, %vm15430_vm7  ;;  %v20054_v35 = vld [vmem:[#allocation67_spill] sm:$0xff]  ;;  %8465 = vmatmul.mubr.bf16.gmra.mxu0 %v10350_v57  ;;  %v10665_v7 = vpack.c.bf16 %v20059_v63, %v20059_v63  ;;  %vm20061_vm8 = vcmask 913152   ;;  %vm20064_vm15 = vcmask 125952   ;;  %v15747_v42 = vld [vmem:[#allocation2 + $0xb8] sm:$0xff] }
 0x341   :  { %7884 = vst.msk [vmem:[#allocation3 + $0x1a4] sm:$0xf] %vm20047_vm5, %v11082_v25  ;;  %v11083_v25 = vpack.c.bf16 %v7565_v46, %v7565_v46  ;;  %vm20060_vm14 = vmmov %vm20057_vm9  ;;  %v1415_v46 = vshra.s32 %v1287_v4, 4  ;;  %v2050_v57 = vsel %vm15725_vm12, %v1794_v32, 0.0  ;;  %4343 = vrot.lane.b32.xlu0 %v10728_v52, %s11354_s3  ;;  %v5801_v5 = vld [vmem:[#allocation2 + $0xbf] sm:$0xff]  ;;  %vm20078_vm10 = vcmp.lt.s32.totalorder %v20018_v12, 15 }
 0x342   :  { %5020 = vst.msk [vmem:[#allocation3 + $0x38] sm:$0xf] %vm20055_vm3, %v20054_v35  ;;  %v20062_v35 = vld [vmem:[#allocation24_spill] sm:$0xff]  ;;  %3640 = vrot.lane.b32.xlu1 %v10665_v7, %s11352_s1  ;;  %vm15751_vm3 = vcmp.gt.s32.totalorder %v1350_v9, 0  ;;  %v10568_v63 = vpack.c.bf16 %v2050_v57, %v2050_v57  ;;  %v15799_v12 = vld [vmem:[#allocation2 + $0xc0] sm:$0xff]  ;;  %v20096_v33 = vld [vmem:[#allocation41_spill] sm:$0xff] }
 0x343   :  { %5724 = vst.msk [vmem:[#allocation3 + $0x30] sm:$0xf] %vm20057_vm9, %v20056_v59  ;;  %vm20063_vm5 = vnez %v20062_v35  ;;  %v1351_v59 = vand.u32 15, %v1287_v4  ;;  %vm20069_vm9 = vcmp.gt.s32.totalorder %v15356_v47, 0  ;;  %v20070_v4 = vld [vmem:[#allocation7_spill] sm:$0xff]  ;;  %v15759_v16 = vand.u32 15, %v1415_v46  ;;  %v7012_v35 = vpop.permute.xlu0 %7011 }
 0x344   :  { %5725 = vst.msk [vmem:[#allocation3 + $0x38] sm:$0xf] %vm20060_vm14, %v5540_v45  ;;  %v6056_v29 = vsel %vm20063_vm5, %v15716_v20, 0.0  ;;  %v15749_v45 = vand.u32 15, %v1414_v0  ;;  %v10857_v32 = vpack.c.bf16 %v20070_v4, %v20070_v4  ;;  %v6309_v0 = vpop.permute.xlu1 %6308  ;;  %vm20073_vm14 = vmmov %vm20064_vm15  ;;  %v15773_v46 = vld [vmem:[#allocation2 + $0x1d9] sm:$0xff]  ;;  %vm20075_vm5 = vcmask 913152  }
 0x345   :  { %6493 = vst.msk [vmem:[#allocation3 + $0x30] sm:$0xf] %vm20061_vm8, %v6307_v21  ;;  %v20066_v21 = vmov 0  ;;  %vm15761_vm12 = vcmp.lt.s32.totalorder %v1351_v59, 15  ;;  %v10920_v9 = vpack.c.bf16 %v6056_v29, %v6056_v29  ;;  %v6761_v59 = vsel %vm20078_vm10, %v15747_v42, 0.0 }
 0x346   :  { %7885 = vst.msk [vmem:[#allocation3 + $0x1ac] sm:$0xf] %vm20064_vm15, %v11083_v25  ;;  %20065 = vst [vmem:[#allocation17_spill] sm:$0xff] %v15749_v45  ;;  %v20067_v21 = vsel %vm15751_vm3, 4294967295, %v20066_v21  ;;  %v2051_v25 = vsel %vm20069_vm9, %v1795_v28, 0.0  ;;  %vm19147_vm4 = vcmp.gt.s32.totalorder %v15749_v45, 0  ;;  %5563 = vrot.lane.b32.xlu1 %v10857_v32, %s11355_s17 }
 0x347   :  { %20068 = vst [vmem:[#allocation18_spill] sm:$0xff] %v20067_v21  ;;  %v10569_v52 = vpack.c.bf16 %v2051_v25, %v2051_v25  ;;  %2371 = vst.msk [vmem:[#allocation3 + $0x190] sm:$0xf] %vm20073_vm14, %v10568_v63  ;;  %v15770_v28 = vsel %vm15761_vm12, %v15694_v30, 0.0  ;;  %vm19148_vm8 = vcmp.lt.s32.totalorder %v15749_v45, 15  ;;  %vm20076_vm15 = vcmask 1044352   ;;  %6330 = vrot.lane.b32.xlu0 %v10920_v9, %s11356_s13  ;;  %v2850_v32 = vpop.permute.xlu0 %2849 }
 0x348   :  { %20074 = vst [vmem:[#allocation67_spill] sm:$0xff] %v15770_v28  ;;  %6494 = vst.msk [vmem:[#allocation3 + $0x38] sm:$0xf] %vm20075_vm5, %v6309_v0  ;;  %vm20077_vm9 = vcmp.lt.s32.totalorder %v20036_v51, 15  ;;  %vm19149_vm14 = vcmp.gt.s32.totalorder %v15759_v16, 0  ;;  %v15786_v57 = vsel %vm19147_vm4, %v15437_v48, 0.0  ;;  %v7014_v4 = vpop.permute.xlu1 %7013  ;;  %v10984_v0 = vpack.c.bf16 %v6761_v59, %v6761_v59 }
 0x349   :  { %7198 = vst.msk [vmem:[#allocation3 + $0x30] sm:$0xf] %vm20076_vm15, %v7012_v35  ;;  %v6057_v29 = vsel %vm20077_vm9, %v5801_v5, 0.0  ;;  %20079 = vst [vmem:[#allocation68_spill] sm:$0xff] %v15786_v57  ;;  %v20080_v63 = vmov 0  ;;  %vm20083_vm15 = vcmask 125952  }
 0x34a   :  { %vm15792_vm5 = vmand %vm19148_vm8, %vm15751_vm3  ;;  %2372 = vst.msk [vmem:[#allocation3 + $0x198] sm:$0xf] %vm20083_vm15, %v10569_v52  ;;  %v7566_v5 = vsel %vm19148_vm8, %v15773_v46, 0.0  ;;  %v15811_v25 = vld [vmem:[#allocation2 + $0x1e1] sm:$0xff]  ;;  %v10921_v52 = vpack.c.bf16 %v6057_v29, %v6057_v29  ;;  %vm19152_vm9 = vcmp.lt.s32.totalorder %v15759_v16, 15  ;;  %vm20085_vm15 = vcmask 1044352  }
 0x34b   :  { %v20081_v63 = vsel %vm15792_vm5, 4294967295, %v20080_v63  ;;  %vm3209_vm10 = vmand %vm19149_vm14, %vm15761_vm12  ;;  %v11084_v35 = vpack.c.bf16 %v7566_v5, %v7566_v5  ;;  %7199 = vst.msk [vmem:[#allocation3 + $0x38] sm:$0xf] %vm20085_vm15, %v7014_v4  ;;  %vm20086_vm4 = vcmask 257152   ;;  %v20088_v9 = vld [vmem:[#allocation21_spill] sm:$0xff]  ;;  %v1288_v29 = vadd.s32 448, %v19411_v2  ;;  %7035 = vrot.lane.b32.xlu0 %v10984_v0, %s11357_s14  ;;  %v3619_v0 = vpop.permute.xlu0 %3618 }
 0x34c   :  { %20082 = vst [vmem:[#allocation25_spill] sm:$0xff] %v20081_v63  ;;  %v15806_v48 = vsel %vm3209_vm10, %v15474_v11, 0.0  ;;  %3034 = vst.msk [vmem:[#allocation3 + $0x40] sm:$0xf] %vm20086_vm4, %v2850_v32  ;;  %vm20087_vm10 = vcmp.lt.s32.totalorder %v20036_v51, 15  ;;  %vm20089_vm8 = vcmp.gt.s32.totalorder %v20088_v9, 0  ;;  %6332 = vrot.lane.b32.xlu1 %v10921_v52, %s11356_s13  ;;  %v2852_v52 = vpop.permute.xlu1 %2851 }
 0x34d   :  { %20084 = vst [vmem:[#allocation24_spill] sm:$0xff] %v15806_v48  ;;  %v6762_v11 = vsel %vm20087_vm10, %v15799_v12, 0.0  ;;  %v2597_v28 = vsel %vm20089_vm8, %v15546_v60, 0.0  ;;  %vm7375_vm14 = vmand %vm19152_vm9, %vm15761_vm12  ;;  %vm20090_vm4 = vcmask 125952   ;;  %v1289_v59 = vadd.s32 456, %v19411_v2  ;;  %v1784_v5 = vld [vmem:[#allocation2 + $0x147] sm:$0xff] }
 0x34e   :  { %7886 = vst.msk [vmem:[#allocation3 + $0x1b4] sm:$0xf] %vm20090_vm4, %v11084_v35  ;;  %v7567_v51 = vsel %vm7375_vm14, %v15811_v25, 0.0  ;;  %vm20091_vm8 = vcmp.gt.s32.totalorder %v15478_v17, 0  ;;  %v1416_v4 = vshra.s32 %v1288_v29, 4  ;;  %v1352_v32 = vand.u32 15, %v1288_v29 }
 0x34f   :  { %vm15836_vm15 = vmand %vm20091_vm8, %vm15579_vm2  ;;  %v11085_v7 = vpack.c.bf16 %v7567_v51, %v7567_v51  ;;  %v10985_v63 = vpack.c.bf16 %v6762_v11, %v6762_v11  ;;  %v10602_v35 = vpack.c.bf16 %v2597_v28, %v2597_v28  ;;  %v1417_v48 = vshra.s32 %v1289_v59, 4  ;;  %v4324_v60 = vpop.permute.xlu0 %4323  ;;  %v20195_v21 = vld [vmem:[#allocation5_spill] sm:$0xff] }
 0x350   :  { %v1353_v57 = vand.u32 15, %v1289_v59  ;;  %vm20094_vm12 = vcmask 257152   ;;  %vm20095_vm14 = vcmask 388352   ;;  %vm20097_vm10 = vcmp.gt.s32.totalorder %v20096_v33, 0  ;;  %v7902_v59 = vld [vmem:[#allocation3 + $0x30] sm:$0xff] }
 0x351   :  { %3035 = vst.msk [vmem:[#allocation3 + $0x48] sm:$0xf] %vm20094_vm12, %v2852_v52  ;;  %v2598_v17 = vsel %vm20097_vm10, %v15590_v43, 0.0  ;;  %v15846_v61 = vand.u32 15, %v1416_v4  ;;  %vm15848_vm8 = vcmp.gt.s32.totalorder %v1352_v32, 0  ;;  %v2040_v28 = vsel %vm15836_vm15, %v1784_v5, 0.0  ;;  %7037 = vrot.lane.b32.xlu1 %v10985_v63, %s11357_s14  ;;  %2873 = vrot.lane.b32.xlu0 %v10602_v35, %s11351_s0 }
 0x352   :  { %3803 = vst.msk [vmem:[#allocation3 + $0x40] sm:$0xf] %vm20095_vm14, %v3619_v0  ;;  %v15856_v11 = vand.u32 15, %v1417_v48  ;;  %vm15858_vm12 = vcmp.lt.s32.totalorder %v1353_v57, 15  ;;  %v10558_v43 = vpack.c.bf16 %v2040_v28, %v2040_v28  ;;  %v15869_v63 = vld [vmem:[#allocation2 + $0x1e9] sm:$0xff]  ;;  %v3621_v48 = vpop.permute.xlu1 %3620  ;;  %v10603_v57 = vpack.c.bf16 %v2598_v17, %v2598_v17  ;;  %v20103_v4 = vld [vmem:[#allocation42_spill] sm:$0xff] }
 0x353   :  { %7887 = vst.msk [vmem:[#allocation3 + $0x1bc] sm:$0xf] %vm20090_vm4, %v11085_v7  ;;  %vm19154_vm14 = vcmp.gt.s32.totalorder %v15846_v61, 0  ;;  %v15866_v7 = vsel %vm15858_vm12, %v15811_v25, 0.0  ;;  %vm19156_vm15 = vcmp.lt.s32.totalorder %v15846_v61, 15  ;;  %v1785_v5 = vld [vmem:[#allocation2 + $0x14f] sm:$0xff]  ;;  %v10666_v32 = vpack.c.bf16 %v20103_v4, %v20103_v4 }
 0x354   :  { %20102 = vst [vmem:[#allocation7_spill] sm:$0xff] %v15866_v7  ;;  %v7903_v52 = vld [vmem:[#allocation3 + $0x38] sm:$0xff]  ;;  %v15877_v35 = vsel %vm19154_vm14, %v15666_v3, 0.0  ;;  %2361 = vst.msk [vmem:[#allocation3 + $0x140] sm:$0xf] %vm20090_vm4, %v10558_v43  ;;  %v20105_v17 = vmov 0 }
 0x355   :  { %v11208_v0 = vld [vmem:[#allocation3 + $0x34] ss:$8 sps:$4 sm:$0xff]   ;;  %20104 = vst [vmem:[#allocation21_spill] sm:$0xff] %v15877_v35  ;;  %vm15884_vm9 = vmand %vm19156_vm15, %vm15848_vm8  ;;  %vm20108_vm5 = vcmask 388352   ;;  %vm20109_vm2 = vcmask 519552   ;;  %v10352_v28 = vcombine.low %v7902_v59, %v7903_v52  ;;  %vm20112_vm4 = vcmp.gt.s32.totalorder %v15856_v11, 0  ;;  %2875 = vrot.lane.b32.xlu1 %v10603_v57, %s11351_s0  ;;  %3642 = vrot.lane.b32.xlu0 %v10666_v32, %s11352_s1 }
 0x356   :  { %v20106_v17 = vsel %vm15884_vm9, 4294967295, %v20105_v17  ;;  %3804 = vst.msk [vmem:[#allocation3 + $0x48] sm:$0xf] %vm20108_vm5, %v3621_v48  ;;  %v20110_v4 = vld [vmem:[#allocation23_spill] sm:$0xff]  ;;  %vm3211_vm14 = vmand %vm20112_vm4, %vm15858_vm12  ;;  %v20113_v43 = vld [vmem:[#allocation72_spill] sm:$0xff]  ;;  %vm20116_vm15 = vcmask 650752  }
 0x357   :  { %20107 = vst [vmem:[#allocation41_spill] sm:$0xff] %v20106_v17  ;;  %4508 = vst.msk [vmem:[#allocation3 + $0x40] sm:$0xf] %vm20109_vm2, %v4324_v60  ;;  %vm20111_vm10 = vnez %v20110_v4  ;;  %v20115_v7 = vld [vmem:[#allocation73_spill] sm:$0xff]  ;;  %v15903_v59 = vld [vmem:[#allocation2 + $0xc7] sm:$0xff]  ;;  %v15906_v48 = vsel %vm3211_vm14, %v15694_v30, 0.0  ;;  %v6311_v17 = vpop.permute.xlu0 %6310 }
 0x358   :  { %v4071_v3 = vsel %vm20111_vm10, %v15716_v20, 0.0  ;;  %vm20114_vm7 = vmmov %vm20109_vm2  ;;  %5021 = vst.msk [vmem:[#allocation3 + $0x40] sm:$0xf] %vm20116_vm15, %v20115_v7  ;;  %vm20118_vm2 = vcmp.lt.s32.totalorder %v15846_v61, 15  ;;  %v20119_v60 = vld [vmem:[#allocation76_spill] sm:$0xff]  ;;  %v20121_v52 = vld [vmem:[#allocation77_spill] sm:$0xff] }
 0x359   :  { %4509 = vst.msk [vmem:[#allocation3 + $0x48] sm:$0xf] %vm20114_vm7, %v20113_v43  ;;  %20117 = vst [vmem:[#allocation42_spill] sm:$0xff] %v15906_v48  ;;  %v7568_v20 = vsel %vm20118_vm2, %v15869_v63, 0.0  ;;  %vm20122_vm7 = vcmask 781952   ;;  %v20124_v7 = vld [vmem:[#allocation33_spill] sm:$0xff]  ;;  %v5544_v43 = vpop.permute.xlu1 %5543  ;;  %v10730_v48 = vpack.c.bf16 %v4071_v3, %v4071_v3 }
 0x35a   :  { %vm20120_vm5 = vmmov %vm20116_vm15  ;;  %5726 = vst.msk [vmem:[#allocation3 + $0x40] sm:$0xf] %vm20122_vm7, %v20121_v52  ;;  %vm20123_vm15 = vcmask 130048   ;;  %v10667_v57 = vpack.c.bf16 %v20124_v7, %v20124_v7  ;;  %v11086_v32 = vpack.c.bf16 %v7568_v20, %v7568_v20  ;;  %vm20125_vm10 = vcmp.gt.s32.totalorder %v15488_v36, 0  ;;  %v15920_v4 = vld [vmem:[#allocation2 + $0x1f1] sm:$0xff]  ;;  %v15937_v3 = vld [vmem:[#allocation2 + $0xc8] sm:$0xff] }
 0x35b   :  { %5022 = vst.msk [vmem:[#allocation3 + $0x48] sm:$0xf] %vm20120_vm5, %v20119_v60  ;;  %10422 = vmatprep.mubr.msk.bf16.mxu0 %vm20123_vm15, %v11208_v0  ;;  %v2041_v30 = vsel %vm20125_vm10, %v1785_v5, 0.0  ;;  %vm19162_vm14 = vcmp.lt.s32.totalorder %v15856_v11, 15  ;;  %v1290_v60 = vadd.s32 464, %v19411_v2  ;;  %vm20126_vm4 = vmmov %vm20122_vm7  ;;  %vm20127_vm2 = vcmask 913152   ;;  %4347 = vrot.lane.b32.xlu0 %v10730_v48, %s11354_s3 }
 0x35c   :  { %8473 = vmatmul.mubr.bf16.gmra.mxu0 %v10352_v28  ;;  %v10559_v35 = vpack.c.bf16 %v2041_v30, %v2041_v30  ;;  %5727 = vst.msk [vmem:[#allocation3 + $0x48] sm:$0xf] %vm20126_vm4, %v5544_v43  ;;  %v20128_v0 = vld [vmem:[#allocation43_spill] sm:$0xff]  ;;  %vm20130_vm7 = vcmask 125952   ;;  %vm7377_vm15 = vmand %vm19162_vm14, %vm15858_vm12  ;;  %v1291_v5 = vadd.s32 472, %v19411_v2  ;;  %3644 = vrot.lane.b32.xlu1 %v10667_v57, %s11352_s1  ;;  %v5803_v28 = vld [vmem:[#allocation2 + $0xcf] sm:$0xff] }
 0x35d   :  { %6495 = vst.msk [vmem:[#allocation3 + $0x40] sm:$0xf] %vm20127_vm2, %v6311_v17  ;;  %vm20129_vm5 = vnez %v20128_v0  ;;  %vm20131_vm10 = vmmov %vm20130_vm7  ;;  %v7569_v17 = vsel %vm7377_vm15, %v15920_v4, 0.0  ;;  %v1418_v52 = vshra.s32 %v1290_v60, 4  ;;  %v1354_v30 = vand.u32 15, %v1290_v60  ;;  %v1796_v43 = vld [vmem:[#allocation2 + $0x1a7] sm:$0xff]  ;;  %v6313_v48 = vpop.permute.xlu1 %6312  ;;  %v7016_v0 = vpop.permute.xlu0 %7015 }
 0x35e   :  { %v6058_v20 = vsel %vm20129_vm5, %v15903_v59, 0.0  ;;  %7888 = vst.msk [vmem:[#allocation3 + $0x1c4] sm:$0xf] %vm20130_vm7, %v11086_v32  ;;  %v11087_v7 = vpack.c.bf16 %v7569_v17, %v7569_v17  ;;  %v1419_v32 = vshra.s32 %v1291_v5, 4  ;;  %v1355_v51 = vand.u32 15, %v1291_v5  ;;  %v20135_v36 = vld [vmem:[#allocation22_spill] sm:$0xff] }
 0x35f   :  { %2362 = vst.msk [vmem:[#allocation3 + $0x148] sm:$0xf] %vm20131_vm10, %v10559_v35  ;;  %vm20132_vm12 = vcmp.gt.s32.totalorder %v15600_v14, 0  ;;  %v10859_v35 = vpack.c.bf16 %v20135_v36, %v20135_v36  ;;  %v10922_v26 = vpack.c.bf16 %v6058_v20, %v6058_v20  ;;  %v15951_v10 = vand.u32 15, %v1418_v52  ;;  %v15969_v20 = vld [vmem:[#allocation2 + $0xd0] sm:$0xff] }
 0x360   :  { %vm15945_vm4 = vmand %vm20132_vm12, %vm15662_vm6  ;;  %6496 = vst.msk [vmem:[#allocation3 + $0x48] sm:$0xf] %vm20127_vm2, %v6313_v48  ;;  %vm20136_vm5 = vcmask 1044352   ;;  %vm20137_vm7 = vcmp.lt.s32.totalorder %v20096_v33, 15  ;;  %vm20138_vm15 = vcmp.lt.s32.totalorder %v20088_v9, 15  ;;  %v15961_v17 = vand.u32 15, %v1419_v32 }
 0x361   :  { %7200 = vst.msk [vmem:[#allocation3 + $0x40] sm:$0xf] %vm20136_vm5, %v7016_v0  ;;  %v6059_v60 = vsel %vm20137_vm7, %v5803_v28, 0.0  ;;  %v6763_v5 = vsel %vm20138_vm15, %v15937_v3, 0.0  ;;  %vm15963_vm12 = vcmp.lt.s32.totalorder %v1355_v51, 15  ;;  %5567 = vrot.lane.b32.xlu1 %v10859_v35, %s11355_s17  ;;  %6334 = vrot.lane.b32.xlu0 %v10922_v26, %s11356_s13  ;;  %vm19163_vm2 = vcmp.gt.s32.totalorder %v15951_v10, 0  ;;  %v7018_v51 = vpop.permute.xlu1 %7017 }
 0x362   :  { %7889 = vst.msk [vmem:[#allocation3 + $0x1cc] sm:$0xf] %vm20131_vm10, %v11087_v7  ;;  %v2052_v9 = vsel %vm15945_vm4, %v1796_v43, 0.0  ;;  %v15977_v28 = vsel %vm15963_vm12, %v15920_v4, 0.0  ;;  %vm19164_vm5 = vcmp.gt.s32.totalorder %v15961_v17, 0  ;;  %v15983_v52 = vsel %vm19163_vm2, %v15773_v46, 0.0  ;;  %v2854_v43 = vpop.permute.xlu0 %2853 }
 0x363   :  { %20141 = vst [vmem:[#allocation23_spill] sm:$0xff] %v15977_v28  ;;  %20142 = vst [vmem:[#allocation72_spill] sm:$0xff] %v15983_v52  ;;  %vm15985_vm7 = vcmp.gt.s32.totalorder %v1354_v30, 0  ;;  %v15989_v7 = vld [vmem:[#allocation2 + $0x1f9] sm:$0xff]  ;;  %v1797_v32 = vld [vmem:[#allocation2 + $0x1af] sm:$0xff]  ;;  %v10923_v57 = vpack.c.bf16 %v6059_v60, %v6059_v60  ;;  %v10986_v48 = vpack.c.bf16 %v6763_v5, %v6763_v5  ;;  %v10570_v0 = vpack.c.bf16 %v2052_v9, %v2052_v9 }
 0x364   :  { %vm3213_vm4 = vmand %vm19164_vm5, %vm15963_vm12  ;;  %v15995_v35 = vld [vmem:[#allocation2 + $0x1f7] sm:$0xff]  ;;  %v15997_v46 = vld [vmem:[#allocation2 + $0x1ff] sm:$0xff]  ;;  %vm20145_vm15 = vcmask 1044352   ;;  %vm20146_vm10 = vcmask 257152   ;;  %vm20147_vm14 = vcmp.lt.s32.totalorder %v20096_v33, 15  ;;  %vm19165_vm5 = vcmp.lt.s32.totalorder %v15951_v10, 15 }
 0x365   :  { %7201 = vst.msk [vmem:[#allocation3 + $0x48] sm:$0xf] %vm20145_vm15, %v7018_v51  ;;  %v6764_v30 = vsel %vm20147_vm14, %v15969_v20, 0.0  ;;  %v20148_v60 = vld [vmem:[#allocation34_spill] sm:$0xff]  ;;  %v16008_v28 = vsel %vm3213_vm4, %v15811_v25, 0.0  ;;  %v16011_v9 = vld [vmem:[#allocation2 + $0x201] sm:$0xff]  ;;  %6336 = vrot.lane.b32.xlu1 %v10923_v57, %s11356_s13  ;;  %7039 = vrot.lane.b32.xlu0 %v10986_v48, %s11357_s14  ;;  %vm5904_vm14 = vmand %vm19165_vm5, %vm15985_vm7  ;;  %v2856_v48 = vpop.permute.xlu1 %2855 }
 0x366   :  { %3036 = vst.msk [vmem:[#allocation3 + $0x50] sm:$0xf] %vm20146_vm10, %v2854_v43  ;;  %vm20149_vm2 = vcmp.gt.s32.totalorder %v20148_v60, 0  ;;  %20150 = vst [vmem:[#allocation73_spill] sm:$0xff] %v16008_v28  ;;  %vm20151_vm15 = vcmask 125952   ;;  %v7570_v33 = vsel %vm19165_vm5, %v15989_v7, 0.0 }
 0x367   :  { %v2599_v5 = vsel %vm20149_vm2, %v15747_v42, 0.0  ;;  %2373 = vst.msk [vmem:[#allocation3 + $0x1a0] sm:$0xf] %vm20151_vm15, %v10570_v0  ;;  %vm20152_vm2 = vcmp.gt.s32.totalorder %v15602_v1, 0  ;;  %vm19172_vm4 = vcmp.lt.s32.totalorder %v15961_v17, 15  ;;  %v16027_v25 = vsel %vm5904_vm14, %v15995_v35, 0.0  ;;  %v3623_v0 = vpop.permute.xlu0 %3622 }
 0x368   :  { %v2053_v42 = vsel %vm20152_vm2, %v1797_v32, 0.0  ;;  %20153 = vst [vmem:[#allocation76_spill] sm:$0xff] %v16027_v25  ;;  %v11088_v51 = vpack.c.bf16 %v7570_v33, %v7570_v33  ;;  %v16032_v57 = vsel %vm19172_vm4, %v15997_v46, 0.0  ;;  %vm7379_vm10 = vmand %vm19172_vm4, %vm15963_vm12  ;;  %v10987_v32 = vpack.c.bf16 %v6764_v30, %v6764_v30  ;;  %v20157_v33 = vld [vmem:[#allocation27_spill] sm:$0xff]  ;;  %v11210_v1 = vld [vmem:[#allocation3 + $0x44] ss:$8 sps:$4 sm:$0xff]  }
 0x369   :  { %v10571_v43 = vpack.c.bf16 %v2053_v42, %v2053_v42  ;;  %20154 = vst [vmem:[#allocation77_spill] sm:$0xff] %v16032_v57  ;;  %v10604_v28 = vpack.c.bf16 %v2599_v5, %v2599_v5  ;;  %v7571_v52 = vsel %vm7379_vm10, %v16011_v9, 0.0  ;;  %vm20155_vm15 = vcmask 257152   ;;  %v20161_v5 = vld [vmem:[#allocation28_spill] sm:$0xff] }
 0x36a   :  { %3037 = vst.msk [vmem:[#allocation3 + $0x58] sm:$0xf] %vm20155_vm15, %v2856_v48  ;;  %vm20156_vm14 = vcmask 388352   ;;  %vm20158_vm2 = vcmp.gt.s32.totalorder %v20157_v33, 0  ;;  %vm20159_vm5 = vcmask 125952   ;;  %v11089_v36 = vpack.c.bf16 %v7571_v52, %v7571_v52  ;;  %7041 = vrot.lane.b32.xlu1 %v10987_v32, %s11357_s14 }
 0x36b   :  { %3805 = vst.msk [vmem:[#allocation3 + $0x50] sm:$0xf] %vm20156_vm14, %v3623_v0  ;;  %v2600_v42 = vsel %vm20158_vm2, %v15799_v12, 0.0  ;;  %vm20160_vm9 = vmmov %vm20159_vm5  ;;  %v1292_v57 = vadd.s32 480, %v19411_v2  ;;  %2877 = vrot.lane.b32.xlu0 %v10604_v28, %s11351_s0  ;;  %v1293_v30 = vadd.s32 488, %v19411_v2  ;;  %v10668_v48 = vpack.c.bf16 %v20161_v5, %v20161_v5  ;;  %v7904_v0 = vld [vmem:[#allocation3 + $0x40] sm:$0xff]  ;;  %v4328_v14 = vpop.permute.xlu0 %4327 }
 0x36c   :  { %7890 = vst.msk [vmem:[#allocation3 + $0x1d4] sm:$0xf] %vm20159_vm5, %v11088_v51  ;;  %vm20162_vm12 = vmmov %vm20159_vm5  ;;  %v3625_v51 = vpop.permute.xlu1 %3624  ;;  %v7905_v52 = vld [vmem:[#allocation3 + $0x48] sm:$0xff]  ;;  %v16054_v32 = vadd.s32 496, %v19411_v2  ;;  %vm20164_vm5 = vcmask 519552   ;;  %vm20172_vm2 = vcmask 650752  }
 0x36d   :  { %2374 = vst.msk [vmem:[#allocation3 + $0x1a8] sm:$0xf] %vm20160_vm9, %v10571_v43  ;;  %v1420_v12 = vshra.s32 %v1292_v57, 4  ;;  %v1356_v25 = vand.u32 15, %v1292_v57  ;;  %v10605_v43 = vpack.c.bf16 %v2600_v42, %v2600_v42  ;;  %v1421_v39 = vshra.s32 %v1293_v30, 4  ;;  %vm20163_vm9 = vmmov %vm20156_vm14  ;;  %v20165_v5 = vld [vmem:[#allocation29_spill] sm:$0xff] }
 0x36e   :  { %7891 = vst.msk [vmem:[#allocation3 + $0x1dc] sm:$0xf] %vm20162_vm12, %v11089_v36  ;;  %v1357_v47 = vand.u32 15, %v1293_v30  ;;  %v10354_v28 = vcombine.low %v7904_v0, %v7905_v52  ;;  %vm20166_vm10 = vnez %v20165_v5  ;;  %vm20170_vm14 = vmmov %vm20164_vm5  ;;  %v20171_v30 = vld [vmem:[#allocation80_spill] sm:$0xff] }
 0x36f   :  { %3806 = vst.msk [vmem:[#allocation3 + $0x58] sm:$0xf] %vm20163_vm9, %v3625_v51  ;;  %v4073_v36 = vsel %vm20166_vm10, %v15903_v59, 0.0  ;;  %v16061_v57 = vand.u32 15, %v1420_v12  ;;  %vm16063_vm15 = vcmp.gt.s32.totalorder %v1356_v25, 0  ;;  %2879 = vrot.lane.b32.xlu1 %v10605_v43, %s11351_s0  ;;  %3646 = vrot.lane.b32.xlu0 %v10668_v48, %s11352_s1  ;;  %v16075_v0 = vand.u32 15, %v1421_v39  ;;  %vm20177_vm9 = vmmov %vm20172_vm2  ;;  %v6315_v5 = vpop.permute.xlu0 %6314 }
 0x370   :  { %4510 = vst.msk [vmem:[#allocation3 + $0x50] sm:$0xf] %vm20164_vm5, %v4328_v14  ;;  %v16073_v14 = vld [vmem:[#allocation2 + $0xd7] sm:$0xff]  ;;  %vm16077_vm12 = vcmp.lt.s32.totalorder %v1357_v47, 15  ;;  %v16084_v25 = vsel %vm16063_vm15, %v15995_v35, 0.0  ;;  %v20178_v12 = vld [vmem:[#allocation84_spill] sm:$0xff]  ;;  %v5548_v52 = vpop.permute.xlu1 %5547 }
 0x371   :  { %4511 = vst.msk [vmem:[#allocation3 + $0x58] sm:$0xf] %vm20170_vm14, %v20169_v22  ;;  %20175 = vst [vmem:[#allocation33_spill] sm:$0xff] %v16084_v25  ;;  %v20176_v22 = vld [vmem:[#allocation83_spill] sm:$0xff]  ;;  %vm20179_vm5 = vcmask 781952   ;;  %vm20180_vm10 = vcmask 130048  }
 0x372   :  { %5023 = vst.msk [vmem:[#allocation3 + $0x50] sm:$0xf] %vm20172_vm2, %v20171_v30  ;;  %10423 = vmatprep.mubr.msk.bf16.mxu0 %vm20180_vm10, %v11210_v1  ;;  %v20181_v48 = vld [vmem:[#allocation44_spill] sm:$0xff]  ;;  %vm19174_vm14 = vcmp.gt.s32.totalorder %v16061_v57, 0  ;;  %v16097_v47 = vsel %vm16077_vm12, %v16011_v9, 0.0  ;;  %vm19180_vm2 = vcmp.lt.s32.totalorder %v16061_v57, 15  ;;  %v10732_v30 = vpack.c.bf16 %v4073_v36, %v4073_v36 }
 0x373   :  { %5024 = vst.msk [vmem:[#allocation3 + $0x58] sm:$0xf] %vm20177_vm9, %v20176_v22  ;;  %v10669_v39 = vpack.c.bf16 %v20181_v48, %v20181_v48  ;;  %20182 = vst [vmem:[#allocation43_spill] sm:$0xff] %v16097_v47  ;;  %v7316_v51 = vld [vmem:[#allocation2 + $0x209] sm:$0xff]  ;;  %v1798_v43 = vld [vmem:[#allocation2 + $0x1b7] sm:$0xff]  ;;  %vm20183_vm9 = vcmp.gt.s32.totalorder %v15749_v45, 0  ;;  %8481 = vmatmul.mubr.bf16.gmra.mxu0 %v10354_v28  ;;  %v10861_v45 = vpack.c.bf16 %v20195_v21, %v20195_v21 }
 0x374   :  { %5728 = vst.msk [vmem:[#allocation3 + $0x50] sm:$0xf] %vm20179_vm5, %v20178_v12  ;;  %vm16104_vm5 = vmand %vm20183_vm9, %vm15751_vm3  ;;  %v16112_v22 = vsel %vm19174_vm14, %v15869_v63, 0.0  ;;  %v20187_v12 = vmov 0  ;;  %v1422_v48 = vshra.s32 %v16054_v32, 4  ;;  %vm20190_vm9 = vcmask 781952   ;;  %4351 = vrot.lane.b32.xlu0 %v10732_v30, %s11354_s3  ;;  %v7020_v30 = vpop.permute.xlu0 %7019 }
 0x375   :  { %20186 = vst [vmem:[#allocation22_spill] sm:$0xff] %v16112_v22  ;;  %vm16118_vm4 = vmand %vm19180_vm2, %vm16063_vm15  ;;  %vm20191_vm3 = vcmask 913152   ;;  %v20192_v28 = vld [vmem:[#allocation36_spill] sm:$0xff]  ;;  %vm20194_vm14 = vcmp.gt.s32.totalorder %v16075_v0, 0  ;;  %3648 = vrot.lane.b32.xlu1 %v10669_v39, %s11352_s1  ;;  %v16134_v63 = vld [vmem:[#allocation2 + $0xdf] sm:$0xff]  ;;  %v6317_v22 = vpop.permute.xlu1 %6316 }
 0x376   :  { %v20188_v12 = vsel %vm16118_vm4, 4294967295, %v20187_v12  ;;  %5729 = vst.msk [vmem:[#allocation3 + $0x58] sm:$0xf] %vm20190_vm9, %v5548_v52  ;;  %vm20193_vm10 = vnez %v20192_v28  ;;  %vm3215_vm6 = vmand %vm20194_vm14, %vm16077_vm12  ;;  %v16136_v47 = vld [vmem:[#allocation2 + $0xd8] sm:$0xff]  ;;  %vm20196_vm14 = vcmask 913152   ;;  %vm20199_vm9 = vcmp.lt.s32.totalorder %v20148_v60, 15 }
 0x377   :  { %20189 = vst [vmem:[#allocation34_spill] sm:$0xff] %v20188_v12  ;;  %6497 = vst.msk [vmem:[#allocation3 + $0x50] sm:$0xf] %vm20191_vm3, %v6315_v5  ;;  %v6060_v36 = vsel %vm20193_vm10, %v16073_v14, 0.0  ;;  %v16139_v52 = vsel %vm3215_vm6, %v15920_v4, 0.0  ;;  %v7572_v5 = vsel %vm19180_vm2, %v7316_v51, 0.0 }
 0x378   :  { %v7317_v28 = vld [vmem:[#allocation2 + $0x211] sm:$0xff]  ;;  %v2054_v12 = vsel %vm16104_vm5, %v1798_v43, 0.0  ;;  %v11090_v25 = vpack.c.bf16 %v7572_v5, %v7572_v5  ;;  %vm19182_vm3 = vcmp.lt.s32.totalorder %v16075_v0, 15  ;;  %v1799_v39 = vld [vmem:[#allocation2 + $0x1bf] sm:$0xff]  ;;  %v10924_v38 = vpack.c.bf16 %v6060_v36, %v6060_v36  ;;  %6498 = vst.msk [vmem:[#allocation3 + $0x58] sm:$0xf] %vm20196_vm14, %v6317_v22 }
 0x379   :  { %vm7381_vm6 = vmand %vm19182_vm3, %vm16077_vm12  ;;  %v16152_v4 = vand.u32 15, %v1422_v48  ;;  %vm20197_vm5 = vcmask 1044352   ;;  %vm20198_vm10 = vcmp.lt.s32.totalorder %v20157_v33, 15  ;;  %v6765_v21 = vsel %vm20199_vm9, %v16136_v47, 0.0  ;;  %5571 = vrot.lane.b32.xlu1 %v10861_v45, %s11355_s17  ;;  %v16165_v1 = vld [vmem:[#allocation2 + $0xe0] sm:$0xff] }
 0x37a   :  { %7202 = vst.msk [vmem:[#allocation3 + $0x50] sm:$0xf] %vm20197_vm5, %v7020_v30  ;;  %v6061_v51 = vsel %vm20198_vm10, %v16134_v63, 0.0  ;;  %vm20200_vm2 = vcmask 125952   ;;  %v7573_v59 = vsel %vm7381_vm6, %v7317_v28, 0.0  ;;  %v10572_v43 = vpack.c.bf16 %v2054_v12, %v2054_v12  ;;  %6338 = vrot.lane.b32.xlu0 %v10924_v38, %s11356_s13  ;;  %v2858_v12 = vpop.permute.xlu0 %2857 }
 0x37b   :  { %7892 = vst.msk [vmem:[#allocation3 + $0x1e4] sm:$0xf] %vm20200_vm2, %v11090_v25  ;;  %v11091_v22 = vpack.c.bf16 %v7573_v59, %v7573_v59  ;;  %vm19183_vm12 = vcmp.gt.s32.totalorder %v16152_v4, 0  ;;  %v1295_v48 = vadd.s32 504, %v19411_v2  ;;  %vm20201_vm14 = vcmp.gt.s32.totalorder %v15759_v16, 0  ;;  %vm20202_vm5 = vmmov %vm20200_vm2  ;;  %v7022_v25 = vpop.permute.xlu1 %7021  ;;  %v1800_v2 = vld [vmem:[#allocation2 + $0x1c7] sm:$0xff] }
 0x37c   :  { %v2055_v36 = vsel %vm20201_vm14, %v1799_v39, 0.0  ;;  %2375 = vst.msk [vmem:[#allocation3 + $0x1b0] sm:$0xf] %vm20202_vm5, %v10572_v43  ;;  %v16175_v60 = vsel %vm19183_vm12, %v15989_v7, 0.0  ;;  %v1358_v38 = vand.u32 15, %v16054_v32  ;;  %v10925_v5 = vpack.c.bf16 %v6061_v51, %v6061_v51  ;;  %v1801_v39 = vld [vmem:[#allocation2 + $0x1cf] sm:$0xff] }
 0x37d   :  { %20203 = vst [vmem:[#allocation27_spill] sm:$0xff] %v16175_v60  ;;  %v10573_v45 = vpack.c.bf16 %v2055_v36, %v2055_v36  ;;  %v10988_v28 = vpack.c.bf16 %v6765_v21, %v6765_v21  ;;  %7893 = vst.msk [vmem:[#allocation3 + $0x1ec] sm:$0xf] %vm20200_vm2, %v11091_v22  ;;  %v1423_v30 = vshra.s32 %v1295_v48, 4  ;;  %v1359_v59 = vand.u32 15, %v1295_v48  ;;  %v20208_v32 = vld [vmem:[#allocation45_spill] sm:$0xff] }
 0x37e   :  { %vm20204_vm6 = vcmp.gt.s32.totalorder %v15846_v61, 0  ;;  %vm20205_vm9 = vcmask 1044352   ;;  %vm20206_vm14 = vcmask 257152   ;;  %vm20207_vm5 = vcmp.lt.s32.totalorder %v20157_v33, 15  ;;  %6340 = vrot.lane.b32.xlu1 %v10925_v5, %s11356_s13  ;;  %v1802_v33 = vld [vmem:[#allocation2 + $0x1d7] sm:$0xff]  ;;  %v1805_v60 = vld [vmem:[#allocation2 + $0x1ef] sm:$0xff] }
 0x37f   :  { %vm1864_vm10 = vmand %vm20204_vm6, %vm15848_vm8  ;;  %7203 = vst.msk [vmem:[#allocation3 + $0x58] sm:$0xf] %vm20205_vm9, %v7022_v25  ;;  %v6766_v7 = vsel %vm20207_vm5, %v16165_v1, 0.0  ;;  %vm20209_vm2 = vcmp.gt.s32.totalorder %v20208_v32, 0  ;;  %vm20210_vm3 = vcmask 125952   ;;  %vm16192_vm12 = vcmp.gt.s32.totalorder %v1358_v38, 0  ;;  %7043 = vrot.lane.b32.xlu0 %v10988_v28, %s11357_s14  ;;  %v2860_v5 = vpop.permute.xlu1 %2859  ;;  %v3627_v28 = vpop.permute.xlu0 %3626 }
 0x380   :  { %3038 = vst.msk [vmem:[#allocation3 + $0x60] sm:$0xf] %vm20206_vm14, %v2858_v12  ;;  %v2601_v51 = vsel %vm20209_vm2, %v15937_v3, 0.0  ;;  %v20211_v21 = vmov 0  ;;  %v16198_v43 = vand.u32 15, %v1423_v30  ;;  %vm16200_vm6 = vcmp.lt.s32.totalorder %v1359_v59, 15 }
 0x381   :  { %2376 = vst.msk [vmem:[#allocation3 + $0x1b8] sm:$0xf] %vm20210_vm3, %v10573_v45  ;;  %v20212_v21 = vsel %vm16192_vm12, 4294967295, %v20211_v21  ;;  %vm20216_vm9 = vcmp.gt.s32.totalorder %v15951_v10, 0  ;;  %v20219_v48 = vld [vmem:[#allocation37_spill] sm:$0xff]  ;;  %v2056_v45 = vsel %vm1864_vm10, %v1800_v2, 0.0  ;;  %v10989_v30 = vpack.c.bf16 %v6766_v7, %v6766_v7 }
 0x382   :  { %20213 = vst [vmem:[#allocation28_spill] sm:$0xff] %v20212_v21  ;;  %vm16208_vm3 = vmand %vm20216_vm9, %vm15985_vm7  ;;  %vm20220_vm14 = vcmp.gt.s32.totalorder %v20219_v48, 0  ;;  %vm20221_vm5 = vcmp.gt.s32.totalorder %v15856_v11, 0  ;;  %v1803_v25 = vld [vmem:[#allocation2 + $0x1df] sm:$0xff]  ;;  %vm20222_vm2 = vcmp.gt.s32.totalorder %v16061_v57, 0  ;;  %v10606_v59 = vpack.c.bf16 %v2601_v51, %v2601_v51  ;;  %v1804_v2 = vld [vmem:[#allocation2 + $0x1e7] sm:$0xff] }
 0x383   :  { %v2602_v36 = vsel %vm20220_vm14, %v15969_v20, 0.0  ;;  %v2057_v38 = vsel %vm20221_vm5, %v1801_v39, 0.0  ;;  %vm16221_vm4 = vmand %vm20222_vm2, %vm16063_vm15  ;;  %vm19186_vm9 = vcmp.gt.s32.totalorder %v16198_v43, 0  ;;  %v10574_v20 = vpack.c.bf16 %v2056_v45, %v2056_v45  ;;  %7045 = vrot.lane.b32.xlu1 %v10989_v30, %s11357_s14  ;;  %v20233_v21 = vld [vmem:[#allocation32_spill] sm:$0xff]  ;;  %v4332_v30 = vpop.permute.xlu0 %4331 }
 0x384   :  { %vm20225_vm10 = vcmp.gt.s32.totalorder %v16152_v4, 0  ;;  %vm20228_vm15 = vcmask 257152   ;;  %vm20229_vm5 = vcmask 388352   ;;  %vm3217_vm2 = vmand %vm19186_vm9, %vm16200_vm6  ;;  %v10575_v39 = vpack.c.bf16 %v2057_v38, %v2057_v38  ;;  %2881 = vrot.lane.b32.xlu0 %v10606_v59, %s11351_s0  ;;  %v7906_v59 = vld [vmem:[#allocation3 + $0x50] sm:$0xff] }
 0x385   :  { %vm16230_vm14 = vmand %vm20225_vm10, %vm16192_vm12  ;;  %3039 = vst.msk [vmem:[#allocation3 + $0x68] sm:$0xf] %vm20228_vm15, %v2860_v5  ;;  %v2058_v7 = vsel %vm16208_vm3, %v1802_v33, 0.0  ;;  %v10607_v51 = vpack.c.bf16 %v2602_v36, %v2602_v36  ;;  %v16245_v45 = vsel %vm3217_vm2, %v16011_v9, 0.0  ;;  %vm20231_vm10 = vcmask 125952   ;;  %v3629_v9 = vpop.permute.xlu1 %3628 }
 0x386   :  { %3807 = vst.msk [vmem:[#allocation3 + $0x60] sm:$0xf] %vm20229_vm5, %v3627_v28  ;;  %20230 = vst [vmem:[#allocation29_spill] sm:$0xff] %v16245_v45  ;;  %v10576_v5 = vpack.c.bf16 %v2058_v7, %v2058_v7  ;;  %vm20232_vm15 = vcmp.gt.s32.totalorder %v15961_v17, 0  ;;  %v10670_v38 = vpack.c.bf16 %v20233_v21, %v20233_v21  ;;  %v2060_v3 = vsel %vm16221_vm4, %v1804_v2, 0.0  ;;  %v20239_v2 = vld [vmem:[#allocation6_spill] sm:$0xff] }
 0x387   :  { %2377 = vst.msk [vmem:[#allocation3 + $0x1c0] sm:$0xf] %vm20231_vm10, %v10574_v20  ;;  %v2059_v28 = vsel %vm20232_vm15, %v1803_v25, 0.0  ;;  %vm20234_vm5 = vmmov %vm20231_vm10  ;;  %vm20235_vm3 = vcmp.gt.s32.totalorder %v16075_v0, 0  ;;  %v7907_v20 = vld [vmem:[#allocation3 + $0x58] sm:$0xff]  ;;  %v10578_v25 = vpack.c.bf16 %v2060_v3, %v2060_v3  ;;  %v2062_v21 = vsel %vm16230_vm14, %v15995_v35, 0.0  ;;  %2883 = vrot.lane.b32.xlu1 %v10607_v51, %s11351_s0  ;;  %v6319_v51 = vpop.permute.xlu0 %6318 }
 0x388   :  { %2378 = vst.msk [vmem:[#allocation3 + $0x1c8] sm:$0xf] %vm20234_vm5, %v10575_v39  ;;  %v10577_v33 = vpack.c.bf16 %v2059_v28, %v2059_v28  ;;  %v2061_v36 = vsel %vm20235_vm3, %v1805_v60, 0.0  ;;  %v11212_v7 = vld [vmem:[#allocation3 + $0x54] ss:$8 sps:$4 sm:$0xff]   ;;  %vm20236_vm2 = vmmov %vm20234_vm5  ;;  %v2063_v12 = vsel %vm19186_vm9, %v15997_v46, 0.0  ;;  %v10356_v60 = vcombine.low %v7906_v59, %v7907_v20  ;;  %3650 = vrot.lane.b32.xlu0 %v10670_v38, %s11352_s1 }
 0x389   :  { %2379 = vst.msk [vmem:[#allocation3 + $0x1d0] sm:$0xf] %vm20236_vm2, %v10576_v5  ;;  %v10579_v45 = vpack.c.bf16 %v2061_v36, %v2061_v36  ;;  %vm20237_vm4 = vcmask 388352   ;;  %vm20238_vm10 = vcmask 519552   ;;  %vm20240_vm15 = vnez %v20239_v2  ;;  %vm20241_vm5 = vmmov %vm20236_vm2  ;;  %v20242_v3 = vld [vmem:[#allocation87_spill] sm:$0xff]  ;;  %v20244_v35 = vld [vmem:[#allocation88_spill] sm:$0xff]  ;;  %v5552_v42 = vpop.permute.xlu1 %5551 }
 0x38a   :  { %3808 = vst.msk [vmem:[#allocation3 + $0x68] sm:$0xf] %vm20237_vm4, %v3629_v9  ;;  %v4075_v39 = vsel %vm20240_vm15, %v16073_v14, 0.0  ;;  %v10580_v5 = vpack.c.bf16 %v2062_v21, %v2062_v21  ;;  %v10581_v28 = vpack.c.bf16 %v2063_v12, %v2063_v12  ;;  %vm20243_vm3 = vmmov %vm20238_vm10  ;;  %vm20245_vm14 = vcmask 650752   ;;  %v20247_v46 = vld [vmem:[#allocation91_spill] sm:$0xff]  ;;  %v20249_v14 = vld [vmem:[#allocation92_spill] sm:$0xff] }
 0x38b   :  { %4512 = vst.msk [vmem:[#allocation3 + $0x60] sm:$0xf] %vm20238_vm10, %v4332_v30  ;;  %vm20246_vm4 = vmmov %vm20236_vm2  ;;  %vm20250_vm15 = vcmask 781952   ;;  %v20254_v38 = vld [vmem:[#allocation31_spill] sm:$0xff]  ;;  %v10734_v36 = vpack.c.bf16 %v4075_v39, %v4075_v39  ;;  %v7024_v9 = vpop.permute.xlu0 %7023  ;;  %v10735_v30 = vpack.c.bf16 %v16134_v63, %v16134_v63  ;;  %v10798_v59 = vpack.c.bf16 %v16136_v47, %v16136_v47  ;;  %v11312_v12 = vld [vmem:[#allocation2 + $0xd9] sm:$0xff] }
 0x38c   :  { %2380 = vst.msk [vmem:[#allocation3 + $0x1d8] sm:$0xf] %vm20241_vm5, %v10577_v33  ;;  %vm20248_vm10 = vmmov %vm20245_vm14  ;;  %vm20251_vm5 = vcmask 130048   ;;  %v10671_v33 = vpack.c.bf16 %v20254_v38, %v20254_v38  ;;  %v5806_v20 = vld [vmem:[#allocation2 + $0xe7] sm:$0xff]  ;;  %v10799_v21 = vpack.c.bf16 %v16165_v1, %v16165_v1  ;;  %v20261_v63 = vld [vmem:[#allocation26_spill] sm:$0xff] }
 0x38d   :  { %4513 = vst.msk [vmem:[#allocation3 + $0x68] sm:$0xf] %vm20243_vm3, %v20242_v3  ;;  %10424 = vmatprep.mubr.msk.bf16.mxu0 %vm20251_vm5, %v11212_v7  ;;  %vm20252_vm3 = vmmov %vm20236_vm2  ;;  %4355 = vrot.lane.b32.xlu0 %v10734_v36, %s11354_s3  ;;  %vm20262_vm5 = vnez %v20261_v63  ;;  %v16307_v39 = vld [vmem:[#allocation2 + $0xef] sm:$0xff] }
 0x38e   :  { %5025 = vst.msk [vmem:[#allocation3 + $0x60] sm:$0xf] %vm20245_vm14, %v20244_v35  ;;  %vm20253_vm9 = vmmov %vm20236_vm2  ;;  %8489 = vmatmul.mubr.bf16.gmra.mxu0 %v10356_v60  ;;  %3652 = vrot.lane.b32.xlu1 %v10671_v33, %s11352_s1  ;;  %v10862_v60 = vpack.c.bf16 %v11312_v12, %v11312_v12  ;;  %v6062_v2 = vsel %vm20262_vm5, %v5806_v20, 0.0  ;;  %v20263_v35 = vld [vmem:[#allocation39_spill] sm:$0xff]  ;;  %v16323_v38 = vld [vmem:[#allocation2 + $0xf0] sm:$0xff] }
 0x38f   :  { %2381 = vst.msk [vmem:[#allocation3 + $0x1e0] sm:$0xf] %vm20236_vm2, %v10578_v25  ;;  %vm20255_vm14 = vmmov %vm20250_vm15  ;;  %vm20256_vm2 = vcmask 913152   ;;  %v2862_v25 = vpop.permute.xlu0 %2861  ;;  %v20275_v63 = vld [vmem:[#allocation96_spill] sm:$0xff] }
 0x390   :  { %2382 = vst.msk [vmem:[#allocation3 + $0x1e8] sm:$0xf] %vm20246_vm4, %v10579_v45  ;;  %v6321_v45 = vpop.permute.xlu1 %6320  ;;  %vm20258_vm4 = vcmask 1044352  }
 0x391   :  { %5026 = vst.msk [vmem:[#allocation3 + $0x68] sm:$0xf] %vm20248_vm10, %v20247_v46  ;;  %4868 = vrot.lane.b32.xlu0 %v10798_v59, %s11353_s2  ;;  %vm20259_vm10 = vmmov %vm20258_vm4  ;;  %v10863_v46 = vpack.c.bf16 %v20263_v35, %v20263_v35 }
 0x392   :  { %5730 = vst.msk [vmem:[#allocation3 + $0x60] sm:$0xf] %vm20250_vm15, %v20249_v14  ;;  %4357 = vrot.lane.b32.xlu1 %v10735_v30, %s11354_s3  ;;  %vm20260_vm15 = vcmask 257152   ;;  %v10926_v14 = vpack.c.bf16 %v6062_v2, %v6062_v2  ;;  %v20277_v2 = vld [vmem:[#allocation99_spill] sm:$0xff] }
 0x393   :  { %2383 = vst.msk [vmem:[#allocation3 + $0x1f0] sm:$0xf] %vm20252_vm3, %v10580_v5  ;;  %v16309_v5 = vld [vmem:[#allocation2 + $0xe8] sm:$0xff]  ;;  %v3631_v3 = vpop.permute.xlu0 %3630  ;;  %vm20264_vm3 = vmmov %vm20260_vm15 }
 0x394   :  { %2384 = vst.msk [vmem:[#allocation3 + $0x1f8] sm:$0xf] %vm20253_vm9, %v10581_v28  ;;  %vm20257_vm9 = vmmov %vm20256_vm2  ;;  %v7026_v7 = vpop.permute.xlu1 %7025 }
 0x395   :  { %5731 = vst.msk [vmem:[#allocation3 + $0x68] sm:$0xf] %vm20255_vm14, %v5552_v42  ;;  %5573 = vrot.lane.b32.xlu0 %v10862_v60, %s11355_s17  ;;  %vm20265_vm14 = vcmask 388352   ;;  %v20273_v60 = vld [vmem:[#allocation95_spill] sm:$0xff] }
 0x396   :  { %6499 = vst.msk [vmem:[#allocation3 + $0x60] sm:$0xf] %vm20256_vm2, %v6319_v51  ;;  %4870 = vrot.lane.b32.xlu1 %v10799_v21, %s11353_s2  ;;  %vm20266_vm2 = vcmp.lt.s32.totalorder %v20219_v48, 15  ;;  %v20271_v21 = vld [vmem:[#allocation46_spill] sm:$0xff] }
 0x397   :  { %6500 = vst.msk [vmem:[#allocation3 + $0x68] sm:$0xf] %vm20257_vm9, %v6321_v45  ;;  %v6063_v42 = vsel %vm20266_vm2, %v16307_v39, 0.0  ;;  %vm20267_vm9 = vcmp.lt.s32.totalorder %v20208_v32, 15  ;;  %v4336_v36 = vpop.permute.xlu0 %4335  ;;  %vm20272_vm5 = vcmp.gt.s32.totalorder %v20271_v21, 0 }
 0x398   :  { %7204 = vst.msk [vmem:[#allocation3 + $0x60] sm:$0xf] %vm20258_vm4, %v7024_v9  ;;  %v2864_v28 = vpop.permute.xlu1 %2863  ;;  %v6767_v51 = vsel %vm20267_vm9, %v16309_v5, 0.0  ;;  %v10927_v45 = vpack.c.bf16 %v6063_v42, %v6063_v42  ;;  %vm20268_vm4 = vmmov %vm20265_vm14  ;;  %v2603_v12 = vsel %vm20272_vm5, %v16136_v47, 0.0  ;;  %vm20280_vm9 = vcmask 781952  }
 0x399   :  { %7205 = vst.msk [vmem:[#allocation3 + $0x68] sm:$0xf] %vm20259_vm10, %v7026_v7  ;;  %6342 = vrot.lane.b32.xlu0 %v10926_v14, %s11356_s13  ;;  %v10990_v9 = vpack.c.bf16 %v6767_v51, %v6767_v51  ;;  %v11214_v7 = vld [vmem:[#allocation3 + $0x64] ss:$8 sps:$4 sm:$0xff]   ;;  %vm20269_vm10 = vcmask 519552   ;;  %v10608_v35 = vpack.c.bf16 %v2603_v12, %v2603_v12 }
 0x39a   :  { %3040 = vst.msk [vmem:[#allocation3 + $0x70] sm:$0xf] %vm20260_vm15, %v2862_v25  ;;  %5575 = vrot.lane.b32.xlu1 %v10863_v46, %s11355_s17  ;;  %vm20270_vm15 = vmmov %vm20266_vm2  ;;  %v20284_v46 = vld [vmem:[#allocation47_spill] sm:$0xff] }
 0x39b   :  { %3041 = vst.msk [vmem:[#allocation3 + $0x78] sm:$0xf] %vm20264_vm3, %v2864_v28  ;;  %v6768_v32 = vsel %vm20270_vm15, %v16323_v38, 0.0  ;;  %vm20274_vm3 = vmmov %vm20269_vm10  ;;  %v20279_v28 = vld [vmem:[#allocation100_spill] sm:$0xff]  ;;  %v6323_v47 = vpop.permute.xlu0 %6322  ;;  %vm20283_vm15 = vcmask 913152   ;;  %vm20285_vm5 = vcmp.gt.s32.totalorder %v20284_v46, 0 }
 0x39c   :  { %3809 = vst.msk [vmem:[#allocation3 + $0x70] sm:$0xf] %vm20265_vm14, %v3631_v3  ;;  %v3633_v33 = vpop.permute.xlu1 %3632  ;;  %vm20276_vm14 = vcmask 650752   ;;  %v10991_v3 = vpack.c.bf16 %v6768_v32, %v6768_v32  ;;  %v2604_v14 = vsel %vm20285_vm5, %v16165_v1, 0.0 }
 0x39d   :  { %3810 = vst.msk [vmem:[#allocation3 + $0x78] sm:$0xf] %vm20268_vm4, %v3633_v33  ;;  %7047 = vrot.lane.b32.xlu0 %v10990_v9, %s11357_s14  ;;  %vm20278_vm2 = vmmov %vm20276_vm14  ;;  %vm20281_vm4 = vcmask 130048   ;;  %v10609_v33 = vpack.c.bf16 %v2604_v14, %v2604_v14  ;;  %v20289_v9 = vld [vmem:[#allocation50_spill] sm:$0xff] }
 0x39e   :  { %4514 = vst.msk [vmem:[#allocation3 + $0x70] sm:$0xf] %vm20269_vm10, %v4336_v36  ;;  %6344 = vrot.lane.b32.xlu1 %v10927_v45, %s11356_s13  ;;  %10425 = vmatprep.mubr.msk.bf16.mxu0 %vm20281_vm4, %v11214_v7  ;;  %vm20282_vm10 = vmmov %vm20280_vm9  ;;  %v20286_v36 = vld [vmem:[#allocation49_spill] sm:$0xff]  ;;  %v20291_v7 = vld [vmem:[#allocation52_spill] sm:$0xff]  ;;  %vm20293_vm4 = vcmask 257152  }
 0x39f   :  { %v7908_v30 = vld [vmem:[#allocation3 + $0x60] sm:$0xff]  ;;  %4515 = vst.msk [vmem:[#allocation3 + $0x78] sm:$0xf] %vm20274_vm3, %v20273_v60  ;;  %v7028_v51 = vpop.permute.xlu0 %7027  ;;  %v10672_v45 = vpack.c.bf16 %v20286_v36, %v20286_v36  ;;  %vm20287_vm3 = vmmov %vm20283_vm15  ;;  %v10737_v60 = vpack.c.bf16 %v16307_v39, %v16307_v39 }
 0x3a0   :  { %v7909_v59 = vld [vmem:[#allocation3 + $0x68] sm:$0xff]  ;;  %5027 = vst.msk [vmem:[#allocation3 + $0x70] sm:$0xf] %vm20276_vm14, %v20275_v63  ;;  %v5556_v48 = vpop.permute.xlu1 %5555  ;;  %vm20288_vm14 = vcmask 1044352   ;;  %v10800_v63 = vpack.c.bf16 %v16309_v5, %v16309_v5 }
 0x3a1   :  { %v10358_v25 = vcombine.low %v7908_v30, %v7909_v59  ;;  %5028 = vst.msk [vmem:[#allocation3 + $0x78] sm:$0xf] %vm20278_vm2, %v20277_v2  ;;  %2885 = vrot.lane.b32.xlu0 %v10608_v35, %s11351_s0  ;;  %vm20290_vm2 = vnez %v20289_v9  ;;  %v5808_v2 = vld [vmem:[#allocation2 + $0xf7] sm:$0xff] }
 0x3a2   :  { %5732 = vst.msk [vmem:[#allocation3 + $0x70] sm:$0xf] %vm20280_vm9, %v20279_v28  ;;  %7049 = vrot.lane.b32.xlu1 %v10991_v3, %s11357_s14  ;;  %v4077_v30 = vsel %vm20290_vm2, %v5806_v20, 0.0  ;;  %vm20292_vm9 = vmmov %vm20288_vm14  ;;  %v11313_v3 = vld [vmem:[#allocation2 + $0xe9] sm:$0xff]  ;;  %v16387_v9 = vld [vmem:[#allocation2 + $0xf8] sm:$0xff] }
 0x3a3   :  { %8497 = vmatmul.mubr.bf16.gmra.mxu0 %v10358_v25  ;;  %5733 = vst.msk [vmem:[#allocation3 + $0x78] sm:$0xf] %vm20282_vm10, %v5556_v48  ;;  %v2866_v59 = vpop.permute.xlu0 %2865  ;;  %v10673_v25 = vpack.c.bf16 %v20291_v7, %v20291_v7  ;;  %v10736_v32 = vpack.c.bf16 %v4077_v30, %v4077_v30  ;;  %vm20294_vm10 = vmmov %vm20293_vm4  ;;  %v10864_v35 = vpack.c.bf16 %v11313_v3, %v11313_v3  ;;  %v16406_v7 = vld [vmem:[#allocation2 + $0x100] sm:$0xff] }
 0x3a4   :  { %6501 = vst.msk [vmem:[#allocation3 + $0x70] sm:$0xf] %vm20283_vm15, %v6323_v47  ;;  %v6325_v42 = vpop.permute.xlu1 %6324  ;;  %vm20295_vm15 = vcmask 388352   ;;  %v10801_v47 = vpack.c.bf16 %v16323_v38, %v16323_v38 }
 0x3a5   :  { %6502 = vst.msk [vmem:[#allocation3 + $0x78] sm:$0xf] %vm20287_vm3, %v6325_v42  ;;  %3654 = vrot.lane.b32.xlu0 %v10672_v45, %s11352_s1  ;;  %v11216_v42 = vld [vmem:[#allocation3 + $0x74] ss:$8 sps:$4 sm:$0xff]   ;;  %vm20296_vm5 = vmmov %vm20295_vm15  ;;  %vm20297_vm3 = vcmask 519552  }
 0x3a6   :  { %7206 = vst.msk [vmem:[#allocation3 + $0x70] sm:$0xf] %vm20288_vm14, %v7028_v51  ;;  %2887 = vrot.lane.b32.xlu1 %v10609_v33, %s11351_s0  ;;  %v20298_v33 = vld [vmem:[#allocation53_spill] sm:$0xff]  ;;  %vm20300_vm2 = vmmov %vm20297_vm3  ;;  %v16385_v45 = vld [vmem:[#allocation2 + $0xff] sm:$0xff] }
 0x3a7   :  { %3042 = vst.msk [vmem:[#allocation3 + $0x80] sm:$0xf] %vm20293_vm4, %v2866_v59  ;;  %v3635_v20 = vpop.permute.xlu0 %3634  ;;  %vm20299_vm14 = vnez %v20298_v33  ;;  %v20322_v33 = vld [vmem:[#allocation55_spill] sm:$0xff] }
 0x3a8   :  { %v7030_v1 = vpop.permute.xlu1 %7029  ;;  %3811 = vst.msk [vmem:[#allocation3 + $0x80] sm:$0xf] %vm20295_vm15, %v3635_v20  ;;  %v6064_v36 = vsel %vm20299_vm14, %v5808_v2, 0.0  ;;  %vm20304_vm15 = vcmask 130048   ;;  %vm20308_vm14 = vcmp.lt.s32.totalorder %v20284_v46, 15 }
 0x3a9   :  { %7207 = vst.msk [vmem:[#allocation3 + $0x78] sm:$0xf] %vm20292_vm9, %v7030_v1  ;;  %4359 = vrot.lane.b32.xlu0 %v10736_v32, %s11354_s3  ;;  %vm20301_vm9 = vcmask 650752   ;;  %10426 = vmatprep.mubr.msk.bf16.mxu0 %vm20304_vm15, %v11216_v42  ;;  %v10928_v59 = vpack.c.bf16 %v6064_v36, %v6064_v36  ;;  %v20319_v42 = vld [vmem:[#allocation58_spill] sm:$0xff] }
 0x3aa   :  { %3656 = vrot.lane.b32.xlu1 %v10673_v25, %s11352_s1  ;;  %vm20302_vm4 = vmmov %vm20301_vm9 }
 0x3ab   :  { %v4340_v48 = vpop.permute.xlu0 %4339 }
 0x3ac   :  { %v2868_v12 = vpop.permute.xlu1 %2867  ;;  %4516 = vst.msk [vmem:[#allocation3 + $0x80] sm:$0xf] %vm20297_vm3, %v4340_v48  ;;  %vm20307_vm3 = vcmask 913152  }
 0x3ad   :  { %3043 = vst.msk [vmem:[#allocation3 + $0x88] sm:$0xf] %vm20294_vm10, %v2868_v12  ;;  %4872 = vrot.lane.b32.xlu0 %v10800_v63, %s11353_s2  ;;  %v7910_v39 = vld [vmem:[#allocation3 + $0x70] sm:$0xff]  ;;  %vm20303_vm10 = vcmask 781952  }
 0x3ae   :  { %4361 = vrot.lane.b32.xlu1 %v10737_v60, %s11354_s3  ;;  %5029 = vst.msk [vmem:[#allocation3 + $0x80] sm:$0xf] %vm20301_vm9, %v14723_v41  ;;  %v20305_v41 = vld [vmem:[#allocation51_spill] sm:$0xff]  ;;  %vm20310_vm9 = vmmov %vm20307_vm3 }
 0x3af   :  { %5734 = vst.msk [vmem:[#allocation3 + $0x80] sm:$0xf] %vm20303_vm10, %v14755_v40  ;;  %v6327_v30 = vpop.permute.xlu0 %6326  ;;  %v10865_v1 = vpack.c.bf16 %v20305_v41, %v20305_v41 }
 0x3b0   :  { %v3637_v28 = vpop.permute.xlu1 %3636  ;;  %v7911_v14 = vld [vmem:[#allocation3 + $0x78] sm:$0xff]  ;;  %6503 = vst.msk [vmem:[#allocation3 + $0x80] sm:$0xf] %vm20307_vm3, %v6327_v30  ;;  %vm20316_vm3 = vcmask 257152  }
 0x3b1   :  { %3812 = vst.msk [vmem:[#allocation3 + $0x88] sm:$0xf] %vm20296_vm5, %v3637_v28  ;;  %v10360_v51 = vcombine.low %v7910_v39, %v7911_v14  ;;  %5577 = vrot.lane.b32.xlu0 %v10864_v35, %s11355_s17  ;;  %vm20306_vm5 = vmmov %vm20303_vm10  ;;  %v20317_v35 = vld [vmem:[#allocation56_spill] sm:$0xff] }
 0x3b2   :  { %4517 = vst.msk [vmem:[#allocation3 + $0x88] sm:$0xf] %vm20300_vm2, %v14721_v23  ;;  %4874 = vrot.lane.b32.xlu1 %v10801_v47, %s11353_s2  ;;  %vm20309_vm2 = vcmp.lt.s32.totalorder %v20271_v21, 15  ;;  %vm20312_vm10 = vmmov %vm20308_vm14  ;;  %v20313_v21 = vld [vmem:[#allocation54_spill] sm:$0xff]  ;;  %v20324_v30 = vld [vmem:[#allocation60_spill] sm:$0xff] }
 0x3b3   :  { %5030 = vst.msk [vmem:[#allocation3 + $0x88] sm:$0xf] %vm20302_vm4, %v14753_v55  ;;  %8505 = vmatmul.mubr.bf16.gmra.mxu0 %v10360_v51  ;;  %v6065_v55 = vsel %vm20308_vm14, %v16385_v45, 0.0  ;;  %v6769_v40 = vsel %vm20309_vm2, %v16387_v9, 0.0  ;;  %v7032_v32 = vpop.permute.xlu0 %7031  ;;  %vm20311_vm4 = vcmask 1044352   ;;  %v6770_v60 = vsel %vm20312_vm10, %v16406_v7, 0.0  ;;  %vm20320_vm2 = vmmov %vm20316_vm3 }
 0x3b4   :  { %v5560_v23 = vpop.permute.xlu1 %5559  ;;  %v10929_v12 = vpack.c.bf16 %v6065_v55, %v6065_v55  ;;  %v10992_v20 = vpack.c.bf16 %v6769_v40, %v6769_v40  ;;  %7208 = vst.msk [vmem:[#allocation3 + $0x80] sm:$0xf] %vm20311_vm4, %v7032_v32  ;;  %vm20314_vm15 = vcmp.gt.s32.totalorder %v20313_v21, 0  ;;  %v10993_v47 = vpack.c.bf16 %v6770_v60, %v6770_v60  ;;  %v11218_v40 = vld [vmem:[#allocation3 + $0x84] ss:$8 sps:$4 sm:$0xff]   ;;  %v5810_v60 = vld [vmem:[#allocation2 + $0x107] sm:$0xff] }
 0x3b5   :  { %5735 = vst.msk [vmem:[#allocation3 + $0x88] sm:$0xf] %vm20306_vm5, %v5560_v23  ;;  %6346 = vrot.lane.b32.xlu0 %v10928_v59, %s11356_s13  ;;  %v2605_v63 = vsel %vm20314_vm15, %v16309_v5, 0.0  ;;  %vm20315_vm5 = vmmov %vm20311_vm4  ;;  %vm20318_vm14 = vcmp.gt.s32.totalorder %v20317_v35, 0  ;;  %v10674_v51 = vpack.c.bf16 %v20319_v42, %v20319_v42  ;;  %vm20323_vm4 = vnez %v20322_v33  ;;  %v20331_v32 = vld [vmem:[#allocation114_spill] sm:$0xff] }
 0x3b6   :  { %5579 = vrot.lane.b32.xlu1 %v10865_v1, %s11355_s17  ;;  %v10610_v3 = vpack.c.bf16 %v2605_v63, %v2605_v63  ;;  %v2606_v46 = vsel %vm20318_vm14, %v16323_v38, 0.0  ;;  %v4079_v36 = vsel %vm20323_vm4, %v5808_v2, 0.0  ;;  %v10675_v41 = vpack.c.bf16 %v20324_v30, %v20324_v30  ;;  %v20329_v2 = vld [vmem:[#allocation113_spill] sm:$0xff] }
 0x3b7   :  { %v2870_v48 = vpop.permute.xlu0 %2869  ;;  %v10611_v14 = vpack.c.bf16 %v2606_v46, %v2606_v46  ;;  %v10738_v1 = vpack.c.bf16 %v4079_v36, %v4079_v36  ;;  %vm20326_vm15 = vcmask 519552   ;;  %v16480_v30 = vld [vmem:[#allocation2 + $0x110] sm:$0xff] }
 0x3b8   :  { %v6329_v25 = vpop.permute.xlu1 %6328  ;;  %3044 = vst.msk [vmem:[#allocation3 + $0x90] sm:$0xf] %vm20316_vm3, %v2870_v48  ;;  %vm20328_vm3 = vcmask 650752   ;;  %v10803_v48 = vpack.c.bf16 %v16406_v7, %v16406_v7 }
 0x3b9   :  { %6504 = vst.msk [vmem:[#allocation3 + $0x88] sm:$0xf] %vm20310_vm9, %v6329_v25  ;;  %7051 = vrot.lane.b32.xlu0 %v10992_v20, %s11357_s14  ;;  %vm20321_vm9 = vcmask 388352   ;;  %vm20330_vm14 = vmmov %vm20328_vm3 }
 0x3ba   :  { %6348 = vrot.lane.b32.xlu1 %v10929_v12, %s11356_s13  ;;  %vm20325_vm10 = vmmov %vm20321_vm9 }
 0x3bb   :  { %v3639_v39 = vpop.permute.xlu0 %3638  ;;  %v7912_v59 = vld [vmem:[#allocation3 + $0x80] sm:$0xff] }
 0x3bc   :  { %v7034_v28 = vpop.permute.xlu1 %7033  ;;  %3813 = vst.msk [vmem:[#allocation3 + $0x90] sm:$0xf] %vm20321_vm9, %v3639_v39  ;;  %vm20333_vm9 = vcmask 130048   ;;  %v16466_v39 = vld [vmem:[#allocation2 + $0x108] sm:$0xff] }
 0x3bd   :  { %7209 = vst.msk [vmem:[#allocation3 + $0x88] sm:$0xf] %vm20315_vm5, %v7034_v28  ;;  %2889 = vrot.lane.b32.xlu0 %v10610_v3, %s11351_s0  ;;  %vm20327_vm5 = vmmov %vm20326_vm15  ;;  %10427 = vmatprep.mubr.msk.bf16.mxu0 %vm20333_vm9, %v11218_v40  ;;  %vm20343_vm9 = vcmp.lt.s32.totalorder %v20317_v35, 15 }
 0x3be   :  { %7053 = vrot.lane.b32.xlu1 %v10993_v47, %s11357_s14  ;;  %v11314_v47 = vld [vmem:[#allocation2 + $0xf9] sm:$0xff] }
 0x3bf   :  { %v4344_v23 = vpop.permute.xlu0 %4343  ;;  %v10866_v3 = vpack.c.bf16 %v11314_v47, %v11314_v47  ;;  %v20356_v47 = vld [vmem:[#allocation116_spill] sm:$0xff] }
 0x3c0   :  { %v2872_v5 = vpop.permute.xlu1 %2871  ;;  %4518 = vst.msk [vmem:[#allocation3 + $0x90] sm:$0xf] %vm20326_vm15, %v4344_v23 }
 0x3c1   :  { %3045 = vst.msk [vmem:[#allocation3 + $0x98] sm:$0xf] %vm20320_vm2, %v2872_v5  ;;  %3658 = vrot.lane.b32.xlu0 %v10674_v51, %s11352_s1  ;;  %vm20332_vm2 = vcmask 781952   ;;  %v16464_v5 = vld [vmem:[#allocation2 + $0x10f] sm:$0xff] }
 0x3c2   :  { %2891 = vrot.lane.b32.xlu1 %v10611_v14, %s11351_s0  ;;  %5031 = vst.msk [vmem:[#allocation3 + $0x90] sm:$0xf] %vm20328_vm3, %v14803_v54  ;;  %v10802_v54 = vpack.c.bf16 %v16387_v9, %v16387_v9  ;;  %vm20334_vm4 = vmmov %vm20332_vm2  ;;  %v20340_v51 = vld [vmem:[#allocation57_spill] sm:$0xff] }
 0x3c3   :  { %5736 = vst.msk [vmem:[#allocation3 + $0x90] sm:$0xf] %vm20332_vm2, %v20331_v32  ;;  %v6331_v20 = vpop.permute.xlu0 %6330  ;;  %v10867_v33 = vpack.c.bf16 %v20340_v51, %v20340_v51  ;;  %vm20342_vm2 = vcmask 257152  }
 0x3c4   :  { %v3641_v38 = vpop.permute.xlu1 %3640  ;;  %v7913_v55 = vld [vmem:[#allocation3 + $0x88] sm:$0xff] }
 0x3c5   :  { %3814 = vst.msk [vmem:[#allocation3 + $0x98] sm:$0xf] %vm20325_vm10, %v3641_v38  ;;  %v10362_v25 = vcombine.low %v7912_v59, %v7913_v55  ;;  %4363 = vrot.lane.b32.xlu0 %v10738_v1, %s11354_s3  ;;  %vm20335_vm10 = vcmask 913152   ;;  %v6067_v38 = vsel %vm20343_vm9, %v16464_v5, 0.0 }
 0x3c6   :  { %4519 = vst.msk [vmem:[#allocation3 + $0x98] sm:$0xf] %vm20327_vm5, %v14801_v56  ;;  %3660 = vrot.lane.b32.xlu1 %v10675_v41, %s11352_s1  ;;  %v10739_v56 = vpack.c.bf16 %v16385_v45, %v16385_v45  ;;  %vm20336_vm15 = vmmov %vm20335_vm10  ;;  %vm20337_vm5 = vcmask 1044352   ;;  %v20338_v45 = vld [vmem:[#allocation59_spill] sm:$0xff]  ;;  %v10931_v59 = vpack.c.bf16 %v6067_v38, %v6067_v38 }
 0x3c7   :  { %5032 = vst.msk [vmem:[#allocation3 + $0x98] sm:$0xf] %vm20330_vm14, %v20329_v2  ;;  %8513 = vmatmul.mubr.bf16.gmra.mxu0 %v10362_v25  ;;  %v7036_v28 = vpop.permute.xlu0 %7035  ;;  %vm20339_vm3 = vnez %v20338_v45  ;;  %vm20341_vm14 = vmmov %vm20337_vm5  ;;  %v20360_v45 = vld [vmem:[#allocation122_spill] sm:$0xff] }
 0x3c8   :  { %v5564_v12 = vpop.permute.xlu1 %5563  ;;  %6505 = vst.msk [vmem:[#allocation3 + $0x90] sm:$0xf] %vm20335_vm10, %v6331_v20  ;;  %v6066_v46 = vsel %vm20339_vm3, %v5810_v60, 0.0  ;;  %vm20345_vm10 = vmmov %vm20342_vm2 }
 0x3c9   :  { %5737 = vst.msk [vmem:[#allocation3 + $0x98] sm:$0xf] %vm20334_vm4, %v5564_v12  ;;  %4876 = vrot.lane.b32.xlu0 %v10802_v54, %s11353_s2  ;;  %v10930_v36 = vpack.c.bf16 %v6066_v46, %v6066_v46  ;;  %vm20344_vm4 = vcmp.lt.s32.totalorder %v20313_v21, 15  ;;  %v20348_v21 = vld [vmem:[#allocation61_spill] sm:$0xff] }
 0x3ca   :  { %4365 = vrot.lane.b32.xlu1 %v10739_v56, %s11354_s3  ;;  %7210 = vst.msk [vmem:[#allocation3 + $0x90] sm:$0xf] %vm20337_vm5, %v7036_v28  ;;  %v6771_v23 = vsel %vm20344_vm4, %v16466_v39, 0.0  ;;  %vm20347_vm5 = vmmov %vm20343_vm9  ;;  %vm20349_vm3 = vcmp.gt.s32.totalorder %v20348_v21, 0  ;;  %v20352_v28 = vld [vmem:[#allocation62_spill] sm:$0xff] }
 0x3cb   :  { %v2874_v42 = vpop.permute.xlu0 %2873  ;;  %v10994_v55 = vpack.c.bf16 %v6771_v23, %v6771_v23  ;;  %v6772_v40 = vsel %vm20347_vm5, %v16480_v30, 0.0  ;;  %v2607_v25 = vsel %vm20349_vm3, %v16387_v9, 0.0  ;;  %vm20353_vm9 = vcmp.gt.s32.totalorder %v20352_v28, 0 }
 0x3cc   :  { %v6333_v63 = vpop.permute.xlu1 %6332  ;;  %3046 = vst.msk [vmem:[#allocation3 + $0xa0] sm:$0xf] %vm20342_vm2, %v2874_v42  ;;  %v10995_v12 = vpack.c.bf16 %v6772_v40, %v6772_v40  ;;  %v10612_v20 = vpack.c.bf16 %v2607_v25, %v2607_v25  ;;  %vm20351_vm2 = vcmask 519552   ;;  %v2608_v9 = vsel %vm20353_vm9, %v16406_v7, 0.0  ;;  %v20363_v42 = vld [vmem:[#allocation63_spill] sm:$0xff] }
 0x3cd   :  { %6506 = vst.msk [vmem:[#allocation3 + $0x98] sm:$0xf] %vm20336_vm15, %v6333_v63  ;;  %5581 = vrot.lane.b32.xlu0 %v10866_v3, %s11355_s17  ;;  %vm20346_vm15 = vcmask 388352   ;;  %v11220_v63 = vld [vmem:[#allocation3 + $0x94] ss:$8 sps:$4 sm:$0xff]   ;;  %vm20355_vm4 = vmmov %vm20351_vm2  ;;  %v20358_v3 = vld [vmem:[#allocation121_spill] sm:$0xff]  ;;  %v10676_v51 = vpack.c.bf16 %v20363_v42, %v20363_v42  ;;  %v10741_v25 = vpack.c.bf16 %v16464_v5, %v16464_v5  ;;  %v10805_v5 = vpack.c.bf16 %v16480_v30, %v16480_v30 }
 0x3ce   :  { %4878 = vrot.lane.b32.xlu1 %v10803_v48, %s11353_s2  ;;  %v20354_v48 = vld [vmem:[#allocation115_spill] sm:$0xff]  ;;  %vm20361_vm5 = vcmask 781952   ;;  %vm20362_vm3 = vcmask 130048  }
 0x3cf   :  { %v3643_v1 = vpop.permute.xlu0 %3642  ;;  %10428 = vmatprep.mubr.msk.bf16.mxu0 %vm20362_vm3, %v11220_v63 }
 0x3d0   :  { %v7038_v14 = vpop.permute.xlu1 %7037  ;;  %3815 = vst.msk [vmem:[#allocation3 + $0xa0] sm:$0xf] %vm20346_vm15, %v3643_v1 }
 0x3d1   :  { %7211 = vst.msk [vmem:[#allocation3 + $0x98] sm:$0xf] %vm20341_vm14, %v7038_v14  ;;  %6350 = vrot.lane.b32.xlu0 %v10930_v36, %s11356_s13  ;;  %v7914_v56 = vld [vmem:[#allocation3 + $0x90] sm:$0xff]  ;;  %vm20350_vm14 = vmmov %vm20346_vm15  ;;  %v10613_v14 = vpack.c.bf16 %v2608_v9, %v2608_v9 }
 0x3d2   :  { %5583 = vrot.lane.b32.xlu1 %v10867_v33, %s11355_s17  ;;  %v20366_v33 = vld [vmem:[#allocation64_spill] sm:$0xff]  ;;  %v20376_v9 = vld [vmem:[#allocation70_spill] sm:$0xff] }
 0x3d3   :  { %v4348_v32 = vpop.permute.xlu0 %4347  ;;  %vm20367_vm9 = vnez %v20366_v33 }
 0x3d4   :  { %v2876_v41 = vpop.permute.xlu1 %2875  ;;  %4520 = vst.msk [vmem:[#allocation3 + $0xa0] sm:$0xf] %vm20351_vm2, %v4348_v32  ;;  %vm20365_vm2 = vcmask 913152   ;;  %v4081_v36 = vsel %vm20367_vm9, %v5810_v60, 0.0  ;;  %v20373_v32 = vld [vmem:[#allocation75_spill] sm:$0xff]  ;;  %vm20378_vm9 = vcmask 388352  }
 0x3d5   :  { %3047 = vst.msk [vmem:[#allocation3 + $0xa8] sm:$0xf] %vm20345_vm10, %v2876_v41  ;;  %7055 = vrot.lane.b32.xlu0 %v10994_v55, %s11357_s14  ;;  %vm20357_vm10 = vcmask 650752   ;;  %v20368_v41 = vld [vmem:[#allocation65_spill] sm:$0xff]  ;;  %vm20374_vm3 = vcmp.gt.s32.totalorder %v20373_v32, 0 }
 0x3d6   :  { %6352 = vrot.lane.b32.xlu1 %v10931_v59, %s11356_s13  ;;  %5033 = vst.msk [vmem:[#allocation3 + $0xa0] sm:$0xf] %vm20357_vm10, %v20356_v47  ;;  %vm20359_vm15 = vmmov %vm20357_vm10  ;;  %v10677_v1 = vpack.c.bf16 %v20368_v41, %v20368_v41  ;;  %v10740_v59 = vpack.c.bf16 %v4081_v36, %v4081_v36  ;;  %vm20370_vm10 = vcmask 1044352   ;;  %v2427_v55 = vld [vmem:[#allocation2 + $0x158] sm:$0xff] }
 0x3d7   :  { %5738 = vst.msk [vmem:[#allocation3 + $0xa0] sm:$0xf] %vm20361_vm5, %v20360_v45  ;;  %v6335_v7 = vpop.permute.xlu0 %6334  ;;  %v11222_v36 = vld [vmem:[#allocation3 + $0xa4] ss:$8 sps:$4 sm:$0xff]  }
 0x3d8   :  { %v3645_v2 = vpop.permute.xlu1 %3644  ;;  %v7915_v54 = vld [vmem:[#allocation3 + $0x98] sm:$0xff]  ;;  %6507 = vst.msk [vmem:[#allocation3 + $0xa0] sm:$0xf] %vm20365_vm2, %v6335_v7 }
 0x3d9   :  { %3816 = vst.msk [vmem:[#allocation3 + $0xa8] sm:$0xf] %vm20350_vm14, %v3645_v2  ;;  %v10364_v35 = vcombine.low %v7914_v56, %v7915_v54  ;;  %2893 = vrot.lane.b32.xlu0 %v10612_v20, %s11351_s0  ;;  %vm20364_vm14 = vmmov %vm20361_vm5  ;;  %v10804_v2 = vpack.c.bf16 %v16466_v39, %v16466_v39  ;;  %vm20372_vm5 = vcmask 257152   ;;  %v2428_v20 = vld [vmem:[#allocation2 + $0x160] sm:$0xff]  ;;  %v16532_v54 = vpop.f32.mrf.mxu0 }
 0x3da   :  { %4521 = vst.msk [vmem:[#allocation3 + $0xa8] sm:$0xf] %vm20355_vm4, %v20354_v48  ;;  %7057 = vrot.lane.b32.xlu1 %v10995_v12, %s11357_s14  ;;  %vm20369_vm4 = vmmov %vm20365_vm2  ;;  %v2619_v12 = vsel %vm20374_vm3, %v2427_v55, 0.0  ;;  %vm20377_vm2 = vcmp.gt.s32.totalorder %v20376_v9, 0  ;;  %v3133_v55 = vld [vmem:[#allocation2 + $0x161] sm:$0xff] }
 0x3db   :  { %5034 = vst.msk [vmem:[#allocation3 + $0xa8] sm:$0xf] %vm20359_vm15, %v20358_v3  ;;  %8521 = vmatmul.mubr.bf16.gmra.mxu0 %v10364_v35  ;;  %v7040_v23 = vpop.permute.xlu0 %7039  ;;  %vm20371_vm15 = vmmov %vm20370_vm10  ;;  %v10624_v63 = vpack.c.bf16 %v2619_v12, %v2619_v12  ;;  %v2620_v48 = vsel %vm20377_vm2, %v2428_v20, 0.0  ;;  %v8452_v47 = vpop.f32.mrf.mxu0  ;;  %v3132_v3 = vld [vmem:[#allocation2 + $0x159] sm:$0xff]  ;;  %vm20387_vm2 = vcmask 130048  }
 0x3dc   :  { %v5568_v46 = vpop.permute.xlu1 %5567  ;;  %7212 = vst.msk [vmem:[#allocation3 + $0xa0] sm:$0xf] %vm20370_vm10, %v7040_v23  ;;  %v10625_v7 = vpack.c.bf16 %v2620_v48, %v2620_v48  ;;  %vm20380_vm10 = vmmov %vm20374_vm3  ;;  %vm20384_vm3 = vcmask 650752   ;;  %10429 = vmatprep.mubr.msk.bf16.mxu0 %vm20387_vm2, %v11222_v36  ;;  %v20390_v12 = vld [vmem:[#allocation66_spill] sm:$0xff] }
 0x3dd   :  { %5739 = vst.msk [vmem:[#allocation3 + $0xa8] sm:$0xf] %vm20364_vm14, %v5568_v46  ;;  %3662 = vrot.lane.b32.xlu0 %v10676_v51, %s11352_s1  ;;  %vm20375_vm14 = vmmov %vm20372_vm5  ;;  %v16542_v46 = vpop.f32.mrf.mxu0  ;;  %v3388_v41 = vsel %vm20380_vm10, %v3132_v3, 0.0  ;;  %v10869_v20 = vpack.c.bf16 %v20390_v12, %v20390_v12  ;;  %v16576_v47 = vld [vmem:[#allocation2 + $0x11f] sm:$0xff]  ;;  %v3901_v3 = vld [vmem:[#allocation2 + $0x167] sm:$0xff] }
 0x3de   :  { %2895 = vrot.lane.b32.xlu1 %v10613_v14, %s11351_s0  ;;  %v16544_v14 = vld [vmem:[#allocation2 + $0x109] sm:$0xff]  ;;  %v20399_v36 = vld [vmem:[#allocation78_spill] sm:$0xff] }
 0x3df   :  { %v2878_v40 = vpop.permute.xlu0 %2877  ;;  %v10868_v42 = vpack.c.bf16 %v16544_v14, %v16544_v14  ;;  %vm20400_vm2 = vnez %v20399_v36 }
 0x3e0   :  { %v6337_v38 = vpop.permute.xlu1 %6336  ;;  %3048 = vst.msk [vmem:[#allocation3 + $0xb0] sm:$0xf] %vm20372_vm5, %v2878_v40  ;;  %v20385_v40 = vld [vmem:[#allocation126_spill] sm:$0xff] }
 0x3e1   :  { %6508 = vst.msk [vmem:[#allocation3 + $0xa8] sm:$0xf] %vm20369_vm4, %v6337_v38  ;;  %4367 = vrot.lane.b32.xlu0 %v10740_v59, %s11354_s3  ;;  %vm20379_vm4 = vmmov %vm20378_vm9  ;;  %v8455_v59 = vpop.f32.mrf.mxu0 }
 0x3e2   :  { %3664 = vrot.lane.b32.xlu1 %v10677_v1, %s11352_s1  ;;  %v20381_v1 = vld [vmem:[#allocation125_spill] sm:$0xff] }
 0x3e3   :  { %v3647_v35 = vpop.permute.xlu0 %3646  ;;  %v7916_v51 = vld [vmem:[#allocation3 + $0xa0] sm:$0xff] }
 0x3e4   :  { %v7042_v60 = vpop.permute.xlu1 %7041  ;;  %3817 = vst.msk [vmem:[#allocation3 + $0xb0] sm:$0xf] %vm20378_vm9, %v3647_v35  ;;  %vm20389_vm9 = vcmask 781952   ;;  %v20394_v35 = vld [vmem:[#allocation69_spill] sm:$0xff] }
 0x3e5   :  { %7213 = vst.msk [vmem:[#allocation3 + $0xa8] sm:$0xf] %vm20371_vm15, %v7042_v60  ;;  %4880 = vrot.lane.b32.xlu0 %v10804_v2, %s11353_s2  ;;  %vm20382_vm15 = vcmask 519552   ;;  %v16556_v60 = vld [vmem:[#allocation2 + $0x117] sm:$0xff] }
 0x3e6   :  { %4369 = vrot.lane.b32.xlu1 %v10741_v25, %s11354_s3  ;;  %vm20383_vm5 = vmmov %vm20382_vm15  ;;  %v20388_v25 = vld [vmem:[#allocation128_spill] sm:$0xff] }
 0x3e7   :  { %v4352_v38 = vpop.permute.xlu0 %4351  ;;  %v16596_v12 = vpop.f32.mrf.mxu0 }
 0x3e8   :  { %v2880_v56 = vpop.permute.xlu1 %2879  ;;  %4522 = vst.msk [vmem:[#allocation3 + $0xb0] sm:$0xf] %vm20383_vm5, %v4352_v38  ;;  %vm20396_vm5 = vcmask 913152   ;;  %v4093_v38 = vsel %vm20400_vm2, %v3901_v3, 0.0 }
 0x3e9   :  { %3049 = vst.msk [vmem:[#allocation3 + $0xb8] sm:$0xf] %vm20375_vm14, %v2880_v56  ;;  %2917 = vrot.lane.b32.xlu0 %v10624_v63, %s11351_s0  ;;  %vm20386_vm14 = vmmov %vm20384_vm3  ;;  %v10688_v56 = vpack.c.bf16 %v3388_v41, %v3388_v41  ;;  %v20392_v63 = vld [vmem:[#allocation74_spill] sm:$0xff] }
 0x3ea   :  { %4882 = vrot.lane.b32.xlu1 %v10805_v5, %s11353_s2  ;;  %5035 = vst.msk [vmem:[#allocation3 + $0xb0] sm:$0xf] %vm20386_vm14, %v20385_v40  ;;  %vm20393_vm10 = vnez %v20392_v63  ;;  %vm20398_vm14 = vcmp.lt.s32.totalorder %v20352_v28, 15  ;;  %v16588_v40 = vld [vmem:[#allocation2 + $0x118] sm:$0xff]  ;;  %v16599_v63 = vld [vmem:[#allocation2 + $0x120] sm:$0xff] }
 0x3eb   :  { %5740 = vst.msk [vmem:[#allocation3 + $0xb0] sm:$0xf] %vm20389_vm9, %v20388_v25  ;;  %v11224_v28 = vld [vmem:[#allocation3 + $0xb4] ss:$8 sps:$4 sm:$0xff]  }
 0x3ec   :  { %v3649_v45 = vpop.permute.xlu1 %3648  ;;  %v7917_v33 = vld [vmem:[#allocation3 + $0xa8] sm:$0xff]  ;;  %v6339_v5 = vpop.permute.xlu0 %6338 }
 0x3ed   :  { %3818 = vst.msk [vmem:[#allocation3 + $0xb8] sm:$0xf] %vm20379_vm4, %v3649_v45  ;;  %v10366_v23 = vcombine.low %v7916_v51, %v7917_v33  ;;  %5585 = vrot.lane.b32.xlu0 %v10868_v42, %s11355_s17  ;;  %vm20391_vm4 = vmmov %vm20389_vm9  ;;  %v6069_v33 = vsel %vm20398_vm14, %v16576_v47, 0.0  ;;  %vm20401_vm9 = vcmask 1044352  }
 0x3ee   :  { %4523 = vst.msk [vmem:[#allocation3 + $0xb8] sm:$0xf] %vm20382_vm15, %v20381_v1  ;;  %2919 = vrot.lane.b32.xlu1 %v10625_v7, %s11351_s0  ;;  %vm20395_vm15 = vnez %v20394_v35  ;;  %v10933_v41 = vpack.c.bf16 %v6069_v33, %v6069_v33  ;;  %v10752_v1 = vpack.c.bf16 %v4093_v38, %v4093_v38  ;;  %v8460_v35 = vpop.f32.mrf.mxu0  ;;  %v16614_v38 = vld [vmem:[#allocation2 + $0x170] sm:$0xff] }
 0x3ef   :  { %5036 = vst.msk [vmem:[#allocation3 + $0xb8] sm:$0xf] %vm20384_vm3, %v15024_v62  ;;  %8529 = vmatmul.mubr.bf16.gmra.mxu0 %v10366_v23  ;;  %v3389_v62 = vsel %vm20393_vm10, %v3133_v55, 0.0  ;;  %v6068_v48 = vsel %vm20395_vm15, %v16556_v60, 0.0  ;;  %vm20397_vm3 = vmmov %vm20396_vm5  ;;  %v3902_v55 = vld [vmem:[#allocation2 + $0x16f] sm:$0xff]  ;;  %vm20403_vm10 = vcmp.lt.s32.totalorder %v20348_v21, 15 }
 0x3f0   :  { %v5572_v2 = vpop.permute.xlu1 %5571  ;;  %6509 = vst.msk [vmem:[#allocation3 + $0xb0] sm:$0xf] %vm20396_vm5, %v6339_v5  ;;  %v10689_v7 = vpack.c.bf16 %v3389_v62, %v3389_v62  ;;  %v10932_v42 = vpack.c.bf16 %v6068_v48, %v6068_v48  ;;  %v6773_v25 = vsel %vm20403_vm10, %v16588_v40, 0.0  ;;  %vm20404_vm15 = vcmask 257152   ;;  %v16604_v62 = vld [vmem:[#allocation2 + $0x168] sm:$0xff]  ;;  %v16609_v3 = vpop.f32.mrf.mxu0 }
 0x3f1   :  { %5741 = vst.msk [vmem:[#allocation3 + $0xb8] sm:$0xf] %vm20391_vm4, %v5572_v2  ;;  %3686 = vrot.lane.b32.xlu0 %v10688_v56, %s11352_s1  ;;  %v7044_v51 = vpop.permute.xlu0 %7043  ;;  %vm20402_vm4 = vmmov %vm20401_vm9  ;;  %v10996_v56 = vpack.c.bf16 %v6773_v25, %v6773_v25  ;;  %vm20412_vm10 = vcmask 130048  }
 0x3f2   :  { %5587 = vrot.lane.b32.xlu1 %v10869_v20, %s11355_s17  ;;  %7214 = vst.msk [vmem:[#allocation3 + $0xb0] sm:$0xf] %vm20401_vm9, %v7044_v51  ;;  %v10753_v20 = vpack.c.bf16 %v3902_v55, %v3902_v55  ;;  %vm20405_vm5 = vmmov %vm20404_vm15  ;;  %10430 = vmatprep.mubr.msk.bf16.mxu0 %vm20412_vm10, %v11224_v28  ;;  %v10817_v55 = vpack.c.bf16 %v16614_v38, %v16614_v38 }
 0x3f4   :  { %v6341_v45 = vpop.permute.xlu1 %6340 }
 0x3f5   :  { %6510 = vst.msk [vmem:[#allocation3 + $0xb8] sm:$0xf] %vm20397_vm3, %v6341_v45  ;;  %6354 = vrot.lane.b32.xlu0 %v10932_v42, %s11356_s13  ;;  %vm20406_vm3 = vmmov %vm20398_vm14  ;;  %vm20407_vm14 = vcmask 388352  }
 0x3f6   :  { %3688 = vrot.lane.b32.xlu1 %v10689_v7, %s11352_s1  ;;  %v2882_v59 = vpop.permute.xlu0 %2881  ;;  %v6774_v21 = vsel %vm20406_vm3, %v16599_v63, 0.0  ;;  %v10816_v7 = vpack.c.bf16 %v16604_v62, %v16604_v62  ;;  %vm20408_vm2 = vmmov %vm20407_vm14  ;;  %vm20416_vm3 = vcmask 650752  }
 0x3f7   :  { %3050 = vst.msk [vmem:[#allocation3 + $0xc0] sm:$0xf] %vm20404_vm15, %v2882_v59  ;;  %v10997_v45 = vpack.c.bf16 %v6774_v21, %v6774_v21 }
 0x3f8   :  { %v7046_v23 = vpop.permute.xlu1 %7045 }
 0x3f9   :  { %7215 = vst.msk [vmem:[#allocation3 + $0xb8] sm:$0xf] %vm20402_vm4, %v7046_v23  ;;  %4391 = vrot.lane.b32.xlu0 %v10752_v1, %s11354_s3  ;;  %v7918_v42 = vld [vmem:[#allocation3 + $0xb0] sm:$0xff]  ;;  %vm20411_vm4 = vcmask 519552   ;;  %v8463_v1 = vpop.f32.mrf.mxu0 }
 0x3fa   :  { %6356 = vrot.lane.b32.xlu1 %v10933_v41, %s11356_s13  ;;  %v3651_v5 = vpop.permute.xlu0 %3650  ;;  %v20409_v23 = vld [vmem:[#allocation86_spill] sm:$0xff]  ;;  %vm20413_vm15 = vmmov %vm20411_vm4  ;;  %v20422_v1 = vld [vmem:[#allocation81_spill] sm:$0xff] }
 0x3fb   :  { %3819 = vst.msk [vmem:[#allocation3 + $0xc0] sm:$0xf] %vm20407_vm14, %v3651_v5  ;;  %vm20410_vm9 = vcmp.gt.s32.totalorder %v20409_v23, 0  ;;  %v16634_v5 = vld [vmem:[#allocation2 + $0x171] sm:$0xff]  ;;  %vm20417_vm14 = vmmov %vm20416_vm3 }
 0x3fc   :  { %v2884_v2 = vpop.permute.xlu1 %2883  ;;  %v2609_v41 = vsel %vm20410_vm9, %v16466_v39, 0.0  ;;  %v20414_v39 = vld [vmem:[#allocation82_spill] sm:$0xff] }
 0x3fd   :  { %3051 = vst.msk [vmem:[#allocation3 + $0xc8] sm:$0xf] %vm20405_vm5, %v2884_v2  ;;  %7059 = vrot.lane.b32.xlu0 %v10996_v56, %s11357_s14  ;;  %v10614_v25 = vpack.c.bf16 %v2609_v41, %v2609_v41  ;;  %vm20415_vm5 = vcmp.gt.s32.totalorder %v20414_v39, 0  ;;  %v16629_v56 = vld [vmem:[#allocation2 + $0x169] sm:$0xff] }
 0x3fe   :  { %4393 = vrot.lane.b32.xlu1 %v10753_v20, %s11354_s3  ;;  %v2610_v20 = vsel %vm20415_vm5, %v16480_v30, 0.0  ;;  %v20418_v30 = vld [vmem:[#allocation71_spill] sm:$0xff]  ;;  %vm20424_vm5 = vcmask 913152  }
 0x3ff   :  { %v4356_v33 = vpop.permute.xlu0 %4355  ;;  %v10615_v35 = vpack.c.bf16 %v2610_v20, %v2610_v20 }
 0x400   :  { %v3653_v48 = vpop.permute.xlu1 %3652  ;;  %v7919_v51 = vld [vmem:[#allocation3 + $0xb8] sm:$0xff]  ;;  %4524 = vst.msk [vmem:[#allocation3 + $0xc0] sm:$0xf] %vm20411_vm4, %v4356_v33  ;;  %vm20420_vm4 = vcmask 781952  }
 0x401   :  { %3820 = vst.msk [vmem:[#allocation3 + $0xc8] sm:$0xf] %vm20408_vm2, %v3653_v48  ;;  %v10368_v36 = vcombine.low %v7918_v42, %v7919_v51  ;;  %4904 = vrot.lane.b32.xlu0 %v10816_v7, %s11353_s2  ;;  %v10880_v48 = vpack.c.bf16 %v16629_v56, %v16629_v56  ;;  %vm20419_vm2 = vnez %v20418_v30  ;;  %v3378_v42 = vsel %vm20410_vm9, %v16544_v14, 0.0  ;;  %v16648_v51 = vld [vmem:[#allocation2 + $0x177] sm:$0xff]  ;;  %vm20421_vm10 = vmmov %vm20420_vm4  ;;  %v16657_v14 = vld [vmem:[#allocation2 + $0x17f] sm:$0xff] }
 0x402   :  { %7061 = vrot.lane.b32.xlu1 %v10997_v45, %s11357_s14  ;;  %v5312_v7 = vsel %vm20419_vm2, %v16634_v5, 0.0  ;;  %vm20430_vm9 = vcmask 1044352  }
 0x403   :  { %8537 = vmatmul.mubr.bf16.gmra.mxu0 %v10368_v36  ;;  %v4869_v2 = vpop.permute.xlu0 %4868  ;;  %v10881_v33 = vpack.c.bf16 %v5312_v7, %v5312_v7  ;;  %v10678_v36 = vpack.c.bf16 %v3378_v42, %v3378_v42 }
 0x404   :  { %v4358_v59 = vpop.permute.xlu1 %4357  ;;  %5037 = vst.msk [vmem:[#allocation3 + $0xc0] sm:$0xf] %vm20416_vm3, %v4869_v2  ;;  %v20425_v2 = vld [vmem:[#allocation85_spill] sm:$0xff]  ;;  %vm20426_vm3 = vmmov %vm20424_vm5 }
 0x405   :  { %4525 = vst.msk [vmem:[#allocation3 + $0xc8] sm:$0xf] %vm20413_vm15, %v4358_v59  ;;  %2897 = vrot.lane.b32.xlu0 %v10614_v25, %s11351_s0  ;;  %vm20423_vm15 = vnez %v20422_v1  ;;  %v16659_v25 = vpop.f32.mrf.mxu0  ;;  %v10679_v20 = vpack.c.bf16 %v20425_v2, %v20425_v2  ;;  %v16676_v1 = vld [vmem:[#allocation2 + $0x178] sm:$0xff]  ;;  %v10743_v2 = vpack.c.bf16 %v16576_v47, %v16576_v47  ;;  %v10806_v47 = vpack.c.bf16 %v16588_v40, %v16588_v40 }
 0x406   :  { %4906 = vrot.lane.b32.xlu1 %v10817_v55, %s11353_s2  ;;  %v6080_v59 = vsel %vm20423_vm15, %v16648_v51, 0.0  ;;  %vm20433_vm15 = vcmask 257152  }
 0x407   :  { %v5574_v45 = vpop.permute.xlu0 %5573  ;;  %v8468_v7 = vpop.f32.mrf.mxu0 }
 0x408   :  { %v4871_v21 = vpop.permute.xlu1 %4870  ;;  %5742 = vst.msk [vmem:[#allocation3 + $0xc0] sm:$0xf] %vm20420_vm4, %v5574_v45  ;;  %v20428_v45 = vld [vmem:[#allocation89_spill] sm:$0xff]  ;;  %vm20431_vm4 = vmmov %vm20430_vm9 }
 0x409   :  { %5038 = vst.msk [vmem:[#allocation3 + $0xc8] sm:$0xf] %vm20417_vm14, %v4871_v21  ;;  %5609 = vrot.lane.b32.xlu0 %v10880_v48, %s11355_s17  ;;  %v10944_v21 = vpack.c.bf16 %v6080_v59, %v6080_v59  ;;  %vm20427_vm14 = vcmp.lt.s32.totalorder %v20376_v9, 15  ;;  %vm20429_vm2 = vnez %v20428_v45  ;;  %v20438_v9 = vld [vmem:[#allocation98_spill] sm:$0xff] }
 0x40a   :  { %2899 = vrot.lane.b32.xlu1 %v10615_v35, %s11351_s0  ;;  %v6081_v48 = vsel %vm20427_vm14, %v16657_v14, 0.0  ;;  %v4083_v30 = vsel %vm20429_vm2, %v16556_v60, 0.0 }
 0x40b   :  { %v6343_v41 = vpop.permute.xlu0 %6342 }
 0x40c   :  { %v5576_v28 = vpop.permute.xlu1 %5575  ;;  %6511 = vst.msk [vmem:[#allocation3 + $0xc0] sm:$0xf] %vm20424_vm5, %v6343_v41  ;;  %vm20434_vm5 = vmmov %vm20433_vm15 }
 0x40d   :  { %5743 = vst.msk [vmem:[#allocation3 + $0xc8] sm:$0xf] %vm20421_vm10, %v5576_v28  ;;  %3666 = vrot.lane.b32.xlu0 %v10678_v36, %s11352_s1  ;;  %v16673_v28 = vpop.f32.mrf.mxu0  ;;  %v10742_v36 = vpack.c.bf16 %v4083_v30, %v4083_v30  ;;  %vm20432_vm10 = vcmp.lt.s32.totalorder %v20373_v32, 15 }
 0x40e   :  { %5611 = vrot.lane.b32.xlu1 %v10881_v33, %s11355_s17  ;;  %v10945_v33 = vpack.c.bf16 %v6081_v48, %v6081_v48  ;;  %v6785_v60 = vsel %vm20432_vm10, %v16676_v1, 0.0  ;;  %vm20441_vm10 = vcmask 130048  }
 0x40f   :  { %v7048_v35 = vpop.permute.xlu0 %7047  ;;  %v8471_v59 = vpop.f32.mrf.mxu0 }
 0x410   :  { %v6345_v55 = vpop.permute.xlu1 %6344  ;;  %7216 = vst.msk [vmem:[#allocation3 + $0xc0] sm:$0xf] %vm20430_vm9, %v7048_v35  ;;  %v16687_v35 = vld [vmem:[#allocation2 + $0x180] sm:$0xff]  ;;  %vm20439_vm9 = vcmp.gt.s32.totalorder %v20438_v9, 0 }
 0x411   :  { %6512 = vst.msk [vmem:[#allocation3 + $0xc8] sm:$0xf] %vm20426_vm3, %v6345_v55  ;;  %6378 = vrot.lane.b32.xlu0 %v10944_v21, %s11356_s13  ;;  %vm20435_vm3 = vmmov %vm20427_vm14  ;;  %vm20436_vm14 = vcmask 388352  }
 0x412   :  { %3668 = vrot.lane.b32.xlu1 %v10679_v20, %s11352_s1  ;;  %v11008_v20 = vpack.c.bf16 %v6785_v60, %v6785_v60  ;;  %v6786_v32 = vsel %vm20435_vm3, %v16687_v35, 0.0  ;;  %vm20437_vm2 = vmmov %vm20436_vm14  ;;  %v10807_v60 = vpack.c.bf16 %v16599_v63, %v16599_v63  ;;  %vm20445_vm3 = vcmask 650752  }
 0x413   :  { %v2886_v41 = vpop.permute.xlu0 %2885  ;;  %v11009_v45 = vpack.c.bf16 %v6786_v32, %v6786_v32 }
 0x414   :  { %v7050_v42 = vpop.permute.xlu1 %7049  ;;  %3052 = vst.msk [vmem:[#allocation3 + $0xd0] sm:$0xf] %vm20433_vm15, %v2886_v41  ;;  %v2621_v41 = vsel %vm20439_vm9, %v16604_v62, 0.0 }
 0x415   :  { %7217 = vst.msk [vmem:[#allocation3 + $0xc8] sm:$0xf] %vm20431_vm4, %v7050_v42  ;;  %4371 = vrot.lane.b32.xlu0 %v10742_v36, %s11354_s3  ;;  %v11226_v42 = vld [vmem:[#allocation3 + $0xc4] ss:$8 sps:$4 sm:$0xff]   ;;  %vm20440_vm4 = vcmask 519552   ;;  %v10626_v59 = vpack.c.bf16 %v2621_v41, %v2621_v41 }
 0x416   :  { %6380 = vrot.lane.b32.xlu1 %v10945_v33, %s11356_s13  ;;  %10431 = vmatprep.mubr.msk.bf16.mxu0 %vm20441_vm10, %v11226_v42  ;;  %vm20442_vm15 = vmmov %vm20440_vm4 }
 0x417   :  { %v3655_v21 = vpop.permute.xlu0 %3654  ;;  %v7920_v30 = vld [vmem:[#allocation3 + $0xc0] sm:$0xff] }
 0x418   :  { %v2888_v55 = vpop.permute.xlu1 %2887  ;;  %3821 = vst.msk [vmem:[#allocation3 + $0xd0] sm:$0xf] %vm20436_vm14, %v3655_v21  ;;  %vm20446_vm14 = vmmov %vm20445_vm3 }
 0x419   :  { %3053 = vst.msk [vmem:[#allocation3 + $0xd8] sm:$0xf] %vm20434_vm5, %v2888_v55  ;;  %7083 = vrot.lane.b32.xlu0 %v11008_v20, %s11357_s14 }
 0x41a   :  { %4373 = vrot.lane.b32.xlu1 %v10743_v2, %s11354_s3  ;;  %v20443_v2 = vld [vmem:[#allocation94_spill] sm:$0xff] }
 0x41b   :  { %v4360_v33 = vpop.permute.xlu0 %4359  ;;  %vm20444_vm5 = vcmp.gt.s32.totalorder %v20443_v2, 0 }
 0x41c   :  { %v3657_v48 = vpop.permute.xlu1 %3656  ;;  %v7921_v7 = vld [vmem:[#allocation3 + $0xc8] sm:$0xff]  ;;  %4526 = vst.msk [vmem:[#allocation3 + $0xd0] sm:$0xf] %vm20440_vm4, %v4360_v33  ;;  %v2622_v62 = vsel %vm20444_vm5, %v16614_v38, 0.0  ;;  %v16714_v21 = vpop.f32.mrf.mxu0  ;;  %vm20455_vm5 = vcmask 913152  }
 0x41d   :  { %3822 = vst.msk [vmem:[#allocation3 + $0xd8] sm:$0xf] %vm20437_vm2, %v3657_v48  ;;  %v10370_v36 = vcombine.low %v7920_v30, %v7921_v7  ;;  %4884 = vrot.lane.b32.xlu0 %v10806_v47, %s11353_s2  ;;  %v10627_v32 = vpack.c.bf16 %v2622_v62, %v2622_v62  ;;  %v11320_v48 = vld [vmem:[#allocation2 + $0x119] sm:$0xff]  ;;  %vm20447_vm2 = vmmov %vm20439_vm9  ;;  %vm20448_vm9 = vcmask 781952   ;;  %v16723_v30 = vld [vmem:[#allocation2 + $0x127] sm:$0xff] }
 0x41e   :  { %7085 = vrot.lane.b32.xlu1 %v11009_v45, %s11357_s14  ;;  %v10870_v63 = vpack.c.bf16 %v11320_v48, %v11320_v48  ;;  %v3390_v47 = vsel %vm20447_vm2, %v16629_v56, 0.0  ;;  %v8476_v38 = vpop.f32.mrf.mxu0  ;;  %v20449_v33 = vld [vmem:[#allocation90_spill] sm:$0xff]  ;;  %vm20450_vm4 = vmmov %vm20448_vm9  ;;  %v20451_v56 = vld [vmem:[#allocation97_spill] sm:$0xff] }
 0x41f   :  { %8545 = vmatmul.mubr.bf16.gmra.mxu0 %v10370_v36  ;;  %v4873_v55 = vpop.permute.xlu0 %4872  ;;  %v10871_v36 = vpack.c.bf16 %v20449_v33, %v20449_v33  ;;  %v10690_v41 = vpack.c.bf16 %v3390_v47, %v3390_v47  ;;  %vm20452_vm10 = vnez %v20451_v56  ;;  %v20458_v47 = vld [vmem:[#allocation101_spill] sm:$0xff] }
 0x420   :  { %v4362_v40 = vpop.permute.xlu1 %4361  ;;  %5039 = vst.msk [vmem:[#allocation3 + $0xd0] sm:$0xf] %vm20445_vm3, %v4873_v55  ;;  %v16725_v42 = vpop.f32.mrf.mxu0  ;;  %vm20456_vm3 = vmmov %vm20455_vm5  ;;  %vm20459_vm2 = vnez %v20458_v47  ;;  %v11228_v47 = vld [vmem:[#allocation3 + $0xd4] ss:$8 sps:$4 sm:$0xff]  }
 0x421   :  { %4527 = vst.msk [vmem:[#allocation3 + $0xd8] sm:$0xf] %vm20442_vm15, %v4362_v40  ;;  %2921 = vrot.lane.b32.xlu0 %v10626_v59, %s11351_s0  ;;  %v20453_v59 = vld [vmem:[#allocation93_spill] sm:$0xff]  ;;  %v4095_v38 = vsel %vm20459_vm2, %v16648_v51, 0.0 }
 0x422   :  { %4886 = vrot.lane.b32.xlu1 %v10807_v60, %s11353_s2  ;;  %v3391_v60 = vsel %vm20452_vm10, %v16634_v5, 0.0  ;;  %vm20454_vm15 = vnez %v20453_v59  ;;  %v8479_v62 = vpop.f32.mrf.mxu0  ;;  %vm20462_vm10 = vcmp.lt.s32.totalorder %v20409_v23, 15 }
 0x423   :  { %v5578_v45 = vpop.permute.xlu0 %5577  ;;  %v6070_v55 = vsel %vm20454_vm15, %v16723_v30, 0.0  ;;  %v10691_v48 = vpack.c.bf16 %v3391_v60, %v3391_v60  ;;  %vm20463_vm15 = vcmask 257152   ;;  %v10755_v60 = vpack.c.bf16 %v16657_v14, %v16657_v14  ;;  %v16763_v62 = vld [vmem:[#allocation2 + $0x130] sm:$0xff] }
 0x424   :  { %v4875_v20 = vpop.permute.xlu1 %4874  ;;  %5744 = vst.msk [vmem:[#allocation3 + $0xd0] sm:$0xf] %vm20448_vm9, %v5578_v45  ;;  %vm20460_vm9 = vcmask 1044352  }
 0x425   :  { %5040 = vst.msk [vmem:[#allocation3 + $0xd8] sm:$0xf] %vm20446_vm14, %v4875_v20  ;;  %5589 = vrot.lane.b32.xlu0 %v10870_v63, %s11355_s17  ;;  %v16739_v20 = vld [vmem:[#allocation2 + $0x12f] sm:$0xff]  ;;  %v10934_v63 = vpack.c.bf16 %v6070_v55, %v6070_v55  ;;  %vm20457_vm14 = vcmp.lt.s32.totalorder %v20414_v39, 15 }
 0x426   :  { %2923 = vrot.lane.b32.xlu1 %v10627_v32, %s11351_s0  ;;  %v6071_v5 = vsel %vm20457_vm14, %v16739_v20, 0.0 }
 0x427   :  { %v6347_v40 = vpop.permute.xlu0 %6346  ;;  %v10935_v33 = vpack.c.bf16 %v6071_v5, %v6071_v5 }
 0x428   :  { %v5580_v7 = vpop.permute.xlu1 %5579  ;;  %6513 = vst.msk [vmem:[#allocation3 + $0xd0] sm:$0xf] %vm20455_vm5, %v6347_v40  ;;  %v16752_v40 = vld [vmem:[#allocation2 + $0x128] sm:$0xff]  ;;  %vm20464_vm5 = vmmov %vm20463_vm15 }
 0x429   :  { %5745 = vst.msk [vmem:[#allocation3 + $0xd8] sm:$0xf] %vm20450_vm4, %v5580_v7  ;;  %3690 = vrot.lane.b32.xlu0 %v10690_v41, %s11352_s1  ;;  %vm20461_vm4 = vmmov %vm20460_vm9  ;;  %v6775_v56 = vsel %vm20462_vm10, %v16752_v40, 0.0 }
 0x42a   :  { %5591 = vrot.lane.b32.xlu1 %v10871_v36, %s11355_s17  ;;  %v10754_v36 = vpack.c.bf16 %v4095_v38, %v4095_v38  ;;  %v10998_v59 = vpack.c.bf16 %v6775_v56, %v6775_v56 }
 0x42b   :  { %v7052_v45 = vpop.permute.xlu0 %7051 }
 0x42c   :  { %v6349_v32 = vpop.permute.xlu1 %6348  ;;  %7218 = vst.msk [vmem:[#allocation3 + $0xd0] sm:$0xf] %vm20460_vm9, %v7052_v45  ;;  %vm20469_vm9 = vcmask 519552  }
 0x42d   :  { %6514 = vst.msk [vmem:[#allocation3 + $0xd8] sm:$0xf] %vm20456_vm3, %v6349_v32  ;;  %6358 = vrot.lane.b32.xlu0 %v10934_v63, %s11356_s13  ;;  %vm20465_vm3 = vmmov %vm20457_vm14  ;;  %vm20466_vm14 = vcmask 388352   ;;  %v10818_v63 = vpack.c.bf16 %v16676_v1, %v16676_v1  ;;  %v10819_v1 = vpack.c.bf16 %v16687_v35, %v16687_v35 }
 0x42e   :  { %3692 = vrot.lane.b32.xlu1 %v10691_v48, %s11352_s1  ;;  %v6776_v23 = vsel %vm20465_vm3, %v16763_v62, 0.0  ;;  %vm20468_vm2 = vmmov %vm20466_vm14  ;;  %vm20476_vm3 = vcmask 781952  }
 0x42f   :  { %v2890_v41 = vpop.permute.xlu0 %2889  ;;  %v10999_v14 = vpack.c.bf16 %v6776_v23, %v6776_v23  ;;  %vm20472_vm10 = vmmov %vm20469_vm9 }
 0x430   :  { %v7054_v7 = vpop.permute.xlu1 %7053  ;;  %3054 = vst.msk [vmem:[#allocation3 + $0xe0] sm:$0xf] %vm20463_vm15, %v2890_v41  ;;  %v20471_v41 = vld [vmem:[#allocation106_spill] sm:$0xff]  ;;  %vm20473_vm15 = vcmask 650752  }
 0x431   :  { %7219 = vst.msk [vmem:[#allocation3 + $0xd8] sm:$0xf] %vm20461_vm4, %v7054_v7  ;;  %4395 = vrot.lane.b32.xlu0 %v10754_v36, %s11354_s3  ;;  %vm20470_vm4 = vcmask 130048   ;;  %v10616_v56 = vpack.c.bf16 %v20471_v41, %v20471_v41  ;;  %v16809_v41 = vld [vmem:[#allocation2 + $0x18f] sm:$0xff] }
 0x432   :  { %6360 = vrot.lane.b32.xlu1 %v10935_v33, %s11356_s13  ;;  %10432 = vmatprep.mubr.msk.bf16.mxu0 %vm20470_vm4, %v11228_v47 }
 0x433   :  { %v3659_v55 = vpop.permute.xlu0 %3658  ;;  %v16771_v48 = vpop.f32.mrf.mxu0  ;;  %v7922_v45 = vld [vmem:[#allocation3 + $0xd0] sm:$0xff] }
 0x434   :  { %v2892_v51 = vpop.permute.xlu1 %2891  ;;  %3823 = vst.msk [vmem:[#allocation3 + $0xe0] sm:$0xf] %vm20466_vm14, %v3659_v55  ;;  %20467 = vst [vmem:[#allocation79_spill] sm:$0xff] %v16771_v48  ;;  %v20474_v55 = vld [vmem:[#allocation107_spill] sm:$0xff] }
 0x435   :  { %3055 = vst.msk [vmem:[#allocation3 + $0xe8] sm:$0xf] %vm20464_vm5, %v2892_v51  ;;  %7063 = vrot.lane.b32.xlu0 %v10998_v59, %s11357_s14  ;;  %v8484_v7 = vpop.f32.mrf.mxu0  ;;  %v10617_v23 = vpack.c.bf16 %v20474_v55, %v20474_v55  ;;  %vm20475_vm5 = vmmov %vm20473_vm15 }
 0x436   :  { %4397 = vrot.lane.b32.xlu1 %v10755_v60, %s11354_s3  ;;  %vm20479_vm14 = vmmov %vm20476_vm3 }
 0x437   :  { %v4364_v39 = vpop.permute.xlu0 %4363  ;;  %v16780_v36 = vpop.f32.mrf.mxu0 }
 0x438   :  { %v3661_v32 = vpop.permute.xlu1 %3660  ;;  %v7923_v5 = vld [vmem:[#allocation3 + $0xd8] sm:$0xff]  ;;  %4528 = vst.msk [vmem:[#allocation3 + $0xe0] sm:$0xf] %vm20469_vm9, %v4364_v39  ;;  %vm20482_vm9 = vcmask 913152  }
 0x439   :  { %3824 = vst.msk [vmem:[#allocation3 + $0xe8] sm:$0xf] %vm20468_vm2, %v3661_v32  ;;  %v10372_v38 = vcombine.low %v7922_v45, %v7923_v5  ;;  %4908 = vrot.lane.b32.xlu0 %v10818_v63, %s11353_s2  ;;  %v8487_v60 = vpop.f32.mrf.mxu0  ;;  %v11323_v32 = vld [vmem:[#allocation2 + $0x179] sm:$0xff]  ;;  %v16796_v63 = vld [vmem:[#allocation2 + $0x187] sm:$0xff]  ;;  %vm20484_vm4 = vmmov %vm20482_vm9 }
 0x43a   :  { %7065 = vrot.lane.b32.xlu1 %v10999_v14, %s11357_s14  ;;  %v10882_v14 = vpack.c.bf16 %v11323_v32, %v11323_v32  ;;  %v20477_v5 = vld [vmem:[#allocation102_spill] sm:$0xff]  ;;  %v20478_v39 = vld [vmem:[#allocation108_spill] sm:$0xff] }
 0x43b   :  { %8553 = vmatmul.mubr.bf16.gmra.mxu0 %v10372_v38  ;;  %v4877_v51 = vpop.permute.xlu0 %4876  ;;  %v10883_v47 = vpack.c.bf16 %v20477_v5, %v20477_v5  ;;  %v10680_v38 = vpack.c.bf16 %v20478_v39, %v20478_v39  ;;  %v20486_v32 = vld [vmem:[#allocation110_spill] sm:$0xff] }
 0x43c   :  { %v4366_v33 = vpop.permute.xlu1 %4365  ;;  %5041 = vst.msk [vmem:[#allocation3 + $0xe0] sm:$0xf] %vm20473_vm15, %v4877_v51  ;;  %v20483_v51 = vld [vmem:[#allocation109_spill] sm:$0xff]  ;;  %vm20487_vm15 = vnez %v20486_v32 }
 0x43d   :  { %4529 = vst.msk [vmem:[#allocation3 + $0xe8] sm:$0xf] %vm20472_vm10, %v4366_v33  ;;  %2901 = vrot.lane.b32.xlu0 %v10616_v56, %s11351_s0  ;;  %v20480_v33 = vld [vmem:[#allocation103_spill] sm:$0xff]  ;;  %v10681_v60 = vpack.c.bf16 %v20483_v51, %v20483_v51  ;;  %vm20485_vm10 = vcmp.lt.s32.totalorder %v20443_v2, 15 }
 0x43e   :  { %4910 = vrot.lane.b32.xlu1 %v10819_v1, %s11353_s2  ;;  %vm20481_vm2 = vnez %v20480_v33 }
 0x43f   :  { %v5582_v35 = vpop.permute.xlu0 %5581  ;;  %v6082_v1 = vsel %vm20481_vm2, %v16796_v63, 0.0  ;;  %vm20491_vm2 = vcmask 257152  }
 0x440   :  { %v4879_v59 = vpop.permute.xlu1 %4878  ;;  %5746 = vst.msk [vmem:[#allocation3 + $0xe0] sm:$0xf] %vm20476_vm3, %v5582_v35 }
 0x441   :  { %5042 = vst.msk [vmem:[#allocation3 + $0xe8] sm:$0xf] %vm20475_vm5, %v4879_v59  ;;  %5613 = vrot.lane.b32.xlu0 %v10882_v14, %s11355_s17  ;;  %v10946_v59 = vpack.c.bf16 %v6082_v1, %v6082_v1  ;;  %v4085_v14 = vsel %vm20487_vm15, %v16723_v30, 0.0  ;;  %vm20488_vm5 = vcmask 1044352  }
 0x442   :  { %2903 = vrot.lane.b32.xlu1 %v10617_v23, %s11351_s0  ;;  %v6083_v23 = vsel %vm20485_vm10, %v16809_v41, 0.0  ;;  %vm20489_vm3 = vmmov %vm20488_vm5 }
 0x443   :  { %v6351_v7 = vpop.permute.xlu0 %6350  ;;  %v10947_v5 = vpack.c.bf16 %v6083_v23, %v6083_v23 }
 0x444   :  { %v5584_v45 = vpop.permute.xlu1 %5583  ;;  %6515 = vst.msk [vmem:[#allocation3 + $0xe0] sm:$0xf] %vm20482_vm9, %v6351_v7  ;;  %vm20492_vm9 = vmmov %vm20491_vm2 }
 0x445   :  { %5747 = vst.msk [vmem:[#allocation3 + $0xe8] sm:$0xf] %vm20479_vm14, %v5584_v45  ;;  %3670 = vrot.lane.b32.xlu0 %v10680_v38, %s11352_s1  ;;  %v16826_v38 = vld [vmem:[#allocation2 + $0x188] sm:$0xff]  ;;  %vm20490_vm14 = vcmp.lt.s32.totalorder %v20438_v9, 15 }
 0x446   :  { %5615 = vrot.lane.b32.xlu1 %v10883_v47, %s11355_s17  ;;  %v10744_v47 = vpack.c.bf16 %v4085_v14, %v4085_v14  ;;  %v6787_v30 = vsel %vm20490_vm14, %v16826_v38, 0.0 }
 0x447   :  { %v7056_v55 = vpop.permute.xlu0 %7055  ;;  %v11010_v51 = vpack.c.bf16 %v6787_v30, %v6787_v30  ;;  %v20498_v30 = vld [vmem:[#allocation117_spill] sm:$0xff] }
 0x448   :  { %v6353_v56 = vpop.permute.xlu1 %6352  ;;  %7220 = vst.msk [vmem:[#allocation3 + $0xe0] sm:$0xf] %vm20488_vm5, %v7056_v55  ;;  %vm20496_vm5 = vcmask 519552  }
 0x449   :  { %6516 = vst.msk [vmem:[#allocation3 + $0xe8] sm:$0xf] %vm20484_vm4, %v6353_v56  ;;  %6382 = vrot.lane.b32.xlu0 %v10946_v59, %s11356_s13  ;;  %v10745_v56 = vpack.c.bf16 %v16739_v20, %v16739_v20  ;;  %v16839_v59 = vld [vmem:[#allocation2 + $0x190] sm:$0xff]  ;;  %vm20493_vm4 = vmmov %vm20485_vm10  ;;  %vm20494_vm10 = vcmask 388352   ;;  %v10808_v20 = vpack.c.bf16 %v16752_v40, %v16752_v40  ;;  %v10809_v40 = vpack.c.bf16 %v16763_v62, %v16763_v62 }
 0x44a   :  { %3672 = vrot.lane.b32.xlu1 %v10681_v60, %s11352_s1  ;;  %v6788_v9 = vsel %vm20493_vm4, %v16839_v59, 0.0  ;;  %vm20495_vm15 = vmmov %vm20494_vm10  ;;  %vm20503_vm4 = vcmask 257152  }
 0x44b   :  { %v2894_v39 = vpop.permute.xlu0 %2893  ;;  %v11011_v32 = vpack.c.bf16 %v6788_v9, %v6788_v9  ;;  %vm20499_vm14 = vmmov %vm20496_vm5  ;;  %v11326_v9 = vld [vmem:[#allocation2 + $0x129] sm:$0xff] }
 0x44c   :  { %v7058_v35 = vpop.permute.xlu1 %7057  ;;  %3056 = vst.msk [vmem:[#allocation3 + $0xf0] sm:$0xf] %vm20491_vm2, %v2894_v39  ;;  %vm20500_vm2 = vcmask 650752  }
 0x44d   :  { %7221 = vst.msk [vmem:[#allocation3 + $0xe8] sm:$0xf] %vm20489_vm3, %v7058_v35  ;;  %4375 = vrot.lane.b32.xlu0 %v10744_v47, %s11354_s3  ;;  %vm20497_vm3 = vcmask 130048  }
 0x44e   :  { %v16823_v45 = vpop.f32.mrf.mxu0  ;;  %6384 = vrot.lane.b32.xlu1 %v10947_v5, %s11356_s13  ;;  %v11230_v5 = vld [vmem:[#allocation3 + $0xe4] ss:$8 sps:$4 sm:$0xff]  }
 0x44f   :  { %v3663_v60 = vpop.permute.xlu0 %3662  ;;  %v7924_v14 = vld [vmem:[#allocation3 + $0xe0] sm:$0xff]  ;;  %10433 = vmatprep.mubr.msk.bf16.mxu0 %vm20497_vm3, %v11230_v5  ;;  %v20505_v5 = vld [vmem:[#allocation119_spill] sm:$0xff] }
 0x450   :  { %v8492_v7 = vpop.f32.mrf.mxu0  ;;  %v2896_v33 = vpop.permute.xlu1 %2895  ;;  %3825 = vst.msk [vmem:[#allocation3 + $0xf0] sm:$0xf] %vm20494_vm10, %v3663_v60  ;;  %vm20506_vm10 = vmmov %vm20503_vm4 }
 0x451   :  { %3057 = vst.msk [vmem:[#allocation3 + $0xf8] sm:$0xf] %vm20492_vm9, %v2896_v33  ;;  %7087 = vrot.lane.b32.xlu0 %v11010_v51, %s11357_s14  ;;  %v10628_v7 = vpack.c.bf16 %v20498_v30, %v20498_v30  ;;  %v20501_v51 = vld [vmem:[#allocation118_spill] sm:$0xff]  ;;  %vm20502_vm9 = vmmov %vm20500_vm2 }
 0x452   :  { %v16834_v1 = vpop.f32.mrf.mxu0  ;;  %4377 = vrot.lane.b32.xlu1 %v10745_v56, %s11354_s3  ;;  %v10629_v60 = vpack.c.bf16 %v20501_v51, %v20501_v51  ;;  %v20511_v51 = vld [vmem:[#allocation120_spill] sm:$0xff] }
 0x453   :  { %v4368_v47 = vpop.permute.xlu0 %4367 }
 0x454   :  { %v8495_v55 = vpop.f32.mrf.mxu0  ;;  %v3665_v23 = vpop.permute.xlu1 %3664  ;;  %v7925_v35 = vld [vmem:[#allocation3 + $0xe8] sm:$0xff]  ;;  %4530 = vst.msk [vmem:[#allocation3 + $0xf0] sm:$0xf] %vm20496_vm5, %v4368_v47  ;;  %v10692_v47 = vpack.c.bf16 %v20505_v5, %v20505_v5  ;;  %vm20509_vm5 = vcmask 781952  }
 0x455   :  { %3826 = vst.msk [vmem:[#allocation3 + $0xf8] sm:$0xf] %vm20495_vm15, %v3665_v23  ;;  %v10374_v2 = vcombine.low %v7924_v14, %v7925_v35  ;;  %4888 = vrot.lane.b32.xlu0 %v10808_v20, %s11353_s2  ;;  %v10872_v55 = vpack.c.bf16 %v11326_v9, %v11326_v9  ;;  %v16868_v23 = vld [vmem:[#allocation2 + $0x137] sm:$0xff]  ;;  %v20504_v14 = vld [vmem:[#allocation111_spill] sm:$0xff]  ;;  %vm20512_vm3 = vmmov %vm20509_vm5 }
 0x456   :  { %7089 = vrot.lane.b32.xlu1 %v11011_v32, %s11357_s14  ;;  %v10873_v35 = vpack.c.bf16 %v20504_v14, %v20504_v14  ;;  %v4097_v14 = vsel %vm14938_vm11, %v16796_v63, 0.0  ;;  %vm20519_vm11 = vcmask 913152  }
 0x457   :  { %8561 = vmatmul.mubr.bf16.gmra.mxu0 %v10374_v2  ;;  %v4881_v33 = vpop.permute.xlu0 %4880 }
 0x458   :  { %v4370_v39 = vpop.permute.xlu1 %4369  ;;  %5043 = vst.msk [vmem:[#allocation3 + $0xf0] sm:$0xf] %vm20500_vm2, %v4881_v33  ;;  %vm20515_vm2 = vcmask 388352  }
 0x459   :  { %4531 = vst.msk [vmem:[#allocation3 + $0xf8] sm:$0xf] %vm20499_vm14, %v4370_v39  ;;  %2925 = vrot.lane.b32.xlu0 %v10628_v7, %s11351_s0  ;;  %v20507_v39 = vld [vmem:[#allocation112_spill] sm:$0xff]  ;;  %v16883_v7 = vld [vmem:[#allocation2 + $0x13f] sm:$0xff] }
 0x45a   :  { %4890 = vrot.lane.b32.xlu1 %v10809_v40, %s11353_s2  ;;  %vm20508_vm15 = vnez %v20507_v39 }
 0x45b   :  { %v2918_v62 = vpop.permute.xlu0 %2917  ;;  %v6072_v40 = vsel %vm20508_vm15, %v16868_v23, 0.0 }
 0x45c   :  { %v4883_v56 = vpop.permute.xlu1 %4882  ;;  %3068 = vst.msk [vmem:[#allocation3 + $0x150] sm:$0xf] %vm20503_vm4, %v2918_v62  ;;  %v10936_v9 = vpack.c.bf16 %v6072_v40, %v6072_v40  ;;  %v20513_v62 = vld [vmem:[#allocation105_spill] sm:$0xff] }
 0x45d   :  { %5044 = vst.msk [vmem:[#allocation3 + $0xf8] sm:$0xf] %vm20502_vm9, %v4883_v56  ;;  %5593 = vrot.lane.b32.xlu0 %v10872_v55, %s11355_s17  ;;  %vm20514_vm14 = vcmp.lt.s32.totalorder %v20513_v62, 15  ;;  %vm20516_vm9 = vmmov %vm20515_vm2  ;;  %v16900_v40 = vld [vmem:[#allocation2 + $0x138] sm:$0xff] }
 0x45e   :  { %2927 = vrot.lane.b32.xlu1 %v10629_v60, %s11351_s0  ;;  %v10693_v60 = vpack.c.bf16 %v20511_v51, %v20511_v51  ;;  %vm20521_vm15 = vmmov %vm20514_vm14 }
 0x45f   :  { %v5586_v2 = vpop.permute.xlu0 %5585 }
 0x460   :  { %v2920_v32 = vpop.permute.xlu1 %2919  ;;  %5748 = vst.msk [vmem:[#allocation3 + $0xf0] sm:$0xf] %vm20509_vm5, %v5586_v2  ;;  %v10756_v2 = vpack.c.bf16 %v4097_v14, %v4097_v14  ;;  %vm20522_vm5 = vcmask 519552  }
 0x461   :  { %3069 = vst.msk [vmem:[#allocation3 + $0x158] sm:$0xf] %vm20506_vm10, %v2920_v32  ;;  %3694 = vrot.lane.b32.xlu0 %v10692_v47, %s11352_s1  ;;  %v6073_v32 = vsel %vm20514_vm14, %v16883_v7, 0.0  ;;  %vm20520_vm10 = vmmov %vm20519_vm11  ;;  %vm20524_vm14 = vcmask 1044352  }
 0x462   :  { %5595 = vrot.lane.b32.xlu1 %v10873_v35, %s11355_s17  ;;  %v10937_v47 = vpack.c.bf16 %v6073_v32, %v6073_v32 }
 0x463   :  { %v16870_v20 = vpop.f32.mrf.mxu0  ;;  %v3687_v55 = vpop.permute.xlu0 %3686 }
 0x464   :  { %v5588_v33 = vpop.permute.xlu1 %5587  ;;  %3837 = vst.msk [vmem:[#allocation3 + $0x150] sm:$0xf] %vm20515_vm2, %v3687_v55  ;;  %vm20526_vm2 = vmmov %vm20524_vm14 }
 0x465   :  { %v8500_v30 = vpop.f32.mrf.mxu0  ;;  %5749 = vst.msk [vmem:[#allocation3 + $0xf8] sm:$0xf] %vm20512_vm3, %v5588_v33  ;;  %6362 = vrot.lane.b32.xlu0 %v10936_v9, %s11356_s13  ;;  %v10757_v33 = vpack.c.bf16 %v16809_v41, %v16809_v41  ;;  %v16911_v9 = vld [vmem:[#allocation2 + $0x140] sm:$0xff]  ;;  %v10820_v41 = vpack.c.bf16 %v16826_v38, %v16826_v38  ;;  %vm20523_vm3 = vmmov %vm20522_vm5 }
 0x466   :  { %3696 = vrot.lane.b32.xlu1 %v10693_v60, %s11352_s1  ;;  %v20517_v30 = vld [vmem:[#allocation104_spill] sm:$0xff]  ;;  %v6778_v55 = vsel %vm20521_vm15, %v16911_v9, 0.0 }
 0x467   :  { %v16885_v56 = vpop.f32.mrf.mxu0  ;;  %v6355_v39 = vpop.permute.xlu0 %6354  ;;  %vm20518_vm4 = vcmp.lt.s32.totalorder %v20517_v30, 15  ;;  %v11001_v14 = vpack.c.bf16 %v6778_v55, %v6778_v55 }
 0x468   :  { %20510 = vst [vmem:[#allocation80_spill] sm:$0xff] %v16885_v56  ;;  %v3689_v5 = vpop.permute.xlu1 %3688  ;;  %v6777_v34 = vsel %vm20518_vm4, %v16900_v40, 0.0  ;;  %6517 = vst.msk [vmem:[#allocation3 + $0xf0] sm:$0xf] %vm20519_vm11, %v6355_v39  ;;  %vm20530_vm11 = vcmask 257152  }
 0x469   :  { %v8503_v35 = vpop.f32.mrf.mxu0  ;;  %3838 = vst.msk [vmem:[#allocation3 + $0x158] sm:$0xf] %vm20516_vm9, %v3689_v5  ;;  %4399 = vrot.lane.b32.xlu0 %v10756_v2, %s11354_s3  ;;  %v11000_v51 = vpack.c.bf16 %v6777_v34, %v6777_v34  ;;  %v20525_v2 = vld [vmem:[#allocation38_spill] sm:$0xff]  ;;  %vm20527_vm9 = vcmask 650752  }
 0x46a   :  { %6364 = vrot.lane.b32.xlu1 %v10937_v47, %s11356_s13  ;;  %v10821_v47 = vpack.c.bf16 %v16839_v59, %v16839_v59  ;;  %v10618_v39 = vpack.c.bf16 %v20525_v2, %v20525_v2  ;;  %v11329_v59 = vld [vmem:[#allocation2 + $0x189] sm:$0xff]  ;;  %vm20529_vm4 = vmmov %vm20527_vm9 }
 0x46b   :  { %v4392_v60 = vpop.permute.xlu0 %4391 }
 0x46c   :  { %v6357_v63 = vpop.permute.xlu1 %6356  ;;  %4542 = vst.msk [vmem:[#allocation3 + $0x150] sm:$0xf] %vm20522_vm5, %v4392_v60  ;;  %v10884_v60 = vpack.c.bf16 %v11329_v59, %v11329_v59  ;;  %vm20536_vm5 = vcmask 781952  }
 0x46d   :  { %6518 = vst.msk [vmem:[#allocation3 + $0xf8] sm:$0xf] %vm20520_vm10, %v6357_v63  ;;  %7067 = vrot.lane.b32.xlu0 %v11000_v51, %s11357_s14  ;;  %vm20533_vm10 = vmmov %vm20530_vm11 }
 0x46e   :  { %4401 = vrot.lane.b32.xlu1 %v10757_v33, %s11354_s3  ;;  %v20528_v33 = vld [vmem:[#allocation35_spill] sm:$0xff] }
 0x46f   :  { %v7060_v35 = vpop.permute.xlu0 %7059  ;;  %v10619_v51 = vpack.c.bf16 %v20528_v33, %v20528_v33 }
 0x470   :  { %v4394_v32 = vpop.permute.xlu1 %4393  ;;  %7222 = vst.msk [vmem:[#allocation3 + $0xf0] sm:$0xf] %vm20524_vm14, %v7060_v35  ;;  %v20531_v35 = vld [vmem:[#allocation123_spill] sm:$0xff]  ;;  %vm20539_vm14 = vmmov %vm20536_vm5 }
 0x471   :  { %4543 = vst.msk [vmem:[#allocation3 + $0x158] sm:$0xf] %vm20523_vm3, %v4394_v32  ;;  %4912 = vrot.lane.b32.xlu0 %v10820_v41, %s11353_s2  ;;  %vm20537_vm3 = vcmask 130048  }
 0x472   :  { %7069 = vrot.lane.b32.xlu1 %v11001_v14, %s11357_s14  ;;  %v16943_v14 = vld [vmem:[#allocation2 + $0x197] sm:$0xff] }
 0x473   :  { %v16925_v5 = vpop.f32.mrf.mxu0  ;;  %v4905_v38 = vpop.permute.xlu0 %4904 }
 0x474   :  { %v7062_v62 = vpop.permute.xlu1 %7061  ;;  %5055 = vst.msk [vmem:[#allocation3 + $0x150] sm:$0xf] %vm20527_vm9, %v4905_v38  ;;  %vm20541_vm9 = vcmask 388352  }
 0x475   :  { %7223 = vst.msk [vmem:[#allocation3 + $0xf8] sm:$0xf] %vm20526_vm2, %v7062_v62  ;;  %v8508_v30 = vpop.f32.mrf.mxu0  ;;  %2905 = vrot.lane.b32.xlu0 %v10618_v39, %s11351_s0  ;;  %v10885_v62 = vpack.c.bf16 %v20531_v35, %v20531_v35  ;;  %vm20540_vm2 = vcmp.lt.s32.totalorder %v14873_v31, 15 }
 0x476   :  { %4914 = vrot.lane.b32.xlu1 %v10821_v47, %s11353_s2  ;;  %v20532_v47 = vld [vmem:[#allocation127_spill] sm:$0xff] }
 0x477   :  { %v16935_v63 = vpop.f32.mrf.mxu0  ;;  %v2898_v55 = vpop.permute.xlu0 %2897  ;;  %v10682_v2 = vpack.c.bf16 %v20532_v47, %v20532_v47  ;;  %v7926_v39 = vld [vmem:[#allocation3 + $0xf0] sm:$0xff] }
 0x478   :  { %v4907_v34 = vpop.permute.xlu1 %4906  ;;  %3058 = vst.msk [vmem:[#allocation3 + $0x100] sm:$0xf] %vm20530_vm11, %v2898_v55  ;;  %v11232_v30 = vld [vmem:[#allocation3 + $0xf4] ss:$8 sps:$4 sm:$0xff]   ;;  %vm20543_vm11 = vcmp.lt.s32.totalorder %v14871_v6, 15 }
 0x479   :  { %5056 = vst.msk [vmem:[#allocation3 + $0x158] sm:$0xf] %vm20529_vm4, %v4907_v34  ;;  %v8511_v32 = vpop.f32.mrf.mxu0  ;;  %5617 = vrot.lane.b32.xlu0 %v10884_v60, %s11355_s17  ;;  %v16956_v60 = vld [vmem:[#allocation2 + $0x19f] sm:$0xff]  ;;  %10434 = vmatprep.mubr.msk.bf16.mxu0 %vm20537_vm3, %v11232_v30  ;;  %vm20542_vm4 = vmmov %vm20541_vm9 }
 0x47a   :  { %2907 = vrot.lane.b32.xlu1 %v10619_v51, %s11351_s0  ;;  %v20534_v51 = vld [vmem:[#allocation124_spill] sm:$0xff]  ;;  %v20538_v32 = vld [vmem:[#allocation129_spill] sm:$0xff] }
 0x47b   :  { %v5610_v34 = vpop.permute.xlu0 %5609  ;;  %vm20535_vm15 = vnez %v20534_v51 }
 0x47c   :  { %v2900_v41 = vpop.permute.xlu1 %2899  ;;  %v7927_v38 = vld [vmem:[#allocation3 + $0xf8] sm:$0xff]  ;;  %v6084_v59 = vsel %vm20535_vm15, %v16943_v14, 0.0  ;;  %5760 = vst.msk [vmem:[#allocation3 + $0x150] sm:$0xf] %vm20536_vm5, %v5610_v34  ;;  %vm20547_vm15 = vmmov %vm20540_vm2  ;;  %vm20548_vm5 = vcmask 519552  }
 0x47d   :  { %3059 = vst.msk [vmem:[#allocation3 + $0x108] sm:$0xf] %vm20533_vm10, %v2900_v41  ;;  %v10376_v33 = vcombine.low %v7926_v39, %v7927_v38  ;;  %3674 = vrot.lane.b32.xlu0 %v10682_v2, %s11352_s1  ;;  %v10683_v41 = vpack.c.bf16 %v20538_v32, %v20538_v32  ;;  %v10948_v35 = vpack.c.bf16 %v6084_v59, %v6084_v59  ;;  %v6085_v39 = vsel %vm20540_vm2, %v16956_v60, 0.0  ;;  %vm20549_vm3 = vmmov %vm20548_vm5 }
 0x47e   :  { %5619 = vrot.lane.b32.xlu1 %v10885_v62, %s11355_s17  ;;  %v4087_v62 = vsel %vm15060_vm1, %v16868_v23, 0.0  ;;  %v10949_v38 = vpack.c.bf16 %v6085_v39, %v6085_v39  ;;  %vm20544_vm10 = vcmask 913152   ;;  %v10747_v59 = vpack.c.bf16 %v16883_v7, %v16883_v7 }
 0x47f   :  { %8569 = vmatmul.mubr.bf16.gmra.mxu0 %v10376_v33  ;;  %v3667_v47 = vpop.permute.xlu0 %3666  ;;  %v10746_v30 = vpack.c.bf16 %v4087_v62, %v4087_v62  ;;  %v16972_v33 = vld [vmem:[#allocation2 + $0x198] sm:$0xff]  ;;  %vm20546_vm1 = vmmov %vm20544_vm10  ;;  %v10810_v62 = vpack.c.bf16 %v16900_v40, %v16900_v40 }
 0x480   :  { %v5612_v55 = vpop.permute.xlu1 %5611  ;;  %3827 = vst.msk [vmem:[#allocation3 + $0x100] sm:$0xf] %vm20541_vm9, %v3667_v47  ;;  %v6789_v51 = vsel %vm20543_vm11, %v16972_v33, 0.0  ;;  %vm20553_vm9 = vcmask 650752   ;;  %vm20556_vm11 = vcmask 257152  }
 0x481   :  { %5761 = vst.msk [vmem:[#allocation3 + $0x158] sm:$0xf] %vm20539_vm14, %v5612_v55  ;;  %6386 = vrot.lane.b32.xlu0 %v10948_v35, %s11356_s13  ;;  %v11012_v55 = vpack.c.bf16 %v6789_v51, %v6789_v51  ;;  %vm20550_vm14 = vcmask 1044352  }
 0x482   :  { %3676 = vrot.lane.b32.xlu1 %v10683_v41, %s11352_s1  ;;  %v16985_v41 = vld [vmem:[#allocation2 + $0x1a0] sm:$0xff]  ;;  %vm20552_vm2 = vmmov %vm20550_vm14 }
 0x483   :  { %v6379_v34 = vpop.permute.xlu0 %6378  ;;  %v6790_v6 = vsel %vm20547_vm15, %v16985_v41, 0.0  ;;  %vm20562_vm15 = vcmask 781952  }
 0x484   :  { %v3669_v2 = vpop.permute.xlu1 %3668  ;;  %6529 = vst.msk [vmem:[#allocation3 + $0x150] sm:$0xf] %vm20544_vm10, %v6379_v34  ;;  %v11013_v7 = vpack.c.bf16 %v6790_v6, %v6790_v6  ;;  %v20551_v34 = vld [vmem:[#allocation131_spill] sm:$0xff]  ;;  %vm20559_vm10 = vmmov %vm20556_vm11 }
 0x485   :  { %3828 = vst.msk [vmem:[#allocation3 + $0x108] sm:$0xf] %vm20542_vm4, %v3669_v2  ;;  %4379 = vrot.lane.b32.xlu0 %v10746_v30, %s11354_s3  ;;  %v10811_v30 = vpack.c.bf16 %v16911_v9, %v16911_v9  ;;  %v10630_v51 = vpack.c.bf16 %v20551_v34, %v20551_v34  ;;  %vm20555_vm4 = vmmov %vm20553_vm9 }
 0x486   :  { %6388 = vrot.lane.b32.xlu1 %v10949_v38, %s11356_s13 }
 0x487   :  { %v16980_v23 = vpop.f32.mrf.mxu0  ;;  %v4372_v32 = vpop.permute.xlu0 %4371 }
 0x488   :  { %v6381_v37 = vpop.permute.xlu1 %6380  ;;  %20545 = vst [vmem:[#allocation83_spill] sm:$0xff] %v16980_v23  ;;  %4532 = vst.msk [vmem:[#allocation3 + $0x100] sm:$0xf] %vm20548_vm5, %v4372_v32  ;;  %v11332_v32 = vld [vmem:[#allocation2 + $0x139] sm:$0xff]  ;;  %vm20563_vm5 = vcmask 130048  }
 0x489   :  { %6530 = vst.msk [vmem:[#allocation3 + $0x158] sm:$0xf] %vm20546_vm1, %v6381_v37  ;;  %v8516_v35 = vpop.f32.mrf.mxu0  ;;  %7091 = vrot.lane.b32.xlu0 %v11012_v55, %s11357_s14  ;;  %v10874_v6 = vpack.c.bf16 %v11332_v32, %v11332_v32  ;;  %v20564_v32 = vld [vmem:[#allocation134_spill] sm:$0xff] }
 0x48a   :  { %4381 = vrot.lane.b32.xlu1 %v10747_v59, %s11354_s3  ;;  %v20554_v59 = vld [vmem:[#allocation132_spill] sm:$0xff] }
 0x48b   :  { %v16993_v39 = vpop.f32.mrf.mxu0  ;;  %v7084_v2 = vpop.permute.xlu0 %7083  ;;  %v10631_v55 = vpack.c.bf16 %v20554_v59, %v20554_v59  ;;  %v17015_v35 = vld [vmem:[#allocation2 + $0x147] sm:$0xff] }
 0x48c   :  { %v4374_v47 = vpop.permute.xlu1 %4373  ;;  %7234 = vst.msk [vmem:[#allocation3 + $0x150] sm:$0xf] %vm20550_vm14, %v7084_v2  ;;  %v20558_v2 = vld [vmem:[#allocation133_spill] sm:$0xff]  ;;  %vm20566_vm14 = vcmp.lt.s32.totalorder %v14997_v18, 15 }
 0x48d   :  { %4533 = vst.msk [vmem:[#allocation3 + $0x108] sm:$0xf] %vm20549_vm3, %v4374_v47  ;;  %v8519_v31 = vpop.f32.mrf.mxu0  ;;  %4892 = vrot.lane.b32.xlu0 %v10810_v62, %s11353_s2  ;;  %vm20565_vm3 = vmmov %vm20562_vm15 }
 0x48e   :  { %7093 = vrot.lane.b32.xlu1 %v11013_v7, %s11357_s14  ;;  %v20557_v7 = vld [vmem:[#allocation130_spill] sm:$0xff]  ;;  %v10694_v31 = vpack.c.bf16 %v20558_v2, %v20558_v2 }
 0x48f   :  { %v4885_v40 = vpop.permute.xlu0 %4884  ;;  %v10875_v62 = vpack.c.bf16 %v20557_v7, %v20557_v7 }
 0x490   :  { %v7086_v38 = vpop.permute.xlu1 %7085  ;;  %5045 = vst.msk [vmem:[#allocation3 + $0x100] sm:$0xf] %vm20553_vm9, %v4885_v40 }
 0x491   :  { %7235 = vst.msk [vmem:[#allocation3 + $0x158] sm:$0xf] %vm20552_vm2, %v7086_v38  ;;  %2929 = vrot.lane.b32.xlu0 %v10630_v51, %s11351_s0  ;;  %v20560_v51 = vld [vmem:[#allocation48_spill] sm:$0xff]  ;;  %vm20567_vm2 = vcmask 388352  }
 0x492   :  { %4894 = vrot.lane.b32.xlu1 %v10811_v30, %s11353_s2  ;;  %v11236_v30 = vld [vmem:[#allocation3 + $0x154] ss:$8 sps:$4 sm:$0xff]   ;;  %vm20561_vm1 = vnez %v20560_v51  ;;  %vm20568_vm9 = vmmov %vm20567_vm2 }
 0x493   :  { %v2922_v9 = vpop.permute.xlu0 %2921  ;;  %v6074_v40 = vsel %vm20561_vm1, %v17015_v35, 0.0  ;;  %10440 = vmatprep.mubr.msk.bf16.mxu1 %vm20563_vm5, %v11236_v30  ;;  %vm20573_vm1 = vcmask 519552   ;;  %vm20575_vm5 = vcmask 1044352  }
 0x494   :  { %v4887_v37 = vpop.permute.xlu1 %4886  ;;  %3070 = vst.msk [vmem:[#allocation3 + $0x160] sm:$0xf] %vm20556_vm11, %v2922_v9  ;;  %v10938_v9 = vpack.c.bf16 %v6074_v40, %v6074_v40  ;;  %v17048_v40 = vld [vmem:[#allocation2 + $0x148] sm:$0xff] }
 0x495   :  { %5046 = vst.msk [vmem:[#allocation3 + $0x108] sm:$0xf] %vm20555_vm4, %v4887_v37  ;;  %5597 = vrot.lane.b32.xlu0 %v10874_v6, %s11355_s17  ;;  %v17028_v37 = vld [vmem:[#allocation2 + $0x14f] sm:$0xff]  ;;  %v10695_v6 = vpack.c.bf16 %v20564_v32, %v20564_v32  ;;  %vm20570_vm4 = vcmask 913152   ;;  %v10759_v32 = vpack.c.bf16 %v16956_v60, %v16956_v60  ;;  %v10822_v60 = vpack.c.bf16 %v16972_v33, %v16972_v33 }
 0x496   :  { %2931 = vrot.lane.b32.xlu1 %v10631_v55, %s11351_s0  ;;  %v6075_v7 = vsel %vm20566_vm14, %v17028_v37, 0.0  ;;  %vm20571_vm11 = vmmov %vm20570_vm4 }
 0x497   :  { %v5590_v34 = vpop.permute.xlu0 %5589  ;;  %v10939_v30 = vpack.c.bf16 %v6075_v7, %v6075_v7 }
 0x498   :  { %v2924_v47 = vpop.permute.xlu1 %2923  ;;  %v11234_v38 = vld [vmem:[#allocation3 + $0x150] ss:$8 sps:$4 sm:$0xff]   ;;  %5750 = vst.msk [vmem:[#allocation3 + $0x100] sm:$0xf] %vm20562_vm15, %v5590_v34  ;;  %vm20574_vm15 = vmmov %vm20573_vm1 }
 0x499   :  { %3071 = vst.msk [vmem:[#allocation3 + $0x168] sm:$0xf] %vm20559_vm10, %v2924_v47  ;;  %3698 = vrot.lane.b32.xlu0 %v10694_v31, %s11352_s1  ;;  %8617 = vmatmul.mubr.bf16.vlgmr.msra.gmra.mxu1 %v11234_v38  ;;  %vm20572_vm10 = vmmov %vm20566_vm14  ;;  %vm20577_vm14 = vcmask 650752  }
 0x49a   :  { %5599 = vrot.lane.b32.xlu1 %v10875_v62, %s11355_s17  ;;  %v4099_v62 = vsel %vm15187_vm13, %v16943_v14, 0.0  ;;  %vm20569_vm13 = vcmp.lt.s32.totalorder %v14989_v24, 15 }
 0x49b   :  { %v17031_v55 = vpop.f32.mrf.mxu0  ;;  %v3691_v47 = vpop.permute.xlu0 %3690  ;;  %v10758_v34 = vpack.c.bf16 %v4099_v62, %v4099_v62  ;;  %v6779_v53 = vsel %vm20569_vm13, %v17048_v40, 0.0 }
 0x49c   :  { %v5592_v59 = vpop.permute.xlu1 %5591  ;;  %3839 = vst.msk [vmem:[#allocation3 + $0x160] sm:$0xf] %vm20567_vm2, %v3691_v47  ;;  %v17059_v47 = vld [vmem:[#allocation2 + $0x150] sm:$0xff]  ;;  %vm20579_vm2 = vmmov %vm20577_vm14 }
 0x49d   :  { %5751 = vst.msk [vmem:[#allocation3 + $0x108] sm:$0xf] %vm20565_vm3, %v5592_v59  ;;  %v8524_v2 = vpop.f32.mrf.mxu0  ;;  %6366 = vrot.lane.b32.xlu0 %v10938_v9, %s11356_s13  ;;  %v6780_v24 = vsel %vm20572_vm10, %v17059_v47, 0.0  ;;  %vm20576_vm3 = vmmov %vm20575_vm5  ;;  %vm20587_vm10 = vcmask 130048  }
 0x49e   :  { %3700 = vrot.lane.b32.xlu1 %v10695_v6, %s11352_s1  ;;  %v11002_v6 = vpack.c.bf16 %v6779_v53, %v6779_v53  ;;  %v11003_v62 = vpack.c.bf16 %v6780_v24, %v6780_v24  ;;  %v20578_v53 = vld [vmem:[#allocation9_spill] sm:$0xff] }
 0x49f   :  { %v17045_v38 = vpop.f32.mrf.mxu0  ;;  %v6359_v51 = vpop.permute.xlu0 %6358 }
 0x4a0   :  { %v3693_v31 = vpop.permute.xlu1 %3692  ;;  %6519 = vst.msk [vmem:[#allocation3 + $0x100] sm:$0xf] %vm20570_vm4, %v6359_v51 }
 0x4a1   :  { %3840 = vst.msk [vmem:[#allocation3 + $0x168] sm:$0xf] %vm20568_vm9, %v3693_v31  ;;  %v8527_v14 = vpop.f32.mrf.mxu0  ;;  %4403 = vrot.lane.b32.xlu0 %v10758_v34, %s11354_s3  ;;  %v10823_v31 = vpack.c.bf16 %v16985_v41, %v16985_v41  ;;  %vm20580_vm9 = vcmask 257152  }
 0x4a2   :  { %6368 = vrot.lane.b32.xlu1 %v10939_v30, %s11356_s13  ;;  %v10620_v30 = vpack.c.bf16 %v15261_v44, %v15261_v44  ;;  %v10621_v14 = vpack.c.bf16 %v20578_v53, %v20578_v53  ;;  %vm20583_vm13 = vmmov %vm20580_vm9  ;;  %v20584_v53 = vld [vmem:[#allocation135_spill] sm:$0xff] }
 0x4a3   :  { %v4396_v9 = vpop.permute.xlu0 %4395  ;;  %vm20585_vm4 = vnez %v20584_v53 }
 0x4a4   :  { %v6361_v59 = vpop.permute.xlu1 %6360  ;;  %4544 = vst.msk [vmem:[#allocation3 + $0x160] sm:$0xf] %vm20573_vm1, %v4396_v9 }
 0x4a5   :  { %6520 = vst.msk [vmem:[#allocation3 + $0x108] sm:$0xf] %vm20571_vm11, %v6361_v59  ;;  %7071 = vrot.lane.b32.xlu0 %v11002_v6, %s11357_s14  ;;  %v11335_v59 = vld [vmem:[#allocation2 + $0x199] sm:$0xff]  ;;  %v17089_v6 = vld [vmem:[#allocation2 + $0x1a7] sm:$0xff]  ;;  %vm20586_vm11 = vcmask 781952  }
 0x4a6   :  { %4405 = vrot.lane.b32.xlu1 %v10759_v32, %s11354_s3  ;;  %v10886_v41 = vpack.c.bf16 %v11335_v59, %v11335_v59  ;;  %vm20589_vm1 = vmmov %vm20586_vm11 }
 0x4a7   :  { %v7064_v2 = vpop.permute.xlu0 %7063 }
 0x4a8   :  { %v4398_v7 = vpop.permute.xlu1 %4397  ;;  %7224 = vst.msk [vmem:[#allocation3 + $0x100] sm:$0xf] %vm20575_vm5, %v7064_v2  ;;  %vm20591_vm5 = vcmask 388352  }
 0x4a9   :  { %4545 = vst.msk [vmem:[#allocation3 + $0x168] sm:$0xf] %vm20574_vm15, %v4398_v7  ;;  %4916 = vrot.lane.b32.xlu0 %v10822_v60, %s11353_s2  ;;  %v20581_v7 = vld [vmem:[#allocation40_spill] sm:$0xff]  ;;  %v20582_v60 = vld [vmem:[#allocation10_spill] sm:$0xff]  ;;  %vm20590_vm15 = vcmp.lt.s32.totalorder %v15128_v27, 15 }
 0x4aa   :  { %7073 = vrot.lane.b32.xlu1 %v11003_v62, %s11357_s14  ;;  %v10887_v62 = vpack.c.bf16 %v20581_v7, %v20581_v7  ;;  %v10684_v2 = vpack.c.bf16 %v20582_v60, %v20582_v60 }
 0x4ab   :  { %v4909_v34 = vpop.permute.xlu0 %4908 }
 0x4ac   :  { %v7066_v18 = vpop.permute.xlu1 %7065  ;;  %5057 = vst.msk [vmem:[#allocation3 + $0x160] sm:$0xf] %vm20577_vm14, %v4909_v34  ;;  %vm20593_vm14 = vcmp.lt.s32.totalorder %v15126_v50, 15 }
 0x4ad   :  { %7225 = vst.msk [vmem:[#allocation3 + $0x108] sm:$0xf] %vm20576_vm3, %v7066_v18  ;;  %2909 = vrot.lane.b32.xlu0 %v10620_v30, %s11351_s0  ;;  %v11237_v30 = vld [vmem:[#allocation3 + $0x104] ss:$8 sps:$4 sm:$0xff]   ;;  %vm20592_vm3 = vmmov %vm20591_vm5 }
 0x4ae   :  { %4918 = vrot.lane.b32.xlu1 %v10823_v31, %s11353_s2  ;;  %10435 = vmatprep.mubr.msk.bf16.mxu0 %vm20587_vm10, %v11237_v30 }
 0x4af   :  { %v17081_v51 = vpop.f32.mrf.mxu0  ;;  %v2902_v44 = vpop.permute.xlu0 %2901  ;;  %v7928_v18 = vld [vmem:[#allocation3 + $0x100] sm:$0xff] }
 0x4b0   :  { %v4911_v33 = vpop.permute.xlu1 %4910  ;;  %3060 = vst.msk [vmem:[#allocation3 + $0x110] sm:$0xf] %vm20580_vm9, %v2902_v44  ;;  %vm20596_vm9 = vmmov %vm20590_vm15 }
 0x4b1   :  { %5058 = vst.msk [vmem:[#allocation3 + $0x168] sm:$0xf] %vm20579_vm2, %v4911_v33  ;;  %v8532_v32 = vpop.f32.mrf.mxu0  ;;  %5621 = vrot.lane.b32.xlu0 %v10886_v41, %s11355_s17  ;;  %v17104_v41 = vld [vmem:[#allocation2 + $0x1af] sm:$0xff]  ;;  %vm20594_vm2 = vcmask 913152  }
 0x4b2   :  { %2911 = vrot.lane.b32.xlu1 %v10621_v14, %s11351_s0  ;;  %v6086_v14 = vsel %vm20585_vm4, %v17089_v6, 0.0  ;;  %v20588_v32 = vld [vmem:[#allocation8_spill] sm:$0xff] }
 0x4b3   :  { %v17091_v24 = vpop.f32.mrf.mxu0  ;;  %v5614_v34 = vpop.permute.xlu0 %5613  ;;  %v10950_v7 = vpack.c.bf16 %v6086_v14, %v6086_v14 }
 0x4b4   :  { %v2904_v9 = vpop.permute.xlu1 %2903  ;;  %v7929_v31 = vld [vmem:[#allocation3 + $0x108] sm:$0xff]  ;;  %5762 = vst.msk [vmem:[#allocation3 + $0x160] sm:$0xf] %vm20586_vm11, %v5614_v34  ;;  %vm20599_vm11 = vcmask 1044352  }
 0x4b5   :  { %3061 = vst.msk [vmem:[#allocation3 + $0x118] sm:$0xf] %vm20583_vm13, %v2904_v9  ;;  %v10378_v33 = vcombine.low %v7928_v18, %v7929_v31  ;;  %v8535_v59 = vpop.f32.mrf.mxu0  ;;  %3678 = vrot.lane.b32.xlu0 %v10684_v2, %s11352_s1  ;;  %v10685_v9 = vpack.c.bf16 %v20588_v32, %v20588_v32  ;;  %v4089_v2 = vsel %vm15327_vm0, %v17015_v35, 0.0  ;;  %v10749_v35 = vpack.c.bf16 %v17028_v37, %v17028_v37  ;;  %vm20595_vm0 = vmmov %vm20594_vm2 }
 0x4b6   :  { %5623 = vrot.lane.b32.xlu1 %v10887_v62, %s11355_s17  ;;  %v6087_v62 = vsel %vm20590_vm15, %v17104_v41, 0.0  ;;  %v10748_v30 = vpack.c.bf16 %v4089_v2, %v4089_v2  ;;  %vm20597_vm13 = vcmask 519552   ;;  %vm20601_vm10 = vmmov %vm20599_vm11 }
 0x4b7   :  { %8577 = vmatmul.mubr.bf16.gmra.mxu0 %v10378_v33  ;;  %v3671_v60 = vpop.permute.xlu0 %3670  ;;  %v10951_v31 = vpack.c.bf16 %v6087_v62, %v6087_v62  ;;  %v17120_v33 = vld [vmem:[#allocation2 + $0x1a8] sm:$0xff]  ;;  %vm20598_vm4 = vmmov %vm20597_vm13 }
 0x4b8   :  { %v5616_v44 = vpop.permute.xlu1 %5615  ;;  %3829 = vst.msk [vmem:[#allocation3 + $0x110] sm:$0xf] %vm20591_vm5, %v3671_v60  ;;  %v6791_v53 = vsel %vm20593_vm14, %v17120_v33, 0.0  ;;  %vm20605_vm5 = vcmask 257152  }
 0x4b9   :  { %5763 = vst.msk [vmem:[#allocation3 + $0x168] sm:$0xf] %vm20589_vm1, %v5616_v44  ;;  %6390 = vrot.lane.b32.xlu0 %v10950_v7, %s11356_s13  ;;  %v11014_v14 = vpack.c.bf16 %v6791_v53, %v6791_v53  ;;  %v17131_v44 = vld [vmem:[#allocation2 + $0x1b0] sm:$0xff]  ;;  %v10812_v7 = vpack.c.bf16 %v17048_v40, %v17048_v40  ;;  %vm20602_vm1 = vcmask 650752  }
 0x4ba   :  { %3680 = vrot.lane.b32.xlu1 %v10685_v9, %s11352_s1  ;;  %v6792_v50 = vsel %vm20596_vm9, %v17131_v44, 0.0  ;;  %vm20604_vm15 = vmmov %vm20602_vm1 }
 0x4bb   :  { %v6383_v34 = vpop.permute.xlu0 %6382  ;;  %v11015_v37 = vpack.c.bf16 %v6792_v50, %v6792_v50  ;;  %v17163_v50 = vld [vmem:[#allocation2 + $0x157] sm:$0xff] }
 0x4bc   :  { %v3673_v18 = vpop.permute.xlu1 %3672  ;;  %6531 = vst.msk [vmem:[#allocation3 + $0x160] sm:$0xf] %vm20594_vm2, %v6383_v34  ;;  %vm20611_vm2 = vcmask 781952  }
 0x4bd   :  { %3830 = vst.msk [vmem:[#allocation3 + $0x118] sm:$0xf] %vm20592_vm3, %v3673_v18  ;;  %4383 = vrot.lane.b32.xlu0 %v10748_v30, %s11354_s3  ;;  %v10813_v18 = vpack.c.bf16 %v17059_v47, %v17059_v47  ;;  %vm20608_vm3 = vmmov %vm20605_vm5 }
 0x4be   :  { %6392 = vrot.lane.b32.xlu1 %v10951_v31, %s11356_s13  ;;  %v20600_v31 = vld [vmem:[#allocation140_spill] sm:$0xff]  ;;  %vm20614_vm9 = vmmov %vm20611_vm2 }
 0x4bf   :  { %v4376_v59 = vpop.permute.xlu0 %4375  ;;  %v10632_v30 = vpack.c.bf16 %v20600_v31, %v20600_v31  ;;  %v11239_v31 = vld [vmem:[#allocation3 + $0x164] ss:$8 sps:$4 sm:$0xff]  }
 0x4c0   :  { %v6385_v8 = vpop.permute.xlu1 %6384  ;;  %4534 = vst.msk [vmem:[#allocation3 + $0x110] sm:$0xf] %vm20597_vm13, %v4376_v59  ;;  %vm20615_vm13 = vcmp.lt.s32.totalorder %v15238_v19, 15 }
 0x4c1   :  { %6532 = vst.msk [vmem:[#allocation3 + $0x168] sm:$0xf] %vm20595_vm0, %v6385_v8  ;;  %7095 = vrot.lane.b32.xlu0 %v11014_v14, %s11357_s14  ;;  %v20603_v8 = vld [vmem:[#allocation142_spill] sm:$0xff]  ;;  %v11338_v14 = vld [vmem:[#allocation2 + $0x149] sm:$0xff]  ;;  %vm20612_vm0 = vcmask 130048  }
 0x4c2   :  { %4385 = vrot.lane.b32.xlu1 %v10749_v35, %s11354_s3  ;;  %v10633_v35 = vpack.c.bf16 %v20603_v8, %v20603_v8  ;;  %v10876_v59 = vpack.c.bf16 %v11338_v14, %v11338_v14  ;;  %v17176_v8 = vld [vmem:[#allocation2 + $0x15f] sm:$0xff]  ;;  %10441 = vmatprep.mubr.msk.bf16.mxu1 %vm20612_vm0, %v11239_v31  ;;  %vm20625_vm0 = vcmask 1044352  }
 0x4c3   :  { %v17139_v9 = vpop.f32.mrf.mxu0  ;;  %v7088_v60 = vpop.permute.xlu0 %7087  ;;  %v20613_v14 = vld [vmem:[#allocation143_spill] sm:$0xff] }
 0x4c4   :  { %v4378_v32 = vpop.permute.xlu1 %4377  ;;  %7236 = vst.msk [vmem:[#allocation3 + $0x160] sm:$0xf] %vm20599_vm11, %v7088_v60  ;;  %v20607_v60 = vld [vmem:[#allocation141_spill] sm:$0xff]  ;;  %vm20617_vm11 = vcmask 388352  }
 0x4c5   :  { %4535 = vst.msk [vmem:[#allocation3 + $0x118] sm:$0xf] %vm20598_vm4, %v4378_v32  ;;  %v8540_v27 = vpop.f32.mrf.mxu0  ;;  %4896 = vrot.lane.b32.xlu0 %v10812_v7, %s11353_s2  ;;  %vm20616_vm4 = vnez %v19963_v13  ;;  %v17200_v13 = vld [vmem:[#allocation2 + $0x160] sm:$0xff] }
 0x4c6   :  { %7097 = vrot.lane.b32.xlu1 %v11015_v37, %s11357_s14  ;;  %v20606_v37 = vld [vmem:[#allocation136_spill] sm:$0xff]  ;;  %v10696_v27 = vpack.c.bf16 %v20607_v60, %v20607_v60  ;;  %v17191_v60 = vld [vmem:[#allocation2 + $0x158] sm:$0xff] }
 0x4c7   :  { %v17147_v2 = vpop.f32.mrf.mxu0  ;;  %v4889_v40 = vpop.permute.xlu0 %4888  ;;  %v10877_v7 = vpack.c.bf16 %v20606_v37, %v20606_v37  ;;  %v6077_v37 = vsel %vm20615_vm13, %v17176_v8, 0.0 }
 0x4c8   :  { %v7090_v62 = vpop.permute.xlu1 %7089  ;;  %5047 = vst.msk [vmem:[#allocation3 + $0x110] sm:$0xf] %vm20602_vm1, %v4889_v40  ;;  %vm20619_vm1 = vcmp.lt.s32.totalorder %v15234_v58, 15 }
 0x4c9   :  { %7237 = vst.msk [vmem:[#allocation3 + $0x168] sm:$0xf] %vm20601_vm10, %v7090_v62  ;;  %v8543_v34 = vpop.f32.mrf.mxu0  ;;  %2933 = vrot.lane.b32.xlu0 %v10632_v30, %s11351_s0  ;;  %vm20618_vm10 = vmmov %vm20617_vm11 }
 0x4ca   :  { %4898 = vrot.lane.b32.xlu1 %v10813_v18, %s11353_s2  ;;  %v20609_v34 = vld [vmem:[#allocation139_spill] sm:$0xff] }
 0x4cb   :  { %v2926_v47 = vpop.permute.xlu0 %2925  ;;  %v7940_v62 = vld [vmem:[#allocation3 + $0x160] sm:$0xff]  ;;  %vm20610_vm14 = vnez %v20609_v34 }
 0x4cc   :  { %v4891_v53 = vpop.permute.xlu1 %4890  ;;  %3072 = vst.msk [vmem:[#allocation3 + $0x170] sm:$0xf] %vm20605_vm5, %v2926_v47 }
 0x4cd   :  { %5048 = vst.msk [vmem:[#allocation3 + $0x118] sm:$0xf] %vm20604_vm15, %v4891_v53  ;;  %5601 = vrot.lane.b32.xlu0 %v10876_v59, %s11355_s17  ;;  %v6076_v53 = vsel %vm20610_vm14, %v17163_v50, 0.0  ;;  %v10697_v59 = vpack.c.bf16 %v20613_v14, %v20613_v14  ;;  %vm20620_vm15 = vcmask 913152   ;;  %vm20623_vm14 = vcmask 519552  }
 0x4ce   :  { %2935 = vrot.lane.b32.xlu1 %v10633_v35, %s11351_s0  ;;  %v10940_v47 = vpack.c.bf16 %v6076_v53, %v6076_v53  ;;  %vm20621_vm5 = vmmov %vm20620_vm15 }
 0x4cf   :  { %v5594_v30 = vpop.permute.xlu0 %5593 }
 0x4d0   :  { %v2928_v32 = vpop.permute.xlu1 %2927  ;;  %v7941_v18 = vld [vmem:[#allocation3 + $0x168] sm:$0xff]  ;;  %5752 = vst.msk [vmem:[#allocation3 + $0x110] sm:$0xf] %vm20611_vm2, %v5594_v30  ;;  %v6781_v30 = vsel %vm20619_vm1, %v17191_v60, 0.0  ;;  %vm20624_vm2 = vmmov %vm20623_vm14 }
 0x4d1   :  { %3073 = vst.msk [vmem:[#allocation3 + $0x178] sm:$0xf] %vm20608_vm3, %v2928_v32  ;;  %v10390_v40 = vcombine.low %v7940_v62, %v7941_v18  ;;  %3702 = vrot.lane.b32.xlu0 %v10696_v27, %s11352_s1  ;;  %v10941_v62 = vpack.c.bf16 %v6077_v37, %v6077_v37  ;;  %v11004_v34 = vpack.c.bf16 %v6781_v30, %v6781_v30  ;;  %vm20622_vm3 = vmmov %vm20615_vm13  ;;  %vm20627_vm13 = vcmask 650752   ;;  %v11339_v30 = vld [vmem:[#allocation2 + $0x1a9] sm:$0xff] }
 0x4d2   :  { %5603 = vrot.lane.b32.xlu1 %v10877_v7, %s11355_s17  ;;  %v4101_v7 = vsel %vm20616_vm4, %v17089_v6, 0.0  ;;  %v6782_v58 = vsel %vm20622_vm3, %v17200_v13, 0.0  ;;  %vm20628_vm4 = vmmov %vm20627_vm13 }
 0x4d3   :  { %8625 = vmatmul.mubr.bf16.gmra.mxu1 %v10390_v40  ;;  %v3695_v32 = vpop.permute.xlu0 %3694  ;;  %v10760_v18 = vpack.c.bf16 %v4101_v7, %v4101_v7  ;;  %v10761_v40 = vpack.c.bf16 %v17104_v41, %v17104_v41  ;;  %v10824_v41 = vpack.c.bf16 %v17120_v33, %v17120_v33  ;;  %v10825_v7 = vpack.c.bf16 %v17131_v44, %v17131_v44 }
 0x4d4   :  { %v5596_v35 = vpop.permute.xlu1 %5595  ;;  %3841 = vst.msk [vmem:[#allocation3 + $0x170] sm:$0xf] %vm20617_vm11, %v3695_v32  ;;  %vm20629_vm11 = vcmask 257152  }
 0x4d5   :  { %5753 = vst.msk [vmem:[#allocation3 + $0x118] sm:$0xf] %vm20614_vm9, %v5596_v35  ;;  %6370 = vrot.lane.b32.xlu0 %v10940_v47, %s11356_s13  ;;  %vm20626_vm9 = vmmov %vm20625_vm0 }
 0x4d6   :  { %3704 = vrot.lane.b32.xlu1 %v10697_v59, %s11352_s1  ;;  %v11005_v59 = vpack.c.bf16 %v6782_v58, %v6782_v58  ;;  %v20631_v58 = vld [vmem:[#allocation14_spill] sm:$0xff] }
 0x4d7   :  { %v6363_v31 = vpop.permute.xlu0 %6362 }
 0x4d8   :  { %v3697_v27 = vpop.permute.xlu1 %3696  ;;  %6521 = vst.msk [vmem:[#allocation3 + $0x110] sm:$0xf] %vm20620_vm15, %v6363_v31  ;;  %v10623_v31 = vpack.c.bf16 %v15535_v15, %v15535_v15  ;;  %v10686_v15 = vpack.c.bf16 %v20631_v58, %v20631_v58  ;;  %vm20635_vm15 = vcmask 781952  }
 0x4d9   :  { %3842 = vst.msk [vmem:[#allocation3 + $0x178] sm:$0xf] %vm20618_vm10, %v3697_v27  ;;  %4407 = vrot.lane.b32.xlu0 %v10760_v18, %s11354_s3  ;;  %v10622_v27 = vpack.c.bf16 %v15515_v49, %v15515_v49  ;;  %v17235_v49 = vld [vmem:[#allocation2 + $0x1b7] sm:$0xff]  ;;  %vm20632_vm10 = vmmov %vm20629_vm11 }
 0x4da   :  { %6372 = vrot.lane.b32.xlu1 %v10941_v62, %s11356_s13  ;;  %vm20638_vm3 = vmmov %vm20635_vm15 }
 0x4db   :  { %v4400_v53 = vpop.permute.xlu0 %4399 }
 0x4dc   :  { %v6365_v6 = vpop.permute.xlu1 %6364  ;;  %4546 = vst.msk [vmem:[#allocation3 + $0x170] sm:$0xf] %vm20623_vm14, %v4400_v53 }
 0x4dd   :  { %6522 = vst.msk [vmem:[#allocation3 + $0x118] sm:$0xf] %vm20621_vm5, %v6365_v6  ;;  %7075 = vrot.lane.b32.xlu0 %v11004_v34, %s11357_s14  ;;  %v10888_v6 = vpack.c.bf16 %v11339_v30, %v11339_v30  ;;  %v20630_v34 = vld [vmem:[#allocation11_spill] sm:$0xff]  ;;  %vm20636_vm5 = vcmask 130048  }
 0x4de   :  { %4409 = vrot.lane.b32.xlu1 %v10761_v40, %s11354_s3  ;;  %v10889_v53 = vpack.c.bf16 %v20630_v34, %v20630_v34 }
 0x4df   :  { %v17211_v14 = vpop.f32.mrf.mxu0  ;;  %v7068_v47 = vpop.permute.xlu0 %7067 }
 0x4e0   :  { %v4402_v35 = vpop.permute.xlu1 %4401  ;;  %7226 = vst.msk [vmem:[#allocation3 + $0x110] sm:$0xf] %vm20625_vm0, %v7068_v47  ;;  %vm20643_vm0 = vcmask 388352  }
 0x4e1   :  { %4547 = vst.msk [vmem:[#allocation3 + $0x178] sm:$0xf] %vm20624_vm2, %v4402_v35  ;;  %v8548_v19 = vpop.f32.mrf.mxu0  ;;  %4920 = vrot.lane.b32.xlu0 %v10824_v41, %s11353_s2  ;;  %v11241_v41 = vld [vmem:[#allocation3 + $0x114] ss:$8 sps:$4 sm:$0xff]  }
 0x4e2   :  { %7077 = vrot.lane.b32.xlu1 %v11005_v59, %s11357_s14  ;;  %10436 = vmatprep.mubr.msk.bf16.mxu0 %vm20636_vm5, %v11241_v41  ;;  %v20645_v41 = vld [vmem:[#allocation137_spill] sm:$0xff]  ;;  %vm20653_vm5 = vcmask 1044352  }
 0x4e3   :  { %v17219_v37 = vpop.f32.mrf.mxu0  ;;  %v4913_v33 = vpop.permute.xlu0 %4912 }
 0x4e4   :  { %v7070_v32 = vpop.permute.xlu1 %7069  ;;  %5059 = vst.msk [vmem:[#allocation3 + $0x170] sm:$0xf] %vm20627_vm13, %v4913_v33  ;;  %vm20646_vm13 = vcmp.lt.s32.totalorder %v20645_v41, 15 }
 0x4e5   :  { %7227 = vst.msk [vmem:[#allocation3 + $0x118] sm:$0xf] %vm20626_vm9, %v7070_v32  ;;  %v8551_v62 = vpop.f32.mrf.mxu0  ;;  %2913 = vrot.lane.b32.xlu0 %v10622_v27, %s11351_s0  ;;  %v20633_v32 = vld [vmem:[#allocation13_spill] sm:$0xff]  ;;  %v17248_v27 = vld [vmem:[#allocation2 + $0x1bf] sm:$0xff]  ;;  %vm20644_vm9 = vmmov %vm20643_vm0 }
 0x4e6   :  { %4922 = vrot.lane.b32.xlu1 %v10825_v7, %s11353_s2  ;;  %vm20634_vm1 = vnez %v20633_v32  ;;  %v20637_v62 = vld [vmem:[#allocation144_spill] sm:$0xff]  ;;  %v10751_v32 = vpack.c.bf16 %v17176_v8, %v17176_v8  ;;  %v10814_v8 = vpack.c.bf16 %v17191_v60, %v17191_v60 }
 0x4e7   :  { %v2906_v44 = vpop.permute.xlu0 %2905  ;;  %v7930_v35 = vld [vmem:[#allocation3 + $0x110] sm:$0xff]  ;;  %v6088_v7 = vsel %vm20634_vm1, %v17235_v49, 0.0  ;;  %vm20650_vm1 = vcmask 519552  }
 0x4e8   :  { %v4915_v18 = vpop.permute.xlu1 %4914  ;;  %3062 = vst.msk [vmem:[#allocation3 + $0x120] sm:$0xf] %vm20629_vm11, %v2906_v44 }
 0x4e9   :  { %5060 = vst.msk [vmem:[#allocation3 + $0x178] sm:$0xf] %vm20628_vm4, %v4915_v18  ;;  %5625 = vrot.lane.b32.xlu0 %v10888_v6, %s11355_s17  ;;  %v10687_v18 = vpack.c.bf16 %v20637_v62, %v20637_v62  ;;  %v20639_v6 = vld [vmem:[#allocation138_spill] sm:$0xff]  ;;  %vm20647_vm4 = vcmask 913152  }
 0x4ea   :  { %2915 = vrot.lane.b32.xlu1 %v10623_v31, %s11351_s0  ;;  %v10952_v31 = vpack.c.bf16 %v6088_v7, %v6088_v7  ;;  %vm20640_vm14 = vcmp.lt.s32.totalorder %v20639_v6, 15  ;;  %vm20648_vm11 = vmmov %vm20647_vm4 }
 0x4eb   :  { %v5618_v47 = vpop.permute.xlu0 %5617  ;;  %v6089_v44 = vsel %vm20640_vm14, %v17248_v27, 0.0 }
 0x4ec   :  { %v2908_v40 = vpop.permute.xlu1 %2907  ;;  %v7931_v59 = vld [vmem:[#allocation3 + $0x118] sm:$0xff]  ;;  %5764 = vst.msk [vmem:[#allocation3 + $0x170] sm:$0xf] %vm20635_vm15, %v5618_v47  ;;  %vm20652_vm15 = vmmov %vm20650_vm1 }
 0x4ed   :  { %3063 = vst.msk [vmem:[#allocation3 + $0x128] sm:$0xf] %vm20632_vm10, %v2908_v40  ;;  %v10380_v19 = vcombine.low %v7930_v35, %v7931_v59  ;;  %3682 = vrot.lane.b32.xlu0 %v10686_v15, %s11352_s1  ;;  %v20641_v40 = vld [vmem:[#allocation145_spill] sm:$0xff]  ;;  %v10953_v15 = vpack.c.bf16 %v6089_v44, %v6089_v44  ;;  %vm20649_vm10 = vmmov %vm20640_vm14  ;;  %vm20656_vm14 = vcmask 650752  }
 0x4ee   :  { %5627 = vrot.lane.b32.xlu1 %v10889_v53, %s11355_s17  ;;  %vm20642_vm2 = vnez %v20641_v40  ;;  %v17263_v53 = vld [vmem:[#allocation2 + $0x1b8] sm:$0xff] }
 0x4ef   :  { %8585 = vmatmul.mubr.bf16.gmra.mxu0 %v10380_v19  ;;  %v3675_v30 = vpop.permute.xlu0 %3674  ;;  %v4091_v34 = vsel %vm20642_vm2, %v17163_v50, 0.0  ;;  %v6793_v47 = vsel %vm20646_vm13, %v17263_v53, 0.0  ;;  %v17272_v50 = vld [vmem:[#allocation2 + $0x1c0] sm:$0xff]  ;;  %vm20658_vm2 = vmmov %vm20656_vm14 }
 0x4f0   :  { %v5620_v33 = vpop.permute.xlu1 %5619  ;;  %3831 = vst.msk [vmem:[#allocation3 + $0x120] sm:$0xf] %vm20643_vm0, %v3675_v30  ;;  %v10750_v35 = vpack.c.bf16 %v4091_v34, %v4091_v34  ;;  %v11016_v7 = vpack.c.bf16 %v6793_v47, %v6793_v47  ;;  %v6794_v62 = vsel %vm20649_vm10, %v17272_v50, 0.0  ;;  %v20657_v47 = vld [vmem:[#allocation150_spill] sm:$0xff]  ;;  %vm20659_vm0 = vcmask 257152  }
 0x4f1   :  { %5765 = vst.msk [vmem:[#allocation3 + $0x178] sm:$0xf] %vm20638_vm3, %v5620_v33  ;;  %6394 = vrot.lane.b32.xlu0 %v10952_v31, %s11356_s13  ;;  %v11017_v30 = vpack.c.bf16 %v6794_v62, %v6794_v62  ;;  %vm20655_vm3 = vmmov %vm20653_vm5 }
 0x4f2   :  { %3684 = vrot.lane.b32.xlu1 %v10687_v18, %s11352_s1 }
 0x4f3   :  { %v6387_v59 = vpop.permute.xlu0 %6386 }
 0x4f4   :  { %v3677_v58 = vpop.permute.xlu1 %3676  ;;  %6533 = vst.msk [vmem:[#allocation3 + $0x170] sm:$0xf] %vm20647_vm4, %v6387_v59  ;;  %vm20665_vm4 = vcmask 781952  }
 0x4f5   :  { %3832 = vst.msk [vmem:[#allocation3 + $0x128] sm:$0xf] %vm20644_vm9, %v3677_v58  ;;  %4387 = vrot.lane.b32.xlu0 %v10750_v35, %s11354_s3  ;;  %v10815_v58 = vpack.c.bf16 %v17200_v13, %v17200_v13  ;;  %vm20662_vm9 = vmmov %vm20659_vm0 }
 0x4f6   :  { %6396 = vrot.lane.b32.xlu1 %v10953_v15, %s11356_s13  ;;  %v20654_v15 = vld [vmem:[#allocation15_spill] sm:$0xff]  ;;  %vm20668_vm10 = vmmov %vm20665_vm4 }
 0x4f7   :  { %v4380_v33 = vpop.permute.xlu0 %4379  ;;  %v10634_v35 = vpack.c.bf16 %v20654_v15, %v20654_v15 }
 0x4f8   :  { %v6389_v19 = vpop.permute.xlu1 %6388  ;;  %4536 = vst.msk [vmem:[#allocation3 + $0x120] sm:$0xf] %vm20650_vm1, %v4380_v33  ;;  %v5822_v33 = vld [vmem:[#allocation2 + $0x167] sm:$0xff] }
 0x4f9   :  { %6534 = vst.msk [vmem:[#allocation3 + $0x178] sm:$0xf] %vm20648_vm11, %v6389_v19  ;;  %7099 = vrot.lane.b32.xlu0 %v11016_v7, %s11357_s14  ;;  %v10635_v19 = vpack.c.bf16 %v20657_v47, %v20657_v47  ;;  %vm20666_vm11 = vcmask 130048  }
 0x4fa   :  { %4389 = vrot.lane.b32.xlu1 %v10751_v32, %s11354_s3  ;;  %v11340_v32 = vld [vmem:[#allocation2 + $0x159] sm:$0xff] }
 0x4fb   :  { %v17283_v31 = vpop.f32.mrf.mxu0  ;;  %v7092_v44 = vpop.permute.xlu0 %7091  ;;  %v10878_v7 = vpack.c.bf16 %v11340_v32, %v11340_v32 }
 0x4fc   :  { %v4382_v18 = vpop.permute.xlu1 %4381  ;;  %20651 = vst [vmem:[#allocation84_spill] sm:$0xff] %v17283_v31  ;;  %7238 = vst.msk [vmem:[#allocation3 + $0x170] sm:$0xf] %vm20653_vm5, %v7092_v44  ;;  %vm20673_vm5 = vcmask 388352  }
 0x4fd   :  { %4537 = vst.msk [vmem:[#allocation3 + $0x128] sm:$0xf] %vm20652_vm15, %v4382_v18  ;;  %v8556_v6 = vpop.f32.mrf.mxu0  ;;  %4900 = vrot.lane.b32.xlu0 %v10814_v8, %s11353_s2  ;;  %v20660_v18 = vld [vmem:[#allocation146_spill] sm:$0xff]  ;;  %v20661_v8 = vld [vmem:[#allocation151_spill] sm:$0xff] }
 0x4fe   :  { %7101 = vrot.lane.b32.xlu1 %v11017_v30, %s11357_s14  ;;  %v10879_v30 = vpack.c.bf16 %v20660_v18, %v20660_v18  ;;  %v10698_v44 = vpack.c.bf16 %v20661_v8, %v20661_v8  ;;  %v20671_v18 = vld [vmem:[#allocation153_spill] sm:$0xff]  ;;  %v6591_v8 = vld [vmem:[#allocation2 + $0x168] sm:$0xff] }
 0x4ff   :  { %v17291_v34 = vpop.f32.mrf.mxu0  ;;  %v4893_v60 = vpop.permute.xlu0 %4892  ;;  %vm20672_vm15 = vnez %v20671_v18  ;;  %v5834_v18 = vld [vmem:[#allocation2 + $0x1c7] sm:$0xff] }
 0x500   :  { %v7094_v40 = vpop.permute.xlu1 %7093  ;;  %5049 = vst.msk [vmem:[#allocation3 + $0x120] sm:$0xf] %vm20656_vm14, %v4893_v60  ;;  %v20663_v60 = vld [vmem:[#allocation149_spill] sm:$0xff] }
 0x501   :  { %7239 = vst.msk [vmem:[#allocation3 + $0x178] sm:$0xf] %vm20655_vm3, %v7094_v40  ;;  %v8559_v59 = vpop.f32.mrf.mxu0  ;;  %2937 = vrot.lane.b32.xlu0 %v10634_v35, %s11351_s0  ;;  %vm20664_vm13 = vnez %v20663_v60  ;;  %vm20674_vm3 = vmmov %vm20673_vm5 }
 0x502   :  { %4902 = vrot.lane.b32.xlu1 %v10815_v58, %s11353_s2  ;;  %v11243_v58 = vld [vmem:[#allocation3 + $0x174] ss:$8 sps:$4 sm:$0xff]   ;;  %v6078_v59 = vsel %vm20664_vm13, %v5822_v33, 0.0  ;;  %vm20680_vm13 = vcmask 519552  }
 0x503   :  { %v2930_v13 = vpop.permute.xlu0 %2929  ;;  %v7942_v6 = vld [vmem:[#allocation3 + $0x170] sm:$0xff]  ;;  %10442 = vmatprep.mubr.msk.bf16.mxu1 %vm20666_vm11, %v11243_v58  ;;  %vm20682_vm11 = vcmask 1044352  }
 0x504   :  { %v4895_v41 = vpop.permute.xlu1 %4894  ;;  %3074 = vst.msk [vmem:[#allocation3 + $0x180] sm:$0xf] %vm20659_vm0, %v2930_v13 }
 0x505   :  { %5050 = vst.msk [vmem:[#allocation3 + $0x128] sm:$0xf] %vm20658_vm2, %v4895_v41  ;;  %5605 = vrot.lane.b32.xlu0 %v10878_v7, %s11355_s17  ;;  %v5823_v41 = vld [vmem:[#allocation2 + $0x16f] sm:$0xff]  ;;  %v10942_v7 = vpack.c.bf16 %v6078_v59, %v6078_v59  ;;  %vm20677_vm2 = vcmask 913152   ;;  %v10763_v59 = vpack.c.bf16 %v17248_v27, %v17248_v27  ;;  %v10826_v27 = vpack.c.bf16 %v17263_v53, %v17263_v53 }
 0x506   :  { %2939 = vrot.lane.b32.xlu1 %v10635_v19, %s11351_s0  ;;  %v20667_v19 = vld [vmem:[#allocation152_spill] sm:$0xff]  ;;  %vm20678_vm0 = vmmov %vm20677_vm2 }
 0x507   :  { %v5598_v15 = vpop.permute.xlu0 %5597  ;;  %v10699_v32 = vpack.c.bf16 %v20667_v19, %v20667_v19 }
 0x508   :  { %v2932_v62 = vpop.permute.xlu1 %2931  ;;  %v7943_v40 = vld [vmem:[#allocation3 + $0x178] sm:$0xff]  ;;  %5754 = vst.msk [vmem:[#allocation3 + $0x120] sm:$0xf] %vm20665_vm4, %v5598_v15  ;;  %vm20681_vm4 = vmmov %vm20680_vm13 }
 0x509   :  { %3075 = vst.msk [vmem:[#allocation3 + $0x188] sm:$0xf] %vm20662_vm9, %v2932_v62  ;;  %v10392_v35 = vcombine.low %v7942_v6, %v7943_v40  ;;  %3706 = vrot.lane.b32.xlu0 %v10698_v44, %s11352_s1  ;;  %v20669_v62 = vld [vmem:[#allocation16_spill] sm:$0xff] }
 0x50a   :  { %5607 = vrot.lane.b32.xlu1 %v10879_v30, %s11355_s17  ;;  %vm20670_vm1 = vcmp.lt.s32.totalorder %v20669_v62, 15  ;;  %v4103_v30 = vsel %vm20672_vm15, %v17235_v49, 0.0  ;;  %v20675_v15 = vld [vmem:[#allocation12_spill] sm:$0xff]  ;;  %vm20686_vm15 = vcmask 650752  }
 0x50b   :  { %8633 = vmatmul.mubr.bf16.gmra.mxu1 %v10392_v35  ;;  %v3699_v13 = vpop.permute.xlu0 %3698  ;;  %v6079_v33 = vsel %vm20670_vm1, %v5823_v41, 0.0  ;;  %v10762_v40 = vpack.c.bf16 %v4103_v30, %v4103_v30  ;;  %vm20676_vm14 = vcmp.lt.s32.totalorder %v20675_v15, 15  ;;  %v6592_v49 = vld [vmem:[#allocation2 + $0x170] sm:$0xff]  ;;  %vm20679_vm9 = vmmov %vm20670_vm1  ;;  %v20684_v15 = vld [vmem:[#allocation154_spill] sm:$0xff] }
 0x50c   :  { %v5600_v47 = vpop.permute.xlu1 %5599  ;;  %3843 = vst.msk [vmem:[#allocation3 + $0x180] sm:$0xf] %vm20673_vm5, %v3699_v13  ;;  %v10943_v6 = vpack.c.bf16 %v6079_v33, %v6079_v33  ;;  %v6783_v35 = vsel %vm20676_vm14, %v6591_v8, 0.0  ;;  %v6784_v19 = vsel %vm20679_vm9, %v6592_v49, 0.0  ;;  %vm20685_vm1 = vnez %v20684_v15  ;;  %vm20688_vm5 = vmmov %vm20686_vm15 }
 0x50d   :  { %5755 = vst.msk [vmem:[#allocation3 + $0x128] sm:$0xf] %vm20668_vm10, %v5600_v47  ;;  %6374 = vrot.lane.b32.xlu0 %v10942_v7, %s11356_s13  ;;  %v11006_v41 = vpack.c.bf16 %v6783_v35, %v6783_v35  ;;  %v11007_v13 = vpack.c.bf16 %v6784_v19, %v6784_v19  ;;  %vm20683_vm10 = vmmov %vm20682_vm11  ;;  %v6090_v35 = vsel %vm20685_vm1, %v5834_v18, 0.0  ;;  %vm20701_vm1 = vcmp.gt.s32.totalorder %v15759_v16, 0 }
 0x50e   :  { %3708 = vrot.lane.b32.xlu1 %v10699_v32, %s11352_s1 }
 0x50f   :  { %v6367_v58 = vpop.permute.xlu0 %6366 }
 0x510   :  { %v3701_v44 = vpop.permute.xlu1 %3700  ;;  %6523 = vst.msk [vmem:[#allocation3 + $0x120] sm:$0xf] %vm20677_vm2, %v6367_v58  ;;  %vm20693_vm2 = vcmask 257152  }
 0x511   :  { %3844 = vst.msk [vmem:[#allocation3 + $0x188] sm:$0xf] %vm20674_vm3, %v3701_v44  ;;  %4411 = vrot.lane.b32.xlu0 %v10762_v40, %s11354_s3  ;;  %v10827_v44 = vpack.c.bf16 %v17272_v50, %v17272_v50 }
 0x512   :  { %6376 = vrot.lane.b32.xlu1 %v10943_v6, %s11356_s13  ;;  %v11341_v6 = vld [vmem:[#allocation2 + $0x1b9] sm:$0xff] }
 0x513   :  { %v4404_v47 = vpop.permute.xlu0 %4403  ;;  %v10890_v40 = vpack.c.bf16 %v11341_v6, %v11341_v6 }
 0x514   :  { %v6369_v60 = vpop.permute.xlu1 %6368  ;;  %4548 = vst.msk [vmem:[#allocation3 + $0x180] sm:$0xf] %vm20680_vm13, %v4404_v47  ;;  %v20687_v47 = vld [vmem:[#allocation19_spill] sm:$0xff] }
 0x515   :  { %6524 = vst.msk [vmem:[#allocation3 + $0x128] sm:$0xf] %vm20678_vm0, %v6369_v60  ;;  %7079 = vrot.lane.b32.xlu0 %v11006_v41, %s11357_s14  ;;  %v17361_v60 = vld [vmem:[#allocation2 + $0x1cf] sm:$0xff]  ;;  %v10891_v19 = vpack.c.bf16 %v20687_v47, %v20687_v47  ;;  %vm20694_vm0 = vmmov %vm20693_vm2 }
 0x516   :  { %4413 = vrot.lane.b32.xlu1 %v10763_v59, %s11354_s3  ;;  %v17363_v59 = vld [vmem:[#allocation2 + $0x1c8] sm:$0xff] }
 0x517   :  { %v17343_v7 = vpop.f32.mrf.mxu0  ;;  %v7072_v33 = vpop.permute.xlu0 %7071 }
 0x518   :  { %v4406_v32 = vpop.permute.xlu1 %4405  ;;  %7228 = vst.msk [vmem:[#allocation3 + $0x120] sm:$0xf] %vm20682_vm11, %v7072_v33  ;;  %vm20699_vm11 = vcmask 130048  }
 0x519   :  { %4549 = vst.msk [vmem:[#allocation3 + $0x188] sm:$0xf] %vm20681_vm4, %v4406_v32  ;;  %v8564_v62 = vpop.f32.mrf.mxu0  ;;  %4924 = vrot.lane.b32.xlu0 %v10826_v27, %s11353_s2  ;;  %v10954_v32 = vpack.c.bf16 %v6090_v35, %v6090_v35  ;;  %v20689_v27 = vld [vmem:[#allocation148_spill] sm:$0xff]  ;;  %vm20698_vm4 = vcmask 781952  }
 0x51a   :  { %7081 = vrot.lane.b32.xlu1 %v11007_v13, %s11357_s14  ;;  %vm20690_vm3 = vcmp.lt.s32.totalorder %v20689_v27, 15  ;;  %v20691_v62 = vld [vmem:[#allocation147_spill] sm:$0xff] }
 0x51b   :  { %v17351_v8 = vpop.f32.mrf.mxu0  ;;  %v4917_v58 = vpop.permute.xlu0 %4916  ;;  %v6091_v33 = vsel %vm20690_vm3, %v17361_v60, 0.0  ;;  %vm20692_vm14 = vcmp.lt.s32.totalorder %v20691_v62, 15  ;;  %vm20695_vm9 = vmmov %vm20690_vm3 }
 0x51c   :  { %v7074_v30 = vpop.permute.xlu1 %7073  ;;  %5061 = vst.msk [vmem:[#allocation3 + $0x180] sm:$0xf] %vm20686_vm15, %v4917_v58  ;;  %vm20702_vm15 = vcmask 388352  }
 0x51d   :  { %7229 = vst.msk [vmem:[#allocation3 + $0x128] sm:$0xf] %vm20683_vm10, %v7074_v30  ;;  %v8567_v49 = vpop.f32.mrf.mxu0  ;;  %5629 = vrot.lane.b32.xlu0 %v10890_v40, %s11355_s17  ;;  %v6795_v30 = vsel %vm20692_vm14, %v17363_v59, 0.0  ;;  %v10955_v40 = vpack.c.bf16 %v6091_v33, %v6091_v33  ;;  %vm20700_vm10 = vmmov %vm20698_vm4  ;;  %vm20707_vm14 = vcmask 913152  }
 0x51e   :  { %4926 = vrot.lane.b32.xlu1 %v10827_v44, %s11353_s2  ;;  %v17377_v44 = vld [vmem:[#allocation2 + $0x1d0] sm:$0xff]  ;;  %v11018_v58 = vpack.c.bf16 %v6795_v30, %v6795_v30 }
 0x51f   :  { %v2910_v13 = vpop.permute.xlu0 %2909  ;;  %v7932_v15 = vld [vmem:[#allocation3 + $0x120] sm:$0xff] }
 0x520   :  { %v4919_v41 = vpop.permute.xlu1 %4918  ;;  %3064 = vst.msk [vmem:[#allocation3 + $0x130] sm:$0xf] %vm20693_vm2, %v2910_v13  ;;  %v11245_v49 = vld [vmem:[#allocation3 + $0x124] ss:$8 sps:$4 sm:$0xff]   ;;  %v6796_v13 = vsel %vm20695_vm9, %v17377_v44, 0.0  ;;  %vm1614_vm2 = vcmp.lt.s32.totalorder %v16152_v4, 15 }
 0x521   :  { %5062 = vst.msk [vmem:[#allocation3 + $0x188] sm:$0xf] %vm20688_vm5, %v4919_v41  ;;  %6398 = vrot.lane.b32.xlu0 %v10954_v32, %s11356_s13  ;;  %10437 = vmatprep.mubr.msk.bf16.mxu0 %vm20699_vm11, %v11245_v49  ;;  %v11019_v62 = vpack.c.bf16 %v6796_v13, %v6796_v13  ;;  %vm20704_vm5 = vmmov %vm20702_vm15  ;;  %v20705_v49 = vld [vmem:[#allocation18_spill] sm:$0xff]  ;;  %vm20710_vm9 = vcmask 519552  }
 0x522   :  { %5631 = vrot.lane.b32.xlu1 %v10891_v19, %s11355_s17  ;;  %v20696_v19 = vld [vmem:[#allocation17_spill] sm:$0xff]  ;;  %vm20706_vm3 = vnez %v20705_v49 }
 0x523   :  { %v5622_v41 = vpop.permute.xlu0 %5621  ;;  %vm20697_vm13 = vcmp.gt.s32.totalorder %v20696_v19, 0  ;;  %v5836_v49 = vld [vmem:[#allocation2 + $0x1d7] sm:$0xff] }
 0x524   :  { %v2912_v6 = vpop.permute.xlu1 %2911  ;;  %v7933_v35 = vld [vmem:[#allocation3 + $0x128] sm:$0xff]  ;;  %v2631_v32 = vsel %vm20697_vm13, %v17263_v53, 0.0  ;;  %5766 = vst.msk [vmem:[#allocation3 + $0x180] sm:$0xf] %vm20698_vm4, %v5622_v41  ;;  %v4105_v41 = vsel %vm20706_vm3, %v5834_v18, 0.0  ;;  %vm20711_vm13 = vcmask 125952  }
 0x525   :  { %3065 = vst.msk [vmem:[#allocation3 + $0x138] sm:$0xf] %vm20694_vm0, %v2912_v6  ;;  %v10382_v47 = vcombine.low %v7932_v15, %v7933_v35  ;;  %7103 = vrot.lane.b32.xlu0 %v11018_v58, %s11357_s14  ;;  %v10636_v30 = vpack.c.bf16 %v2631_v32, %v2631_v32  ;;  %v2632_v6 = vsel %vm20701_vm1, %v17272_v50, 0.0  ;;  %v20703_v58 = vld [vmem:[#allocation68_spill] sm:$0xff]  ;;  %v7318_v50 = vld [vmem:[#allocation2 + $0x219] sm:$0xff]  ;;  %vm20709_vm0 = vmmov %vm20707_vm14  ;;  %vm1615_vm4 = vcmp.lt.s32.totalorder %v16198_v43, 15 }
 0x526   :  { %6400 = vrot.lane.b32.xlu1 %v10955_v40, %s11356_s13  ;;  %v10637_v40 = vpack.c.bf16 %v2632_v6, %v2632_v6  ;;  %v10700_v15 = vpack.c.bf16 %v20703_v58, %v20703_v58  ;;  %v20708_v32 = vld [vmem:[#allocation24_spill] sm:$0xff]  ;;  %vm7383_vm11 = vmand %vm1615_vm4, %vm16200_vm6  ;;  %vm20713_vm1 = vcmask 1044352  }
 0x527   :  { %8593 = vmatmul.mubr.bf16.gmra.mxu0 %v10382_v47  ;;  %v3679_v27 = vpop.permute.xlu0 %3678  ;;  %v7574_v47 = vsel %vm1614_vm2, %v7318_v50, 0.0  ;;  %v10829_v50 = vpack.c.bf16 %v17377_v44, %v17377_v44 }
 0x528   :  { %v5624_v33 = vpop.permute.xlu1 %5623  ;;  %3833 = vst.msk [vmem:[#allocation3 + $0x130] sm:$0xf] %vm20702_vm15, %v3679_v27  ;;  %v7319_v27 = vld [vmem:[#allocation2 + $0x221] sm:$0xff]  ;;  %vm20714_vm15 = vmmov %vm20711_vm13 }
 0x529   :  { %5767 = vst.msk [vmem:[#allocation3 + $0x188] sm:$0xf] %vm20700_vm10, %v5624_v33  ;;  %2941 = vrot.lane.b32.xlu0 %v10636_v30, %s11351_s0  ;;  %v10701_v33 = vpack.c.bf16 %v20708_v32, %v20708_v32  ;;  %v11092_v30 = vpack.c.bf16 %v7574_v47, %v7574_v47  ;;  %v7575_v58 = vsel %vm7383_vm11, %v7319_v27, 0.0  ;;  %vm20712_vm10 = vmmov %vm20710_vm9  ;;  %v11342_v47 = vld [vmem:[#allocation2 + $0x1c9] sm:$0xff]  ;;  %vm20723_vm11 = vcmask 257152  }
 0x52a   :  { %7105 = vrot.lane.b32.xlu1 %v11019_v62, %s11357_s14  ;;  %v10764_v62 = vpack.c.bf16 %v4105_v41, %v4105_v41 }
 0x52b   :  { %v6391_v35 = vpop.permute.xlu0 %6390  ;;  %7894 = vst.msk [vmem:[#allocation3 + $0x1f4] sm:$0xf] %vm20711_vm13, %v11092_v30  ;;  %v17440_v30 = vld [vmem:[#allocation2 + $0x1df] sm:$0xff]  ;;  %vm20722_vm13 = vcmp.lt.s32.totalorder %v20696_v19, 15 }
 0x52c   :  { %v3681_v53 = vpop.permute.xlu1 %3680  ;;  %6535 = vst.msk [vmem:[#allocation3 + $0x180] sm:$0xf] %vm20707_vm14, %v6391_v35  ;;  %v11093_v35 = vpack.c.bf16 %v7575_v58, %v7575_v58  ;;  %vm20718_vm14 = vcmask 650752  }
 0x52d   :  { %3834 = vst.msk [vmem:[#allocation3 + $0x138] sm:$0xf] %vm20704_vm5, %v3681_v53  ;;  %3710 = vrot.lane.b32.xlu0 %v10700_v15, %s11352_s1  ;;  %v10765_v53 = vpack.c.bf16 %v17361_v60, %v17361_v60  ;;  %v14_v60 = vstv %s18832_s8  ;;  %vm20715_vm5 = vmmov %vm20713_vm1 }
 0x52e   :  { %2943 = vrot.lane.b32.xlu1 %v10637_v40, %s11351_s0  ;;  %v10828_v40 = vpack.c.bf16 %v17363_v59, %v17363_v59  ;;  %7895 = vst.msk [vmem:[#allocation3 + $0x1fc] sm:$0xf] %vm20714_vm15, %v11093_v35  ;;  %15 = vst [vmem:[#allocation4] sm:$0x1] %v14_v60  ;;  %v17456_v60 = vld [vmem:[#allocation2 + $0x1e0] sm:$0xff]  ;;  %vm20727_vm15 = vcmp.gt.s32.totalorder %v15846_v61, 0 }
 0x52f   :  { %v4384_v18 = vpop.permute.xlu0 %4383 }
 0x530   :  { %v6393_v13 = vpop.permute.xlu1 %6392  ;;  %4538 = vst.msk [vmem:[#allocation3 + $0x130] sm:$0xf] %vm20710_vm9, %v4384_v18  ;;  %v17442_v18 = vld [vmem:[#allocation2 + $0x1d8] sm:$0xff]  ;;  %vm20721_vm9 = vcmp.lt.s32.totalorder %v15759_v16, 15 }
 0x531   :  { %6536 = vst.msk [vmem:[#allocation3 + $0x188] sm:$0xf] %vm20709_vm0, %v6393_v13  ;;  %4415 = vrot.lane.b32.xlu0 %v10764_v62, %s11354_s3  ;;  %v10892_v13 = vpack.c.bf16 %v11342_v47, %v11342_v47  ;;  %vm20720_vm0 = vmmov %vm20718_vm14  ;;  %v6797_v35 = vsel %vm20722_vm13, %v17442_v18, 0.0 }
 0x532   :  { %3712 = vrot.lane.b32.xlu1 %v10701_v33, %s11352_s1  ;;  %v20716_v33 = vld [vmem:[#allocation25_spill] sm:$0xff] }
 0x533   :  { %v7096_v15 = vpop.permute.xlu0 %7095  ;;  %vm20717_vm3 = vnez %v20716_v33 }
 0x534   :  { %v4386_v6 = vpop.permute.xlu1 %4385  ;;  %7240 = vst.msk [vmem:[#allocation3 + $0x180] sm:$0xf] %vm20713_vm1, %v7096_v15  ;;  %v6092_v62 = vsel %vm20717_vm3, %v5836_v49, 0.0  ;;  %v6093_v15 = vsel %vm20721_vm9, %v17440_v30, 0.0  ;;  %vm20726_vm1 = vmmov %vm20721_vm9  ;;  %vm20729_vm3 = vcmask 130048   ;;  %vm20732_vm9 = vcmask 388352  }
 0x535   :  { %4539 = vst.msk [vmem:[#allocation3 + $0x138] sm:$0xf] %vm20712_vm10, %v4386_v6  ;;  %4928 = vrot.lane.b32.xlu0 %v10828_v40, %s11353_s2  ;;  %v20719_v6 = vld [vmem:[#allocation67_spill] sm:$0xff]  ;;  %v10956_v40 = vpack.c.bf16 %v6092_v62, %v6092_v62  ;;  %v10957_v47 = vpack.c.bf16 %v6093_v15, %v6093_v15  ;;  %v11247_v62 = vld [vmem:[#allocation3 + $0x184] ss:$8 sps:$4 sm:$0xff]   ;;  %vm20725_vm10 = vmmov %vm20723_vm11 }
 0x536   :  { %4417 = vrot.lane.b32.xlu1 %v10765_v53, %s11354_s3  ;;  %v10893_v53 = vpack.c.bf16 %v20719_v6, %v20719_v6  ;;  %v6798_v6 = vsel %vm20726_vm1, %v17456_v60, 0.0  ;;  %10443 = vmatprep.mubr.msk.bf16.mxu1 %vm20729_vm3, %v11247_v62  ;;  %vm20734_vm13 = vmmov %vm20732_vm9  ;;  %vm20738_vm1 = vcmask 519552  }
 0x537   :  { %v4897_v32 = vpop.permute.xlu0 %4896 }
 0x538   :  { %v7098_v41 = vpop.permute.xlu1 %7097  ;;  %5051 = vst.msk [vmem:[#allocation3 + $0x130] sm:$0xf] %vm20718_vm14, %v4897_v32 }
 0x539   :  { %7241 = vst.msk [vmem:[#allocation3 + $0x188] sm:$0xf] %vm20715_vm5, %v7098_v41  ;;  %5633 = vrot.lane.b32.xlu0 %v10892_v13, %s11355_s17  ;;  %v11020_v13 = vpack.c.bf16 %v6797_v35, %v6797_v35  ;;  %vm20728_vm5 = vcmask 781952   ;;  %v11021_v35 = vpack.c.bf16 %v6798_v6, %v6798_v6  ;;  %v20736_v6 = vld [vmem:[#allocation42_spill] sm:$0xff] }
 0x53a   :  { %4930 = vrot.lane.b32.xlu1 %v10829_v50, %s11353_s2  ;;  %vm20730_vm14 = vmmov %vm20728_vm5 }
 0x53b   :  { %v2934_v58 = vpop.permute.xlu0 %2933  ;;  %v7944_v32 = vld [vmem:[#allocation3 + $0x180] sm:$0xff] }
 0x53c   :  { %v4899_v27 = vpop.permute.xlu1 %4898  ;;  %3076 = vst.msk [vmem:[#allocation3 + $0x190] sm:$0xf] %vm20723_vm11, %v2934_v58  ;;  %vm20735_vm11 = vcmask 913152  }
 0x53d   :  { %5052 = vst.msk [vmem:[#allocation3 + $0x138] sm:$0xf] %vm20720_vm0, %v4899_v27  ;;  %6402 = vrot.lane.b32.xlu0 %v10956_v40, %s11356_s13  ;;  %vm20731_vm0 = vcmp.gt.s32.totalorder %v15856_v11, 0 }
 0x53e   :  { %5635 = vrot.lane.b32.xlu1 %v10893_v53, %s11355_s17  ;;  %v2633_v53 = vsel %vm20727_vm15, %v17363_v59, 0.0  ;;  %v2634_v59 = vsel %vm20731_vm0, %v17377_v44, 0.0  ;;  %vm20740_vm15 = vcmask 1044352  }
 0x53f   :  { %v17458_v50 = vpop.f32.mrf.mxu0  ;;  %v5602_v19 = vpop.permute.xlu0 %5601  ;;  %v10638_v16 = vpack.c.bf16 %v2633_v53, %v2633_v53  ;;  %v10703_v53 = vpack.c.bf16 %v20736_v6, %v20736_v6  ;;  %v20745_v6 = vld [vmem:[#allocation7_spill] sm:$0xff] }
 0x540   :  { %v2936_v41 = vpop.permute.xlu1 %2935  ;;  %20724 = vst [vmem:[#allocation44_spill] sm:$0xff] %v17458_v50  ;;  %v7945_v33 = vld [vmem:[#allocation3 + $0x188] sm:$0xff]  ;;  %5756 = vst.msk [vmem:[#allocation3 + $0x130] sm:$0xf] %vm20728_vm5, %v5602_v19 }
 0x541   :  { %3077 = vst.msk [vmem:[#allocation3 + $0x198] sm:$0xf] %vm20725_vm10, %v2936_v41  ;;  %v10394_v27 = vcombine.low %v7944_v32, %v7945_v33  ;;  %v8572_v40 = vpop.f32.mrf.mxu0  ;;  %7107 = vrot.lane.b32.xlu0 %v11020_v13, %s11357_s14  ;;  %v10639_v32 = vpack.c.bf16 %v2634_v59, %v2634_v59  ;;  %v20733_v33 = vld [vmem:[#allocation21_spill] sm:$0xff]  ;;  %vm20737_vm10 = vmmov %vm20735_vm11 }
 0x542   :  { %6404 = vrot.lane.b32.xlu1 %v10957_v47, %s11356_s13  ;;  %v10702_v62 = vpack.c.bf16 %v20733_v33, %v20733_v33  ;;  %vm20741_vm5 = vmmov %vm20740_vm15  ;;  %v20742_v33 = vld [vmem:[#allocation41_spill] sm:$0xff] }
 0x543   :  { %v17471_v15 = vpop.f32.mrf.mxu0  ;;  %8641 = vmatmul.mubr.bf16.gmra.mxu1 %v10394_v27  ;;  %v3703_v41 = vpop.permute.xlu0 %3702  ;;  %v4107_v27 = vsel %vm15848_vm8, %v5836_v49, 0.0  ;;  %v10767_v49 = vpack.c.bf16 %v17440_v30, %v17440_v30  ;;  %vm20739_vm8 = vmmov %vm20738_vm1  ;;  %vm20743_vm3 = vnez %v20742_v33  ;;  %v11249_v33 = vld [vmem:[#allocation3 + $0x134] ss:$8 sps:$4 sm:$0xff]  }
 0x544   :  { %v5604_v58 = vpop.permute.xlu1 %5603  ;;  %3845 = vst.msk [vmem:[#allocation3 + $0x190] sm:$0xf] %vm20732_vm9, %v3703_v41  ;;  %v10766_v40 = vpack.c.bf16 %v4107_v27, %v4107_v27  ;;  %v5838_v41 = vld [vmem:[#allocation2 + $0x1e7] sm:$0xff]  ;;  %vm20747_vm9 = vcmp.lt.s32.totalorder %v15856_v11, 15 }
 0x545   :  { %5757 = vst.msk [vmem:[#allocation3 + $0x138] sm:$0xf] %vm20730_vm14, %v5604_v58  ;;  %v8575_v47 = vpop.f32.mrf.mxu0  ;;  %2945 = vrot.lane.b32.xlu0 %v10638_v16, %s11351_s0  ;;  %vm20744_vm14 = vcmask 650752   ;;  %v17512_v27 = vld [vmem:[#allocation2 + $0x1e8] sm:$0xff] }
 0x546   :  { %7109 = vrot.lane.b32.xlu1 %v11021_v35, %s11357_s14  ;;  %v10830_v35 = vpack.c.bf16 %v17442_v18, %v17442_v18  ;;  %v10831_v47 = vpack.c.bf16 %v17456_v60, %v17456_v60  ;;  %vm20746_vm0 = vmmov %vm20744_vm14 }
 0x547   :  { %v6371_v19 = vpop.permute.xlu0 %6370 }
 0x548   :  { %v3705_v13 = vpop.permute.xlu1 %3704  ;;  %6525 = vst.msk [vmem:[#allocation3 + $0x130] sm:$0xf] %vm20735_vm11, %v6371_v19  ;;  %v17510_v19 = vld [vmem:[#allocation2 + $0x1ef] sm:$0xff]  ;;  %vm20749_vm11 = vcmask 257152  }
 0x549   :  { %3846 = vst.msk [vmem:[#allocation3 + $0x198] sm:$0xf] %vm20734_vm13, %v3705_v13  ;;  %3714 = vrot.lane.b32.xlu0 %v10702_v62, %s11352_s1  ;;  %v11343_v13 = vld [vmem:[#allocation2 + $0x1d9] sm:$0xff]  ;;  %v6094_v62 = vsel %vm20743_vm3, %v5838_v41, 0.0  ;;  %vm20748_vm13 = vcmp.lt.s32.totalorder %v15846_v61, 15 }
 0x54a   :  { %2947 = vrot.lane.b32.xlu1 %v10639_v32, %s11351_s0  ;;  %v10894_v32 = vpack.c.bf16 %v11343_v13, %v11343_v13 }
 0x54b   :  { %v4408_v58 = vpop.permute.xlu0 %4407 }
 0x54c   :  { %v6373_v44 = vpop.permute.xlu1 %6372  ;;  %4550 = vst.msk [vmem:[#allocation3 + $0x190] sm:$0xf] %vm20738_vm1, %v4408_v58  ;;  %vm20751_vm1 = vmmov %vm20747_vm9 }
 0x54d   :  { %6526 = vst.msk [vmem:[#allocation3 + $0x138] sm:$0xf] %vm20737_vm10, %v6373_v44  ;;  %4419 = vrot.lane.b32.xlu0 %v10766_v40, %s11354_s3  ;;  %v10958_v40 = vpack.c.bf16 %v6094_v62, %v6094_v62  ;;  %vm20750_vm10 = vmmov %vm20749_vm11 }
 0x54e   :  { %3716 = vrot.lane.b32.xlu1 %v10703_v53, %s11352_s1  ;;  %v10895_v53 = vpack.c.bf16 %v20745_v6, %v20745_v6 }
 0x54f   :  { %v7076_v16 = vpop.permute.xlu0 %7075 }
 0x550   :  { %v4410_v29 = vpop.permute.xlu1 %4409  ;;  %7230 = vst.msk [vmem:[#allocation3 + $0x130] sm:$0xf] %vm20740_vm15, %v7076_v16  ;;  %vm20753_vm15 = vcmask 781952  }
 0x551   :  { %4551 = vst.msk [vmem:[#allocation3 + $0x198] sm:$0xf] %vm20739_vm8, %v4410_v29  ;;  %4932 = vrot.lane.b32.xlu0 %v10830_v35, %s11353_s2  ;;  %v6095_v29 = vsel %vm20747_vm9, %v17510_v19, 0.0  ;;  %v17526_v35 = vld [vmem:[#allocation2 + $0x1f0] sm:$0xff]  ;;  %vm20752_vm8 = vcmp.gt.s32.totalorder %v15951_v10, 0  ;;  %vm20755_vm3 = vmmov %vm20753_vm15 }
 0x552   :  { %4421 = vrot.lane.b32.xlu1 %v10767_v49, %s11354_s3  ;;  %v6799_v49 = vsel %vm20748_vm13, %v17512_v27, 0.0  ;;  %v2635_v6 = vsel %vm20752_vm8, %v17442_v18, 0.0  ;;  %vm20760_vm13 = vcmask 913152  }
 0x553   :  { %v4921_v30 = vpop.permute.xlu0 %4920  ;;  %v11022_v13 = vpack.c.bf16 %v6799_v49, %v6799_v49  ;;  %v10640_v11 = vpack.c.bf16 %v2635_v6, %v2635_v6 }
 0x554   :  { %v7078_v59 = vpop.permute.xlu1 %7077  ;;  %5063 = vst.msk [vmem:[#allocation3 + $0x190] sm:$0xf] %vm20744_vm14, %v4921_v30  ;;  %vm20756_vm14 = vcmp.gt.s32.totalorder %v15961_v17, 0 }
 0x555   :  { %7231 = vst.msk [vmem:[#allocation3 + $0x138] sm:$0xf] %vm20741_vm5, %v7078_v59  ;;  %5637 = vrot.lane.b32.xlu0 %v10894_v32, %s11355_s17  ;;  %vm20754_vm5 = vcmask 130048   ;;  %v2636_v18 = vsel %vm20756_vm14, %v17456_v60, 0.0  ;;  %vm20772_vm14 = vcmask 257152  }
 0x556   :  { %4934 = vrot.lane.b32.xlu1 %v10831_v47, %s11353_s2  ;;  %v10959_v47 = vpack.c.bf16 %v6095_v29, %v6095_v29  ;;  %10438 = vmatprep.mubr.msk.bf16.mxu0 %vm20754_vm5, %v11249_v33 }
 0x557   :  { %v2914_v58 = vpop.permute.xlu0 %2913  ;;  %v7934_v32 = vld [vmem:[#allocation3 + $0x130] sm:$0xff] }
 0x558   :  { %v4923_v44 = vpop.permute.xlu1 %4922  ;;  %3066 = vst.msk [vmem:[#allocation3 + $0x140] sm:$0xf] %vm20749_vm11, %v2914_v58  ;;  %vm20762_vm11 = vmmov %vm20760_vm13 }
 0x559   :  { %5064 = vst.msk [vmem:[#allocation3 + $0x198] sm:$0xf] %vm20746_vm0, %v4923_v44  ;;  %6406 = vrot.lane.b32.xlu0 %v10958_v40, %s11356_s13  ;;  %v17528_v59 = vpop.f32.mrf.mxu1  ;;  %v6800_v44 = vsel %vm20751_vm1, %v17526_v35, 0.0  ;;  %vm20757_vm0 = vcmask 388352   ;;  %vm20765_vm1 = vcmask 1044352  }
 0x55a   :  { %5639 = vrot.lane.b32.xlu1 %v10895_v53, %s11355_s17  ;;  %v11023_v29 = vpack.c.bf16 %v6800_v44, %v6800_v44  ;;  %vm20759_vm9 = vmmov %vm20757_vm0 }
 0x55b   :  { %v5626_v61 = vpop.permute.xlu0 %5625  ;;  %v8620_v53 = vpop.f32.mrf.mxu1  ;;  %vm20766_vm8 = vmmov %vm20765_vm1 }
 0x55c   :  { %v2916_v16 = vpop.permute.xlu1 %2915  ;;  %v7935_v30 = vld [vmem:[#allocation3 + $0x138] sm:$0xff]  ;;  %5768 = vst.msk [vmem:[#allocation3 + $0x190] sm:$0xf] %vm20753_vm15, %v5626_v61  ;;  %v4109_v61 = vsel %vm15985_vm7, %v5838_v41, 0.0  ;;  %v10769_v41 = vpack.c.bf16 %v17510_v19, %v17510_v19  ;;  %vm20767_vm15 = vcmask 650752  }
 0x55d   :  { %3067 = vst.msk [vmem:[#allocation3 + $0x148] sm:$0xf] %vm20750_vm10, %v2916_v16  ;;  %v10384_v62 = vcombine.low %v7934_v32, %v7935_v30  ;;  %7111 = vrot.lane.b32.xlu0 %v11022_v13, %s11357_s14  ;;  %v17541_v58 = vpop.f32.mrf.mxu1  ;;  %v10641_v13 = vpack.c.bf16 %v2636_v18, %v2636_v18  ;;  %v20758_v32 = vld [vmem:[#allocation72_spill] sm:$0xff]  ;;  %v10768_v6 = vpack.c.bf16 %v4109_v61, %v4109_v61  ;;  %vm20763_vm10 = vcmask 519552   ;;  %vm20770_vm5 = vmmov %vm20767_vm15 }
 0x55e   :  { %6408 = vrot.lane.b32.xlu1 %v10959_v47, %s11356_s13  ;;  %v10704_v30 = vpack.c.bf16 %v20758_v32, %v20758_v32  ;;  %vm20764_vm7 = vmmov %vm20763_vm10  ;;  %v11344_v18 = vld [vmem:[#allocation2 + $0x1e9] sm:$0xff]  ;;  %v20768_v32 = vld [vmem:[#allocation23_spill] sm:$0xff] }
 0x55f   :  { %8601 = vmatmul.mubr.bf16.gmra.mxu0 %v10384_v62  ;;  %v3683_v49 = vpop.permute.xlu0 %3682  ;;  %v8623_v16 = vpop.f32.mrf.mxu1  ;;  %v20761_v62 = vld [vmem:[#allocation73_spill] sm:$0xff] }
 0x560   :  { %v5628_v40 = vpop.permute.xlu1 %5627  ;;  %3835 = vst.msk [vmem:[#allocation3 + $0x140] sm:$0xf] %vm20757_vm0, %v3683_v49  ;;  %v10705_v44 = vpack.c.bf16 %v20761_v62, %v20761_v62  ;;  %v10833_v49 = vpack.c.bf16 %v17526_v35, %v17526_v35  ;;  %v10896_v16 = vpack.c.bf16 %v11344_v18, %v11344_v18  ;;  %vm20774_vm0 = vmmov %vm20772_vm14 }
 0x561   :  { %5769 = vst.msk [vmem:[#allocation3 + $0x198] sm:$0xf] %vm20755_vm3, %v5628_v40  ;;  %2949 = vrot.lane.b32.xlu0 %v10640_v11, %s11351_s0  ;;  %v10832_v40 = vpack.c.bf16 %v17512_v27, %v17512_v27  ;;  %vm20771_vm3 = vcmp.lt.s32.totalorder %v15951_v10, 15 }
 0x562   :  { %7113 = vrot.lane.b32.xlu1 %v11023_v29, %s11357_s14 }
 0x563   :  { %v6395_v33 = vpop.permute.xlu0 %6394 }
 0x564   :  { %v3685_v47 = vpop.permute.xlu1 %3684  ;;  %6537 = vst.msk [vmem:[#allocation3 + $0x190] sm:$0xf] %vm20760_vm13, %v6395_v33  ;;  %v20769_v33 = vld [vmem:[#allocation76_spill] sm:$0xff]  ;;  %vm20776_vm13 = vcmp.gt.s32.totalorder %v16061_v57, 0 }
 0x565   :  { %3836 = vst.msk [vmem:[#allocation3 + $0x148] sm:$0xf] %vm20759_vm9, %v3685_v47  ;;  %3718 = vrot.lane.b32.xlu0 %v10704_v30, %s11352_s1  ;;  %v17578_v47 = vld [vmem:[#allocation2 + $0x1f8] sm:$0xff]  ;;  %v10897_v30 = vpack.c.bf16 %v20768_v32, %v20768_v32  ;;  %v10960_v61 = vpack.c.bf16 %v20769_v33, %v20769_v33  ;;  %vm20775_vm9 = vcmp.lt.s32.totalorder %v15961_v17, 15 }
 0x566   :  { %2951 = vrot.lane.b32.xlu1 %v10641_v13, %s11351_s0  ;;  %v6801_v62 = vsel %vm20771_vm3, %v17578_v47, 0.0 }
 0x567   :  { %v4388_v53 = vpop.permute.xlu0 %4387 }
 0x568   :  { %v6397_v60 = vpop.permute.xlu1 %6396  ;;  %4540 = vst.msk [vmem:[#allocation3 + $0x140] sm:$0xf] %vm20763_vm10, %v4388_v53  ;;  %vm20778_vm10 = vcmask 130048  }
 0x569   :  { %6538 = vst.msk [vmem:[#allocation3 + $0x198] sm:$0xf] %vm20762_vm11, %v6397_v60  ;;  %4423 = vrot.lane.b32.xlu0 %v10768_v6, %s11354_s3  ;;  %vm20777_vm11 = vcmask 781952  }
 0x56a   :  { %3720 = vrot.lane.b32.xlu1 %v10705_v44, %s11352_s1  ;;  %v17591_v44 = vld [vmem:[#allocation2 + $0x200] sm:$0xff] }
 0x56b   :  { %v7100_v29 = vpop.permute.xlu0 %7099 }
 0x56c   :  { %v4390_v26 = vpop.permute.xlu1 %4389  ;;  %7242 = vst.msk [vmem:[#allocation3 + $0x190] sm:$0xf] %vm20765_vm1, %v7100_v29  ;;  %vm20780_vm1 = vcmp.gt.s32.totalorder %v16075_v0, 0 }
 0x56d   :  { %4541 = vst.msk [vmem:[#allocation3 + $0x148] sm:$0xf] %vm20764_vm7, %v4390_v26  ;;  %4936 = vrot.lane.b32.xlu0 %v10832_v40, %s11353_s2  ;;  %v20773_v26 = vld [vmem:[#allocation77_spill] sm:$0xff]  ;;  %v11024_v40 = vpack.c.bf16 %v6801_v62, %v6801_v62  ;;  %vm20779_vm7 = vmmov %vm20777_vm11 }
 0x56e   :  { %4425 = vrot.lane.b32.xlu1 %v10769_v41, %s11354_s3  ;;  %v10961_v41 = vpack.c.bf16 %v20773_v26, %v20773_v26  ;;  %v20782_v26 = vld [vmem:[#allocation22_spill] sm:$0xff] }
 0x56f   :  { %v4901_v19 = vpop.permute.xlu0 %4900 }
 0x570   :  { %v7102_v11 = vpop.permute.xlu1 %7101  ;;  %5053 = vst.msk [vmem:[#allocation3 + $0x140] sm:$0xf] %vm20767_vm15, %v4901_v19  ;;  %v2637_v19 = vsel %vm20776_vm13, %v17512_v27, 0.0  ;;  %v2638_v27 = vsel %vm20780_vm1, %v17526_v35, 0.0  ;;  %vm20796_vm1 = vcmp.lt.s32.totalorder %v16075_v0, 15 }
 0x571   :  { %7243 = vst.msk [vmem:[#allocation3 + $0x198] sm:$0xf] %vm20766_vm8, %v7102_v11  ;;  %5641 = vrot.lane.b32.xlu0 %v10896_v16, %s11355_s17  ;;  %v6802_v16 = vsel %vm20775_vm9, %v17591_v44, 0.0  ;;  %v10642_v17 = vpack.c.bf16 %v2637_v19, %v2637_v19  ;;  %vm20781_vm8 = vcmask 388352   ;;  %vm20789_vm9 = vcmask 1044352  }
 0x572   :  { %4938 = vrot.lane.b32.xlu1 %v10833_v49, %s11353_s2  ;;  %v11251_v49 = vld [vmem:[#allocation3 + $0x194] ss:$8 sps:$4 sm:$0xff]   ;;  %v11025_v33 = vpack.c.bf16 %v6802_v16, %v6802_v16  ;;  %vm20783_vm15 = vmmov %vm20781_vm8 }
 0x573   :  { %v2938_v60 = vpop.permute.xlu0 %2937  ;;  %v7946_v29 = vld [vmem:[#allocation3 + $0x190] sm:$0xff]  ;;  %10444 = vmatprep.mubr.msk.bf16.mxu1 %vm20778_vm10, %v11251_v49  ;;  %vm20790_vm13 = vmmov %vm20789_vm9  ;;  %vm20793_vm10 = vcmask 650752  }
 0x574   :  { %v4903_v13 = vpop.permute.xlu1 %4902  ;;  %3078 = vst.msk [vmem:[#allocation3 + $0x1a0] sm:$0xf] %vm20772_vm14, %v2938_v60  ;;  %vm20787_vm14 = vcmask 519552   ;;  %v11345_v16 = vld [vmem:[#allocation2 + $0x1ff] sm:$0xff] }
 0x575   :  { %5054 = vst.msk [vmem:[#allocation3 + $0x148] sm:$0xf] %vm20770_vm5, %v4903_v13  ;;  %6410 = vrot.lane.b32.xlu0 %v10960_v61, %s11356_s13  ;;  %vm20784_vm5 = vcmask 913152   ;;  %v10771_v19 = vpack.c.bf16 %v11345_v16, %v11345_v16  ;;  %v17661_v16 = vld [vmem:[#allocation2 + $0x210] sm:$0xff] }
 0x576   :  { %5643 = vrot.lane.b32.xlu1 %v10897_v30, %s11355_s17  ;;  %vm20786_vm3 = vmmov %vm20784_vm5 }
 0x577   :  { %v17593_v53 = vpop.f32.mrf.mxu0  ;;  %v5606_v10 = vpop.permute.xlu0 %5605 }
 0x578   :  { %v2940_v6 = vpop.permute.xlu1 %2939  ;;  %v7947_v11 = vld [vmem:[#allocation3 + $0x198] sm:$0xff]  ;;  %5758 = vst.msk [vmem:[#allocation3 + $0x140] sm:$0xf] %vm20777_vm11, %v5606_v10 }
 0x579   :  { %3079 = vst.msk [vmem:[#allocation3 + $0x1a8] sm:$0xf] %vm20774_vm0, %v2940_v6  ;;  %v10396_v18 = vcombine.low %v7946_v29, %v7947_v11  ;;  %v8580_v13 = vpop.f32.mrf.mxu0  ;;  %7115 = vrot.lane.b32.xlu0 %v11024_v40, %s11357_s14  ;;  %v10643_v6 = vpack.c.bf16 %v2638_v27, %v2638_v27  ;;  %v10707_v29 = vpack.c.bf16 %v16139_v52, %v16139_v52  ;;  %v20785_v11 = vld [vmem:[#allocation33_spill] sm:$0xff]  ;;  %vm20788_vm0 = vmmov %vm20787_vm14 }
 0x57a   :  { %6412 = vrot.lane.b32.xlu1 %v10961_v41, %s11356_s13  ;;  %v10706_v41 = vpack.c.bf16 %v20782_v26, %v20782_v26  ;;  %v10770_v49 = vpack.c.bf16 %v20785_v11, %v20785_v11  ;;  %v10834_v13 = vpack.c.bf16 %v17578_v47, %v17578_v47  ;;  %v17645_v26 = vld [vmem:[#allocation2 + $0x20f] sm:$0xff] }
 0x57b   :  { %v17608_v30 = vpop.f32.mrf.mxu0  ;;  %8649 = vmatmul.mubr.bf16.gmra.mxu1 %v10396_v18  ;;  %v3707_v61 = vpop.permute.xlu0 %3706 }
 0x57c   :  { %v5608_v32 = vpop.permute.xlu1 %5607  ;;  %3847 = vst.msk [vmem:[#allocation3 + $0x1a0] sm:$0xf] %vm20781_vm8, %v3707_v61  ;;  %v11346_v61 = vld [vmem:[#allocation2 + $0x1f9] sm:$0xff]  ;;  %vm20797_vm8 = vcmp.lt.s32.totalorder %v16061_v57, 15 }
 0x57d   :  { %5759 = vst.msk [vmem:[#allocation3 + $0x148] sm:$0xf] %vm20779_vm7, %v5608_v32  ;;  %v8583_v60 = vpop.f32.mrf.mxu0  ;;  %2953 = vrot.lane.b32.xlu0 %v10642_v17, %s11351_s0  ;;  %v5842_v32 = vld [vmem:[#allocation2 + $0x207] sm:$0xff]  ;;  %v10835_v17 = vpack.c.bf16 %v17591_v44, %v17591_v44  ;;  %v10898_v27 = vpack.c.bf16 %v11346_v61, %v11346_v61  ;;  %vm20795_vm7 = vmmov %vm20793_vm10 }
 0x57e   :  { %7117 = vrot.lane.b32.xlu1 %v11025_v33, %s11357_s14 }
 0x57f   :  { %v6375_v40 = vpop.permute.xlu0 %6374 }
 0x580   :  { %v3709_v62 = vpop.permute.xlu1 %3708  ;;  %6527 = vst.msk [vmem:[#allocation3 + $0x140] sm:$0xf] %vm20784_vm5, %v6375_v40 }
 0x581   :  { %3848 = vst.msk [vmem:[#allocation3 + $0x1a8] sm:$0xf] %vm20783_vm15, %v3709_v62  ;;  %3722 = vrot.lane.b32.xlu0 %v10706_v41, %s11352_s1  ;;  %v20791_v62 = vld [vmem:[#allocation34_spill] sm:$0xff]  ;;  %v17647_v41 = vld [vmem:[#allocation2 + $0x208] sm:$0xff]  ;;  %vm20798_vm15 = vcmask 781952  }
 0x582   :  { %2955 = vrot.lane.b32.xlu1 %v10643_v6, %s11351_s0  ;;  %vm20792_vm11 = vnez %v20791_v62  ;;  %vm20799_vm5 = vmmov %vm20798_vm15 }
 0x583   :  { %v4412_v10 = vpop.permute.xlu0 %4411  ;;  %v6098_v6 = vsel %vm20792_vm11, %v5842_v32, 0.0  ;;  %vm20805_vm11 = vcmp.gt.s32.totalorder %v16198_v43, 0 }
 0x584   :  { %v6377_v35 = vpop.permute.xlu1 %6376  ;;  %4552 = vst.msk [vmem:[#allocation3 + $0x1a0] sm:$0xf] %vm20787_vm14, %v4412_v10  ;;  %v10962_v11 = vpack.c.bf16 %v6098_v6, %v6098_v6  ;;  %v6099_v10 = vsel %vm20796_vm1, %v17645_v26, 0.0  ;;  %vm20801_vm14 = vcmp.gt.s32.totalorder %v16152_v4, 0 }
 0x585   :  { %6528 = vst.msk [vmem:[#allocation3 + $0x148] sm:$0xf] %vm20786_vm3, %v6377_v35  ;;  %4427 = vrot.lane.b32.xlu0 %v10770_v49, %s11354_s3  ;;  %v20794_v35 = vld [vmem:[#allocation43_spill] sm:$0xff]  ;;  %vm20800_vm3 = vmmov %vm20796_vm1  ;;  %v2639_v6 = vsel %vm20801_vm14, %v17578_v47, 0.0  ;;  %v2640_v47 = vsel %vm20805_vm11, %v17591_v44, 0.0  ;;  %vm20810_vm1 = vcmask 257152  }
 0x586   :  { %3724 = vrot.lane.b32.xlu1 %v10707_v29, %s11352_s1  ;;  %v10899_v29 = vpack.c.bf16 %v20794_v35, %v20794_v35  ;;  %v6804_v62 = vsel %vm20800_vm3, %v17661_v16, 0.0  ;;  %v10644_v0 = vpack.c.bf16 %v2639_v6, %v2639_v6  ;;  %vm20815_vm3 = vcmask 519552   ;;  %vm5908_vm14 = vmand %vm1614_vm2, %vm16192_vm12 }
 0x587   :  { %v7080_v52 = vpop.permute.xlu0 %7079  ;;  %vm20822_vm11 = vcmask 913152  }
 0x588   :  { %v4414_v18 = vpop.permute.xlu1 %4413  ;;  %7232 = vst.msk [vmem:[#allocation3 + $0x140] sm:$0xf] %vm20789_vm9, %v7080_v52  ;;  %v10963_v52 = vpack.c.bf16 %v6099_v10, %v6099_v10  ;;  %vm20803_vm9 = vcmask 130048  }
 0x589   :  { %4553 = vst.msk [vmem:[#allocation3 + $0x1a8] sm:$0xf] %vm20788_vm0, %v4414_v18  ;;  %4940 = vrot.lane.b32.xlu0 %v10834_v13, %s11353_s2  ;;  %v6803_v18 = vsel %vm20797_vm8, %v17647_v41, 0.0  ;;  %vm20802_vm0 = vcmask 913152   ;;  %vm20812_vm8 = vmmov %vm20810_vm1 }
 0x58a   :  { %4429 = vrot.lane.b32.xlu1 %v10771_v19, %s11354_s3 }
 0x58b   :  { %v4925_v60 = vpop.permute.xlu0 %4924 }
 0x58c   :  { %v7082_v33 = vpop.permute.xlu1 %7081  ;;  %5065 = vst.msk [vmem:[#allocation3 + $0x1a0] sm:$0xf] %vm20793_vm10, %v4925_v60  ;;  %vm20806_vm10 = vcmask 1044352  }
 0x58d   :  { %7233 = vst.msk [vmem:[#allocation3 + $0x148] sm:$0xf] %vm20790_vm13, %v7082_v33  ;;  %5645 = vrot.lane.b32.xlu0 %v10898_v27, %s11355_s17  ;;  %v11026_v33 = vpack.c.bf16 %v6803_v18, %v6803_v18  ;;  %v11253_v27 = vld [vmem:[#allocation3 + $0x144] ss:$8 sps:$4 sm:$0xff]   ;;  %vm20804_vm13 = vmmov %vm20802_vm0 }
 0x58e   :  { %4942 = vrot.lane.b32.xlu1 %v10835_v17, %s11353_s2  ;;  %10439 = vmatprep.mubr.msk.bf16.mxu0 %vm20803_vm9, %v11253_v27  ;;  %v4113_v27 = vsel %vm16192_vm12, %v5842_v32, 0.0  ;;  %vm20818_vm12 = vcmask 650752  }
 0x58f   :  { %v5630_v49 = vpop.permute.xlu0 %5629  ;;  %v7936_v17 = vld [vmem:[#allocation3 + $0x140] sm:$0xff] }
 0x590   :  { %v4927_v40 = vpop.permute.xlu1 %4926  ;;  %5770 = vst.msk [vmem:[#allocation3 + $0x1a0] sm:$0xf] %vm20798_vm15, %v5630_v49  ;;  %vm20813_vm15 = vcmask 388352  }
 0x591   :  { %5066 = vst.msk [vmem:[#allocation3 + $0x1a8] sm:$0xf] %vm20795_vm7, %v4927_v40  ;;  %6414 = vrot.lane.b32.xlu0 %v10962_v11, %s11356_s13  ;;  %v11027_v11 = vpack.c.bf16 %v6804_v62, %v6804_v62  ;;  %vm20808_vm7 = vmmov %vm20806_vm10  ;;  %v10772_v62 = vpack.c.bf16 %v4113_v27, %v4113_v27 }
 0x592   :  { %5647 = vrot.lane.b32.xlu1 %v10899_v29, %s11355_s17 }
 0x593   :  { %v17663_v13 = vpop.f32.mrf.mxu1  ;;  %v6399_v57 = vpop.permute.xlu0 %6398 }
 0x594   :  { %v5632_v19 = vpop.permute.xlu1 %5631  ;;  %v7937_v61 = vld [vmem:[#allocation3 + $0x148] sm:$0xff]  ;;  %6539 = vst.msk [vmem:[#allocation3 + $0x1a0] sm:$0xf] %vm20802_vm0, %v6399_v57  ;;  %vm20816_vm0 = vmmov %vm20803_vm9 }
 0x595   :  { %5771 = vst.msk [vmem:[#allocation3 + $0x1a8] sm:$0xf] %vm20799_vm5, %v5632_v19  ;;  %v10386_v60 = vcombine.low %v7936_v17, %v7937_v61  ;;  %v8628_v40 = vpop.f32.mrf.mxu1  ;;  %7119 = vrot.lane.b32.xlu0 %v11026_v33, %s11357_s14  ;;  %v10645_v19 = vpack.c.bf16 %v2640_v47, %v2640_v47  ;;  %v20811_v57 = vld [vmem:[#allocation29_spill] sm:$0xff]  ;;  %vm20814_vm5 = vmmov %vm20813_vm15 }
 0x596   :  { %6416 = vrot.lane.b32.xlu1 %v10963_v52, %s11356_s13  ;;  %v20807_v52 = vld [vmem:[#allocation27_spill] sm:$0xff]  ;;  %v10773_v40 = vpack.c.bf16 %v17645_v26, %v17645_v26  ;;  %vm20817_vm9 = vmmov %vm20815_vm3 }
 0x597   :  { %8609 = vmatmul.mubr.bf16.gmra.mxu0 %v10386_v60  ;;  %v17676_v29 = vpop.f32.mrf.mxu1  ;;  %v7104_v49 = vpop.permute.xlu0 %7103  ;;  %v10708_v33 = vpack.c.bf16 %v20807_v52, %v20807_v52  ;;  %v10709_v60 = vpack.c.bf16 %v20811_v57, %v20811_v57 }
 0x598   :  { %v6401_v35 = vpop.permute.xlu1 %6400  ;;  %7244 = vst.msk [vmem:[#allocation3 + $0x1a0] sm:$0xf] %vm20806_vm10, %v7104_v49  ;;  %v11255_v49 = vld [vmem:[#allocation3 + $0x1a4] ss:$8 sps:$4 sm:$0xff]   ;;  %vm20823_vm10 = vmmov %vm20822_vm11 }
 0x599   :  { %6540 = vst.msk [vmem:[#allocation3 + $0x1a8] sm:$0xf] %vm20804_vm13, %v6401_v35  ;;  %v8631_v10 = vpop.f32.mrf.mxu1  ;;  %2957 = vrot.lane.b32.xlu0 %v10644_v0, %s11351_s0  ;;  %v10836_v35 = vpack.c.bf16 %v17647_v41, %v17647_v41  ;;  %10445 = vmatprep.mubr.msk.bf16.mxu1 %vm20816_vm0, %v11255_v49  ;;  %v10837_v41 = vpack.c.bf16 %v17661_v16, %v17661_v16  ;;  %vm20819_vm13 = vmmov %vm20818_vm12 }
 0x59a   :  { %7121 = vrot.lane.b32.xlu1 %v11027_v11, %s11357_s14 }
 0x59b   :  { %v2942_v17 = vpop.permute.xlu0 %2941 }
 0x59c   :  { %v7106_v18 = vpop.permute.xlu1 %7105  ;;  %3080 = vst.msk [vmem:[#allocation3 + $0x1b0] sm:$0xf] %vm20810_vm1, %v2942_v17  ;;  %v6613_v17 = vld [vmem:[#allocation2 + $0x218] sm:$0xff] }
 0x59d   :  { %7245 = vst.msk [vmem:[#allocation3 + $0x1a8] sm:$0xf] %vm20808_vm7, %v7106_v18  ;;  %3726 = vrot.lane.b32.xlu0 %v10708_v33, %s11352_s1  ;;  %v5844_v18 = vld [vmem:[#allocation2 + $0x217] sm:$0xff]  ;;  %v5845_v33 = vld [vmem:[#allocation2 + $0x21f] sm:$0xff] }
 0x59e   :  { %2959 = vrot.lane.b32.xlu1 %v10645_v19, %s11351_s0  ;;  %v11347_v19 = vld [vmem:[#allocation2 + $0x209] sm:$0xff]  ;;  %v6100_v57 = vsel %vm5908_vm14, %v5844_v18, 0.0  ;;  %v6101_v16 = vsel %vm1615_vm4, %v5845_v33, 0.0  ;;  %vm20828_vm14 = vmmov %vm20816_vm0 }
 0x59f   :  { %v3711_v6 = vpop.permute.xlu0 %3710  ;;  %v7948_v11 = vld [vmem:[#allocation3 + $0x1a0] sm:$0xff]  ;;  %v10900_v52 = vpack.c.bf16 %v11347_v19, %v11347_v19  ;;  %vm20829_vm0 = vmmov %vm20815_vm3 }
 0x5a0   :  { %v2944_v44 = vpop.permute.xlu1 %2943  ;;  %3849 = vst.msk [vmem:[#allocation3 + $0x1b0] sm:$0xf] %vm20813_vm15, %v3711_v6  ;;  %vm20827_vm15 = vmmov %vm20814_vm5 }
 0x5a1   :  { %3081 = vst.msk [vmem:[#allocation3 + $0x1b8] sm:$0xf] %vm20812_vm8, %v2944_v44  ;;  %4431 = vrot.lane.b32.xlu0 %v10772_v62, %s11354_s3  ;;  %v11348_v44 = vld [vmem:[#allocation2 + $0x211] sm:$0xff]  ;;  %vm20826_vm8 = vmmov %vm20810_vm1 }
 0x5a2   :  { %3728 = vrot.lane.b32.xlu1 %v10709_v60, %s11352_s1  ;;  %v5332_v61 = vsel %vm16200_vm6, %v11348_v44, 0.0  ;;  %v6805_v60 = vsel %vm1614_vm2, %v6613_v17, 0.0  ;;  %vm20820_vm6 = vcmask 781952  }
 0x5a3   :  { %v4416_v47 = vpop.permute.xlu0 %4415  ;;  %v10901_v6 = vpack.c.bf16 %v5332_v61, %v5332_v61  ;;  %vm20821_vm2 = vmmov %vm20820_vm6 }
 0x5a4   :  { %v3713_v32 = vpop.permute.xlu1 %3712  ;;  %v7949_v0 = vld [vmem:[#allocation3 + $0x1a8] sm:$0xff]  ;;  %4554 = vst.msk [vmem:[#allocation3 + $0x1b0] sm:$0xf] %vm20815_vm3, %v4416_v47 }
 0x5a5   :  { %3850 = vst.msk [vmem:[#allocation3 + $0x1b8] sm:$0xf] %vm20814_vm5, %v3713_v32  ;;  %v10398_v10 = vcombine.low %v7948_v11, %v7949_v0  ;;  %4944 = vrot.lane.b32.xlu0 %v10836_v35, %s11353_s2  ;;  %v10964_v32 = vpack.c.bf16 %v6100_v57, %v6100_v57  ;;  %v10965_v35 = vpack.c.bf16 %v6101_v16, %v6101_v16 }
 0x5a6   :  { %4433 = vrot.lane.b32.xlu1 %v10773_v40, %s11354_s3  ;;  %v6614_v40 = vld [vmem:[#allocation2 + $0x220] sm:$0xff]  ;;  %v11028_v11 = vpack.c.bf16 %v6805_v60, %v6805_v60 }
 0x5a7   :  { %8657 = vmatmul.mubr.bf16.gmra.mxu1 %v10398_v10  ;;  %v4929_v27 = vpop.permute.xlu0 %4928  ;;  %v6806_v0 = vsel %vm1615_vm4, %v6614_v40, 0.0  ;;  %vm20824_vm4 = vmmov %vm20808_vm7  ;;  %v11257_v60 = vld [vmem:[#allocation3 + $0x1b4] ss:$8 sps:$4 sm:$0xff]  }
 0x5a8   :  { %v4418_v26 = vpop.permute.xlu1 %4417  ;;  %5067 = vst.msk [vmem:[#allocation3 + $0x1b0] sm:$0xf] %vm20818_vm12, %v4929_v27  ;;  %v11029_v18 = vpack.c.bf16 %v6806_v0, %v6806_v0  ;;  %vm20825_vm7 = vmmov %vm20824_vm4  ;;  %10446 = vmatprep.mubr.msk.bf16.mxu1 %vm20828_vm14, %v11257_v60 }
 0x5a9   :  { %4555 = vst.msk [vmem:[#allocation3 + $0x1b8] sm:$0xf] %vm20817_vm9, %v4418_v26  ;;  %5649 = vrot.lane.b32.xlu0 %v10900_v52, %s11355_s17  ;;  %v9712_v26 = vld [vmem:[#allocation4] sm:$0x1]  ;;  %vm20830_vm9 = vmmov %vm20818_vm12 }
 0x5aa   :  { %4946 = vrot.lane.b32.xlu1 %v10837_v41, %s11353_s2  ;;  %vm20831_vm12 = vmmov %vm20830_vm9 }
 0x5ab   :  { %v5634_v22 = vpop.permute.xlu0 %5633 }
 0x5ac   :  { %v4931_v62 = vpop.permute.xlu1 %4930  ;;  %5772 = vst.msk [vmem:[#allocation3 + $0x1b0] sm:$0xf] %vm20820_vm6, %v5634_v22  ;;  %vm20833_vm6 = vmmov %vm20821_vm2 }
 0x5ad   :  { %5068 = vst.msk [vmem:[#allocation3 + $0x1b8] sm:$0xf] %vm20819_vm13, %v4931_v62  ;;  %6418 = vrot.lane.b32.xlu0 %v10964_v32, %s11356_s13  ;;  %vm20832_vm13 = vmmov %vm20821_vm2 }
 0x5ae   :  { %5651 = vrot.lane.b32.xlu1 %v10901_v6, %s11355_s17 }
 0x5af   :  { %v17730_v49 = vpop.f32.mrf.mxu0  ;;  %v6403_v47 = vpop.permute.xlu0 %6402 }
 0x5b0   :  { %v5636_v4 = vpop.permute.xlu1 %5635  ;;  %6541 = vst.msk [vmem:[#allocation3 + $0x1b0] sm:$0xf] %vm20822_vm11, %v6403_v47 }
 0x5b1   :  { %5773 = vst.msk [vmem:[#allocation3 + $0x1b8] sm:$0xf] %vm20821_vm2, %v5636_v4  ;;  %v8588_v10 = vpop.f32.mrf.mxu0  ;;  %7123 = vrot.lane.b32.xlu0 %v11028_v11, %s11357_s14  ;;  %vm20834_vm2 = vmmov %vm20823_vm10 }
 0x5b2   :  { %6420 = vrot.lane.b32.xlu1 %v10965_v35, %s11356_s13  ;;  %vm20835_vm11 = vmmov %vm20834_vm2 }
 0x5b3   :  { %v17736_v19 = vpop.f32.mrf.mxu0  ;;  %v7108_v43 = vpop.permute.xlu0 %7107 }
 0x5b4   :  { %v6405_v41 = vpop.permute.xlu1 %6404  ;;  %7246 = vst.msk [vmem:[#allocation3 + $0x1b0] sm:$0xf] %vm20824_vm4, %v7108_v43 }
 0x5b5   :  { %6542 = vst.msk [vmem:[#allocation3 + $0x1b8] sm:$0xf] %vm20823_vm10, %v6405_v41  ;;  %v8591_v52 = vpop.f32.mrf.mxu0  ;;  %9715 = vperm.xlu0 %11190, %v9712_v26   ;;  %vm20836_vm10 = vmmov %vm20824_vm4 }
 0x5b6   :  { %7125 = vrot.lane.b32.xlu1 %v11029_v18, %s11357_s14 }
 0x5b7   :  { %v2946_v17 = vpop.permute.xlu0 %2945 }
 0x5b8   :  { %v7110_v33 = vpop.permute.xlu1 %7109  ;;  %3082 = vst.msk [vmem:[#allocation3 + $0x1c0] sm:$0xf] %vm20810_vm1, %v2946_v17 }
 0x5b9   :  { %7247 = vst.msk [vmem:[#allocation3 + $0x1b8] sm:$0xf] %vm20825_vm7, %v7110_v33  ;;  %vm20837_vm7 = vmmov %vm20810_vm1 }
 0x5bb   :  { %v3715_v44 = vpop.permute.xlu0 %3714  ;;  %v7950_v57 = vld [vmem:[#allocation3 + $0x1b0] sm:$0xff] }
 0x5bc   :  { %v2948_v27 = vpop.permute.xlu1 %2947  ;;  %3851 = vst.msk [vmem:[#allocation3 + $0x1c0] sm:$0xf] %vm20827_vm15, %v3715_v44  ;;  %vm20839_vm15 = vmmov %vm20814_vm5 }
 0x5bd   :  { %3083 = vst.msk [vmem:[#allocation3 + $0x1c8] sm:$0xf] %vm20826_vm8, %v2948_v27  ;;  %vm20838_vm8 = vmmov %vm20814_vm5 }
 0x5bf   :  { %v4420_v62 = vpop.permute.xlu0 %4419 }
 0x5c0   :  { %v3717_v61 = vpop.permute.xlu1 %3716  ;;  %v7951_v16 = vld [vmem:[#allocation3 + $0x1b8] sm:$0xff]  ;;  %4556 = vst.msk [vmem:[#allocation3 + $0x1c0] sm:$0xf] %vm20815_vm3, %v4420_v62  ;;  %vm20841_vm3 = vmmov %vm20828_vm14 }
 0x5c1   :  { %3852 = vst.msk [vmem:[#allocation3 + $0x1c8] sm:$0xf] %vm20814_vm5, %v3717_v61  ;;  %v10400_v6 = vcombine.low %v7950_v57, %v7951_v16  ;;  %v11259_v57 = vld [vmem:[#allocation3 + $0x1c4] ss:$8 sps:$4 sm:$0xff]   ;;  %vm20840_vm5 = vmmov %vm20829_vm0 }
 0x5c2   :  { %vm20842_vm14 = vmmov %vm20829_vm0 }
 0x5c3   :  { %8665 = vmatmul.mubr.bf16.gmra.mxu1 %v10400_v6  ;;  %v4933_v40 = vpop.permute.xlu0 %4932 }
 0x5c4   :  { %v4422_v32 = vpop.permute.xlu1 %4421  ;;  %5069 = vst.msk [vmem:[#allocation3 + $0x1c0] sm:$0xf] %vm20830_vm9, %v4933_v40  ;;  %10447 = vmatprep.mubr.msk.bf16.mxu1 %vm20841_vm3, %v11259_v57  ;;  %v11261_v57 = vld [vmem:[#allocation3 + $0x1d4] ss:$8 sps:$4 sm:$0xff]  }
 0x5c5   :  { %4557 = vst.msk [vmem:[#allocation3 + $0x1c8] sm:$0xf] %vm20829_vm0, %v4422_v32  ;;  %vm20843_vm0 = vmmov %vm20830_vm9 }
 0x5c6   :  { %vm20844_vm9 = vmmov %vm20843_vm0 }
 0x5c7   :  { %v5638_v35 = vpop.permute.xlu0 %5637 }
 0x5c8   :  { %v4935_v22 = vpop.permute.xlu1 %4934  ;;  %5774 = vst.msk [vmem:[#allocation3 + $0x1c0] sm:$0xf] %vm20832_vm13, %v5638_v35  ;;  %vm20847_vm13 = vmmov %vm20833_vm6 }
 0x5c9   :  { %5070 = vst.msk [vmem:[#allocation3 + $0x1c8] sm:$0xf] %vm20831_vm12, %v4935_v22  ;;  %vm20845_vm12 = vmmov %vm20833_vm6 }
 0x5cb   :  { %v17752_v0 = vpop.f32.mrf.mxu1  ;;  %v6407_v4 = vpop.permute.xlu0 %6406 }
 0x5cc   :  { %v5640_v11 = vpop.permute.xlu1 %5639  ;;  %6543 = vst.msk [vmem:[#allocation3 + $0x1c0] sm:$0xf] %vm20834_vm2, %v6407_v4 }
 0x5cd   :  { %5775 = vst.msk [vmem:[#allocation3 + $0x1c8] sm:$0xf] %vm20833_vm6, %v5640_v11  ;;  %v8636_v47 = vpop.f32.mrf.mxu1  ;;  %vm20848_vm6 = vmmov %vm20834_vm2 }
 0x5cf   :  { %v17756_v18 = vpop.f32.mrf.mxu1  ;;  %v7112_v26 = vpop.permute.xlu0 %7111 }
 0x5d0   :  { %v6409_v10 = vpop.permute.xlu1 %6408  ;;  %7248 = vst.msk [vmem:[#allocation3 + $0x1c0] sm:$0xf] %vm20836_vm10, %v7112_v26  ;;  %vm20850_vm10 = vmmov %vm20824_vm4 }
 0x5d1   :  { %6544 = vst.msk [vmem:[#allocation3 + $0x1c8] sm:$0xf] %vm20835_vm11, %v6409_v10  ;;  %v8639_v41 = vpop.f32.mrf.mxu1  ;;  %vm20849_vm11 = vmmov %vm20824_vm4 }
 0x5d3   :  { %v2950_v52 = vpop.permute.xlu0 %2949 }
 0x5d4   :  { %v7114_v43 = vpop.permute.xlu1 %7113  ;;  %3084 = vst.msk [vmem:[#allocation3 + $0x1d0] sm:$0xf] %vm20837_vm7, %v2950_v52  ;;  %vm20852_vm7 = vmmov %vm20810_vm1 }
 0x5d5   :  { %7249 = vst.msk [vmem:[#allocation3 + $0x1c8] sm:$0xf] %vm20824_vm4, %v7114_v43  ;;  %vm20851_vm4 = vmmov %vm20810_vm1 }
 0x5d7   :  { %v3719_v17 = vpop.permute.xlu0 %3718  ;;  %v7952_v44 = vld [vmem:[#allocation3 + $0x1c0] sm:$0xff] }
 0x5d8   :  { %v2952_v33 = vpop.permute.xlu1 %2951  ;;  %3853 = vst.msk [vmem:[#allocation3 + $0x1d0] sm:$0xf] %vm20838_vm8, %v3719_v17 }
 0x5d9   :  { %3085 = vst.msk [vmem:[#allocation3 + $0x1d8] sm:$0xf] %vm20810_vm1, %v2952_v33  ;;  %vm20853_vm1 = vmmov %vm20838_vm8 }
 0x5da   :  { %vm20854_vm8 = vmmov %vm20853_vm1 }
 0x5db   :  { %v4424_v16 = vpop.permute.xlu0 %4423 }
 0x5dc   :  { %v3721_v27 = vpop.permute.xlu1 %3720  ;;  %v7953_v61 = vld [vmem:[#allocation3 + $0x1c8] sm:$0xff]  ;;  %4558 = vst.msk [vmem:[#allocation3 + $0x1d0] sm:$0xf] %vm20840_vm5, %v4424_v16 }
 0x5dd   :  { %3854 = vst.msk [vmem:[#allocation3 + $0x1d8] sm:$0xf] %vm20839_vm15, %v3721_v27  ;;  %v10402_v60 = vcombine.low %v7952_v44, %v7953_v61  ;;  %vm20855_vm15 = vmmov %vm20840_vm5 }
 0x5de   :  { %vm20856_vm5 = vmmov %vm20841_vm3 }
 0x5df   :  { %8673 = vmatmul.mubr.bf16.gmra.mxu1 %v10402_v60  ;;  %v4937_v6 = vpop.permute.xlu0 %4936  ;;  %vm20857_vm3 = vmmov %vm20842_vm14 }
 0x5e0   :  { %v4426_v62 = vpop.permute.xlu1 %4425  ;;  %5071 = vst.msk [vmem:[#allocation3 + $0x1d0] sm:$0xf] %vm20843_vm0, %v4937_v6  ;;  %10448 = vmatprep.mubr.msk.bf16.mxu1 %vm20856_vm5, %v11261_v57 }
 0x5e1   :  { %4559 = vst.msk [vmem:[#allocation3 + $0x1d8] sm:$0xf] %vm20842_vm14, %v4426_v62  ;;  %vm20858_vm14 = vmmov %vm20843_vm0 }
 0x5e3   :  { %v5642_v40 = vpop.permute.xlu0 %5641 }
 0x5e4   :  { %v4939_v32 = vpop.permute.xlu1 %4938  ;;  %5776 = vst.msk [vmem:[#allocation3 + $0x1d0] sm:$0xf] %vm20845_vm12, %v5642_v40 }
 0x5e5   :  { %5072 = vst.msk [vmem:[#allocation3 + $0x1d8] sm:$0xf] %vm20844_vm9, %v4939_v32  ;;  %vm20859_vm9 = vmmov %vm20845_vm12 }
 0x5e6   :  { %vm20860_vm12 = vmmov %vm20859_vm9 }
 0x5e7   :  { %v17771_v35 = vpop.f32.mrf.mxu0  ;;  %v6411_v11 = vpop.permute.xlu0 %6410 }
 0x5e8   :  { %v5644_v22 = vpop.permute.xlu1 %5643  ;;  %20846 = vst [vmem:[#allocation36_spill] sm:$0xff] %v17771_v35  ;;  %6545 = vst.msk [vmem:[#allocation3 + $0x1d0] sm:$0xf] %vm20848_vm6, %v6411_v11 }
 0x5e9   :  { %5777 = vst.msk [vmem:[#allocation3 + $0x1d8] sm:$0xf] %vm20847_vm13, %v5644_v22  ;;  %v8596_v4 = vpop.f32.mrf.mxu0  ;;  %vm20861_vm13 = vmmov %vm20834_vm2 }
 0x5ea   :  { %vm20863_vm6 = vmmov %vm20834_vm2 }
 0x5eb   :  { %v17775_v10 = vpop.f32.mrf.mxu0  ;;  %v7116_v26 = vpop.permute.xlu0 %7115 }
 0x5ec   :  { %v6413_v47 = vpop.permute.xlu1 %6412  ;;  %7250 = vst.msk [vmem:[#allocation3 + $0x1d0] sm:$0xf] %vm20849_vm11, %v7116_v26 }
 0x5ed   :  { %6546 = vst.msk [vmem:[#allocation3 + $0x1d8] sm:$0xf] %vm20834_vm2, %v6413_v47  ;;  %v8599_v41 = vpop.f32.mrf.mxu0  ;;  %vm20864_vm2 = vmmov %vm20850_vm10 }
 0x5ee   :  { %vm20865_vm11 = vmmov %vm20864_vm2 }
 0x5ef   :  { %v2954_v52 = vpop.permute.xlu0 %2953 }
 0x5f0   :  { %v7118_v43 = vpop.permute.xlu1 %7117  ;;  %3086 = vst.msk [vmem:[#allocation3 + $0x1e0] sm:$0xf] %vm20851_vm4, %v2954_v52 }
 0x5f1   :  { %7251 = vst.msk [vmem:[#allocation3 + $0x1d8] sm:$0xf] %vm20850_vm10, %v7118_v43  ;;  %vm20866_vm10 = vmmov %vm20851_vm4 }
 0x5f3   :  { %v3723_v17 = vpop.permute.xlu0 %3722  ;;  %v7954_v44 = vld [vmem:[#allocation3 + $0x1d0] sm:$0xff] }
 0x5f4   :  { %v2956_v33 = vpop.permute.xlu1 %2955  ;;  %3855 = vst.msk [vmem:[#allocation3 + $0x1e0] sm:$0xf] %vm20853_vm1, %v3723_v17 }
 0x5f5   :  { %3087 = vst.msk [vmem:[#allocation3 + $0x1e8] sm:$0xf] %vm20852_vm7, %v2956_v33  ;;  %vm20867_vm7 = vmmov %vm20853_vm1 }
 0x5f7   :  { %v4428_v16 = vpop.permute.xlu0 %4427 }
 0x5f8   :  { %v3725_v27 = vpop.permute.xlu1 %3724  ;;  %v7955_v61 = vld [vmem:[#allocation3 + $0x1d8] sm:$0xff]  ;;  %4560 = vst.msk [vmem:[#allocation3 + $0x1e0] sm:$0xf] %vm20855_vm15, %v4428_v16  ;;  %vm20869_vm15 = vmmov %vm20856_vm5 }
 0x5f9   :  { %3856 = vst.msk [vmem:[#allocation3 + $0x1e8] sm:$0xf] %vm20854_vm8, %v3725_v27  ;;  %v10404_v60 = vcombine.low %v7954_v44, %v7955_v61  ;;  %vm20868_vm8 = vmmov %vm20857_vm3 }
 0x5fa   :  { %vm20870_vm5 = vmmov %vm20857_vm3 }
 0x5fb   :  { %8681 = vmatmul.mubr.bf16.gmra.mxu1 %v10404_v60  ;;  %v4941_v6 = vpop.permute.xlu0 %4940  ;;  %v11263_v60 = vld [vmem:[#allocation3 + $0x1e4] ss:$8 sps:$4 sm:$0xff]  }
 0x5fc   :  { %v4430_v62 = vpop.permute.xlu1 %4429  ;;  %5073 = vst.msk [vmem:[#allocation3 + $0x1e0] sm:$0xf] %vm20858_vm14, %v4941_v6  ;;  %10449 = vmatprep.mubr.msk.bf16.mxu1 %vm20869_vm15, %v11263_v60  ;;  %vm20872_vm14 = vmmov %vm20843_vm0 }
 0x5fd   :  { %4561 = vst.msk [vmem:[#allocation3 + $0x1e8] sm:$0xf] %vm20857_vm3, %v4430_v62  ;;  %vm20871_vm3 = vmmov %vm20843_vm0 }
 0x5ff   :  { %v5646_v40 = vpop.permute.xlu0 %5645 }
 0x600   :  { %v4943_v32 = vpop.permute.xlu1 %4942  ;;  %5778 = vst.msk [vmem:[#allocation3 + $0x1e0] sm:$0xf] %vm20859_vm9, %v5646_v40 }
 0x601   :  { %5074 = vst.msk [vmem:[#allocation3 + $0x1e8] sm:$0xf] %vm20843_vm0, %v4943_v32  ;;  %vm20873_vm0 = vmmov %vm20859_vm9 }
 0x602   :  { %vm20874_vm9 = vmmov %vm20873_vm0 }
 0x603   :  { %v17790_v11 = vpop.f32.mrf.mxu1  ;;  %v6415_v4 = vpop.permute.xlu0 %6414 }
 0x604   :  { %v5648_v22 = vpop.permute.xlu1 %5647  ;;  %6547 = vst.msk [vmem:[#allocation3 + $0x1e0] sm:$0xf] %vm20861_vm13, %v6415_v4  ;;  %vm20876_vm13 = vmmov %vm20863_vm6 }
 0x605   :  { %5779 = vst.msk [vmem:[#allocation3 + $0x1e8] sm:$0xf] %vm20860_vm12, %v5648_v22  ;;  %v8644_v47 = vpop.f32.mrf.mxu1  ;;  %vm20875_vm12 = vmmov %vm20863_vm6 }
 0x607   :  { %v17794_v41 = vpop.f32.mrf.mxu1  ;;  %v7120_v43 = vpop.permute.xlu0 %7119 }
 0x608   :  { %v6417_v26 = vpop.permute.xlu1 %6416  ;;  %20862 = vst [vmem:[#allocation5_spill] sm:$0xff] %v17794_v41  ;;  %7252 = vst.msk [vmem:[#allocation3 + $0x1e0] sm:$0xf] %vm20864_vm2, %v7120_v43 }
 0x609   :  { %6548 = vst.msk [vmem:[#allocation3 + $0x1e8] sm:$0xf] %vm20863_vm6, %v6417_v26  ;;  %v8647_v52 = vpop.f32.mrf.mxu1  ;;  %vm20877_vm6 = vmmov %vm20864_vm2 }
 0x60b   :  { %v2958_v17 = vpop.permute.xlu0 %2957 }
 0x60c   :  { %v7122_v33 = vpop.permute.xlu1 %7121  ;;  %3088 = vst.msk [vmem:[#allocation3 + $0x1f0] sm:$0xf] %vm20866_vm10, %v2958_v17 }
 0x60d   :  { %7253 = vst.msk [vmem:[#allocation3 + $0x1e8] sm:$0xf] %vm20865_vm11, %v7122_v33  ;;  %vm20878_vm11 = vmmov %vm20869_vm15 }
 0x60e   :  { %vm20880_vm10 = vmmov %vm20878_vm11 }
 0x60f   :  { %v3727_v44 = vpop.permute.xlu0 %3726  ;;  %v7956_v57 = vld [vmem:[#allocation3 + $0x1e0] sm:$0xff] }
 0x610   :  { %v2960_v27 = vpop.permute.xlu1 %2959  ;;  %3857 = vst.msk [vmem:[#allocation3 + $0x1f0] sm:$0xf] %vm20867_vm7, %v3727_v44 }
 0x611   :  { %3089 = vst.msk [vmem:[#allocation3 + $0x1f8] sm:$0xf] %vm20851_vm4, %v2960_v27  ;;  %vm20881_vm4 = vmmov %vm20880_vm10 }
 0x612   :  { %vm20882_vm7 = vmmov %vm20881_vm4 }
 0x613   :  { %v4432_v62 = vpop.permute.xlu0 %4431 }
 0x614   :  { %v3729_v61 = vpop.permute.xlu1 %3728  ;;  %v7957_v16 = vld [vmem:[#allocation3 + $0x1e8] sm:$0xff]  ;;  %4562 = vst.msk [vmem:[#allocation3 + $0x1f0] sm:$0xf] %vm20868_vm8, %v4432_v62 }
 0x615   :  { %3858 = vst.msk [vmem:[#allocation3 + $0x1f8] sm:$0xf] %vm20853_vm1, %v3729_v61  ;;  %v10406_v6 = vcombine.low %v7956_v57, %v7957_v16  ;;  %v11265_v57 = vld [vmem:[#allocation3 + $0x1f4] ss:$8 sps:$4 sm:$0xff]   ;;  %vm20883_vm1 = vmmov %vm20881_vm4 }
 0x616   :  { %vm20884_vm8 = vmmov %vm20883_vm1 }
 0x617   :  { %8689 = vmatmul.mubr.bf16.gmra.mxu1 %v10406_v6  ;;  %v4945_v40 = vpop.permute.xlu0 %4944  ;;  %vm20885_vm15 = vmmov %vm20883_vm1 }
 0x618   :  { %v4434_v32 = vpop.permute.xlu1 %4433  ;;  %5075 = vst.msk [vmem:[#allocation3 + $0x1f0] sm:$0xf] %vm20871_vm3, %v4945_v40  ;;  %10450 = vmatprep.mubr.msk.bf16.mxu1 %vm20878_vm11, %v11265_v57  ;;  %v8708_v40 = vsel %vm20880_vm10, %v16542_v46, 0.0  ;;  %vm20887_vm3 = vmmov %vm20883_vm1 }
 0x619   :  { %4563 = vst.msk [vmem:[#allocation3 + $0x1f8] sm:$0xf] %vm20870_vm5, %v4434_v32  ;;  %vm20886_vm5 = vmmov %vm20883_vm1 }
 0x61a   :  { %v8718_v57 = vsel %vm20886_vm5, %v16714_v21, 0.0 }
 0x61b   :  { %v5650_v4 = vpop.permute.xlu0 %5649 }
 0x61c   :  { %v4947_v22 = vpop.permute.xlu1 %4946  ;;  %5780 = vst.msk [vmem:[#allocation3 + $0x1f0] sm:$0xf] %vm20873_vm0, %v5650_v4  ;;  %v8710_v4 = vsel %vm20882_vm7, %v16596_v12, 0.0  ;;  %vm20890_vm0 = vmmov %vm20883_vm1 }
 0x61d   :  { %5076 = vst.msk [vmem:[#allocation3 + $0x1f8] sm:$0xf] %vm20872_vm14, %v4947_v22  ;;  %v8707_v22 = vsel %vm20881_vm4, %v16532_v54, 0.0  ;;  %vm20888_vm14 = vmmov %vm20883_vm1 }
 0x61e   :  { %vm20896_vm11 = vmmov %vm20890_vm0 }
 0x61f   :  { %v17809_v26 = vpop.f32.mrf.mxu0  ;;  %v6419_v43 = vpop.permute.xlu0 %6418  ;;  %vm20897_vm10 = vmmov %vm20890_vm0 }
 0x620   :  { %v5652_v47 = vpop.permute.xlu1 %5651  ;;  %6549 = vst.msk [vmem:[#allocation3 + $0x1f0] sm:$0xf] %vm20875_vm12, %v6419_v43  ;;  %v8712_v43 = vsel %vm20883_vm1, %v16609_v3, 0.0  ;;  %vm20892_vm12 = vmmov %vm20890_vm0 }
 0x621   :  { %5781 = vst.msk [vmem:[#allocation3 + $0x1f8] sm:$0xf] %vm20874_vm9, %v5652_v47  ;;  %v8604_v52 = vpop.f32.mrf.mxu0  ;;  %v8709_v47 = vadd.f32 %v8708_v40, %v8707_v22  ;;  %v8722_v40 = vsel %vm20888_vm14, %v16771_v48, 0.0  ;;  %vm20891_vm9 = vmmov %vm20890_vm0 }
 0x622   :  { %vm20899_vm4 = vmmov %vm20890_vm0 }
 0x623   :  { %v17813_v17 = vpop.f32.mrf.mxu0  ;;  %v7124_v27 = vpop.permute.xlu0 %7123  ;;  %v8711_v52 = vadd.f32 %v8710_v4, %v8709_v47  ;;  %v8724_v47 = vsel %vm20890_vm0, %v16780_v36, 0.0  ;;  %vm20900_vm7 = vmmov %vm20890_vm0 }
 0x624   :  { %v6421_v33 = vpop.permute.xlu1 %6420  ;;  %7254 = vst.msk [vmem:[#allocation3 + $0x1f0] sm:$0xf] %vm20877_vm6, %v7124_v27  ;;  %vm20894_vm6 = vmmov %vm20890_vm0 }
 0x625   :  { %6550 = vst.msk [vmem:[#allocation3 + $0x1f8] sm:$0xf] %vm20876_vm13, %v6421_v33  ;;  %v8607_v44 = vpop.f32.mrf.mxu0  ;;  %v8714_v33 = vsel %vm20884_vm8, %v16659_v25, 0.0  ;;  %v8713_v27 = vadd.f32 %v8712_v43, %v8711_v52  ;;  %vm20893_vm13 = vmmov %vm20890_vm0 }
 0x626   :  { %v8716_v44 = vsel %vm20885_vm15, %v16673_v28, 0.0  ;;  %v8730_v48 = vsel %vm20893_vm13, %v16870_v20, 0.0  ;;  %vm20902_vm1 = vmmov %vm20890_vm0 }
 0x627   :  { %vm20903_vm8 = vmmov %vm20890_vm0 }
 0x628   :  { %v7126_v61 = vpop.permute.xlu1 %7125  ;;  %vm20904_vm15 = vmmov %vm20890_vm0 }
 0x629   :  { %7255 = vst.msk [vmem:[#allocation3 + $0x1f8] sm:$0xf] %vm20864_vm2, %v7126_v61  ;;  %v8715_v61 = vadd.f32 %v8714_v33, %v8713_v27  ;;  %v8726_v33 = vsel %vm20891_vm9, %v16823_v45, 0.0  ;;  %vm20895_vm2 = vmmov %vm20890_vm0 }
 0x62a   :  { %vm20905_vm5 = vmmov %vm20890_vm0 }
 0x62b   :  { %vm20907_vm14 = vmmov %vm20890_vm0 }
 0x62c   :  { %vm20908_vm9 = vmmov %vm20890_vm0 }
 0x62d   :  { %vm20910_vm13 = vmmov %vm20890_vm0 }
 0x630   :  { %v11267_v16 = vld [vmem:[#allocation3 + $0x1f0] ss:$8 sps:$4 sm:$0xff]  }
 0x631   :  { %8697 = vmatmul.mubr.bf16.gmra.mxu1 %v11267_v16  ;;  %v8717_v16 = vadd.f32 %v8716_v44, %v8715_v61  ;;  %v8728_v61 = vsel %vm20892_vm12, %v16834_v1, 0.0  ;;  %vm20909_vm12 = vmmov %vm20890_vm0 }
 0x63b   :  { %v17819_v60 = vpop.f32.mrf.mxu1 }
 0x63d   :  { %v8652_v62 = vpop.f32.mrf.mxu1 }
 0x63e   :  { %v8720_v62 = vsel %vm20887_vm3, %v16725_v42, 0.0  ;;  %vm20906_vm3 = vmmov %vm20890_vm0 }
 0x63f   :  { %v17821_v6 = vpop.f32.mrf.mxu1 }
 0x640   :  { %20879 = vst [vmem:[#allocation45_spill] sm:$0xff] %v17821_v6 }
 0x641   :  { %v8655_v32 = vpop.f32.mrf.mxu1 }
 0x642   :  { %v8719_v32 = vadd.f32 %v8718_v57, %v8717_v16 }
 0x644   :  { %v8721_v4 = vadd.f32 %v8720_v62, %v8719_v32  ;;  %v8732_v32 = vsel %vm20894_vm6, %v16885_v56, 0.0  ;;  %vm20911_vm6 = vmmov %vm20890_vm0 }
 0x646   :  { %v8723_v52 = vadd.f32 %v8722_v40, %v8721_v4  ;;  %v8734_v40 = vsel %vm20895_vm2, %v16925_v5, 0.0  ;;  %vm20913_vm2 = vmmov %vm20890_vm0 }
 0x648   :  { %v8725_v44 = vadd.f32 %v8724_v47, %v8723_v52  ;;  %v8736_v47 = vsel %vm20896_vm11, %v16935_v63, 0.0  ;;  %vm20914_vm11 = vmmov %vm20890_vm0 }
 0x64a   :  { %v8727_v16 = vadd.f32 %v8726_v33, %v8725_v44 }
 0x64c   :  { %v8729_v62 = vadd.f32 %v8728_v61, %v8727_v16  ;;  %v8740_v61 = vsel %vm20899_vm4, %v16993_v39, 0.0  ;;  %vm20917_vm4 = vmmov %vm20890_vm0 }
 0x657   :  { %v17841_v22 = vpop.f32.mrf.mxu0 }
 0x658   :  { %20889 = vst [vmem:[#allocation37_spill] sm:$0xff] %v17841_v22 }
 0x659   :  { %v8612_v43 = vpop.f32.mrf.mxu0 }
 0x65a   :  { %v8731_v43 = vadd.f32 %v8730_v48, %v8729_v62  ;;  %v8742_v48 = vsel %vm20900_vm7, %v17031_v55, 0.0  ;;  %vm20918_vm7 = vmmov %vm20890_vm0 }
 0x65b   :  { %v17847_v27 = vpop.f32.mrf.mxu0 }
 0x65c   :  { %v8733_v4 = vadd.f32 %v8732_v32, %v8731_v43  ;;  %v8744_v43 = vsel %vm20902_vm1, %v17045_v38, 0.0  ;;  %vm20919_vm1 = vmmov %vm20890_vm0 }
 0x65d   :  { %v8615_v57 = vpop.f32.mrf.mxu0 }
 0x65e   :  { %v8735_v52 = vadd.f32 %v8734_v40, %v8733_v4  ;;  %v8738_v57 = vsel %vm20897_vm10, %v16980_v23, 0.0  ;;  %v8746_v23 = vsel %vm20903_vm8, %v17081_v51, 0.0  ;;  %vm20916_vm10 = vmmov %vm20890_vm0 }
 0x65f   :  { %vm20920_vm8 = vmmov %vm20890_vm0 }
 0x660   :  { %v8737_v44 = vadd.f32 %v8736_v47, %v8735_v52  ;;  %v8748_v52 = vsel %vm20904_vm15, %v17091_v24, 0.0  ;;  %vm20921_vm15 = vmmov %vm20890_vm0 }
 0x662   :  { %v8739_v56 = vadd.f32 %v8738_v57, %v8737_v44  ;;  %v8750_v57 = vsel %vm20905_vm5, %v17139_v9, 0.0  ;;  %vm20922_vm5 = vmmov %vm20890_vm0 }
 0x664   :  { %v8741_v32 = vadd.f32 %v8740_v61, %v8739_v56  ;;  %v8752_v56 = vsel %vm20906_vm3, %v17147_v2, 0.0  ;;  %vm20923_vm3 = vmmov %vm20890_vm0 }
 0x666   :  { %v8743_v4 = vadd.f32 %v8742_v48, %v8741_v32  ;;  %v8756_v32 = vsel %vm20890_vm0, %v17219_v37, 0.0 }
 0x667   :  { %v17861_v33 = vpop.f32.mrf.mxu1 }
 0x668   :  { %20898 = vst [vmem:[#allocation32_spill] sm:$0xff] %v17861_v33  ;;  %v8745_v47 = vadd.f32 %v8744_v43, %v8743_v4  ;;  %v8758_v4 = vsel %vm20908_vm9, %v17283_v31, 0.0  ;;  %vm20926_vm9 = vmmov %vm20890_vm0 }
 0x669   :  { %v8660_v16 = vpop.f32.mrf.mxu1 }
 0x66a   :  { %v8747_v16 = vadd.f32 %v8746_v23, %v8745_v47  ;;  %v8760_v47 = vsel %vm20909_vm12, %v17291_v34, 0.0  ;;  %vm20928_vm12 = vmmov %vm20890_vm0 }
 0x66b   :  { %v17867_v62 = vpop.f32.mrf.mxu1 }
 0x66c   :  { %20901 = vst [vmem:[#allocation6_spill] sm:$0xff] %v17867_v62  ;;  %v8749_v44 = vadd.f32 %v8748_v52, %v8747_v16  ;;  %v8762_v16 = vsel %vm20910_vm13, %v17343_v7, 0.0  ;;  %vm20929_vm13 = vmmov %vm20890_vm0 }
 0x66d   :  { %v8663_v40 = vpop.f32.mrf.mxu1 }
 0x66e   :  { %v8751_v61 = vadd.f32 %v8750_v57, %v8749_v44  ;;  %v8754_v40 = vsel %vm20907_vm14, %v17211_v14, 0.0  ;;  %v8764_v44 = vsel %vm20911_vm6, %v17351_v8, 0.0  ;;  %vm20924_vm14 = vmmov %vm20890_vm0 }
 0x66f   :  { %vm20930_vm6 = vmmov %vm20890_vm0 }
 0x670   :  { %v8753_v48 = vadd.f32 %v8752_v56, %v8751_v61 }
 0x672   :  { %v8755_v43 = vadd.f32 %v8754_v40, %v8753_v48  ;;  %v8766_v40 = vsel %vm20913_vm2, %v17458_v50, 0.0  ;;  %v8774_v50 = vsel %vm20918_vm7, %v17730_v49, 0.0  ;;  %vm20931_vm2 = vmmov %vm20890_vm0 }
 0x673   :  { %vm20937_vm7 = vmmov %vm20890_vm0 }
 0x674   :  { %v8757_v23 = vadd.f32 %v8756_v32, %v8755_v43  ;;  %v8768_v32 = vsel %vm20914_vm11, %v17471_v15, 0.0  ;;  %vm20932_vm11 = vmmov %vm20890_vm0 }
 0x676   :  { %v8759_v52 = vadd.f32 %v8758_v4, %v8757_v23  ;;  %v8770_v23 = vsel %vm20916_vm10, %v17593_v53, 0.0  ;;  %vm20933_vm10 = vmmov %vm20890_vm0 }
 0x678   :  { %v8761_v57 = vadd.f32 %v8760_v47, %v8759_v52 }
 0x67a   :  { %v8763_v56 = vadd.f32 %v8762_v16, %v8761_v57  ;;  %v8772_v16 = vsel %vm20917_vm4, %v17608_v30, 0.0  ;;  %vm20935_vm4 = vmmov %vm20890_vm0 }
 0x67c   :  { %v8765_v48 = vadd.f32 %v8764_v44, %v8763_v56 }
 0x67e   :  { %v8767_v43 = vadd.f32 %v8766_v40, %v8765_v48  ;;  %v8778_v40 = vsel %vm20920_vm8, %v17771_v35, 0.0  ;;  %vm20939_vm8 = vmmov %vm20890_vm0 }
 0x680   :  { %v8769_v47 = vadd.f32 %v8768_v32, %v8767_v43  ;;  %v8780_v32 = vsel %vm20921_vm15, %v17775_v10, 0.0  ;;  %vm20940_vm15 = vmmov %vm20890_vm0 }
 0x682   :  { %v8771_v57 = vadd.f32 %v8770_v23, %v8769_v47  ;;  %v8784_v47 = vsel %vm20923_vm3, %v17813_v17, 0.0  ;;  %vm20942_vm3 = vmmov %vm20890_vm0 }
 0x683   :  { %v17891_v61 = vpop.f32.mrf.mxu1 }
 0x684   :  { %20912 = vst [vmem:[#allocation87_spill] sm:$0xff] %v17891_v61  ;;  %v8773_v44 = vadd.f32 %v8772_v16, %v8771_v57  ;;  %v8786_v57 = vsel %vm20924_vm14, %v17841_v22, 0.0  ;;  %vm20943_vm14 = vmmov %vm20890_vm0 }
 0x685   :  { %v8668_v31 = vpop.f32.mrf.mxu1 }
 0x686   :  { %v8776_v31 = vsel %vm20919_vm1, %v17736_v19, 0.0  ;;  %v8775_v56 = vadd.f32 %v8774_v50, %v8773_v44  ;;  %v8788_v44 = vsel %vm20890_vm0, %v17847_v27, 0.0  ;;  %vm20938_vm1 = vmmov %vm20890_vm0 }
 0x687   :  { %v17897_v4 = vpop.f32.mrf.mxu1 }
 0x688   :  { %20915 = vst [vmem:[#allocation88_spill] sm:$0xff] %v17897_v4  ;;  %v8777_v48 = vadd.f32 %v8776_v31, %v8775_v56 }
 0x689   :  { %v8671_v52 = vpop.f32.mrf.mxu1 }
 0x68a   :  { %v8779_v43 = vadd.f32 %v8778_v40, %v8777_v48  ;;  %v8782_v52 = vsel %vm20922_vm5, %v17809_v26, 0.0  ;;  %v8790_v40 = vsel %vm20926_vm9, %v17528_v59, 0.0  ;;  %vm20941_vm5 = vmmov %vm20890_vm0 }
 0x68b   :  { %vm20944_vm9 = vmmov %vm20890_vm0 }
 0x68c   :  { %v8781_v23 = vadd.f32 %v8780_v32, %v8779_v43 }
 0x68e   :  { %v8783_v16 = vadd.f32 %v8782_v52, %v8781_v23  ;;  %v8792_v52 = vsel %vm20928_vm12, %v17541_v58, 0.0  ;;  %vm20945_vm12 = vmmov %vm20890_vm0 }
 0x690   :  { %v8785_v50 = vadd.f32 %v8784_v47, %v8783_v16  ;;  %v8794_v47 = vsel %vm20929_vm13, %v17663_v13, 0.0  ;;  %vm20946_vm13 = vmmov %vm20890_vm0 }
 0x692   :  { %v8787_v31 = vadd.f32 %v8786_v57, %v8785_v50  ;;  %v8796_v57 = vsel %vm20930_vm6, %v17676_v29, 0.0  ;;  %vm20947_vm6 = vmmov %vm20890_vm0 }
 0x694   :  { %v8789_v56 = vadd.f32 %v8788_v44, %v8787_v31  ;;  %v8798_v44 = vsel %vm20931_vm2, %v17752_v0, 0.0  ;;  %vm20948_vm2 = vmmov %vm20890_vm0 }
 0x696   :  { %v8791_v48 = vadd.f32 %v8790_v40, %v8789_v56  ;;  %v8800_v56 = vsel %vm20932_vm11, %v17756_v18, 0.0  ;;  %vm20949_vm11 = vmmov %vm20890_vm0 }
 0x698   :  { %v8793_v23 = vadd.f32 %v8792_v52, %v8791_v48  ;;  %v8802_v48 = vsel %vm20933_vm10, %v17790_v11, 0.0  ;;  %v8804_v52 = vsel %vm20935_vm4, %v17794_v41, 0.0  ;;  %v8812_v41 = vsel %vm20940_vm15, %v17867_v62, 0.0  ;;  %vm20956_vm10 = vmmov %vm20890_vm0 }
 0x699   :  { %vm20957_vm4 = vmmov %vm20890_vm0 }
 0x69a   :  { %v8795_v16 = vadd.f32 %v8794_v47, %v8793_v23  ;;  %vm20966_vm15 = vmmov %vm20890_vm0 }
 0x69c   :  { %v8797_v50 = vadd.f32 %v8796_v57, %v8795_v16  ;;  %v8806_v57 = vsel %vm20937_vm7, %v17819_v60, 0.0  ;;  %vm20959_vm7 = vmmov %vm20890_vm0 }
 0x69e   :  { %v8799_v31 = vadd.f32 %v8798_v44, %v8797_v50 }
 0x69f   :  { %v17919_v35 = vpop.f32.mrf.mxu1 }
 0x6a0   :  { %20925 = vst [vmem:[#allocation91_spill] sm:$0xff] %v17919_v35  ;;  %v8801_v40 = vadd.f32 %v8800_v56, %v8799_v31  ;;  %v8808_v31 = vsel %vm20938_vm1, %v17821_v6, 0.0  ;;  %vm20961_vm1 = vmmov %vm20890_vm0 }
 0x6a1   :  { %v8676_v32 = vpop.f32.mrf.mxu1 }
 0x6a3   :  { %v17923_v43 = vpop.f32.mrf.mxu1 }
 0x6a4   :  { %20927 = vst [vmem:[#allocation92_spill] sm:$0xff] %v17923_v43 }
 0x6a5   :  { %v8679_v22 = vpop.f32.mrf.mxu1 }
 0x6a6   :  { %v8803_v22 = vadd.f32 %v8802_v48, %v8801_v40  ;;  %v8810_v40 = vsel %vm20939_vm8, %v17861_v33, 0.0  ;;  %vm20964_vm8 = vmmov %vm20890_vm0 }
 0x6a8   :  { %v8805_v23 = vadd.f32 %v8804_v52, %v8803_v22  ;;  %v8814_v22 = vsel %vm20941_vm5, %v17891_v61, 0.0  ;;  %vm20967_vm5 = vmmov %vm20890_vm0 }
 0x6aa   :  { %v8807_v50 = vadd.f32 %v8806_v57, %v8805_v23  ;;  %v8818_v57 = vsel %vm20943_vm14, %v17919_v35, 0.0  ;;  %vm20969_vm14 = vmmov %vm20890_vm0 }
 0x6ac   :  { %v8809_v56 = vadd.f32 %v8808_v31, %v8807_v50  ;;  %v8820_v50 = vsel %vm20890_vm0, %v17923_v43, 0.0 }
 0x6ae   :  { %v8811_v48 = vadd.f32 %v8810_v40, %v8809_v56 }
 0x6b0   :  { %v8813_v52 = vadd.f32 %v8812_v41, %v8811_v48 }
 0x6b2   :  { %v8815_v23 = vadd.f32 %v8814_v22, %v8813_v52 }
 0x6bb   :  { %v17937_v32 = vpop.f32.mrf.mxu1 }
 0x6bc   :  { %20934 = vst [vmem:[#allocation31_spill] sm:$0xff] %v17937_v32  ;;  %v8822_v56 = vsel %vm20944_vm9, %v17937_v32, 0.0  ;;  %vm20971_vm9 = vmmov %vm20890_vm0 }
 0x6bd   :  { %v8684_v47 = vpop.f32.mrf.mxu1 }
 0x6be   :  { %v8816_v47 = vsel %vm20942_vm3, %v17897_v4, 0.0  ;;  %vm20968_vm3 = vmmov %vm20890_vm0 }
 0x6bf   :  { %v17941_v16 = vpop.f32.mrf.mxu1 }
 0x6c0   :  { %20936 = vst [vmem:[#allocation26_spill] sm:$0xff] %v17941_v16  ;;  %v8824_v61 = vsel %vm20945_vm12, %v17941_v16, 0.0  ;;  %vm20972_vm12 = vmmov %vm20890_vm0 }
 0x6c1   :  { %v8687_v44 = vpop.f32.mrf.mxu1 }
 0x6c2   :  { %v8817_v44 = vadd.f32 %v8816_v47, %v8815_v23 }
 0x6c4   :  { %v8819_v31 = vadd.f32 %v8818_v57, %v8817_v44 }
 0x6c6   :  { %v8821_v40 = vadd.f32 %v8820_v50, %v8819_v31 }
 0x6c8   :  { %v8823_v41 = vadd.f32 %v8822_v56, %v8821_v40 }
 0x6ca   :  { %v8825_v22 = vadd.f32 %v8824_v61, %v8823_v41 }
 0x6d7   :  { %v8690_v48 = vpop.f32.mrf.mxu1 }
 0x6d8   :  { %v8826_v4 = vsel %vm20946_vm13, %v8690_v48, 0.0  ;;  %vm20975_vm13 = vmmov %vm20890_vm0 }
 0x6d9   :  { %v8692_v52 = vpop.f32.mrf.mxu1  ;;  %v8827_v62 = vadd.f32 %v8826_v4, %v8825_v22 }
 0x6db   :  { %v8693_v35 = vpop.f32.mrf.mxu1 }
 0x6dc   :  { %v8828_v47 = vsel %vm20947_vm6, %v8693_v35, 0.0  ;;  %vm20977_vm6 = vmmov %vm20890_vm0 }
 0x6dd   :  { %v8829_v23 = vadd.f32 %v8828_v47, %v8827_v62  ;;  %v8695_v43 = vpop.f32.mrf.mxu1 }
 0x6f1   :  { %v8698_v57 = vpop.f32.mrf.mxu1 }
 0x6f2   :  { %v8830_v44 = vsel %vm20948_vm2, %v8698_v57, 0.0  ;;  %vm20979_vm2 = vmmov %vm20890_vm0 }
 0x6f3   :  { %v8831_v32 = vadd.f32 %v8830_v44, %v8829_v23  ;;  %v8700_v50 = vpop.f32.mrf.mxu1 }
 0x6f5   :  { %v8701_v31 = vpop.f32.mrf.mxu1 }
 0x6f6   :  { %v8832_v16 = vsel %vm20949_vm11, %v8701_v31, 0.0  ;;  %vm20981_vm11 = vmmov %vm20890_vm0 }
 0x6f7   :  { %v8833_v56 = vadd.f32 %v8832_v16, %v8831_v32  ;;  %v8703_v40 = vpop.f32.mrf.mxu1 }
 0x6f9   :  { %v8834_v33 = vrot.slane %v8833_v56, 4 }
 0x6fb   :  { %v8835_v6 = vadd.f32 %v8834_v33, %v8833_v56 }
 0x6fd   :  { %v8836_v61 = vrot.slane %v8835_v6, 2 }
 0x6ff   :  { %v8837_v41 = vadd.f32 %v8836_v61, %v8835_v6 }
 0x701   :  { %v8838_v4 = vrot.slane %v8837_v41, 1 }
 0x703   :  { %v8839_v22 = vadd.f32 %v8838_v4, %v8837_v41 }
 0x705   :  { %v17967_v52 = vmul.f32 0.001953125, %v8839_v22  ;;  %v20962_v22 = vld [vmem:[#allocation79_spill] sm:$0xff] }
 0x707   :  { %v17970_v62 = vsub.f32 %v8690_v48, %v17967_v52  ;;  %v17973_v43 = vsub.f32 %v8693_v35, %v17967_v52  ;;  %v17976_v47 = vsub.f32 %v8698_v57, %v17967_v52  ;;  %v17979_v32 = vsub.f32 %v8701_v31, %v17967_v52 }
 0x708   :  { %v17983_v33 = vsub.f32 %v16532_v54, %v17967_v52  ;;  %v17987_v6 = vsub.f32 %v16542_v46, %v17967_v52  ;;  %v17991_v16 = vsub.f32 %v16596_v12, %v17967_v52  ;;  %v17995_v35 = vsub.f32 %v16609_v3, %v17967_v52 }
 0x709   :  { %v18003_v54 = vsub.f32 %v16659_v25, %v17967_v52  ;;  %v18009_v12 = vsub.f32 %v16673_v28, %v17967_v52  ;;  %v18017_v31 = vsub.f32 %v16714_v21, %v17967_v52  ;;  %v18024_v28 = vsub.f32 %v16725_v42, %v17967_v52 }
 0x70a   :  { %20950 = vst [vmem:[#allocation39_spill] sm:$0xff] %v17983_v33  ;;  %20951 = vst [vmem:[#allocation46_spill] sm:$0xff] %v17987_v6  ;;  %v8905_v48 = vmul.f32 %v17983_v33, %v17983_v33  ;;  %v8906_v23 = vmul.f32 %v17987_v6, %v17987_v6  ;;  %v8907_v46 = vmul.f32 %v17991_v16, %v17991_v16 }
 0x70b   :  { %20952 = vst [vmem:[#allocation95_spill] sm:$0xff] %v17991_v16  ;;  %20953 = vst [vmem:[#allocation96_spill] sm:$0xff] %v17995_v35  ;;  %v8908_v3 = vmul.f32 %v17995_v35, %v17995_v35  ;;  %v8909_v25 = vmul.f32 %v18003_v54, %v18003_v54  ;;  %v8910_v61 = vmul.f32 %v18009_v12, %v18009_v12 }
 0x70c   :  { %20954 = vst [vmem:[#allocation99_spill] sm:$0xff] %v18003_v54  ;;  %20955 = vst [vmem:[#allocation100_spill] sm:$0xff] %v18009_v12  ;;  %v8969_v57 = vsel %vm20956_vm10, %v8905_v48, 0.0  ;;  %v8970_v44 = vsel %vm20957_vm4, %v8906_v23, 0.0  ;;  %v8972_v56 = vsel %vm20959_vm7, %v8907_v46, 0.0  ;;  %v18031_v21 = vsub.f32 %v20962_v22, %v17967_v52 }
 0x70d   :  { %v8971_v50 = vadd.f32 %v8970_v44, %v8969_v57  ;;  %20958 = vst [vmem:[#allocation47_spill] sm:$0xff] %v18017_v31  ;;  %20960 = vst [vmem:[#allocation49_spill] sm:$0xff] %v18024_v28  ;;  %v8974_v41 = vsel %vm20961_vm1, %v8908_v3, 0.0  ;;  %v8911_v48 = vmul.f32 %v18017_v31, %v18017_v31  ;;  %v8976_v23 = vsel %vm20964_vm8, %v8909_v25, 0.0 }
 0x70e   :  { %20963 = vst [vmem:[#allocation50_spill] sm:$0xff] %v18031_v21  ;;  %v18038_v42 = vsub.f32 %v16780_v36, %v17967_v52  ;;  %v8912_v57 = vmul.f32 %v18024_v28, %v18024_v28  ;;  %v8978_v3 = vsel %vm20966_vm15, %v8910_v61, 0.0  ;;  %v18052_v36 = vsub.f32 %v16834_v1, %v17967_v52  ;;  %vm20983_vm10 = vmmov %vm20890_vm0 }
 0x70f   :  { %v8973_v40 = vadd.f32 %v8972_v56, %v8971_v50  ;;  %v18045_v50 = vsub.f32 %v16823_v45, %v17967_v52  ;;  %v8913_v56 = vmul.f32 %v18031_v21, %v18031_v21  ;;  %v8980_v25 = vsel %vm20967_vm5, %v8911_v48, 0.0  ;;  %vm20985_vm4 = vmmov %vm20890_vm0 }
 0x710   :  { %20965 = vst [vmem:[#allocation52_spill] sm:$0xff] %v18038_v42  ;;  %v8982_v61 = vsel %vm20968_vm3, %v8912_v57, 0.0  ;;  %v18059_v45 = vsub.f32 %v16870_v20, %v17967_v52  ;;  %v18073_v20 = vsub.f32 %v16925_v5, %v17967_v52  ;;  %vm20987_vm7 = vmmov %vm20890_vm0 }
 0x711   :  { %v8975_v4 = vadd.f32 %v8974_v41, %v8973_v40  ;;  %v8914_v41 = vmul.f32 %v18038_v42, %v18038_v42  ;;  %v8915_v22 = vmul.f32 %v18045_v50, %v18045_v50  ;;  %v8984_v48 = vsel %vm20969_vm14, %v8913_v56, 0.0  ;;  %vm20989_vm1 = vmmov %vm20890_vm0 }
 0x712   :  { %vm20991_vm8 = vmmov %vm20890_vm0 }
 0x713   :  { %v8977_v46 = vadd.f32 %v8976_v23, %v8975_v4  ;;  %v8986_v57 = vsel %vm20890_vm0, %v8914_v41, 0.0  ;;  %v8988_v56 = vsel %vm20971_vm9, %v8915_v22, 0.0  ;;  %vm20992_vm15 = vmmov %vm20890_vm0 }
 0x714   :  { %vm20994_vm5 = vmmov %vm20890_vm0 }
 0x715   :  { %v8979_v44 = vadd.f32 %v8978_v3, %v8977_v46  ;;  %v20970_v46 = vld [vmem:[#allocation80_spill] sm:$0xff]  ;;  %v8916_v3 = vmul.f32 %v18052_v36, %v18052_v36  ;;  %vm20995_vm3 = vmmov %vm20890_vm0 }
 0x716   :  { %v18066_v1 = vsub.f32 %v20970_v46, %v17967_v52  ;;  %v8919_v46 = vmul.f32 %v18073_v20, %v18073_v20  ;;  %vm20996_vm14 = vmmov %vm20890_vm0 }
 0x717   :  { %v8981_v40 = vadd.f32 %v8980_v25, %v8979_v44  ;;  %v8917_v25 = vmul.f32 %v18059_v45, %v18059_v45  ;;  %v8990_v41 = vsel %vm20972_vm12, %v8916_v3, 0.0  ;;  %vm20998_vm9 = vmmov %vm20890_vm0 }
 0x718   :  { %vm20999_vm12 = vmmov %vm20890_vm0 }
 0x719   :  { %v8983_v4 = vadd.f32 %v8982_v61, %v8981_v40  ;;  %v18080_v61 = vsub.f32 %v16935_v63, %v17967_v52  ;;  %v8992_v22 = vsel %vm20975_vm13, %v8917_v25, 0.0  ;;  %v18094_v63 = vsub.f32 %v16993_v39, %v17967_v52  ;;  %vm21000_vm13 = vmmov %vm20890_vm0 }
 0x71a   :  { %v8996_v25 = vsel %vm20979_vm2, %v8919_v46, 0.0  ;;  %v18108_v39 = vsub.f32 %v17045_v38, %v17967_v52  ;;  %v18122_v38 = vsub.f32 %v17091_v24, %v17967_v52  ;;  %v18136_v24 = vsub.f32 %v17147_v2, %v17967_v52  ;;  %vm21002_vm2 = vmmov %vm20890_vm0 }
 0x71b   :  { %v8985_v23 = vadd.f32 %v8984_v48, %v8983_v4  ;;  %v8918_v4 = vmul.f32 %v18066_v1, %v18066_v1  ;;  %20976 = vst [vmem:[#allocation51_spill] sm:$0xff] %v18094_v63  ;;  %v18150_v2 = vsub.f32 %v17219_v37, %v17967_v52  ;;  %v18164_v37 = vsub.f32 %v17291_v34, %v17967_v52 }
 0x71c   :  { %20980 = vst [vmem:[#allocation56_spill] sm:$0xff] %v18108_v39  ;;  %20984 = vst [vmem:[#allocation55_spill] sm:$0xff] %v18122_v38  ;;  %v18178_v34 = vsub.f32 %v17351_v8, %v17967_v52  ;;  %v18192_v8 = vsub.f32 %v17471_v15, %v17967_v52  ;;  %v18206_v15 = vsub.f32 %v17608_v30, %v17967_v52 }
 0x71d   :  { %v8987_v44 = vadd.f32 %v8986_v57, %v8985_v23  ;;  %v20973_v23 = vld [vmem:[#allocation83_spill] sm:$0xff]  ;;  %v8994_v3 = vsel %vm20977_vm6, %v8918_v4, 0.0  ;;  %20988 = vst [vmem:[#allocation113_spill] sm:$0xff] %v18136_v24  ;;  %vm21001_vm6 = vmmov %vm20890_vm0  ;;  %v18220_v30 = vsub.f32 %v17736_v19, %v17967_v52  ;;  %v18234_v19 = vsub.f32 %v17775_v10, %v17967_v52 }
 0x71e   :  { %v18087_v5 = vsub.f32 %v20973_v23, %v17967_v52  ;;  %v8922_v23 = vmul.f32 %v18094_v63, %v18094_v63  ;;  %v18248_v10 = vsub.f32 %v17813_v17, %v17967_v52  ;;  %v18262_v17 = vsub.f32 %v17847_v27, %v17967_v52 }
 0x71f   :  { %v8989_v40 = vadd.f32 %v8988_v56, %v8987_v44  ;;  %v8920_v44 = vmul.f32 %v18080_v61, %v18080_v61  ;;  %v18276_v27 = vsub.f32 %v17541_v58, %v17967_v52  ;;  %v18290_v58 = vsub.f32 %v17676_v29, %v17967_v52 }
 0x720   :  { %20974 = vst [vmem:[#allocation53_spill] sm:$0xff] %v18087_v5  ;;  %v18304_v29 = vsub.f32 %v17756_v18, %v17967_v52 }
 0x721   :  { %v8991_v48 = vadd.f32 %v8990_v41, %v8989_v40  ;;  %v18101_v40 = vsub.f32 %v17031_v55, %v17967_v52  ;;  %v8921_v41 = vmul.f32 %v18087_v5, %v18087_v5  ;;  %v8998_v4 = vsel %vm20981_vm11, %v8920_v44, 0.0  ;;  %vm21003_vm11 = vmmov %vm20890_vm0 }
 0x722   :  { %v18115_v55 = vsub.f32 %v17081_v51, %v17967_v52  ;;  %v9002_v44 = vsel %vm20985_vm4, %v8922_v23, 0.0  ;;  %v18129_v51 = vsub.f32 %v17139_v9, %v17967_v52  ;;  %v18143_v9 = vsub.f32 %v17211_v14, %v17967_v52  ;;  %vm21006_vm4 = vmmov %vm20890_vm0 }
 0x723   :  { %v8993_v57 = vadd.f32 %v8992_v22, %v8991_v48  ;;  %20978 = vst [vmem:[#allocation54_spill] sm:$0xff] %v18101_v40  ;;  %v9000_v46 = vsel %vm20983_vm10, %v8921_v41, 0.0  ;;  %vm21005_vm10 = vmmov %vm20890_vm0  ;;  %v8952_v63 = vmul.f32 %v18304_v29, %v18304_v29 }
 0x724   :  { %20982 = vst [vmem:[#allocation58_spill] sm:$0xff] %v18115_v55  ;;  %20986 = vst [vmem:[#allocation60_spill] sm:$0xff] %v18129_v51 }
 0x725   :  { %v8995_v56 = vadd.f32 %v8994_v3, %v8993_v57  ;;  %v8923_v57 = vmul.f32 %v18101_v40, %v18101_v40  ;;  %20990 = vst [vmem:[#allocation114_spill] sm:$0xff] %v18143_v9 }
 0x727   :  { %v8997_v48 = vadd.f32 %v8996_v25, %v8995_v56  ;;  %v8924_v56 = vmul.f32 %v18108_v39, %v18108_v39  ;;  %v9004_v41 = vsel %vm20987_vm7, %v8923_v57, 0.0  ;;  %vm21007_vm7 = vmmov %vm20890_vm0 }
 0x729   :  { %v8999_v22 = vadd.f32 %v8998_v4, %v8997_v48  ;;  %v8925_v48 = vmul.f32 %v18115_v55, %v18115_v55  ;;  %v9006_v23 = vsel %vm20989_vm1, %v8924_v56, 0.0  ;;  %vm21008_vm1 = vmmov %vm20890_vm0 }
 0x72b   :  { %v9001_v3 = vadd.f32 %v9000_v46, %v8999_v22  ;;  %v8926_v22 = vmul.f32 %v18122_v38, %v18122_v38  ;;  %v9008_v57 = vsel %vm20991_vm8, %v8925_v48, 0.0  ;;  %vm21010_vm8 = vmmov %vm20890_vm0 }
 0x72d   :  { %v9003_v25 = vadd.f32 %v9002_v44, %v9001_v3  ;;  %v8927_v3 = vmul.f32 %v18129_v51, %v18129_v51  ;;  %v9010_v56 = vsel %vm20992_vm15, %v8926_v22, 0.0  ;;  %vm21011_vm15 = vmmov %vm20890_vm0 }
 0x72f   :  { %v9005_v4 = vadd.f32 %v9004_v41, %v9003_v25  ;;  %v8928_v25 = vmul.f32 %v18136_v24, %v18136_v24  ;;  %v9012_v48 = vsel %vm20994_vm5, %v8927_v3, 0.0  ;;  %vm21012_vm5 = vmmov %vm20890_vm0 }
 0x731   :  { %v9007_v46 = vadd.f32 %v9006_v23, %v9005_v4  ;;  %v20993_v4 = vld [vmem:[#allocation84_spill] sm:$0xff]  ;;  %v8929_v23 = vmul.f32 %v18143_v9, %v18143_v9  ;;  %v9014_v22 = vsel %vm20995_vm3, %v8928_v25, 0.0  ;;  %vm21013_vm3 = vmmov %vm20890_vm0 }
 0x732   :  { %v18157_v14 = vsub.f32 %v20993_v4, %v17967_v52 }
 0x733   :  { %v9009_v44 = vadd.f32 %v9008_v57, %v9007_v46  ;;  %v8930_v57 = vmul.f32 %v18150_v2, %v18150_v2  ;;  %v9016_v3 = vsel %vm20996_vm14, %v8929_v23, 0.0  ;;  %vm21014_vm14 = vmmov %vm20890_vm0 }
 0x734   :  { %v8931_v4 = vmul.f32 %v18157_v14, %v18157_v14 }
 0x735   :  { %v9011_v41 = vadd.f32 %v9010_v56, %v9009_v44  ;;  %v18171_v56 = vsub.f32 %v17343_v7, %v17967_v52  ;;  %v9018_v25 = vsel %vm20890_vm0, %v8930_v57, 0.0 }
 0x736   :  { %v9020_v23 = vsel %vm20998_vm9, %v8931_v4, 0.0  ;;  %vm21015_vm9 = vmmov %vm20890_vm0 }
 0x737   :  { %v9013_v46 = vadd.f32 %v9012_v48, %v9011_v41  ;;  %v8932_v48 = vmul.f32 %v18164_v37, %v18164_v37  ;;  %v8933_v33 = vmul.f32 %v18171_v56, %v18171_v56 }
 0x739   :  { %v9015_v44 = vadd.f32 %v9014_v22, %v9013_v46  ;;  %v20997_v22 = vld [vmem:[#allocation44_spill] sm:$0xff]  ;;  %v9022_v57 = vsel %vm20999_vm12, %v8932_v48, 0.0  ;;  %v9024_v4 = vsel %vm21000_vm13, %v8933_v33, 0.0  ;;  %vm21016_vm12 = vmmov %vm20890_vm0 }
 0x73a   :  { %v18185_v7 = vsub.f32 %v20997_v22, %v17967_v52  ;;  %vm21017_vm13 = vmmov %vm20890_vm0 }
 0x73b   :  { %v9017_v41 = vadd.f32 %v9016_v3, %v9015_v44  ;;  %v8934_v3 = vmul.f32 %v18178_v34, %v18178_v34 }
 0x73c   :  { %v8935_v22 = vmul.f32 %v18185_v7, %v18185_v7 }
 0x73d   :  { %v9019_v46 = vadd.f32 %v9018_v25, %v9017_v41  ;;  %v18199_v25 = vsub.f32 %v17593_v53, %v17967_v52  ;;  %v9026_v48 = vsel %vm21001_vm6, %v8934_v3, 0.0  ;;  %v18213_v53 = vsub.f32 %v17730_v49, %v17967_v52  ;;  %vm21019_vm6 = vmmov %vm20890_vm0 }
 0x73e   :  { %v9028_v33 = vsel %vm21002_vm2, %v8935_v22, 0.0  ;;  %vm21020_vm2 = vmmov %vm20890_vm0 }
 0x73f   :  { %v9021_v44 = vadd.f32 %v9020_v23, %v9019_v46  ;;  %v8936_v23 = vmul.f32 %v18192_v8, %v18192_v8  ;;  %v8939_v5 = vmul.f32 %v18213_v53, %v18213_v53 }
 0x741   :  { %v9023_v41 = vadd.f32 %v9022_v57, %v9021_v44  ;;  %v8937_v57 = vmul.f32 %v18199_v25, %v18199_v25  ;;  %v9030_v3 = vsel %vm21003_vm11, %v8936_v23, 0.0  ;;  %vm21022_vm11 = vmmov %vm20890_vm0 }
 0x743   :  { %v9025_v46 = vadd.f32 %v9024_v4, %v9023_v41  ;;  %v8938_v4 = vmul.f32 %v18206_v15, %v18206_v15  ;;  %v9032_v22 = vsel %vm21005_vm10, %v8937_v57, 0.0  ;;  %v9036_v57 = vsel %vm21007_vm7, %v8939_v5, 0.0  ;;  %vm21024_vm10 = vmmov %vm20890_vm0 }
 0x744   :  { %vm21028_vm7 = vmmov %vm20890_vm0 }
 0x745   :  { %v9027_v44 = vadd.f32 %v9026_v48, %v9025_v46  ;;  %v21004_v48 = vld [vmem:[#allocation36_spill] sm:$0xff]  ;;  %v9034_v23 = vsel %vm21006_vm4, %v8938_v4, 0.0  ;;  %vm21026_vm4 = vmmov %vm20890_vm0 }
 0x746   :  { %v18227_v49 = vsub.f32 %v21004_v48, %v17967_v52 }
 0x747   :  { %v9029_v41 = vadd.f32 %v9028_v33, %v9027_v44  ;;  %v8940_v33 = vmul.f32 %v18220_v30, %v18220_v30 }
 0x748   :  { %v8941_v48 = vmul.f32 %v18227_v49, %v18227_v49 }
 0x749   :  { %v9031_v46 = vadd.f32 %v9030_v3, %v9029_v41  ;;  %v18241_v3 = vsub.f32 %v17809_v26, %v17967_v52  ;;  %v9038_v4 = vsel %vm21008_vm1, %v8940_v33, 0.0  ;;  %vm21030_vm1 = vmmov %vm20890_vm0 }
 0x74a   :  { %v9040_v5 = vsel %vm21010_vm8, %v8941_v48, 0.0  ;;  %vm21032_vm8 = vmmov %vm20890_vm0 }
 0x74b   :  { %v9033_v44 = vadd.f32 %v9032_v22, %v9031_v46  ;;  %v8942_v22 = vmul.f32 %v18234_v19, %v18234_v19  ;;  %v8943_v6 = vmul.f32 %v18241_v3, %v18241_v3 }
 0x74d   :  { %v9035_v41 = vadd.f32 %v9034_v23, %v9033_v44  ;;  %v21009_v23 = vld [vmem:[#allocation37_spill] sm:$0xff]  ;;  %v9042_v33 = vsel %vm21011_vm15, %v8942_v22, 0.0  ;;  %v9044_v48 = vsel %vm21012_vm5, %v8943_v6, 0.0  ;;  %vm21034_vm15 = vmmov %vm20890_vm0 }
 0x74e   :  { %v18255_v26 = vsub.f32 %v21009_v23, %v17967_v52  ;;  %vm21036_vm5 = vmmov %vm20890_vm0 }
 0x74f   :  { %v9037_v46 = vadd.f32 %v9036_v57, %v9035_v41  ;;  %v8944_v57 = vmul.f32 %v18248_v10, %v18248_v10 }
 0x750   :  { %v8945_v23 = vmul.f32 %v18255_v26, %v18255_v26 }
 0x751   :  { %v9039_v44 = vadd.f32 %v9038_v4, %v9037_v46  ;;  %v18269_v4 = vsub.f32 %v17528_v59, %v17967_v52  ;;  %v9046_v22 = vsel %vm21013_vm3, %v8944_v57, 0.0  ;;  %v18283_v59 = vsub.f32 %v17663_v13, %v17967_v52  ;;  %vm21038_vm3 = vmmov %vm20890_vm0 }
 0x752   :  { %v9048_v6 = vsel %vm21014_vm14, %v8945_v23, 0.0  ;;  %v18297_v13 = vsub.f32 %v17752_v0, %v17967_v52  ;;  %v18311_v0 = vsub.f32 %v17790_v11, %v17967_v52  ;;  %v18325_v11 = vsub.f32 %v17819_v60, %v17967_v52  ;;  %vm21039_vm14 = vmmov %vm20890_vm0 }
 0x753   :  { %v9041_v41 = vadd.f32 %v9040_v5, %v9039_v44  ;;  %v8946_v5 = vmul.f32 %v18262_v17, %v18262_v17 }
 0x754   :  { %v8955_v40 = vmul.f32 %v18325_v11, %v18325_v11 }
 0x755   :  { %v9043_v46 = vadd.f32 %v9042_v33, %v9041_v41  ;;  %v8947_v33 = vmul.f32 %v18269_v4, %v18269_v4  ;;  %v9050_v57 = vsel %vm20890_vm0, %v8946_v5, 0.0 }
 0x757   :  { %v9045_v44 = vadd.f32 %v9044_v48, %v9043_v46  ;;  %v8948_v48 = vmul.f32 %v18276_v27, %v18276_v27  ;;  %v9052_v23 = vsel %vm21015_vm9, %v8947_v33, 0.0  ;;  %vm21040_vm9 = vmmov %vm20890_vm0 }
 0x759   :  { %v9047_v41 = vadd.f32 %v9046_v22, %v9045_v44  ;;  %v8949_v22 = vmul.f32 %v18283_v59, %v18283_v59  ;;  %v9054_v5 = vsel %vm21016_vm12, %v8948_v48, 0.0  ;;  %vm21041_vm12 = vmmov %vm20890_vm0 }
 0x75b   :  { %v9049_v46 = vadd.f32 %v9048_v6, %v9047_v41  ;;  %v8950_v6 = vmul.f32 %v18290_v58, %v18290_v58  ;;  %v9056_v33 = vsel %vm21017_vm13, %v8949_v22, 0.0  ;;  %vm21042_vm13 = vmmov %vm20890_vm0 }
 0x75d   :  { %v9051_v44 = vadd.f32 %v9050_v57, %v9049_v46  ;;  %v8951_v57 = vmul.f32 %v18297_v13, %v18297_v13  ;;  %v9058_v48 = vsel %vm21019_vm6, %v8950_v6, 0.0  ;;  %v9062_v6 = vsel %vm21022_vm11, %v8952_v63, 0.0  ;;  %vm21043_vm6 = vmmov %vm20890_vm0 }
 0x75e   :  { %vm21045_vm11 = vmmov %vm20890_vm0 }
 0x75f   :  { %v9053_v41 = vadd.f32 %v9052_v23, %v9051_v44  ;;  %v21018_v23 = vld [vmem:[#allocation5_spill] sm:$0xff]  ;;  %v9060_v22 = vsel %vm21020_vm2, %v8951_v57, 0.0  ;;  %vm21044_vm2 = vmmov %vm20890_vm0 }
 0x760   :  { %v18318_v18 = vsub.f32 %v21018_v23, %v17967_v52 }
 0x761   :  { %v9055_v46 = vadd.f32 %v9054_v5, %v9053_v41  ;;  %v8953_v5 = vmul.f32 %v18311_v0, %v18311_v0 }
 0x762   :  { %v8954_v16 = vmul.f32 %v18318_v18, %v18318_v18 }
 0x763   :  { %v9057_v44 = vadd.f32 %v9056_v33, %v9055_v46  ;;  %v21021_v33 = vld [vmem:[#allocation45_spill] sm:$0xff]  ;;  %v9064_v57 = vsel %vm21024_vm10, %v8953_v5, 0.0  ;;  %v9068_v5 = vsel %vm21028_vm7, %v8955_v40, 0.0  ;;  %vm21046_vm10 = vmmov %vm20890_vm0 }
 0x764   :  { %v18332_v23 = vsub.f32 %v21021_v33, %v17967_v52  ;;  %v9066_v63 = vsel %vm21026_vm4, %v8954_v16, 0.0  ;;  %vm21048_vm4 = vmmov %vm20890_vm0 }
 0x765   :  { %v9059_v41 = vadd.f32 %v9058_v48, %v9057_v44  ;;  %v21023_v48 = vld [vmem:[#allocation32_spill] sm:$0xff]  ;;  %vm21049_vm7 = vmmov %vm20890_vm0 }
 0x766   :  { %v18339_v60 = vsub.f32 %v21023_v48, %v17967_v52  ;;  %v8956_v35 = vmul.f32 %v18332_v23, %v18332_v23 }
 0x767   :  { %v9061_v46 = vadd.f32 %v9060_v22, %v9059_v41  ;;  %v21025_v22 = vld [vmem:[#allocation6_spill] sm:$0xff] }
 0x768   :  { %v18346_v33 = vsub.f32 %v21025_v22, %v17967_v52  ;;  %v8957_v39 = vmul.f32 %v18339_v60, %v18339_v60  ;;  %v9070_v16 = vsel %vm21030_vm1, %v8956_v35, 0.0  ;;  %vm21050_vm1 = vmmov %vm20890_vm0 }
 0x769   :  { %v9063_v44 = vadd.f32 %v9062_v6, %v9061_v46  ;;  %v21027_v6 = vld [vmem:[#allocation87_spill] sm:$0xff] }
 0x76a   :  { %v18353_v48 = vsub.f32 %v21027_v6, %v17967_v52  ;;  %v8958_v54 = vmul.f32 %v18346_v33, %v18346_v33  ;;  %v9072_v40 = vsel %vm21032_vm8, %v8957_v39, 0.0  ;;  %vm21051_vm8 = vmmov %vm20890_vm0 }
 0x76b   :  { %v9065_v41 = vadd.f32 %v9064_v57, %v9063_v44  ;;  %v21029_v57 = vld [vmem:[#allocation88_spill] sm:$0xff] }
 0x76c   :  { %v18360_v22 = vsub.f32 %v21029_v57, %v17967_v52  ;;  %v8959_v55 = vmul.f32 %v18353_v48, %v18353_v48  ;;  %v9074_v35 = vsel %vm21034_vm15, %v8958_v54, 0.0  ;;  %vm21052_vm15 = vmmov %vm20890_vm0 }
 0x76d   :  { %v9067_v46 = vadd.f32 %v9066_v63, %v9065_v41  ;;  %v21031_v63 = vld [vmem:[#allocation91_spill] sm:$0xff] }
 0x76e   :  { %v18367_v6 = vsub.f32 %v21031_v63, %v17967_v52  ;;  %v8960_v12 = vmul.f32 %v18360_v22, %v18360_v22  ;;  %v9076_v39 = vsel %vm21036_vm5, %v8959_v55, 0.0  ;;  %vm21053_vm5 = vmmov %vm20890_vm0 }
 0x76f   :  { %v9069_v44 = vadd.f32 %v9068_v5, %v9067_v46  ;;  %v21033_v5 = vld [vmem:[#allocation92_spill] sm:$0xff] }
 0x770   :  { %v18374_v57 = vsub.f32 %v21033_v5, %v17967_v52  ;;  %v8961_v38 = vmul.f32 %v18367_v6, %v18367_v6  ;;  %v9078_v54 = vsel %vm21038_vm3, %v8960_v12, 0.0  ;;  %v8966_v12 = vmul.f32 %v17973_v43, %v17973_v43  ;;  %vm21054_vm3 = vmmov %vm20890_vm0 }
 0x771   :  { %v9071_v41 = vadd.f32 %v9070_v16, %v9069_v44  ;;  %v21035_v16 = vld [vmem:[#allocation31_spill] sm:$0xff] }
 0x772   :  { %v18381_v63 = vsub.f32 %v21035_v16, %v17967_v52  ;;  %v8962_v31 = vmul.f32 %v18374_v57, %v18374_v57  ;;  %v9080_v16 = vsel %vm21039_vm14, %v8961_v38, 0.0  ;;  %v8967_v38 = vmul.f32 %v17976_v47, %v17976_v47  ;;  %vm21057_vm14 = vmmov %vm20890_vm0 }
 0x773   :  { %v9073_v46 = vadd.f32 %v9072_v40, %v9071_v41  ;;  %v21037_v40 = vld [vmem:[#allocation26_spill] sm:$0xff] }
 0x774   :  { %v18388_v5 = vsub.f32 %v21037_v40, %v17967_v52  ;;  %v8965_v52 = vmul.f32 %v17970_v62, %v17970_v62 }
 0x775   :  { %v9075_v44 = vadd.f32 %v9074_v35, %v9073_v46  ;;  %v8963_v35 = vmul.f32 %v18381_v63, %v18381_v63 }
 0x776   :  { %v8964_v55 = vmul.f32 %v18388_v5, %v18388_v5 }
 0x777   :  { %v9077_v41 = vadd.f32 %v9076_v39, %v9075_v44  ;;  %v9082_v44 = vsel %vm20890_vm0, %v8962_v31, 0.0  ;;  %v9084_v40 = vsel %vm21040_vm9, %v8963_v35, 0.0  ;;  %v8968_v31 = vmul.f32 %v17979_v32, %v17979_v32  ;;  %vm21060_vm9 = vmmov %vm20890_vm0 }
 0x778   :  { %v9092_v35 = vsel %vm21044_vm2, %v8967_v38, 0.0  ;;  %v8705_v38 = vld [vmem:[%s18834_s5] sm:$0x1]  ;;  %vm21068_vm2 = vmmov %vm20890_vm0 }
 0x779   :  { %v9079_v46 = vadd.f32 %v9078_v54, %v9077_v41  ;;  %v9086_v41 = vsel %vm21041_vm12, %v8964_v55, 0.0  ;;  %vm21061_vm12 = vmmov %vm20890_vm0 }
 0x77b   :  { %v9081_v51 = vadd.f32 %v9080_v16, %v9079_v46  ;;  %v9088_v46 = vsel %vm21042_vm13, %v8965_v52, 0.0  ;;  %vm21064_vm13 = vmmov %vm20890_vm0 }
 0x77d   :  { %v9083_v39 = vadd.f32 %v9082_v44, %v9081_v51  ;;  %v9090_v51 = vsel %vm21043_vm6, %v8966_v12, 0.0  ;;  %v18416_v12 = vld [vmem:[%s18833_s7] sm:$0xff]  ;;  %vm21065_vm6 = vmmov %vm20890_vm0 }
 0x77e   :  { %11126 = vmatprep.mubr.msk.f32.mxu1 %vm21046_vm10, %v18416_v12  ;;  %vm21072_vm10 = vmmov %vm20890_vm0 }
 0x77f   :  { %v9085_v28 = vadd.f32 %v9084_v40, %v9083_v39  ;;  %v9094_v40 = vsel %vm21045_vm11, %v8968_v31, 0.0  ;;  %vm21069_vm11 = vmmov %vm20890_vm0 }
 0x781   :  { %v9087_v54 = vadd.f32 %v9086_v41, %v9085_v28 }
 0x783   :  { %v9089_v16 = vadd.f32 %v9088_v46, %v9087_v54 }
 0x785   :  { %v9091_v44 = vadd.f32 %v9090_v51, %v9089_v16  ;;  %v21047_v16 = vld [vmem:[#allocation20_spill] sm:$0xff] }
 0x787   :  { %v9093_v39 = vadd.f32 %v9092_v35, %v9091_v44 }
 0x789   :  { %v9095_v24 = vadd.f32 %v9094_v40, %v9093_v39 }
 0x78b   :  { %v9096_v55 = vrot.slane %v9095_v24, 4 }
 0x78d   :  { %v9097_v28 = vadd.f32 %v9096_v55, %v9095_v24 }
 0x78f   :  { %v9098_v41 = vrot.slane %v9097_v28, 2 }
 0x791   :  { %v9099_v21 = vadd.f32 %v9098_v41, %v9097_v28 }
 0x793   :  { %v9100_v9 = vrot.slane %v9099_v21, 1 }
 0x795   :  { %v9101_v42 = vadd.f32 %v9100_v9, %v9099_v21  ;;  %v18429_v21 = vld [vmem:[%s18835_s6] ss:$0 sm:$0xff] }
 0x797   :  { %v9102_v52 = vmul.f32 0.001953125, %v9101_v42 }
 0x799   :  { %v9103_v54 = vadd.f32 1e-05, %v9102_v52 }
 0x79b   :  { %11270 = vrsqrt.f32 %v9103_v54 }
 0x7a8   :  { %v11271_v24 = vpop.eup %11270 }
 0x7a9   :  { %v9105_v46 = vmul.f32 %v11271_v24, %v8705_v38 }
 0x7ab   :  { %v18424_v31 = vrot.slane %v9105_v46, %v21047_v16 }
 0x7ad   :  { %v9175_v42 = vmul.f32 %v18424_v31, %v17979_v32  ;;  %v9144_v51 = vmul.f32 %v18424_v31, %v18199_v25  ;;  %v9145_v44 = vmul.f32 %v18424_v31, %v18206_v15  ;;  %v9146_v35 = vmul.f32 %v18424_v31, %v18213_v53 }
 0x7ae   :  { %v9147_v39 = vmul.f32 %v18424_v31, %v18220_v30  ;;  %v9148_v40 = vmul.f32 %v18424_v31, %v18227_v49  ;;  %v9149_v32 = vmul.f32 %v18424_v31, %v18234_v19  ;;  %v9150_v55 = vmul.f32 %v18424_v31, %v18241_v3 }
 0x7af   :  { %v18434_v9 = vadd.f32 %v18429_v21, %v9175_v42  ;;  %v9151_v25 = vmul.f32 %v18424_v31, %v18248_v10  ;;  %v9152_v15 = vmul.f32 %v18424_v31, %v18255_v26  ;;  %v9153_v53 = vmul.f32 %v18424_v31, %v18262_v17 }
 0x7b0   :  { %v9154_v30 = vmul.f32 %v18424_v31, %v18269_v4  ;;  %v9155_v49 = vmul.f32 %v18424_v31, %v18276_v27  ;;  %v9156_v19 = vmul.f32 %v18424_v31, %v18283_v59  ;;  %v9157_v3 = vmul.f32 %v18424_v31, %v18290_v58 }
 0x7b1   :  { %v9158_v10 = vmul.f32 %v18424_v31, %v18297_v13  ;;  %v9159_v26 = vmul.f32 %v18424_v31, %v18304_v29  ;;  %v9160_v17 = vmul.f32 %v18424_v31, %v18311_v0  ;;  %v9161_v4 = vmul.f32 %v18424_v31, %v18318_v18 }
 0x7b2   :  { %v9162_v27 = vmul.f32 %v18424_v31, %v18325_v11  ;;  %v9163_v59 = vmul.f32 %v18424_v31, %v18332_v23  ;;  %v9164_v58 = vmul.f32 %v18424_v31, %v18339_v60  ;;  %v9165_v13 = vmul.f32 %v18424_v31, %v18346_v33 }
 0x7b3   :  { %v9166_v29 = vmul.f32 %v18424_v31, %v18353_v48  ;;  %v9167_v0 = vmul.f32 %v18424_v31, %v18360_v22  ;;  %v9168_v18 = vmul.f32 %v18424_v31, %v18367_v6  ;;  %v9169_v11 = vmul.f32 %v18424_v31, %v18374_v57 }
 0x7b4   :  { %v9170_v23 = vmul.f32 %v18424_v31, %v18381_v63  ;;  %v9171_v60 = vmul.f32 %v18424_v31, %v18388_v5  ;;  %v9172_v33 = vmul.f32 %v18424_v31, %v17970_v62  ;;  %v9173_v48 = vmul.f32 %v18424_v31, %v17973_v43 }
 0x7b5   :  { %v9174_v22 = vmul.f32 %v18424_v31, %v17976_v47  ;;  %v18499_v6 = vadd.f32 %v18429_v21, %v9144_v51  ;;  %v18502_v57 = vadd.f32 %v18429_v21, %v9145_v44  ;;  %v18505_v63 = vadd.f32 %v18429_v21, %v9146_v35 }
 0x7b6   :  { %v18508_v5 = vadd.f32 %v18429_v21, %v9147_v39  ;;  %v18511_v62 = vadd.f32 %v18429_v21, %v9148_v40  ;;  %v18514_v43 = vadd.f32 %v18429_v21, %v9149_v32  ;;  %v18517_v47 = vadd.f32 %v18429_v21, %v9150_v55 }
 0x7b7   :  { %v18520_v28 = vadd.f32 %v18429_v21, %v9151_v25  ;;  %v18523_v41 = vadd.f32 %v18429_v21, %v9152_v15  ;;  %v18526_v52 = vadd.f32 %v18429_v21, %v9153_v53  ;;  %v18529_v54 = vadd.f32 %v18429_v21, %v9154_v30 }
 0x7b8   :  { %v18532_v38 = vadd.f32 %v18429_v21, %v9155_v49  ;;  %v18535_v24 = vadd.f32 %v18429_v21, %v9156_v19  ;;  %v18538_v46 = vadd.f32 %v18429_v21, %v9157_v3  ;;  %v18541_v42 = vadd.f32 %v18429_v21, %v9158_v10 }
 0x7b9   :  { %v18544_v51 = vadd.f32 %v18429_v21, %v9159_v26  ;;  %v18547_v44 = vadd.f32 %v18429_v21, %v9160_v17  ;;  %v18550_v35 = vadd.f32 %v18429_v21, %v9161_v4  ;;  %v18553_v39 = vadd.f32 %v18429_v21, %v9162_v27 }
 0x7ba   :  { %v18556_v40 = vadd.f32 %v18429_v21, %v9163_v59  ;;  %v18559_v32 = vadd.f32 %v18429_v21, %v9164_v58  ;;  %v18562_v55 = vadd.f32 %v18429_v21, %v9165_v13  ;;  %v18565_v25 = vadd.f32 %v18429_v21, %v9166_v29 }
 0x7bb   :  { %v18568_v15 = vadd.f32 %v18429_v21, %v9167_v0  ;;  %v18571_v53 = vadd.f32 %v18429_v21, %v9168_v18  ;;  %v18574_v30 = vadd.f32 %v18429_v21, %v9169_v11  ;;  %v18577_v49 = vadd.f32 %v18429_v21, %v9170_v23 }
 0x7bc   :  { %v18580_v19 = vadd.f32 %v18429_v21, %v9171_v60  ;;  %v18583_v3 = vadd.f32 %v18429_v21, %v9172_v33  ;;  %v18586_v10 = vadd.f32 %v18429_v21, %v9173_v48  ;;  %v18589_v26 = vadd.f32 %v18429_v21, %v9174_v22 }
 0x7bd   :  { %v9127_v17 = vmul.f32 %v18424_v31, %v18080_v61  ;;  %v9143_v4 = vmul.f32 %v18424_v31, %v18192_v8  ;;  %v9142_v58 = vmul.f32 %v18424_v31, %v18185_v7  ;;  %v9126_v13 = vmul.f32 %v18424_v31, %v18073_v20 }
 0x7be   :  { %v9141_v0 = vmul.f32 %v18424_v31, %v18178_v34  ;;  %v9125_v8 = vmul.f32 %v18424_v31, %v18066_v1  ;;  %v9140_v60 = vmul.f32 %v18424_v31, %v18171_v56  ;;  %v9124_v34 = vmul.f32 %v18424_v31, %v18059_v45 }
 0x7bf   :  { %v9197_v27 = vadd.f32 %v18429_v21, %v9127_v17  ;;  %v9213_v59 = vadd.f32 %v18429_v21, %v9143_v4  ;;  %v9212_v61 = vadd.f32 %v18429_v21, %v9142_v58  ;;  %v9196_v11 = vadd.f32 %v18429_v21, %v9126_v13 }
 0x7c0   :  { %v9211_v7 = vadd.f32 %v18429_v21, %v9141_v0  ;;  %v9195_v48 = vadd.f32 %v18429_v21, %v9125_v8  ;;  %v9139_v1 = vmul.f32 %v18424_v31, %v18164_v37  ;;  %v9210_v17 = vadd.f32 %v18429_v21, %v9140_v60 }
 0x7c1   :  { %v9261_v29 = vmul.f32 0.2, %v9197_v27  ;;  %v9277_v18 = vmul.f32 0.2, %v9213_v59  ;;  %v9276_v20 = vmul.f32 0.2, %v9212_v61  ;;  %v9138_v45 = vmul.f32 %v18424_v31, %v18157_v14 }
 0x7c2   :  { %v9260_v22 = vmul.f32 0.2, %v9196_v11  ;;  %v9275_v56 = vmul.f32 0.2, %v9211_v7  ;;  %v9259_v58 = vmul.f32 0.2, %v9195_v48  ;;  %v9137_v14 = vmul.f32 %v18424_v31, %v18150_v2 }
 0x7c3   :  { %v9325_v23 = vmax.f32 %v9197_v27, %v9261_v29  ;;  %v9341_v33 = vmax.f32 %v9213_v59, %v9277_v18  ;;  %v9340_v4 = vmax.f32 %v9212_v61, %v9276_v20  ;;  %v9123_v27 = vmul.f32 %v18424_v31, %v18052_v36 }
 0x7c4   :  { %v9194_v59 = vadd.f32 %v18429_v21, %v9124_v34  ;;  %v9324_v13 = vmax.f32 %v9196_v11, %v9260_v22  ;;  %v9209_v29 = vadd.f32 %v18429_v21, %v9139_v1  ;;  %v9274_v0 = vmul.f32 0.2, %v9210_v17  ;;  %v21056_v22 = vld [vmem:[#allocation114_spill] sm:$0xff] }
 0x7c5   :  { %11094 = vmatprep.subr.msk.mxu1 %vm21048_vm4, %v9341_v33  ;;  %v9339_v37 = vmax.f32 %v9211_v7, %v9275_v56  ;;  %v9122_v36 = vmul.f32 %v18424_v31, %v18045_v50  ;;  %v9193_v18 = vadd.f32 %v18429_v21, %v9123_v27  ;;  %v9323_v8 = vmax.f32 %v9195_v48, %v9259_v58  ;;  %v21055_v7 = vld [vmem:[#allocation52_spill] sm:$0xff]  ;;  %vm21073_vm4 = vmmov %vm20890_vm0 }
 0x7c6   :  { %11095 = vmatpush3.xpose.msk.msra.mxu1 %vm21049_vm7, %v9325_v23  ;;  %v9258_v61 = vmul.f32 0.2, %v9194_v59  ;;  %v9208_v11 = vadd.f32 %v18429_v21, %v9138_v45  ;;  %v9273_v23 = vmul.f32 0.2, %v9209_v29  ;;  %v9338_v60 = vmax.f32 %v9210_v17, %v9274_v0  ;;  %v21058_v17 = vld [vmem:[#allocation50_spill] sm:$0xff]  ;;  %v21059_v45 = vld [vmem:[#allocation113_spill] sm:$0xff]  ;;  %vm21076_vm7 = vmmov %vm20890_vm0 }
 0x7c7   :  { %11096 = vmatprep.subr.msk.mxu1 %vm21050_vm1, %v9340_v4  ;;  %v9121_v33 = vmul.f32 %v18424_v31, %v21055_v7  ;;  %v9192_v50 = vadd.f32 %v18429_v21, %v9122_v36  ;;  %v9257_v20 = vmul.f32 0.2, %v9193_v18  ;;  %v9136_v48 = vmul.f32 %v18424_v31, %v21056_v22  ;;  %vm21077_vm1 = vmmov %vm20890_vm0 }
 0x7c8   :  { %v9322_v34 = vmax.f32 %v9194_v59, %v9258_v61  ;;  %v9207_v2 = vadd.f32 %v18429_v21, %v9137_v14  ;;  %v9272_v1 = vmul.f32 0.2, %v9208_v11  ;;  %v9337_v56 = vmax.f32 %v9209_v29, %v9273_v23  ;;  %v21062_v29 = vld [vmem:[#allocation49_spill] sm:$0xff] }
 0x7c9   :  { %v9120_v4 = vmul.f32 %v18424_v31, %v21058_v17  ;;  %v9191_v27 = vadd.f32 %v18429_v21, %v9121_v33  ;;  %v9256_v58 = vmul.f32 0.2, %v9192_v50  ;;  %v9135_v59 = vmul.f32 %v18424_v31, %v21059_v45 }
 0x7ca   :  { %11097 = vmatpush3.xpose.msk.msra.mxu1 %vm21051_vm8, %v9324_v13  ;;  %v9321_v13 = vmax.f32 %v9193_v18, %v9257_v20  ;;  %v9206_v0 = vadd.f32 %v18429_v21, %v9136_v48  ;;  %v9336_v36 = vmax.f32 %v9208_v11, %v9272_v1  ;;  %v9119_v61 = vmul.f32 %v18424_v31, %v21062_v29  ;;  %v21066_v11 = vld [vmem:[#allocation47_spill] sm:$0xff]  ;;  %vm21080_vm8 = vmmov %vm20890_vm0 }
 0x7cb   :  { %11098 = vmatprep.subr.msk.mxu1 %vm21052_vm15, %v9339_v37  ;;  %v9271_v37 = vmul.f32 0.2, %v9207_v2  ;;  %v9255_v14 = vmul.f32 0.2, %v9191_v27  ;;  %v9320_v23 = vmax.f32 %v9192_v50, %v9256_v58  ;;  %v9205_v7 = vadd.f32 %v18429_v21, %v9135_v59  ;;  %vm21081_vm15 = vmmov %vm20890_vm0 }
 0x7cc   :  { %v9270_v33 = vmul.f32 0.2, %v9206_v0  ;;  %v9189_v22 = vadd.f32 %v18429_v21, %v9119_v61 }
 0x7cd   :  { %v9335_v20 = vmax.f32 %v9207_v2, %v9271_v37  ;;  %v9319_v1 = vmax.f32 %v9191_v27, %v9255_v14  ;;  %v21070_v2 = vld [vmem:[#allocation100_spill] sm:$0xff] }
 0x7ce   :  { %11099 = vmatpush3.xpose.msk.msra.mxu1 %vm21053_vm5, %v9323_v8  ;;  %v9190_v8 = vadd.f32 %v18429_v21, %v9120_v4  ;;  %v9269_v4 = vmul.f32 0.2, %v9205_v7  ;;  %v9334_v58 = vmax.f32 %v9206_v0, %v9270_v33  ;;  %v9253_v59 = vmul.f32 0.2, %v9189_v22  ;;  %v21074_v0 = vld [vmem:[#allocation99_spill] sm:$0xff]  ;;  %vm21084_vm5 = vmmov %vm20890_vm0 }
 0x7cf   :  { %11100 = vmatprep.subr.msk.mxu1 %vm21054_vm3, %v9338_v60  ;;  %v21063_v60 = vld [vmem:[#allocation60_spill] sm:$0xff]  ;;  %vm21085_vm3 = vmmov %vm20890_vm0 }
 0x7d0   :  { %v9134_v18 = vmul.f32 %v18424_v31, %v21063_v60  ;;  %v9254_v48 = vmul.f32 0.2, %v9190_v8  ;;  %v9333_v14 = vmax.f32 %v9205_v7, %v9269_v4  ;;  %v9317_v33 = vmax.f32 %v9189_v22, %v9253_v59  ;;  %v21078_v7 = vld [vmem:[#allocation96_spill] sm:$0xff] }
 0x7d2   :  { %11101 = vmatpush3.xpose.msk.msra.mxu1 %vm21057_vm14, %v9322_v34  ;;  %v9118_v34 = vmul.f32 %v18424_v31, %v21066_v11  ;;  %v9204_v17 = vadd.f32 %v18429_v21, %v9134_v18  ;;  %v9318_v37 = vmax.f32 %v9190_v8, %v9254_v48  ;;  %vm21088_vm14 = vmmov %vm20890_vm0 }
 0x7d3   :  { %11102 = vmatprep.subr.msk.mxu1 %vm20890_vm0, %v9337_v56  ;;  %v21067_v56 = vld [vmem:[#allocation55_spill] sm:$0xff] }
 0x7d4   :  { %v9133_v50 = vmul.f32 %v18424_v31, %v21067_v56  ;;  %v9188_v45 = vadd.f32 %v18429_v21, %v9118_v34  ;;  %v9268_v61 = vmul.f32 0.2, %v9204_v17 }
 0x7d6   :  { %11103 = vmatpush3.xpose.msk.msra.mxu1 %vm21060_vm9, %v9321_v13  ;;  %v9117_v13 = vmul.f32 %v18424_v31, %v21070_v2  ;;  %v9203_v29 = vadd.f32 %v18429_v21, %v9133_v50  ;;  %v9252_v18 = vmul.f32 0.2, %v9188_v45  ;;  %v9332_v48 = vmax.f32 %v9204_v17, %v9268_v61  ;;  %v21082_v17 = vld [vmem:[#allocation95_spill] sm:$0xff]  ;;  %vm21090_vm9 = vmmov %vm20890_vm0 }
 0x7d7   :  { %11104 = vmatprep.subr.msk.mxu1 %vm21061_vm12, %v9336_v36  ;;  %v21071_v36 = vld [vmem:[#allocation58_spill] sm:$0xff]  ;;  %vm21091_vm12 = vmmov %vm20890_vm0 }
 0x7d8   :  { %v9132_v27 = vmul.f32 %v18424_v31, %v21071_v36  ;;  %v9187_v60 = vadd.f32 %v18429_v21, %v9117_v13  ;;  %v9267_v34 = vmul.f32 0.2, %v9203_v29  ;;  %v9316_v4 = vmax.f32 %v9188_v45, %v9252_v18 }
 0x7da   :  { %11105 = vmatpush3.xpose.msk.msra.mxu1 %vm21064_vm13, %v9320_v23  ;;  %v9116_v23 = vmul.f32 %v18424_v31, %v21074_v0  ;;  %v9202_v11 = vadd.f32 %v18429_v21, %v9132_v27  ;;  %v9251_v50 = vmul.f32 0.2, %v9187_v60  ;;  %v9331_v59 = vmax.f32 %v9203_v29, %v9267_v34  ;;  %v21086_v29 = vld [vmem:[#allocation46_spill] sm:$0xff]  ;;  %vm21092_vm13 = vmmov %vm20890_vm0 }
 0x7db   :  { %11106 = vmatprep.subr.msk.mxu1 %vm21065_vm6, %v9335_v20  ;;  %v21075_v20 = vld [vmem:[#allocation56_spill] sm:$0xff]  ;;  %vm21093_vm6 = vmmov %vm20890_vm0 }
 0x7dc   :  { %v9131_v8 = vmul.f32 %v18424_v31, %v21075_v20  ;;  %v9186_v56 = vadd.f32 %v18429_v21, %v9116_v23  ;;  %v9266_v13 = vmul.f32 0.2, %v9202_v11  ;;  %v9315_v61 = vmax.f32 %v9187_v60, %v9251_v50 }
 0x7de   :  { %11107 = vmatpush3.xpose.msk.msra.mxu1 %vm21068_vm2, %v9319_v1  ;;  %v9115_v1 = vmul.f32 %v18424_v31, %v21078_v7  ;;  %v9201_v2 = vadd.f32 %v18429_v21, %v9131_v8  ;;  %v9250_v27 = vmul.f32 0.2, %v9186_v56  ;;  %v9330_v18 = vmax.f32 %v9202_v11, %v9266_v13  ;;  %v21089_v11 = vld [vmem:[#allocation39_spill] sm:$0xff]  ;;  %vm21094_vm2 = vmmov %vm20890_vm0 }
 0x7df   :  { %11108 = vmatprep.subr.msk.mxu1 %vm21069_vm11, %v9334_v58  ;;  %v21079_v58 = vld [vmem:[#allocation54_spill] sm:$0xff]  ;;  %vm21095_vm11 = vmmov %vm20890_vm0 }
 0x7e0   :  { %v9130_v22 = vmul.f32 %v18424_v31, %v21079_v58  ;;  %v9185_v36 = vadd.f32 %v18429_v21, %v9115_v1  ;;  %v9265_v23 = vmul.f32 0.2, %v9201_v2  ;;  %v9314_v34 = vmax.f32 %v9186_v56, %v9250_v27 }
 0x7e2   :  { %11109 = vmatpush3.xpose.msk.msra.mxu1 %vm21072_vm10, %v9318_v37  ;;  %v9114_v37 = vmul.f32 %v18424_v31, %v21082_v17  ;;  %v9200_v0 = vadd.f32 %v18429_v21, %v9130_v22  ;;  %v9249_v8 = vmul.f32 0.2, %v9185_v36  ;;  %v9329_v50 = vmax.f32 %v9201_v2, %v9265_v23  ;;  %vm21096_vm10 = vmmov %vm20890_vm0 }
 0x7e3   :  { %11110 = vmatprep.subr.msk.mxu1 %vm21073_vm4, %v9333_v14  ;;  %v21083_v14 = vld [vmem:[#allocation51_spill] sm:$0xff]  ;;  %vm21097_vm4 = vmmov %vm20890_vm0 }
 0x7e4   :  { %v9129_v45 = vmul.f32 %v18424_v31, %v21083_v14  ;;  %v9184_v20 = vadd.f32 %v18429_v21, %v9114_v37  ;;  %v9264_v1 = vmul.f32 0.2, %v9200_v0  ;;  %v9313_v13 = vmax.f32 %v9185_v36, %v9249_v8 }
 0x7e5   :  { %v9307_v8 = vmul.f32 0.2, %v18586_v10 }
 0x7e6   :  { %11111 = vmatpush3.xpose.msk.msra.mxu1 %vm21076_vm7, %v9317_v33  ;;  %v9113_v33 = vmul.f32 %v18424_v31, %v21086_v29  ;;  %v9199_v7 = vadd.f32 %v18429_v21, %v9129_v45  ;;  %v9248_v22 = vmul.f32 0.2, %v9184_v20  ;;  %v9328_v17 = vmax.f32 %v9200_v0, %v9264_v1  ;;  %vm21098_vm7 = vmmov %vm20890_vm0 }
 0x7e7   :  { %11112 = vmatprep.subr.msk.mxu1 %vm21077_vm1, %v9332_v48  ;;  %v21087_v48 = vld [vmem:[#allocation53_spill] sm:$0xff]  ;;  %v9309_v45 = vmul.f32 0.2, %v18434_v9  ;;  %v9293_v0 = vmul.f32 0.2, %v18544_v51  ;;  %vm21099_vm1 = vmmov %vm20890_vm0 }
 0x7e8   :  { %v9128_v60 = vmul.f32 %v18424_v31, %v21087_v48  ;;  %v9183_v58 = vadd.f32 %v18429_v21, %v9113_v33  ;;  %v9312_v27 = vmax.f32 %v9184_v20, %v9248_v22  ;;  %v9292_v33 = vmul.f32 0.2, %v18541_v42 }
 0x7e9   :  { %v9373_v29 = vmax.f32 %v18434_v9, %v9309_v45  ;;  %v9357_v20 = vmax.f32 %v18544_v51, %v9293_v0  ;;  %v9291_v9 = vmul.f32 0.2, %v18538_v46  ;;  %v9306_v51 = vmul.f32 0.2, %v18583_v3 }
 0x7ea   :  { %11113 = vmatpush3.xpose.msk.msra.mxu1 %vm21080_vm8, %v9316_v4  ;;  %v9112_v4 = vmul.f32 %v18424_v31, %v21089_v11  ;;  %v9198_v56 = vadd.f32 %v18429_v21, %v9128_v60  ;;  %v9247_v37 = vmul.f32 0.2, %v9183_v58  ;;  %vm21100_vm8 = vmmov %vm20890_vm0  ;;  %v9356_v48 = vmax.f32 %v18541_v42, %v9292_v33 }
 0x7eb   :  { %11114 = vmatprep.subr.msk.mxu1 %vm21081_vm15, %v9331_v59  ;;  %v9263_v59 = vmul.f32 0.2, %v9199_v7  ;;  %vm21101_vm15 = vmmov %vm20890_vm0  ;;  %v9371_v60 = vmax.f32 %v18586_v10, %v9307_v8  ;;  %v9305_v1 = vmul.f32 0.2, %v18580_v19  ;;  %v9289_v42 = vmul.f32 0.2, %v18532_v38  ;;  %v9716_v8 = vpop.permute.xlu0 %9715 }
 0x7ec   :  { %v9182_v2 = vadd.f32 %v18429_v21, %v9112_v4  ;;  %v9311_v36 = vmax.f32 %v9183_v58, %v9247_v37  ;;  %v9304_v11 = vmul.f32 0.2, %v18577_v49  ;;  %v9303_v58 = vmul.f32 0.2, %v18574_v30 }
 0x7ed   :  { %v9327_v14 = vmax.f32 %v9199_v7, %v9263_v59  ;;  %v9355_v7 = vmax.f32 %v18538_v46, %v9291_v9  ;;  %v9369_v4 = vmax.f32 %v18580_v19, %v9305_v1  ;;  %v9288_v46 = vmul.f32 0.2, %v18529_v54 }
 0x7ee   :  { %11115 = vmatpush3.xpose.msk.msra.mxu1 %vm21084_vm5, %v9315_v61  ;;  %v9262_v61 = vmul.f32 0.2, %v9198_v56  ;;  %v9246_v31 = vmul.f32 0.2, %v9182_v2  ;;  %vm21102_vm5 = vmmov %vm20890_vm0  ;;  %v9368_v22 = vmax.f32 %v18577_v49, %v9304_v11  ;;  %v9301_v59 = vmul.f32 0.2, %v18568_v15 }
 0x7ef   :  { %11116 = vmatprep.subr.msk.mxu1 %vm21085_vm3, %v9330_v18  ;;  %v9308_v18 = vmul.f32 0.2, %v18589_v26  ;;  %vm21103_vm3 = vmmov %vm20890_vm0  ;;  %v9352_v19 = vmax.f32 %v18529_v54, %v9288_v46  ;;  %v9285_v54 = vmul.f32 0.2, %v18520_v28  ;;  %v9721_v9 = vrot.slane %v9716_v8, %v21047_v16  ;;  %v21130_v11 = vld [vmem:[#allocation30_spill] sm:$0xff] }
 0x7f0   :  { %v9326_v23 = vmax.f32 %v9198_v56, %v9262_v61  ;;  %v9310_v21 = vmax.f32 %v9182_v2, %v9246_v31  ;;  %v9367_v56 = vmax.f32 %v18574_v30, %v9303_v58  ;;  %v9300_v2 = vmul.f32 0.2, %v18565_v25 }
 0x7f1   :  { %v9365_v37 = vmax.f32 %v18568_v15, %v9301_v59 }
 0x7f2   :  { %11117 = vmatpush3.xpose.msk.msra.mxu1 %vm21088_vm14, %v9314_v34  ;;  %v9372_v34 = vmax.f32 %v18589_v26, %v9308_v18  ;;  %v9290_v26 = vmul.f32 0.2, %v18535_v24  ;;  %vm21104_vm14 = vmmov %vm20890_vm0  ;;  %v9364_v61 = vmax.f32 %v18565_v25, %v9300_v2 }
 0x7f3   :  { %11118 = vmatprep.subr.msk.mxu1 %vm20890_vm0, %v9329_v50  ;;  %v9370_v50 = vmax.f32 %v18583_v3, %v9306_v51  ;;  %v9353_v3 = vmax.f32 %v18532_v38, %v9289_v42  ;;  %v9286_v38 = vmul.f32 0.2, %v18523_v41 }
 0x7f4   :  { %v9354_v10 = vmax.f32 %v18535_v24, %v9290_v26  ;;  %v9287_v24 = vmul.f32 0.2, %v18526_v52 }
 0x7f5   :  { %v9350_v30 = vmax.f32 %v18523_v41, %v9286_v38  ;;  %v9283_v41 = vmul.f32 0.2, %v18514_v43 }
 0x7f6   :  { %11119 = vmatpush3.xpose.msk.msra.mxu1 %vm21090_vm9, %v9313_v13  ;;  %vm21105_vm9 = vmmov %vm20890_vm0  ;;  %v9302_v13 = vmul.f32 0.2, %v18571_v53  ;;  %v9351_v49 = vmax.f32 %v18526_v52, %v9287_v24  ;;  %v9284_v52 = vmul.f32 0.2, %v18517_v47  ;;  %v21131_v24 = vlaneseq }
 0x7f7   :  { %11120 = vmatprep.subr.msk.mxu1 %vm21091_vm12, %v9328_v17  ;;  %vm21106_vm12 = vmmov %vm20890_vm0  ;;  %v9347_v25 = vmax.f32 %v18514_v43, %v9283_v41  ;;  %v9280_v43 = vmul.f32 0.2, %v18505_v63 }
 0x7f8   :  { %v9366_v17 = vmax.f32 %v18571_v53, %v9302_v13  ;;  %v9349_v53 = vmax.f32 %v18520_v28, %v9285_v54  ;;  %v9348_v15 = vmax.f32 %v18517_v47, %v9284_v52  ;;  %v9282_v28 = vmul.f32 0.2, %v18511_v62 }
 0x7f9   :  { %v9281_v47 = vmul.f32 0.2, %v18508_v5 }
 0x7fa   :  { %11121 = vmatpush3.xpose.msk.msra.mxu1 %vm21092_vm13, %v9312_v27  ;;  %vm21107_vm13 = vmmov %vm20890_vm0  ;;  %v9299_v27 = vmul.f32 0.2, %v18562_v55 }
 0x7fb   :  { %11122 = vmatprep.subr.msk.mxu1 %vm21093_vm6, %v9327_v14  ;;  %vm21108_vm6 = vmmov %vm20890_vm0  ;;  %v9298_v14 = vmul.f32 0.2, %v18559_v32 }
 0x7fc   :  { %v9363_v31 = vmax.f32 %v18562_v55, %v9299_v27  ;;  %v9346_v55 = vmax.f32 %v18511_v62, %v9282_v28  ;;  %v9279_v62 = vmul.f32 0.2, %v18502_v57 }
 0x7fd   :  { %v9362_v45 = vmax.f32 %v18559_v32, %v9298_v14  ;;  %v9345_v32 = vmax.f32 %v18508_v5, %v9281_v47  ;;  %v9278_v5 = vmul.f32 0.2, %v18499_v6 }
 0x7fe   :  { %11123 = vmatpush3.xpose.msk.msra.mxu1 %vm21094_vm2, %v9311_v36  ;;  %vm21109_vm2 = vmmov %vm20890_vm0  ;;  %v9297_v36 = vmul.f32 0.2, %v18556_v40 }
 0x7ff   :  { %11124 = vmatprep.subr.msk.mxu1 %vm21095_vm11, %v9326_v23  ;;  %vm21110_vm11 = vmmov %vm20890_vm0  ;;  %v9296_v23 = vmul.f32 0.2, %v18553_v39 }
 0x800   :  { %v9361_v0 = vmax.f32 %v18556_v40, %v9297_v36  ;;  %v9344_v40 = vmax.f32 %v18505_v63, %v9280_v43  ;;  %v9342_v63 = vmax.f32 %v18499_v6, %v9278_v5  ;;  %v11358_v6 = vmov 1966171168  }
 0x801   :  { %v9360_v18 = vmax.f32 %v18553_v39, %v9296_v23  ;;  %v9343_v39 = vmax.f32 %v18502_v57, %v9279_v62 }
 0x802   :  { %11125 = vmatpush3.xpose.msk.msra.mxu1 %vm21096_vm10, %v9310_v21  ;;  %vm21111_vm10 = vmmov %vm20890_vm0  ;;  %v9295_v21 = vmul.f32 0.2, %v18550_v35 }
 0x803   :  { %11128 = vmatprep.subr.msk.mxu1 %vm21097_vm4, %v9373_v29  ;;  %vm21112_vm4 = vmmov %vm20890_vm0  ;;  %v9294_v29 = vmul.f32 0.2, %v18547_v44 }
 0x804   :  { %v9359_v33 = vmax.f32 %v18550_v35, %v9295_v21 }
 0x805   :  { %11127 = vmatmul.mubr.msk.f32.vlgmr.msra.gmra.mxu1 %vm21098_vm7, %v18416_v12  ;;  %vm21113_vm7 = vmmov %vm20890_vm0 }
 0x806   :  { %11129 = vmatpush3.xpose.msk.msra.mxu1 %vm21099_vm1, %v9357_v20  ;;  %11160 = vmatprep.mubr.msk.f32.mxu1 %vm21100_vm8, %v18416_v12  ;;  %vm21114_vm1 = vmmov %vm20890_vm0  ;;  %v9358_v20 = vmax.f32 %v18547_v44, %v9294_v29 }
 0x807   :  { %11130 = vmatprep.subr.msk.mxu1 %vm21101_vm15, %v9372_v34  ;;  %vm21115_vm8 = vmmov %vm20890_vm0 }
 0x808   :  { %vm21116_vm15 = vmmov %vm20890_vm0 }
 0x80a   :  { %11131 = vmatpush3.xpose.msk.msra.mxu1 %vm21102_vm5, %v9356_v48  ;;  %vm21117_vm5 = vmmov %vm20890_vm0 }
 0x80b   :  { %11132 = vmatprep.subr.msk.mxu1 %vm21103_vm3, %v9371_v60  ;;  %vm21118_vm3 = vmmov %vm20890_vm0 }
 0x80e   :  { %11133 = vmatpush3.xpose.msk.msra.mxu1 %vm21104_vm14, %v9355_v7  ;;  %vm21119_vm14 = vmmov %vm20890_vm0  ;;  %v9737_v7 = vunpack.c.l.s4 %v11358_v6 }
 0x80f   :  { %11134 = vmatprep.subr.msk.mxu1 %vm20890_vm0, %v9370_v50 }
 0x810   :  { %v9738_v1 = vunpack.c.0.s8 %v9737_v7 }
 0x812   :  { %11135 = vmatpush3.xpose.msk.msra.mxu1 %vm21105_vm9, %v9354_v10  ;;  %vm21120_vm9 = vmmov %vm20890_vm0 }
 0x813   :  { %11136 = vmatprep.subr.msk.mxu1 %vm21106_vm12, %v9369_v4  ;;  %vm21121_vm12 = vmmov %vm20890_vm0  ;;  %v9741_v4 = vsub.s32 %v9738_v1, %v21130_v11 }
 0x816   :  { %11137 = vmatpush3.xpose.msk.msra.mxu1 %vm21107_vm13, %v9353_v3  ;;  %vm21122_vm13 = vmmov %vm20890_vm0 }
 0x817   :  { %11138 = vmatprep.subr.msk.mxu1 %vm21108_vm6, %v9368_v22  ;;  %vm21123_vm6 = vmmov %vm20890_vm0 }
 0x81a   :  { %11139 = vmatpush3.xpose.msk.msra.mxu1 %vm21109_vm2, %v9352_v19  ;;  %vm21124_vm2 = vmmov %vm20890_vm0 }
 0x81b   :  { %11140 = vmatprep.subr.msk.mxu1 %vm21110_vm11, %v9367_v56  ;;  %vm21125_vm11 = vmmov %vm20890_vm0 }
 0x81e   :  { %11141 = vmatpush3.xpose.msk.msra.mxu1 %vm21111_vm10, %v9351_v49  ;;  %vm21126_vm10 = vmmov %vm20890_vm0 }
 0x81f   :  { %11142 = vmatprep.subr.msk.mxu1 %vm21112_vm4, %v9366_v17  ;;  %vm21127_vm4 = vmmov %vm20890_vm0 }
 0x822   :  { %11143 = vmatpush3.xpose.msk.msra.mxu1 %vm21113_vm7, %v9350_v30  ;;  %vm21128_vm7 = vmmov %vm20890_vm0 }
 0x823   :  { %11144 = vmatprep.subr.msk.mxu1 %vm21114_vm1, %v9365_v37  ;;  %vm21129_vm1 = vmmov %vm20890_vm0 }
 0x826   :  { %11145 = vmatpush3.xpose.msk.msra.mxu1 %vm21115_vm8, %v9349_v53  ;;  %vm9761_vm8 = vcmp.lt.s32.totalorder %v21131_v24, 512 }
 0x827   :  { %11146 = vmatprep.subr.msk.mxu1 %vm21116_vm15, %v9364_v61 }
 0x82a   :  { %11147 = vmatpush3.xpose.msk.msra.mxu1 %vm21117_vm5, %v9348_v15 }
 0x82b   :  { %11148 = vmatprep.subr.msk.mxu1 %vm21118_vm3, %v9363_v31 }
 0x82e   :  { %11149 = vmatpush3.xpose.msk.msra.mxu1 %vm21119_vm14, %v9347_v25 }
 0x82f   :  { %11150 = vmatprep.subr.msk.mxu1 %vm20890_vm0, %v9362_v45 }
 0x832   :  { %11151 = vmatpush3.xpose.msk.msra.mxu1 %vm21120_vm9, %v9346_v55 }
 0x833   :  { %11152 = vmatprep.subr.msk.mxu1 %vm21121_vm12, %v9361_v0 }
 0x836   :  { %11153 = vmatpush3.xpose.msk.msra.mxu1 %vm21122_vm13, %v9345_v32 }
 0x837   :  { %11154 = vmatprep.subr.msk.mxu1 %vm21123_vm6, %v9360_v18 }
 0x83a   :  { %11155 = vmatpush3.xpose.msk.msra.mxu1 %vm21124_vm2, %v9344_v40 }
 0x83b   :  { %11156 = vmatprep.subr.msk.mxu1 %vm21125_vm11, %v9359_v33 }
 0x83e   :  { %11157 = vmatpush3.xpose.msk.msra.mxu1 %vm21126_vm10, %v9343_v39 }
 0x83f   :  { %11158 = vmatprep.subr.msk.mxu1 %vm21127_vm4, %v9358_v20 }
 0x842   :  { %11159 = vmatpush3.xpose.msk.msra.mxu1 %vm21128_vm7, %v9342_v63 }
 0x845   :  { %11161 = vmatmul.mubr.msk.f32.vlgmr.msra.gmra.mxu1 %vm21129_vm1, %v18416_v12 }
 0x8c5   :  { %v9636_v35 = vpop.f32.mrf.mxu1 }
 0x8c6   :  { %v9722_v57 = vadd.f32 %v9721_v9, %v9636_v35 }
 0x8c7   :  { %v9638_v34 = vpop.f32.mrf.mxu1 }
 0x8c8   :  { %v9723_v48 = vadd.f32 %v9721_v9, %v9638_v34 }
 0x8ca   :  { %11272 = vtanh.f32 %v9723_v48 }
 0x8cb   :  { %11274 = vtanh.f32 %v9722_v57 }
 0x8d7   :  { %v11273_v50 = vpop.eup %11272 }
 0x8d8   :  { %v11275_v12 = vpop.eup %11274 }
 0x8d9   :  { %v9734_v10 = vcombine.low %v11275_v12, %v11273_v50 }
 0x8db   :  { %v9742_v3 = vrot.slane %v9734_v10, %v9741_v4 }
 0x905   :  { %v9707_v51 = vpop.f32.mrf.mxu1 }
 0x906   :  { %v9724_v44 = vadd.f32 %v9721_v9, %v9707_v51 }
 0x907   :  { %v9709_v60 = vpop.f32.mrf.mxu1 }
 0x908   :  { %v9725_v26 = vadd.f32 %v9721_v9, %v9709_v60  ;;  %11276 = vtanh.f32 %v9724_v44 }
 0x90a   :  { %11278 = vtanh.f32 %v9725_v26 }
 0x915   :  { %v11277_v42 = vpop.eup %11276 }
 0x917   :  { %v11279_v16 = vpop.eup %11278 }
 0x918   :  { %v9735_v46 = vcombine.low %v11277_v42, %v11279_v16 }
 0x91a   :  { %v9749_v58 = vrot.slane %v9735_v46, %v9741_v4 }
 0x91c   :  { %v9750_v22 = vcombine.low %v9742_v3, %v9749_v58 }
 0x91e   :  { %v9757_v19 = vrot.slane %v9750_v22, %v9741_v4 }
 0x920   :  { %9763 = vst.msk [vmem:[%s18836_s9] sm:$0xf] %vm9761_vm8, %v9757_v19 }

</bundles_post_ra>
